<compile_context>
chip_gen: v5e
topology: v5e:2x2
jax: 0.10.0
libtpu: 0.0.40
codegen_flags: <defaults>
</compile_context>

<pallas_src>
import functools

import jax
import jax.numpy as jnp
from jax.experimental import pallas as pl
from jax.experimental.pallas import tpu as pltpu


# ---------------------------------------------------------------------------
# Fused kernel.
# Grid = (B_pad // TB, N_tiles); batch axis "parallel", N axis "arbitrary".
# Per step: per-point MLP (C -> 64 -> 128 -> 1024) on TB*tile_n rows, running
# global max-pool into (TB, 1024) scratch, and on the last N tile the
# classification head (1024 -> 512 -> 256 -> NC) + LogSoftmax.
# ---------------------------------------------------------------------------
def _fused_pointnet_kernel(x_ref, w1_ref, b1_ref, w2_ref, b2_ref, w3_ref,
                           b3_ref, w4_ref, b4_ref, w5_ref, b5_ref, w6_ref,
                           b6_ref, out_ref, acc_ref, *, tb, tile_n, c_pad,
                           n_valid, needs_mask, bf16_epilogue):
    nt = pl.program_id(1)
    last = pl.num_programs(1) - 1

    # Reset the per-example running max on the first N tile.
    @pl.when(nt == 0)
    def _():
        acc_ref[...] = jnp.full_like(acc_ref, -jnp.inf)

    rows = tb * tile_n
    x = x_ref[...].reshape(rows, c_pad)              # (R, C_pad) f32

    # ---- layer 1 (K tiny, zero-padded to 8): one small MXU matmul ----
    h = jnp.dot(x, w1_ref[...],
                preferred_element_type=jnp.float32) + b1_ref[...]
    h = jnp.maximum(h, 0.0)                          # conv1 + bn + relu

    # ---- layers 2/3: bf16 operands, f32 MXU accumulation ----
    h = jnp.dot(h.astype(jnp.bfloat16), w2_ref[...],
                preferred_element_type=jnp.float32) + b2_ref[...]
    h = jnp.maximum(h, 0.0)                          # conv2 + bn + relu
    h = jnp.dot(h.astype(jnp.bfloat16), w3_ref[...],
                preferred_element_type=jnp.float32) + b3_ref[...]
    if bf16_epilogue:                                # halve VPU/VMEM epilogue cost
        h = h.astype(jnp.bfloat16)
    h = jnp.maximum(h, 0.0)                          # conv3 + bn + relu
    h = h.reshape(tb, tile_n, 1024)                  # (TB, tile_n, 1024)

    def _update(hv):
        acc_ref[...] = jnp.maximum(
            acc_ref[...], jnp.max(hv, axis=1).astype(jnp.float32))

    # ---- AdaptiveMaxPool1d(1): running max across N tiles ----
    if needs_mask:
        # Only the last N tile can contain zero-padded points; only it pays for
        # the iota + select (padded rows could otherwise win via the folded-BN
        # bias after ReLU).
        @pl.when(nt == last)
        def _():
            pt = nt * tile_n + jax.lax.broadcasted_iota(
                jnp.int32, (tb, tile_n, 1), 1)
            _update(jnp.where(pt < n_valid, h, -jnp.inf))

        @pl.when(nt != last)
        def _():
            _update(h)
    else:
        _update(h)

    # ---- fused classification head on the final N tile (M = TB) ----
    @pl.when(nt == last)
    def _():
        f = acc_ref[...]                                       # (TB, 1024) f32
        g = jnp.dot(f, w4_ref[...],
                    preferred_element_type=jnp.float32) + b4_ref[...]
        g = jnp.maximum(g, 0.0)                                # fc1+bn+relu (dropout=id)
        g = jnp.dot(g, w5_ref[...],
                    preferred_element_type=jnp.float32) + b5_ref[...]
        g = jnp.maximum(g, 0.0)                                # fc2+bn+relu (dropout=id)
        logits = jnp.dot(g, w6_ref[...],
                         preferred_element_type=jnp.float32) + b6_ref[...]
        m = jnp.max(logits, axis=-1, keepdims=True)
        lse = jnp.log(jnp.sum(jnp.exp(logits - m), axis=-1, keepdims=True)) + m
        out_ref[...] = logits - lse                            # LogSoftmax(dim=1)


# ---------------------------------------------------------------------------
# Wrapper
# ---------------------------------------------------------------------------
def _round_up(v, m):
    return ((v + m - 1) // m) * m


def _tpu_generation():
    try:
        kind = jax.devices()[0].device_kind.lower()
    except Exception:
        return 6
    if "v5" in kind:
        return 5
    if "v7" in kind:
        return 7
    return 6


def pointnet_forward(x, params, *, batch_block=8, rows_per_step=None,
                     bf16_epilogue=None, vmem_limit_bytes=None):
    """x: (B, N, C) float32.  params: dict of folded (conv/linear + BN) weights."""
    B, N, C = x.shape
    f32, bf16 = jnp.float32, jnp.bfloat16

    gen = _tpu_generation()
    if rows_per_step is None:
        # v7x: 64 MiB VMEM/TC -> smaller budget; v5e/v6e: 128 MiB.
        rows_per_step = 4096 if gen >= 7 else 6144
    if bf16_epilogue is None:
        bf16_epilogue = gen != 5      # v5e VPU has no bf16 VALU; stay f32 there
    if vmem_limit_bytes is None:
        vmem_limit_bytes = (48 if gen >= 7 else 80) * 1024 * 1024
    rows_per_step = max(8, rows_per_step)

    # ---- batch blocking ----
    if B <= batch_block:
        TB = B                                       # single batch block
    else:
        TB = max(8, (min(batch_block, B) // 8) * 8)  # sublane-aligned block
    B_pad = _round_up(B, TB)

    # ---- N tiling: sublane-aligned, bounded VMEM ----
    n_aligned = _round_up(N, 8)
    tile_n = min(n_aligned, max(8, ((rows_per_step // TB) // 8) * 8))
    n_tiles = _round_up(n_aligned, tile_n) // tile_n
    n_pad = n_tiles * tile_n
    needs_mask = n_pad != N

    # ---- channel padding (K >= 8 for the layer-1 MXU matmul) ----
    C_pad = max(8, C)

    if (B_pad != B) or (n_pad != N) or (C_pad != C):
        x = jnp.pad(x, ((0, B_pad - B), (0, n_pad - N), (0, C_pad - C)))

    # ---- folded weights ----
    w1 = params["w1"].astype(f32)                                    # (C, 64)
    if w1.shape[0] < C_pad:
        w1 = jnp.pad(w1, ((0, C_pad - w1.shape[0]), (0, 0)))
    b1 = params["b1"].astype(f32)                                    # (1, 64)
    w2, b2 = params["w2"].astype(bf16), params["b2"].astype(f32)     # (64, 128)
    w3, b3 = params["w3"].astype(bf16), params["b3"].astype(f32)     # (128, 1024)
    w4, b4 = params["w4"].astype(f32), params["b4"].astype(f32)      # (1024, 512)
    w5, b5 = params["w5"].astype(f32), params["b5"].astype(f32)      # (512, 256)

    # fc3: pad classes to a lane-dense multiple of 128; padded logits get a very
    # negative bias so they never affect max / logsumexp; sliced off below.
    w6_raw, b6_raw = params["w6"], params["b6"]
    nc = w6_raw.shape[1]
    nc_pad = _round_up(nc, 128)
    w6 = jnp.zeros((w6_raw.shape[0], nc_pad), f32).at[:, :nc].set(
        w6_raw.astype(f32))
    b6 = jnp.full((1, nc_pad), -1e9, f32).at[:, :nc].set(b6_raw.astype(f32))

    const = lambda shape: pl.BlockSpec(shape, lambda b, nt: (0,) * len(shape))

    kernel = functools.partial(
        _fused_pointnet_kernel, tb=TB, tile_n=tile_n, c_pad=C_pad, n_valid=N,
        needs_mask=needs_mask, bf16_epilogue=bf16_epilogue)

    out = pl.pallas_call(
        kernel,
        out_shape=jax.ShapeDtypeStruct((B_pad, nc_pad), f32),
        grid_spec=pltpu.PrefetchScalarGridSpec(
            num_scalar_prefetch=0,
            grid=(B_pad // TB, n_tiles),
            in_specs=[
                pl.BlockSpec((TB, tile_n, C_pad), lambda b, nt: (b, nt, 0)),
                const(w1.shape), const(b1.shape),
                const(w2.shape), const(b2.shape),
                const(w3.shape), const(b3.shape),
                const(w4.shape), const(b4.shape),
                const(w5.shape), const(b5.shape),
                const(w6.shape), const(b6.shape),
            ],
            out_specs=pl.BlockSpec((TB, nc_pad), lambda b, nt: (b, 0)),
            scratch_shapes=[pltpu.VMEM((TB, 1024), f32)],   # running max pool
        ),
        compiler_params=pltpu.CompilerParams(
            dimension_semantics=("parallel", "arbitrary"),
            vmem_limit_bytes=vmem_limit_bytes,
        ),
    )(x, w1, b1, w2, b2, w3, b3, w4, b4, w5, b5, w6, b6)

    return out[:B, :nc]


# ---------------------------------------------------------------------------
# Pure-JAX reference (f32) for correctness checking.
# ---------------------------------------------------------------------------
def pointnet_reference(x, params):
    h = jnp.maximum(x @ params["w1"] + params["b1"], 0.0)
    h = jnp.maximum(h @ params["w2"] + params["b2"], 0.0)
    h = jnp.maximum(h @ params["w3"] + params["b3"], 0.0)
    f = jnp.max(h, axis=1)                                   # global max pool
    g = jnp.maximum(f @ params["w4"] + params["b4"], 0.0)
    g = jnp.maximum(g @ params["w5"] + params["b5"], 0.0)
    logits = g @ params["w6"] + params["b6"]
    return jax.nn.log_softmax(logits, axis=-1)


# ---------------------------------------------------------------------------
# Deterministic synthetic parameter construction (eval-mode BN folded in).
# ---------------------------------------------------------------------------
def _fold_bn(W_oi, b_o, gamma, beta, mean, var, eps=1e-5):
    """W_oi: (out, in) torch-style weight. Returns (in, out) weight and (1, out) bias."""
    scale = gamma / jnp.sqrt(var + eps)
    W_eff = (W_oi * scale[:, None]).T
    b_eff = (b_o - mean) * scale + beta
    return W_eff.astype(jnp.float32), b_eff.reshape(1, -1).astype(jnp.float32)


def make_params(key, num_channel=3, num_classes=10):
    dims = [
        ("w1", "b1", num_channel, 64, True),
        ("w2", "b2", 64, 128, True),
        ("w3", "b3", 128, 1024, True),
        ("w4", "b4", 1024, 512, True),
        ("w5", "b5", 512, 256, True),
        ("w6", "b6", 256, num_classes, False),   # fc3: no BN
    ]
    params = {}
    for wname, bname, cin, cout, has_bn in dims:
        key, kw, kb, kg, kbe, km, kv = jax.random.split(key, 7)
        W = jax.random.normal(kw, (cout, cin), jnp.float32) * (1.0 / jnp.sqrt(cin))
        b = jax.random.normal(kb, (cout,), jnp.float32) * 0.05
        if has_bn:
            gamma = 1.0 + 0.1 * jax.random.normal(kg, (cout,), jnp.float32)
            beta = 0.1 * jax.random.normal(kbe, (cout,), jnp.float32)
            mean = 0.1 * jax.random.normal(km, (cout,), jnp.float32)
            var = 0.5 + jnp.abs(jax.random.normal(kv, (cout,), jnp.float32))
            W_eff, b_eff = _fold_bn(W, b, gamma, beta, mean, var)
        else:
            W_eff, b_eff = W.T, b.reshape(1, -1)
        params[wname] = W_eff
        params[bname] = b_eff
    return params


if __name__ == "__main__":
    key = jax.random.PRNGKey(0)
    kx, kp, kx2 = jax.random.split(key, 3)

    B, N, C, NUM_CLASSES = 2, 200, 3, 10
    x = jax.random.normal(kx, (B, N, C), jnp.float32)
    params = make_params(kp, num_channel=C, num_classes=NUM_CLASSES)

    # Config 1: small rows_per_step forces N-tiling (tile_n=128 over N=200),
    # exercising the gated padded-row mask and the running max accumulator.
    out = jax.block_until_ready(pointnet_forward(x, params, rows_per_step=256))
    ref = pointnet_reference(x, params)
    assert out.shape == (B, NUM_CLASSES)
    assert bool(jnp.all(jnp.isfinite(out)))
    assert jnp.allclose(jnp.sum(jnp.exp(out), axis=1), 1.0, atol=1e-4)
    assert jnp.allclose(out, ref, atol=1e-1, rtol=1e-1), float(
        jnp.max(jnp.abs(out - ref)))

    # Config 2: B=10 with batch_block=8 exercises batch blocking (TB=8, padded
    # to B_pad=16, two batch blocks) and the single-N-tile path.
    B2 = 10
    x2 = jax.random.normal(kx2, (B2, N, C), jnp.float32)
    out2 = jax.block_until_ready(pointnet_forward(x2, params, batch_block=8))
    ref2 = pointnet_reference(x2, params)
    assert out2.shape == (B2, NUM_CLASSES)
    assert bool(jnp.all(jnp.isfinite(out2)))
    assert jnp.allclose(out2, ref2, atol=1e-1, rtol=1e-1), float(
        jnp.max(jnp.abs(out2 - ref2)))

    print("KERNEL_OK")
</pallas_src>

<mosaic_0001>
module attributes {stable_mosaic.version = 11 : i64} {
  func.func @_fused_pointnet_kernel(%arg0: i32, %arg1: i32, %arg2: memref<2x128x8xf32, #tpu.memory_space<vmem>>, %arg3: memref<8x64xf32, #tpu.memory_space<vmem>>, %arg4: memref<1x64xf32, #tpu.memory_space<vmem>>, %arg5: memref<64x128xbf16, #tpu.memory_space<vmem>>, %arg6: memref<1x128xf32, #tpu.memory_space<vmem>>, %arg7: memref<128x1024xbf16, #tpu.memory_space<vmem>>, %arg8: memref<1x1024xf32, #tpu.memory_space<vmem>>, %arg9: memref<1024x512xf32, #tpu.memory_space<vmem>>, %arg10: memref<1x512xf32, #tpu.memory_space<vmem>>, %arg11: memref<512x256xf32, #tpu.memory_space<vmem>>, %arg12: memref<1x256xf32, #tpu.memory_space<vmem>>, %arg13: memref<256x128xf32, #tpu.memory_space<vmem>>, %arg14: memref<1x128xf32, #tpu.memory_space<vmem>>, %arg15: memref<2x128xf32, #tpu.memory_space<vmem>>, %arg16: memref<2x1024xf32, #tpu.memory_space<vmem>>) attributes {dimension_semantics = [#tpu.dimension_semantics<parallel>, #tpu.dimension_semantics<arbitrary>], iteration_bounds = array<i64: 1, 2>, scalar_prefetch = 0 : i64, scratch_operands = 1 : i64, tpu.core_type = #tpu.core_type<tc>, window_params = [{transform_indices = @transform_0, window_bounds = array<i64: 2, 128, 8>}, {pipeline_mode = #tpu.pipeline_mode<synchronous>, transform_indices = @transform_1, window_bounds = array<i64: 8, 64>}, {pipeline_mode = #tpu.pipeline_mode<synchronous>, transform_indices = @transform_2, window_bounds = array<i64: 1, 64>}, {pipeline_mode = #tpu.pipeline_mode<synchronous>, transform_indices = @transform_3, window_bounds = array<i64: 64, 128>}, {pipeline_mode = #tpu.pipeline_mode<synchronous>, transform_indices = @transform_4, window_bounds = array<i64: 1, 128>}, {pipeline_mode = #tpu.pipeline_mode<synchronous>, transform_indices = @transform_5, window_bounds = array<i64: 128, 1024>}, {pipeline_mode = #tpu.pipeline_mode<synchronous>, transform_indices = @transform_6, window_bounds = array<i64: 1, 1024>}, {pipeline_mode = #tpu.pipeline_mode<synchronous>, transform_indices = @transform_7, window_bounds = array<i64: 1024, 512>}, {pipeline_mode = #tpu.pipeline_mode<synchronous>, transform_indices = @transform_8, window_bounds = array<i64: 1, 512>}, {pipeline_mode = #tpu.pipeline_mode<synchronous>, transform_indices = @transform_9, window_bounds = array<i64: 512, 256>}, {pipeline_mode = #tpu.pipeline_mode<synchronous>, transform_indices = @transform_10, window_bounds = array<i64: 1, 256>}, {pipeline_mode = #tpu.pipeline_mode<synchronous>, transform_indices = @transform_11, window_bounds = array<i64: 256, 128>}, {pipeline_mode = #tpu.pipeline_mode<synchronous>, transform_indices = @transform_12, window_bounds = array<i64: 1, 128>}, {transform_indices = @transform_13, window_bounds = array<i64: 2, 128>}]} {
    %c0_i32 = arith.constant 0 : i32
    %0 = arith.cmpi eq, %arg1, %c0_i32 : i32
    %1 = arith.extui %0 : i1 to i32
    %c0_i32_0 = arith.constant 0 : i32
    %2 = arith.cmpi ne, %1, %c0_i32_0 : i32
    scf.if %2 {
      %cst_25 = arith.constant 0xFF800000 : f32
      %39 = vector.broadcast %cst_25 : f32 to vector<2x1024xf32>
      %c0_26 = arith.constant 0 : index
      %c0_27 = arith.constant 0 : index
      %40 = vector.load %arg16[%c0_26, %c0_27] : memref<2x1024xf32, #tpu.memory_space<vmem>>, vector<2x1024xf32>
      tpu.vector_store %arg16[%c0_26, %c0_27], %39 {strides = array<i32>} : memref<2x1024xf32, #tpu.memory_space<vmem>>, vector<2x1024xf32>,
    } else {
    }
    %c0 = arith.constant 0 : index
    %c0_1 = arith.constant 0 : index
    %c0_2 = arith.constant 0 : index
    %3 = vector.load %arg2[%c0, %c0_1, %c0_2] : memref<2x128x8xf32, #tpu.memory_space<vmem>>, vector<2x128x8xf32>
    %4 = vector.shape_cast %3 : vector<2x128x8xf32> to vector<256x8xf32>
    %c0_3 = arith.constant 0 : index
    %c0_4 = arith.constant 0 : index
    %5 = vector.load %arg3[%c0_3, %c0_4] : memref<8x64xf32, #tpu.memory_space<vmem>>, vector<8x64xf32>
    %cst = arith.constant dense<0.000000e+00> : vector<256x64xf32>
    %6 = tpu.matmul %4, %5, %cst {dimension_numbers = #tpu.dot_dimension_numbers<[1], [0], [0], [1], [0, 0, 1, 1], [], []>} : vector<256x8xf32>, vector<8x64xf32>, vector<256x64xf32> -> vector<256x64xf32>
    %c0_5 = arith.constant 0 : index
    %c0_6 = arith.constant 0 : index
    %7 = vector.load %arg4[%c0_5, %c0_6] : memref<1x64xf32, #tpu.memory_space<vmem>>, vector<1x64xf32>
    %8 = vector.broadcast %7 : vector<1x64xf32> to vector<256x64xf32>
    %9 = arith.addf %6, %8 : vector<256x64xf32>
    %cst_7 = arith.constant 0.000000e+00 : f32
    %10 = vector.broadcast %cst_7 : f32 to vector<256x64xf32>
    %11 = arith.maximumf %9, %10 : vector<256x64xf32>
    %12 = arith.truncf %11 : vector<256x64xf32> to vector<256x64xbf16>
    %c0_8 = arith.constant 0 : index
    %c0_9 = arith.constant 0 : index
    %13 = vector.load %arg5[%c0_8, %c0_9] : memref<64x128xbf16, #tpu.memory_space<vmem>>, vector<64x128xbf16>
    %cst_10 = arith.constant dense<0.000000e+00> : vector<256x128xf32>
    %14 = tpu.matmul %12, %13, %cst_10 {dimension_numbers = #tpu.dot_dimension_numbers<[1], [0], [0], [1], [0, 0, 1, 1], [], []>} : vector<256x64xbf16>, vector<64x128xbf16>, vector<256x128xf32> -> vector<256x128xf32>
    %c0_11 = arith.constant 0 : index
    %c0_12 = arith.constant 0 : index
    %15 = vector.load %arg6[%c0_11, %c0_12] : memref<1x128xf32, #tpu.memory_space<vmem>>, vector<1x128xf32>
    %16 = vector.broadcast %15 : vector<1x128xf32> to vector<256x128xf32>
    %17 = arith.addf %14, %16 : vector<256x128xf32>
    %cst_13 = arith.constant 0.000000e+00 : f32
    %18 = vector.broadcast %cst_13 : f32 to vector<256x128xf32>
    %19 = arith.maximumf %17, %18 : vector<256x128xf32>
    %20 = arith.truncf %19 : vector<256x128xf32> to vector<256x128xbf16>
    %c0_14 = arith.constant 0 : index
    %c0_15 = arith.constant 0 : index
    %21 = vector.load %arg7[%c0_14, %c0_15] : memref<128x1024xbf16, #tpu.memory_space<vmem>>, vector<128x1024xbf16>
    %cst_16 = arith.constant dense<0.000000e+00> : vector<256x1024xf32>
    %22 = tpu.matmul %20, %21, %cst_16 {dimension_numbers = #tpu.dot_dimension_numbers<[1], [0], [0], [1], [0, 0, 1, 1], [], []>} : vector<256x128xbf16>, vector<128x1024xbf16>, vector<256x1024xf32> -> vector<256x1024xf32>
    %c0_17 = arith.constant 0 : index
    %c0_18 = arith.constant 0 : index
    %23 = vector.load %arg8[%c0_17, %c0_18] : memref<1x1024xf32, #tpu.memory_space<vmem>>, vector<1x1024xf32>
    %24 = vector.broadcast %23 : vector<1x1024xf32> to vector<256x1024xf32>
    %25 = arith.addf %22, %24 : vector<256x1024xf32>
    %26 = arith.truncf %25 : vector<256x1024xf32> to vector<256x1024xbf16>
    %cst_19 = arith.constant 0.000000e+00 : bf16
    %27 = vector.broadcast %cst_19 : bf16 to vector<256x1024xbf16>
    %28 = arith.maximumf %26, %27 : vector<256x1024xbf16>
    %29 = vector.shape_cast %28 : vector<256x1024xbf16> to vector<2x128x1024xbf16>
    %c1_i32 = arith.constant 1 : i32
    %30 = arith.cmpi eq, %arg1, %c1_i32 : i32
    %31 = arith.extui %30 : i1 to i32
    %c0_i32_20 = arith.constant 0 : i32
    %32 = arith.cmpi ne, %31, %c0_i32_20 : i32
    scf.if %32 {
      %c128_i32 = arith.constant 128 : i32
      %39 = arith.muli %arg1, %c128_i32 : i32
      %40 = tpu.iota {dimensions = array<i32: 1>} : vector<2x128x1xi32>
      %41 = vector.broadcast %39 : i32 to vector<2x128x1xi32>
      %42 = arith.addi %41, %40 : vector<2x128x1xi32>
      %c200_i32 = arith.constant 200 : i32
      %43 = vector.broadcast %c200_i32 : i32 to vector<2x128x1xi32>
      %44 = arith.cmpi slt, %42, %43 : vector<2x128x1xi32>
      %cst_25 = arith.constant 0xFF800000 : f32
      %45 = arith.truncf %cst_25 : f32 to bf16
      %46 = vector.shape_cast %44 : vector<2x128x1xi1> to vector<2x128x1xi1>
      %47 = vector.broadcast %46 : vector<2x128x1xi1> to vector<2x128x1024xi1>
      %48 = vector.broadcast %45 : bf16 to vector<2x128x1024xbf16>
      %49 = arith.select %47, %29, %48 : vector<2x128x1024xi1>, vector<2x128x1024xbf16>
      %c0_26 = arith.constant 0 : index
      %c0_27 = arith.constant 0 : index
      %50 = vector.load %arg16[%c0_26, %c0_27] : memref<2x1024xf32, #tpu.memory_space<vmem>>, vector<2x1024xf32>
      %cst_28 = arith.constant dense<0xFF80> : vector<2x1024xbf16>
      %51 = vector.multi_reduction <maximumf>, %49, %cst_28 [1] : vector<2x128x1024xbf16> to vector<2x1024xbf16>
      %52 = arith.extf %51 : vector<2x1024xbf16> to vector<2x1024xf32>
      %53 = arith.maximumf %50, %52 : vector<2x1024xf32>
      %c0_29 = arith.constant 0 : index
      %c0_30 = arith.constant 0 : index
      %54 = vector.load %arg16[%c0_29, %c0_30] : memref<2x1024xf32, #tpu.memory_space<vmem>>, vector<2x1024xf32>
      tpu.vector_store %arg16[%c0_29, %c0_30], %53 {strides = array<i32>} : memref<2x1024xf32, #tpu.memory_space<vmem>>, vector<2x1024xf32>,
    } else {
    }
    %c1_i32_21 = arith.constant 1 : i32
    %33 = arith.cmpi ne, %arg1, %c1_i32_21 : i32
    %34 = arith.extui %33 : i1 to i32
    %c0_i32_22 = arith.constant 0 : i32
    %35 = arith.cmpi ne, %34, %c0_i32_22 : i32
    scf.if %35 {
      %c0_25 = arith.constant 0 : index
      %c0_26 = arith.constant 0 : index
      %39 = vector.load %arg16[%c0_25, %c0_26] : memref<2x1024xf32, #tpu.memory_space<vmem>>, vector<2x1024xf32>
      %cst_27 = arith.constant dense<0xFF80> : vector<2x1024xbf16>
      %40 = vector.multi_reduction <maximumf>, %29, %cst_27 [1] : vector<2x128x1024xbf16> to vector<2x1024xbf16>
      %41 = arith.extf %40 : vector<2x1024xbf16> to vector<2x1024xf32>
      %42 = arith.maximumf %39, %41 : vector<2x1024xf32>
      %c0_28 = arith.constant 0 : index
      %c0_29 = arith.constant 0 : index
      %43 = vector.load %arg16[%c0_28, %c0_29] : memref<2x1024xf32, #tpu.memory_space<vmem>>, vector<2x1024xf32>
      tpu.vector_store %arg16[%c0_28, %c0_29], %42 {strides = array<i32>} : memref<2x1024xf32, #tpu.memory_space<vmem>>, vector<2x1024xf32>,
    } else {
    }
    %c1_i32_23 = arith.constant 1 : i32
    %36 = arith.cmpi eq, %arg1, %c1_i32_23 : i32
    %37 = arith.extui %36 : i1 to i32
    %c0_i32_24 = arith.constant 0 : i32
    %38 = arith.cmpi ne, %37, %c0_i32_24 : i32
    scf.if %38 {
      %c0_25 = arith.constant 0 : index
      %c0_26 = arith.constant 0 : index
      %39 = vector.load %arg16[%c0_25, %c0_26] : memref<2x1024xf32, #tpu.memory_space<vmem>>, vector<2x1024xf32>
      %c0_27 = arith.constant 0 : index
      %c0_28 = arith.constant 0 : index
      %40 = vector.load %arg9[%c0_27, %c0_28] : memref<1024x512xf32, #tpu.memory_space<vmem>>, vector<1024x512xf32>
      %cst_29 = arith.constant dense<0.000000e+00> : vector<2x512xf32>
      %41 = tpu.matmul %39, %40, %cst_29 {dimension_numbers = #tpu.dot_dimension_numbers<[1], [0], [0], [1], [0, 0, 1, 1], [], []>} : vector<2x1024xf32>, vector<1024x512xf32>, vector<2x512xf32> -> vector<2x512xf32>
      %c0_30 = arith.constant 0 : index
      %c0_31 = arith.constant 0 : index
      %42 = vector.load %arg10[%c0_30, %c0_31] : memref<1x512xf32, #tpu.memory_space<vmem>>, vector<1x512xf32>
      %43 = vector.broadcast %42 : vector<1x512xf32> to vector<2x512xf32>
      %44 = arith.addf %41, %43 : vector<2x512xf32>
      %cst_32 = arith.constant 0.000000e+00 : f32
      %45 = vector.broadcast %cst_32 : f32 to vector<2x512xf32>
      %46 = arith.maximumf %44, %45 : vector<2x512xf32>
      %c0_33 = arith.constant 0 : index
      %c0_34 = arith.constant 0 : index
      %47 = vector.load %arg11[%c0_33, %c0_34] : memref<512x256xf32, #tpu.memory_space<vmem>>, vector<512x256xf32>
      %cst_35 = arith.constant dense<0.000000e+00> : vector<2x256xf32>
      %48 = tpu.matmul %46, %47, %cst_35 {dimension_numbers = #tpu.dot_dimension_numbers<[1], [0], [0], [1], [0, 0, 1, 1], [], []>} : vector<2x512xf32>, vector<512x256xf32>, vector<2x256xf32> -> vector<2x256xf32>
      %c0_36 = arith.constant 0 : index
      %c0_37 = arith.constant 0 : index
      %49 = vector.load %arg12[%c0_36, %c0_37] : memref<1x256xf32, #tpu.memory_space<vmem>>, vector<1x256xf32>
      %50 = vector.broadcast %49 : vector<1x256xf32> to vector<2x256xf32>
      %51 = arith.addf %48, %50 : vector<2x256xf32>
      %cst_38 = arith.constant 0.000000e+00 : f32
      %52 = vector.broadcast %cst_38 : f32 to vector<2x256xf32>
      %53 = arith.maximumf %51, %52 : vector<2x256xf32>
      %c0_39 = arith.constant 0 : index
      %c0_40 = arith.constant 0 : index
      %54 = vector.load %arg13[%c0_39, %c0_40] : memref<256x128xf32, #tpu.memory_space<vmem>>, vector<256x128xf32>
      %cst_41 = arith.constant dense<0.000000e+00> : vector<2x128xf32>
      %55 = tpu.matmul %53, %54, %cst_41 {dimension_numbers = #tpu.dot_dimension_numbers<[1], [0], [0], [1], [0, 0, 1, 1], [], []>} : vector<2x256xf32>, vector<256x128xf32>, vector<2x128xf32> -> vector<2x128xf32>
      %c0_42 = arith.constant 0 : index
      %c0_43 = arith.constant 0 : index
      %56 = vector.load %arg14[%c0_42, %c0_43] : memref<1x128xf32, #tpu.memory_space<vmem>>, vector<1x128xf32>
      %57 = vector.broadcast %56 : vector<1x128xf32> to vector<2x128xf32>
      %58 = arith.addf %55, %57 : vector<2x128xf32>
      %cst_44 = arith.constant dense<0xFF800000> : vector<2xf32>
      %59 = vector.multi_reduction <maximumf>, %58, %cst_44 [1] : vector<2x128xf32> to vector<2xf32>
      %60 = vector.shape_cast %59 : vector<2xf32> to vector<2x1xf32>
      %61 = vector.broadcast %60 : vector<2x1xf32> to vector<2x128xf32>
      %62 = arith.subf %58, %61 : vector<2x128xf32>
      %63 = math.exp %62 : vector<2x128xf32>
      %cst_45 = arith.constant dense<0.000000e+00> : vector<2xf32>
      %64 = vector.multi_reduction <add>, %63, %cst_45 [1] : vector<2x128xf32> to vector<2xf32>
      %65 = vector.shape_cast %64 : vector<2xf32> to vector<2x1xf32>
      %66 = math.log %65 : vector<2x1xf32>
      %67 = arith.addf %66, %60 : vector<2x1xf32>
      %68 = vector.broadcast %67 : vector<2x1xf32> to vector<2x128xf32>
      %69 = arith.subf %58, %68 : vector<2x128xf32>
      %c0_46 = arith.constant 0 : index
      %c0_47 = arith.constant 0 : index
      %70 = vector.load %arg15[%c0_46, %c0_47] : memref<2x128xf32, #tpu.memory_space<vmem>>, vector<2x128xf32>
      tpu.vector_store %arg15[%c0_46, %c0_47], %69 {strides = array<i32>} : memref<2x128xf32, #tpu.memory_space<vmem>>, vector<2x128xf32>,
    } else {
    }
    return
  }
  func.func @transform_0(%arg0: i32, %arg1: i32) -> (i32, i32, i32) {
    %c0_i32 = arith.constant 0 : i32
    %c0_i32_0 = arith.constant 0 : i32
    return %arg0, %arg1, %c0_i32 : i32, i32, i32
  }
  func.func @transform_1(%arg0: i32, %arg1: i32) -> (i32, i32) {
    %c0_i32 = arith.constant 0 : i32
    %c0_i32_0 = arith.constant 0 : i32
    %c0_i32_1 = arith.constant 0 : i32
    return %c0_i32, %c0_i32_0 : i32, i32
  }
  func.func @transform_2(%arg0: i32, %arg1: i32) -> (i32, i32) {
    %c0_i32 = arith.constant 0 : i32
    %c0_i32_0 = arith.constant 0 : i32
    %c0_i32_1 = arith.constant 0 : i32
    return %c0_i32, %c0_i32_0 : i32, i32
  }
  func.func @transform_3(%arg0: i32, %arg1: i32) -> (i32, i32) {
    %c0_i32 = arith.constant 0 : i32
    %c0_i32_0 = arith.constant 0 : i32
    %c0_i32_1 = arith.constant 0 : i32
    return %c0_i32, %c0_i32_0 : i32, i32
  }
  func.func @transform_4(%arg0: i32, %arg1: i32) -> (i32, i32) {
    %c0_i32 = arith.constant 0 : i32
    %c0_i32_0 = arith.constant 0 : i32
    %c0_i32_1 = arith.constant 0 : i32
    return %c0_i32, %c0_i32_0 : i32, i32
  }
  func.func @transform_5(%arg0: i32, %arg1: i32) -> (i32, i32) {
    %c0_i32 = arith.constant 0 : i32
    %c0_i32_0 = arith.constant 0 : i32
    %c0_i32_1 = arith.constant 0 : i32
    return %c0_i32, %c0_i32_0 : i32, i32
  }
  func.func @transform_6(%arg0: i32, %arg1: i32) -> (i32, i32) {
    %c0_i32 = arith.constant 0 : i32
    %c0_i32_0 = arith.constant 0 : i32
    %c0_i32_1 = arith.constant 0 : i32
    return %c0_i32, %c0_i32_0 : i32, i32
  }
  func.func @transform_7(%arg0: i32, %arg1: i32) -> (i32, i32) {
    %c0_i32 = arith.constant 0 : i32
    %c0_i32_0 = arith.constant 0 : i32
    %c0_i32_1 = arith.constant 0 : i32
    return %c0_i32, %c0_i32_0 : i32, i32
  }
  func.func @transform_8(%arg0: i32, %arg1: i32) -> (i32, i32) {
    %c0_i32 = arith.constant 0 : i32
    %c0_i32_0 = arith.constant 0 : i32
    %c0_i32_1 = arith.constant 0 : i32
    return %c0_i32, %c0_i32_0 : i32, i32
  }
  func.func @transform_9(%arg0: i32, %arg1: i32) -> (i32, i32) {
    %c0_i32 = arith.constant 0 : i32
    %c0_i32_0 = arith.constant 0 : i32
    %c0_i32_1 = arith.constant 0 : i32
    return %c0_i32, %c0_i32_0 : i32, i32
  }
  func.func @transform_10(%arg0: i32, %arg1: i32) -> (i32, i32) {
    %c0_i32 = arith.constant 0 : i32
    %c0_i32_0 = arith.constant 0 : i32
    %c0_i32_1 = arith.constant 0 : i32
    return %c0_i32, %c0_i32_0 : i32, i32
  }
  func.func @transform_11(%arg0: i32, %arg1: i32) -> (i32, i32) {
    %c0_i32 = arith.constant 0 : i32
    %c0_i32_0 = arith.constant 0 : i32
    %c0_i32_1 = arith.constant 0 : i32
    return %c0_i32, %c0_i32_0 : i32, i32
  }
  func.func @transform_12(%arg0: i32, %arg1: i32) -> (i32, i32) {
    %c0_i32 = arith.constant 0 : i32
    %c0_i32_0 = arith.constant 0 : i32
    %c0_i32_1 = arith.constant 0 : i32
    return %c0_i32, %c0_i32_0 : i32, i32
  }
  func.func @transform_13(%arg0: i32, %arg1: i32) -> (i32, i32) {
    %c0_i32 = arith.constant 0 : i32
    %c0_i32_0 = arith.constant 0 : i32
    return %arg0, %c0_i32 : i32, i32
  }
}

</mosaic_0001>

<bundles_post_ra>
// kernel: tpu_custom_call.1
= control target key start
LH: loop header
LB: loop body
LE: loop exit
PB: predicated region body
PF: predicated region fallthrough
CT: control target
= control target key end

     0   :  { %s10668_s0 = inlined_call_operand.vmem [shape: f32[2,256,8], index: 0, kind: input, shape index: {}]   ;;  %s10669_s1 = inlined_call_operand.hbm [shape: f32[8,64], index: 1, kind: input, shape index: {}]   ;;  %s10670_s2 = inlined_call_operand.hbm [shape: f32[1,64], index: 2, kind: input, shape index: {}]   ;;  %s10671_s3 = inlined_call_operand.hbm [shape: bf16[64,128], index: 3, kind: input, shape index: {}]   ;;  %s10672_s4 = inlined_call_operand.hbm [shape: f32[1,128], index: 4, kind: input, shape index: {}]   ;;  %s10673_s5 = inlined_call_operand.hbm [shape: bf16[128,1024], index: 5, kind: input, shape index: {}]   ;;  %s10674_s6 = inlined_call_operand.hbm [shape: f32[1,1024], index: 6, kind: input, shape index: {}]   ;;  %s10675_s7 = inlined_call_operand.hbm [shape: f32[1024,512], index: 7, kind: input, shape index: {}]   ;;  %s10676_s8 = inlined_call_operand.hbm [shape: f32[1,512], index: 8, kind: input, shape index: {}]   ;;  %s10677_s9 = inlined_call_operand.hbm [shape: f32[512,256], index: 9, kind: input, shape index: {}]   ;;  %s10678_s10 = inlined_call_operand.hbm [shape: f32[1,256], index: 10, kind: input, shape index: {}]   ;;  %s10679_s11 = inlined_call_operand.hbm [shape: f32[256,128], index: 11, kind: input, shape index: {}]   ;;  %s10680_s12 = inlined_call_operand.hbm [shape: f32[1,128], index: 12, kind: input, shape index: {}]   ;;  %s10681_s13 = inlined_call_operand.hbm [shape: f32[2,128], index: 13, kind: output, shape index: {}]  }
   0x1   :  { %10942 = sst [smem:[#allocation247_spill]] %s10669_s1 }
   0x2   :  { %10943 = sst [smem:[#allocation248_spill]] %s10670_s2 }
   0x3   :  { %10944 = sst [smem:[#allocation249_spill]] %s10671_s3 }
   0x4   :  { %10945 = sst [smem:[#allocation250_spill]] %s10672_s4 }
   0x5   :  { %10946 = sst [smem:[#allocation251_spill]] %s10681_s13 }
   0x6   :  { %18 = vsyncpa [#allocation5], 0 }
   0x7   :  { %19 = vsyncpa [#allocation8], 0 }
   0x8   :  { %20 = vsyncpa [#allocation11], 0 }
   0x9   :  { %21 = vsyncpa [#allocation14], 0 }
   0xa   :  { %22 = vsyncpa [#allocation17], 0 }
   0xb   :  { %23 = vsyncpa [#allocation20], 0 }
   0xc   :  { %24 = vsyncpa [#allocation23], 0 }
   0xd   :  { %25 = vsyncpa [#allocation6], 0  ;;  %s7758_s25 = smov 0   ;;  %s7760_s26 = smov 0  }
   0xe   :  { %s7762_s27 = smov 0   ;;  %s7764_s28 = smov 0  }
   0xf   :  { %s7766_s29 = smov 0  }
  0x10 LB: > { %10947 = sst [smem:[#allocation33_spill]] %s7648_s25  ;;  %s10682_s30 = sadd.s32 4294967295, %s7664_s29   ;;  %s7664_s29 = sphi %s7766_s29, %s31_s29   ;;  %s7660_s28 = sphi %s7764_s28, %s11572_s28   ;;  %s7656_s27 = sphi %s7762_s27, %s11571_s27   ;;  %s7652_s26 = sphi %s7760_s26, %s11570_s26   ;;  %s7648_s25 = sphi %s7758_s25, %s11569_s25  }
  0x11   : > { %10948 = sst [smem:[#allocation34_spill]] %s7656_s27  ;;  %s40_s14 = sadd.s32 1, %s7660_s28 }
  0x12   : > { %p41_p0 = scmp.ge.s32.totalorder %s40_s14, 2  ;;  %s52_s15 = sadd.s32 1, %s7652_s26 }
  0x13   : > { %p59_p1 = scmp.ne.s32.totalorder %s7652_s26, %s7648_s25  ;;  %p60_p2 = scmp.eq.s32.totalorder %s7664_s29, 0 }
  0x14   : > { %s11574_s14 = smov (%p41_p0, %s40_s14), 0  ;;  %p6579_p4 = scmp.ge.s32.totalorder %s7664_s29, 1 }
  0x15   : > { %10949 = sst [smem:[#allocation35_spill]] %s11574_s14  ;;  %p7791_p3 = por %p60_p2, %p59_p1 }
  0x16   : > { %s48_s17 = ssub.s32 %s7660_s28, %s11574_s14  ;;  %p354_p5 = scmp.lt.s32.totalorder %s7664_s29, 3 }
  0x17   : > { %p50_p6 = scmp.eq.s32.totalorder %s48_s17, 0  ;;  %p7805_p8 = scmp.eq.s32.totalorder %s10682_s30, 0 }
  0x18   : > { %p7799_p7 = pnand %p6579_p4, %p354_p5  ;;  %s10955_s2 = sld [smem:[#allocation248_spill]] }
  0x19   : > { %s10952_s19 = scalar_select %p7805_p8, 1, 0 }
  0x1a   : > { %s7810_s20 = scalar_select %p50_p6, %s7652_s26, %s52_s15  }
  0x1b   : > { %10953 = sst [smem:[#allocation36_spill]] %s10952_s19  ;;  %p7065_p9 = pneg %p7799_p7 }
  0x1c   : > { %10954 = sst [smem:[#allocation37_spill]] %s7810_s20  ;;  %s7666_s17 = smov [#allocation7]  }
  0x1d   : > { %p7819_p10 = pnand %p7805_p8, %p7065_p9  ;;  %s380_s30 = sshll.u32 %s7666_s17, 4  ;;  %s381_s30 = int_to_ptr.vmem [resolvable:$true] %s380_s30 }
  0x1e   : > { %s378_s23 = sshll.u32 %s10955_s2, 4  ;;  %s10957_s4 = sld [smem:[#allocation250_spill]]  ;;  %s379_s23 = int_to_ptr.hbm [resolvable:$true] %s378_s23 }
  0x1f   : > { %7071 = dma.hbm_to_vmem [thread:$0]  (!%p7819_p10), %s379_s23, 16, %s381_s30, [#allocation8]  }
  0x20   : > { %s430_s2 = sshll.u32 %s10674_s6, 4  ;;  %s7667_s13 = smov [#allocation10]   ;;  %s431_s2 = int_to_ptr.hbm [resolvable:$true] %s430_s2 }
  0x21   : > { %s406_s27 = sshll.u32 %s7667_s13, 4  ;;  %s7668_s17 = smov [#allocation13]   ;;  %s407_s27 = int_to_ptr.vmem [resolvable:$true] %s406_s27 }
  0x22   : > { %s432_s19 = sshll.u32 %s7668_s17, 4  ;;  %s456_s15 = sshll.u32 %s10676_s8, 4  ;;  %s433_s19 = int_to_ptr.vmem [resolvable:$true] %s432_s19  ;;  %s457_s15 = int_to_ptr.hbm [resolvable:$true] %s456_s15 }
  0x23   : > { %7083 = dma.hbm_to_vmem [thread:$0]  (!%p7819_p10), %s431_s2, 128, %s433_s19, [#allocation14]  }
  0x24   : > { %s404_s20 = sshll.u32 %s10957_s4, 4  ;;  %s482_s21 = sshll.u32 %s10678_s10, 4  ;;  %s405_s20 = int_to_ptr.hbm [resolvable:$true] %s404_s20  ;;  %s483_s21 = int_to_ptr.hbm [resolvable:$true] %s482_s21 }
  0x25   : > { %7077 = dma.hbm_to_vmem [thread:$0]  (!%p7819_p10), %s405_s20, 16, %s407_s27, [#allocation11]  }
  0x26   : > { %s7669_s13 = smov [#allocation16]   ;;  %s7670_s27 = smov [#allocation19]  }
  0x27   : > { %s458_s22 = sshll.u32 %s7669_s13, 4  ;;  %s484_s20 = sshll.u32 %s7670_s27, 4  ;;  %s459_s22 = int_to_ptr.vmem [resolvable:$true] %s458_s22  ;;  %s485_s20 = int_to_ptr.vmem [resolvable:$true] %s484_s20 }
  0x28   : > { %7089 = dma.hbm_to_vmem [thread:$0]  (!%p7819_p10), %s457_s15, 64, %s459_s22, [#allocation17]  }
  0x29   : > { %7095 = dma.hbm_to_vmem [thread:$0]  (!%p7819_p10), %s483_s21, 32, %s485_s20, [#allocation20]  }
  0x2a   : > { %s10958_s1 = sld [smem:[#allocation247_spill]]  ;;  %s7671_s19 = smov [#allocation4]  }
  0x2b   : > { %s368_s14 = sshll.u32 %s7671_s19, 4  ;;  %s10959_s3 = sld [smem:[#allocation249_spill]]  ;;  %s369_s14 = int_to_ptr.vmem [resolvable:$true] %s368_s14 }
  0x2c   : > { %s7672_s15 = smov [#allocation9]   ;;  %s7673_s21 = smov 64  }
  0x2d   : > { %s391_s22 = sshll.u32 %s7672_s15, 4  ;;  %s7674_s27 = smov 4   ;;  %s392_s22 = int_to_ptr.vmem [resolvable:$true] %s391_s22 }
  0x2e   : > { %s415_s17 = sshll.u32 %s10673_s5, 4  ;;  %s7675_s19 = smov [#allocation12]   ;;  %s416_s17 = int_to_ptr.hbm [resolvable:$true] %s415_s17 }
  0x2f   : > { %s417_s30 = sshll.u32 %s7675_s19, 4  ;;  %s7677_s15 = smov 32   ;;  %s418_s30 = int_to_ptr.vmem [resolvable:$true] %s417_s30 }
  0x30   : > { %s366_s2 = sshll.u32 %s10958_s1, 4  ;;  %s7676_s1 = smov 512   ;;  %s367_s2 = int_to_ptr.hbm [resolvable:$true] %s366_s2 }
  0x31   : > { %s389_s13 = sshll.u32 %s10959_s3, 4  ;;  %s467_s20 = sshll.u32 %s10677_s9, 4  ;;  %s390_s13 = int_to_ptr.hbm [resolvable:$true] %s389_s13  ;;  %s468_s20 = int_to_ptr.hbm [resolvable:$true] %s467_s20 }
  0x32   : > { %7068 = dma.hbm_to_vmem [thread:$0]  (!%p7819_p10), %s367_s2, 128, %s369_s14, [#allocation5]  }
  0x33   : > { %7074 = dma.hbm_to_vmem [thread:$0]  (!%p7819_p10), %s390_s13, 512, %s392_s22, [#allocation8], %s7673_s21, %s7673_s21, %s7674_s27  }
  0x34   : > { %s441_s14 = sshll.u32 %s10675_s7, 4  ;;  %s7678_s13 = smov [#allocation15]   ;;  %s442_s14 = int_to_ptr.hbm [resolvable:$true] %s441_s14 }
  0x35   : > { %7080 = dma.hbm_to_vmem [thread:$0]  (!%p7819_p10), %s416_s17, 8192, %s418_s30, [#allocation11], %s7676_s1, %s7676_s1, %s7677_s15  }
  0x36   : > { %s443_s22 = sshll.u32 %s7678_s13, 4  ;;  %s7679_s25 = smov [#allocation18]   ;;  %s444_s22 = int_to_ptr.vmem [resolvable:$true] %s443_s22 }
  0x37   : > { %7086 = dma.hbm_to_vmem [thread:$0]  (!%p7819_p10), %s442_s14, 65536, %s444_s22, [#allocation14], %s7676_s1, %s7676_s1, %s7677_s15  }
  0x38   : > { %s469_s19 = sshll.u32 %s7679_s25, 4  ;;  %s493_s3 = sshll.u32 %s10679_s11, 4  ;;  %s470_s19 = int_to_ptr.vmem [resolvable:$true] %s469_s19  ;;  %s494_s3 = int_to_ptr.hbm [resolvable:$true] %s493_s3 }
  0x39   : > { %s7680_s17 = smov 256   ;;  %s7681_s30 = smov 16  }
  0x3a   : > { %7092 = dma.hbm_to_vmem [thread:$0]  (!%p7819_p10), %s468_s20, 16384, %s470_s19, [#allocation17], %s7680_s17, %s7680_s17, %s7681_s30  }
  0x3b   : > { %s7682_s13 = smov [#allocation21]   ;;  %s7683_s27 = smov 128  }
  0x3c   : > { %s495_s21 = sshll.u32 %s7682_s13, 4  ;;  %s7684_s4 = smov 8   ;;  %s496_s21 = int_to_ptr.vmem [resolvable:$true] %s495_s21 }
  0x3d   : > { %7098 = dma.hbm_to_vmem [thread:$0]  (!%p7819_p10), %s494_s3, 4096, %s496_s21, [#allocation20], %s7683_s27, %s7683_s27, %s7684_s4  }
  0x3e   : > { %s508_s15 = sshll.u32 %s10680_s12, 4  ;;  %s7685_s22 = smov [#allocation22]   ;;  %s509_s15 = int_to_ptr.hbm [resolvable:$true] %s508_s15 }
  0x3f   : > { %s510_s25 = sshll.u32 %s7685_s22, 4  ;;  %p6592_p11 = scmp.ge.s32.totalorder %s7664_s29, 2  ;;  %s511_s25 = int_to_ptr.vmem [resolvable:$true] %s510_s25 }
  0x40   : > { %7101 = dma.hbm_to_vmem [thread:$0]  (!%p7819_p10), %s509_s15, 16, %s511_s25, [#allocation23]  }
  0x41   : > { %517 = sbr.rel (%p6592_p11) target bundleno = 106 (0x6a), region = 64 }
  0x46   : > { %520 = sbr.rel (!%p7791_p3) target bundleno = 106 (0x6a), region = 68  ;;  %s522_s20 = sand.u32 (%p7791_p3), 1, %s7652_s26  }
  0x47   : > { %s6939_s3 = sshll.u32 (%p7791_p3), %s7660_s28, 7  ;;  %s6593_s4 = sshll.u32 (%p7791_p3), %s522_s20, 8 }
  0x48   : > { %s7888_s2 = scalar_lea.vmem (%p7791_p3), %s10668_s0, %s6939_s3  ;;  %s7893_s16 = scalar_lea.vmem (%p7791_p3), [#allocation3], %s6593_s4 }
  0x49   : > { %v621_v0 = vld [vmem:[%s7888_s2] sm:$0xff] (%p7791_p3)  ;;  %v623_v1 = vld [vmem:[%s7888_s2 + $0x8] sm:$0xff] (%p7791_p3)  ;;  %v625_v2 = vld [vmem:[%s7888_s2 + $0x10] sm:$0xff] (%p7791_p3) }
  0x4a   : > { %622 = vst [vmem:[%s7893_s16] sm:$0xff] (%p7791_p3), %v621_v0  ;;  %v627_v3 = vld [vmem:[%s7888_s2 + $0x18] sm:$0xff] (%p7791_p3)  ;;  %v629_v4 = vld [vmem:[%s7888_s2 + $0x20] sm:$0xff] (%p7791_p3)  ;;  %v631_v5 = vld [vmem:[%s7888_s2 + $0x28] sm:$0xff] (%p7791_p3) }
  0x4b   : > { %624 = vst [vmem:[%s7893_s16 + $0x8] sm:$0xff] %v623_v1  ;;  %v633_v6 = vld [vmem:[%s7888_s2 + $0x30] sm:$0xff]  ;;  %v635_v7 = vld [vmem:[%s7888_s2 + $0x38] sm:$0xff]  ;;  %v637_v8 = vld [vmem:[%s7888_s2 + $0x40] sm:$0xff] }
  0x4c   : > { %626 = vst [vmem:[%s7893_s16 + $0x10] sm:$0xff] %v625_v2  ;;  %v639_v9 = vld [vmem:[%s7888_s2 + $0x48] sm:$0xff]  ;;  %v641_v10 = vld [vmem:[%s7888_s2 + $0x50] sm:$0xff]  ;;  %v643_v11 = vld [vmem:[%s7888_s2 + $0x58] sm:$0xff] }
  0x4d   : > { %628 = vst [vmem:[%s7893_s16 + $0x18] sm:$0xff] %v627_v3  ;;  %v645_v12 = vld [vmem:[%s7888_s2 + $0x60] sm:$0xff]  ;;  %v647_v13 = vld [vmem:[%s7888_s2 + $0x68] sm:$0xff]  ;;  %v649_v14 = vld [vmem:[%s7888_s2 + $0x70] sm:$0xff] }
  0x4e   : > { %630 = vst [vmem:[%s7893_s16 + $0x20] sm:$0xff] %v629_v4  ;;  %v651_v15 = vld [vmem:[%s7888_s2 + $0x78] sm:$0xff]  ;;  %v653_v16 = vld [vmem:[%s7888_s2 + $0x100] sm:$0xff]  ;;  %v655_v17 = vld [vmem:[%s7888_s2 + $0x108] sm:$0xff] }
  0x4f   : > { %632 = vst [vmem:[%s7893_s16 + $0x28] sm:$0xff] %v631_v5  ;;  %v657_v18 = vld [vmem:[%s7888_s2 + $0x110] sm:$0xff]  ;;  %v659_v19 = vld [vmem:[%s7888_s2 + $0x118] sm:$0xff]  ;;  %v661_v20 = vld [vmem:[%s7888_s2 + $0x120] sm:$0xff] }
  0x50   : > { %634 = vst [vmem:[%s7893_s16 + $0x30] sm:$0xff] %v633_v6  ;;  %v663_v21 = vld [vmem:[%s7888_s2 + $0x128] sm:$0xff]  ;;  %v665_v22 = vld [vmem:[%s7888_s2 + $0x130] sm:$0xff]  ;;  %v667_v23 = vld [vmem:[%s7888_s2 + $0x138] sm:$0xff] }
  0x51   : > { %636 = vst [vmem:[%s7893_s16 + $0x38] sm:$0xff] %v635_v7  ;;  %v669_v24 = vld [vmem:[%s7888_s2 + $0x140] sm:$0xff]  ;;  %v671_v25 = vld [vmem:[%s7888_s2 + $0x148] sm:$0xff]  ;;  %v673_v26 = vld [vmem:[%s7888_s2 + $0x150] sm:$0xff] }
  0x52   : > { %638 = vst [vmem:[%s7893_s16 + $0x40] sm:$0xff] %v637_v8  ;;  %v675_v27 = vld [vmem:[%s7888_s2 + $0x158] sm:$0xff]  ;;  %v677_v28 = vld [vmem:[%s7888_s2 + $0x160] sm:$0xff]  ;;  %v679_v29 = vld [vmem:[%s7888_s2 + $0x168] sm:$0xff] }
  0x53   : > { %640 = vst [vmem:[%s7893_s16 + $0x48] sm:$0xff] %v639_v9  ;;  %v681_v30 = vld [vmem:[%s7888_s2 + $0x170] sm:$0xff]  ;;  %v683_v31 = vld [vmem:[%s7888_s2 + $0x178] sm:$0xff] }
  0x54   : > { %642 = vst [vmem:[%s7893_s16 + $0x50] sm:$0xff] %v641_v10 }
  0x55   : > { %644 = vst [vmem:[%s7893_s16 + $0x58] sm:$0xff] %v643_v11 }
  0x56   : > { %646 = vst [vmem:[%s7893_s16 + $0x60] sm:$0xff] %v645_v12 }
  0x57   : > { %648 = vst [vmem:[%s7893_s16 + $0x68] sm:$0xff] %v647_v13 }
  0x58   : > { %650 = vst [vmem:[%s7893_s16 + $0x70] sm:$0xff] %v649_v14 }
  0x59   : > { %652 = vst [vmem:[%s7893_s16 + $0x78] sm:$0xff] %v651_v15 }
  0x5a   : > { %654 = vst [vmem:[%s7893_s16 + $0x80] sm:$0xff] %v653_v16 }
  0x5b   : > { %656 = vst [vmem:[%s7893_s16 + $0x88] sm:$0xff] %v655_v17 }
  0x5c   : > { %658 = vst [vmem:[%s7893_s16 + $0x90] sm:$0xff] %v657_v18 }
  0x5d   : > { %660 = vst [vmem:[%s7893_s16 + $0x98] sm:$0xff] %v659_v19 }
  0x5e   : > { %662 = vst [vmem:[%s7893_s16 + $0xa0] sm:$0xff] %v661_v20 }
  0x5f   : > { %664 = vst [vmem:[%s7893_s16 + $0xa8] sm:$0xff] %v663_v21 }
  0x60   : > { %666 = vst [vmem:[%s7893_s16 + $0xb0] sm:$0xff] %v665_v22 }
  0x61   : > { %668 = vst [vmem:[%s7893_s16 + $0xb8] sm:$0xff] %v667_v23 }
  0x62   : > { %670 = vst [vmem:[%s7893_s16 + $0xc0] sm:$0xff] %v669_v24 }
  0x63   : > { %672 = vst [vmem:[%s7893_s16 + $0xc8] sm:$0xff] %v671_v25 }
  0x64   : > { %674 = vst [vmem:[%s7893_s16 + $0xd0] sm:$0xff] %v673_v26 }
  0x65   : > { %676 = vst [vmem:[%s7893_s16 + $0xd8] sm:$0xff] %v675_v27 }
  0x66   : > { %678 = vst [vmem:[%s7893_s16 + $0xe0] sm:$0xff] %v677_v28 }
  0x67   : > { %680 = vst [vmem:[%s7893_s16 + $0xe8] sm:$0xff] %v679_v29 }
  0x68   : > { %682 = vst [vmem:[%s7893_s16 + $0xf0] sm:$0xff] %v681_v30 }
  0x69   : > { %684 = vst [vmem:[%s7893_s16 + $0xf8] sm:$0xff] %v683_v31 }
  0x6a PF: > { %693 = sbr.rel (%p7799_p7) target bundleno = 2686 (0xa7e), region = 106 }
  0x6f   : > { %s10960_s24 = sld [smem:[#allocation33_spill]] }
  0x75   : > { %s696_s30 = sand.u32 1, %s10960_s24  }
  0x76   : > { %s6597_s13 = sshll.u32 %s696_s30, 8 }
  0x77   : > { %s7959_s21 = scalar_lea.vmem [#allocation3], %s6597_s13 }
  0x78   : > { %7615 = dma.done.wait (%p7805_p8), [#allocation5], 128  }
  0x79   : > { %7617 = vsyncadd (%p7805_p8), [#allocation5], 4294967168 }
  0x7a   : > { %7619 = dma.done.wait (%p7805_p8), [#allocation8], 528  }
  0x7b   : > { %7621 = vsyncadd (%p7805_p8), [#allocation8], 4294966768 }
  0x7c   : > { %7623 = dma.done.wait (%p7805_p8), [#allocation11], 8208  }
  0x7d   : > { %7625 = vsyncadd (%p7805_p8), [#allocation11], 4294959088 }
  0x7e   : > { %7627 = dma.done.wait (%p7805_p8), [#allocation14], 65664  }
  0x7f   : > { %7629 = vsyncadd (%p7805_p8), [#allocation14], 4294901632 }
  0x80   : > { %7631 = dma.done.wait (%p7805_p8), [#allocation17], 16448  }
  0x81   : > { %7633 = vsyncadd (%p7805_p8), [#allocation17], 4294950848 }
  0x82   : > { %7635 = dma.done.wait (%p7805_p8), [#allocation20], 4128  }
  0x83   : > { %7637 = vsyncadd (%p7805_p8), [#allocation20], 4294963168 }
  0x84   : > { %7639 = dma.done.wait (%p7805_p8), [#allocation23], 16  }
  0x85   : > { %7641 = vsyncadd (%p7805_p8), [#allocation23], 4294967280  ;;  %s10962_s18 = sld [smem:[#allocation34_spill]] }
  0x8b   : > { %p6610_p12 = scmp.ne.s32.totalorder %s10962_s18, 0 }
  0x8d   : > { %801 = sbr.rel (%p6610_p12) target bundleno = 149 (0x95), region = 162 }
  0x92   : > { %v7686_v32 = vmov -inf  }
  0x93   : > { %802 = vst [vmem:[#allocation2] sm:$0xff] %v7686_v32 }
  0x94   : > { %803 = vst [vmem:[#allocation2 + $0x8] sm:$0xff] %v7686_v32 }
  0x95 PF: > { %v836_v33 = vld [vmem:[#allocation4] sm:$0xff]  ;;  %vm841_vm0 = vcmask 64512   ;;  %v805_v35 = vld [vmem:[%s7959_s21 + $0x8] sm:$0xff]  ;;  %v806_v36 = vld [vmem:[%s7959_s21 + $0x10] sm:$0xff]  ;;  %vm1135_vm1 = vcmask 523264   ;;  %s11091_s27 = sld [smem:[#allocation34_spill]] }
  0x96   : > { %v804_v34 = vld [vmem:[%s7959_s21] sm:$0xff]  ;;  %953 = vmatpush.msra.mxu0 %v836_v33  ;;  %7008 = vmatpush.msra.mxu3 %v836_v33  ;;  %v807_v37 = vld [vmem:[%s7959_s21 + $0x18] sm:$0xff]  ;;  %v809_v39 = vld [vmem:[%s7959_s21 + $0x28] sm:$0xff] }
  0x97   : > { %6611 = vmatmul.msk.f32.vlgmr.msra.gmra.mxu0 %vm841_vm0, %v804_v34  ;;  %v808_v38 = vld [vmem:[%s7959_s21 + $0x20] sm:$0xff]  ;;  %v810_v40 = vld [vmem:[%s7959_s21 + $0x30] sm:$0xff]  ;;  %v811_v41 = vld [vmem:[%s7959_s21 + $0x38] sm:$0xff] }
  0x98   : > { %v812_v42 = vld [vmem:[%s7959_s21 + $0x40] sm:$0xff]  ;;  %v813_v43 = vld [vmem:[%s7959_s21 + $0x48] sm:$0xff]  ;;  %v814_v44 = vld [vmem:[%s7959_s21 + $0x50] sm:$0xff] }
  0x99   : > { %v821_v45 = vld [vmem:[%s7959_s21 + $0x88] sm:$0xff]  ;;  %v815_v46 = vld [vmem:[%s7959_s21 + $0x58] sm:$0xff]  ;;  %v822_v47 = vld [vmem:[%s7959_s21 + $0x90] sm:$0xff] }
  0x9a   : > { %6628 = vmatmul.msk.f32.vlgmr.msra.gmra.mxu3 %vm841_vm0, %v821_v45  ;;  %v6943_v48 = vld [vmem:[#allocation9 + $0x18] sm:$0xff]  ;;  %v6942_v50 = vld [vmem:[#allocation9 + $0x10] sm:$0xff]  ;;  %v6941_v52 = vld [vmem:[#allocation9 + $0x8] sm:$0xff] }
  0x9b   : > { %v816_v49 = vld [vmem:[%s7959_s21 + $0x60] sm:$0xff]  ;;  %1188 = vmatpush.bf16.msra.mxu1 %v6943_v48  ;;  %7009 = vmatpush.bf16.msra.mxu2 %v6943_v48  ;;  %v823_v51 = vld [vmem:[%s7959_s21 + $0x98] sm:$0xff]  ;;  %v817_v53 = vld [vmem:[%s7959_s21 + $0x68] sm:$0xff]  ;;  %p6931_p13 = scmp.ne.s32.totalorder %s11091_s27, 1 }
  0x9c   : > { %v6940_v54 = vld [vmem:[#allocation9] sm:$0xff]  ;;  %v824_v55 = vld [vmem:[%s7959_s21 + $0xa0] sm:$0xff]  ;;  %v819_v58 = vld [vmem:[%s7959_s21 + $0x78] sm:$0xff] }
  0x9d   : > { %v818_v56 = vld [vmem:[%s7959_s21 + $0x70] sm:$0xff]  ;;  %v825_v57 = vld [vmem:[%s7959_s21 + $0xa8] sm:$0xff]  ;;  %v820_v61 = vld [vmem:[%s7959_s21 + $0x80] sm:$0xff] }
  0x9e   : > { %v826_v59 = vld [vmem:[%s7959_s21 + $0xb0] sm:$0xff]  ;;  %v8035_v62 = vld [vmem:[#allocation7] ss:$0 sm:$0xff]  ;;  %v827_v63 = vld [vmem:[%s7959_s21 + $0xb8] sm:$0xff] }
  0x9f   : > { %6612 = vmatmul.msk.f32.gmra.mxu0 %vm841_vm0, %v805_v35  ;;  %1189 = vmatpush.bf16.msra.mxu1 %v6942_v50  ;;  %v828_v5 = vld [vmem:[%s7959_s21 + $0xc0] sm:$0xff]  ;;  %v829_v8 = vld [vmem:[%s7959_s21 + $0xc8] sm:$0xff]  ;;  %v830_v14 = vld [vmem:[%s7959_s21 + $0xd0] sm:$0xff] }
  0xa0   : > { %7010 = vmatpush.bf16.msra.mxu2 %v6942_v50  ;;  %v831_v17 = vld [vmem:[%s7959_s21 + $0xd8] sm:$0xff]  ;;  %v832_v23 = vld [vmem:[%s7959_s21 + $0xe0] sm:$0xff]  ;;  %v833_v26 = vld [vmem:[%s7959_s21 + $0xe8] sm:$0xff] }
  0xa1   : > { %v834_v32 = vld [vmem:[%s7959_s21 + $0xf0] sm:$0xff]  ;;  %v835_v35 = vld [vmem:[%s7959_s21 + $0xf8] sm:$0xff] }
  0xa2   : > { %6629 = vmatmul.msk.f32.gmra.mxu3 %vm841_vm0, %v822_v47  ;;  %v6903_v47 = vld [vmem:[#allocation12 + $0x1e0] sm:$0xf0]  ;;  %v6909_v48 = vld [vmem:[#allocation12 + $0x1c8] sm:$0xf] }
  0xa3   : > { %1190 = vmatpush.bf16.msra.mxu1 %v6941_v52  ;;  %v7005_v50 = vld [vmem:[#allocation12 + $0x1e4] sm:$0xf0] }
  0xa4   : > { %7011 = vmatpush.bf16.msra.mxu2 %v6941_v52  ;;  %v6911_v52 = vld [vmem:[#allocation12 + $0x1e8] sm:$0xf0] }
  0xa7   : > { %6613 = vmatmul.msk.f32.gmra.mxu0 %vm841_vm0, %v806_v36  ;;  %1191 = vmatpush.bf16.msra.mxu1 %v6940_v54 }
  0xa8   : > { %7012 = vmatpush.bf16.msra.mxu2 %v6940_v54 }
  0xaa   : > { %6630 = vmatmul.msk.f32.gmra.mxu3 %vm841_vm0, %v823_v51  ;;  %v7001_v51 = vld [vmem:[#allocation12 + $0x1cc] sm:$0xf] }
  0xaf   : > { %6614 = vmatmul.msk.f32.gmra.mxu0 %vm841_vm0, %v807_v37 }
  0xb2   : > { %6631 = vmatmul.msk.f32.gmra.mxu3 %vm841_vm0, %v824_v55  ;;  %v6910_v55 = vor.u32 %v7005_v50, %v6909_v48  ;;  %v6961_v48 = vld [vmem:[#allocation12 + $0x8c] sm:$0xf] }
  0xb4   : > { %1901 = vmatpush.bf16.msrb.mxu0 %v6910_v55  ;;  %v6717_v55 = vld [vmem:[#allocation12 + $0x48] sm:$0xf] }
  0xb7   : > { %6615 = vmatmul.msk.f32.gmra.mxu0 %vm841_vm0, %v808_v38 }
  0xba   : > { %6632 = vmatmul.msk.f32.gmra.mxu3 %vm841_vm0, %v825_v57 }
  0xbf   : > { %6616 = vmatmul.msk.f32.gmra.mxu0 %vm841_vm0, %v809_v39 }
  0xc2   : > { %6633 = vmatmul.msk.f32.gmra.mxu3 %vm841_vm0, %v826_v59  ;;  %v6871_v59 = vld [vmem:[#allocation12 + $0x1a0] sm:$0xf0] }
  0xc7   : > { %6617 = vmatmul.msk.f32.gmra.mxu0 %vm841_vm0, %v810_v40 }
  0xca   : > { %6634 = vmatmul.msk.f32.gmra.mxu3 %vm841_vm0, %v827_v63 }
  0xcf   : > { %6618 = vmatmul.msk.f32.gmra.mxu0 %vm841_vm0, %v811_v41 }
  0xd2   : > { %6635 = vmatmul.msk.f32.gmra.mxu3 %vm841_vm0, %v828_v5 }
  0xd7   : > { %6619 = vmatmul.msk.f32.gmra.mxu0 %vm841_vm0, %v812_v42 }
  0xda   : > { %6636 = vmatmul.msk.f32.gmra.mxu3 %vm841_vm0, %v829_v8  ;;  %v6845_v8 = vld [vmem:[#allocation12 + $0x148] sm:$0xf] }
  0xdf   : > { %6620 = vmatmul.msk.f32.gmra.mxu0 %vm841_vm0, %v813_v43 }
  0xe2   : > { %6637 = vmatmul.msk.f32.gmra.mxu3 %vm841_vm0, %v830_v14 }
  0xe7   : > { %6621 = vmatmul.msk.f32.gmra.mxu0 %vm841_vm0, %v814_v44 }
  0xea   : > { %6638 = vmatmul.msk.f32.gmra.mxu3 %vm841_vm0, %v831_v17 }
  0xef   : > { %6622 = vmatmul.msk.f32.gmra.mxu0 %vm841_vm0, %v815_v46  ;;  %v7000_v46 = vld [vmem:[#allocation12 + $0x1c4] sm:$0xf] }
  0xf2   : > { %6639 = vmatmul.msk.f32.gmra.mxu3 %vm841_vm0, %v832_v23  ;;  %v7004_v23 = vld [vmem:[#allocation12 + $0x1dc] sm:$0xf0] }
  0xf7   : > { %6623 = vmatmul.msk.f32.gmra.mxu0 %vm841_vm0, %v816_v49  ;;  %v6906_v49 = vor.u32 %v7000_v46, %v6903_v47  ;;  %v6965_v47 = vld [vmem:[#allocation12 + $0xa4] sm:$0xf0] }
  0xf9   : > { %1812 = vmatpush.bf16.msrb.mxu3 %v6906_v49  ;;  %v6751_v49 = vld [vmem:[#allocation12 + $0xa8] sm:$0xf0] }
  0xfa   : > { %6640 = vmatmul.msk.f32.gmra.mxu3 %vm841_vm0, %v833_v26 }
  0xff   : > { %6624 = vmatmul.msk.f32.gmra.mxu0 %vm841_vm0, %v817_v53 }
 0x102   : > { %6641 = vmatmul.msk.f32.gmra.mxu3 %vm841_vm0, %v834_v32  ;;  %v6775_v32 = vld [vmem:[#allocation12 + $0xe0] sm:$0xf0] }
 0x107   : > { %6625 = vmatmul.msk.f32.gmra.mxu0 %vm841_vm0, %v818_v56  ;;  %v6914_v56 = vor.u32 %v7001_v51, %v6911_v52  ;;  %v6754_v51 = vor.u32 %v6961_v48, %v6751_v49 }
 0x109   : > { %1990 = vmatpush.bf16.msrb.mxu1 %v6914_v56 }
 0x10a   : > { %6642 = vmatmul.msk.f32.gmra.mxu3 %vm841_vm0, %v835_v35  ;;  %v6973_v35 = vld [vmem:[#allocation12 + $0xe4] sm:$0xf0] }
 0x10f   : > { %6626 = vmatmul.msk.f32.gmra.mxu0 %vm841_vm0, %v819_v58  ;;  %v6992_v58 = vld [vmem:[#allocation12 + $0x184] sm:$0xf] }
 0x110   : > { %v6874_v63 = vor.u32 %v6992_v58, %v6871_v59  ;;  %v6957_v58 = vld [vmem:[#allocation12 + $0x64] sm:$0xf0]  ;;  %v6953_v59 = vld [vmem:[#allocation12 + $0x4c] sm:$0xf] }
 0x112   : > { %1813 = vmatpush.bf16.msrb.mxu3 %v6874_v63  ;;  %v6718_v63 = vor.u32 %v6957_v58, %v6717_v55 }
 0x114   : > { %v955_v60 = vpop.f32.mrf.mxu0 }
 0x115   : > { %v956_v0 = vadd.f32 %v8035_v62, %v955_v60  ;;  %v6877_v60 = vld [vmem:[#allocation12 + $0x188] sm:$0xf] }
 0x117   : > { %6627 = vmatmul.msk.f32.gmra.mxu0 %vm841_vm0, %v820_v61  ;;  %v1051_v3 = vmax.f32 %v956_v0, 0.0  ;;  %v6997_v0 = vld [vmem:[#allocation12 + $0x1a4] sm:$0xf0] }
 0x11c   : > { %v958_v1 = vpop.f32.mrf.mxu0 }
 0x11d   : > { %v959_v2 = vadd.f32 %v8035_v62, %v958_v1  ;;  %v8073_v61 = vpop.f32.mrf.mxu3  ;;  %v6993_v1 = vld [vmem:[#allocation12 + $0x18c] sm:$0xf] }
 0x11f   : > { %v1052_v4 = vmax.f32 %v959_v2, 0.0  ;;  %v6879_v2 = vld [vmem:[#allocation12 + $0x1a8] sm:$0xf0] }
 0x121   : > { %v1083_v6 = vpack.c.bf16 %v1052_v4, %v1051_v3  ;;  %v6878_v3 = vor.u32 %v6997_v0, %v6877_v60  ;;  %v6882_v4 = vor.u32 %v6993_v1, %v6879_v2  ;;  %v6719_v60 = vld [vmem:[#allocation12 + $0x68] sm:$0xf0]  ;;  %v6944_v1 = vld [vmem:[#allocation12 + $0x4] sm:$0xf] }
 0x122   : > { %v6722_v0 = vor.u32 %v6953_v59, %v6719_v60  ;;  %v6679_v2 = vld [vmem:[#allocation12 + $0x20] sm:$0xf0]  ;;  %v6773_v60 = vld [vmem:[#allocation12 + $0xc0] sm:$0xf] }
 0x123   : > { %6659 = vmatmul.msk.bf16.vlgmr.msra.gmra.mxu1 %vm1135_vm1, %v1083_v6  ;;  %1902 = vmatpush.bf16.msrb.mxu0 %v6878_v3  ;;  %v6984_v6 = vld [vmem:[#allocation12 + $0x144] sm:$0xf]  ;;  %v6685_v3 = vld [vmem:[#allocation12 + $0x8] sm:$0xf] }
 0x124   : > { %v961_v7 = vpop.f32.mrf.mxu0  ;;  %1991 = vmatpush.bf16.msrb.mxu1 %v6882_v4  ;;  %v6682_v4 = vor.u32 %v6944_v1, %v6679_v2 }
 0x125   : > { %v962_v9 = vadd.f32 %v8035_v62, %v961_v7  ;;  %v6839_v7 = vld [vmem:[#allocation12 + $0x160] sm:$0xf0] }
 0x127   : > { %v1053_v12 = vmax.f32 %v962_v9, 0.0  ;;  %v6842_v9 = vor.u32 %v6984_v6, %v6839_v7  ;;  %v6945_v6 = vld [vmem:[#allocation12 + $0xc] sm:$0xf] }
 0x128   : > { %v6687_v7 = vld [vmem:[#allocation12 + $0x28] sm:$0xf0] }
 0x129   : > { %1814 = vmatpush.bf16.msrb.mxu3 %v6842_v9 }
 0x12c   : > { %v964_v10 = vpop.f32.mrf.mxu0 }
 0x12d   : > { %v965_v11 = vadd.f32 %v8035_v62, %v964_v10  ;;  %v6989_v10 = vld [vmem:[#allocation12 + $0x164] sm:$0xf0] }
 0x12f   : > { %v1054_v13 = vmax.f32 %v965_v11, 0.0  ;;  %v6985_v11 = vld [vmem:[#allocation12 + $0x14c] sm:$0xf] }
 0x131   : > { %v1084_v15 = vpack.c.bf16 %v1054_v13, %v1053_v12  ;;  %v6847_v12 = vld [vmem:[#allocation12 + $0x168] sm:$0xf0]  ;;  %v6846_v13 = vor.u32 %v6989_v10, %v6845_v8  ;;  %v6690_v10 = vor.u32 %v6945_v6, %v6687_v7 }
 0x132   : > { %v6850_v14 = vor.u32 %v6985_v11, %v6847_v12 }
 0x133   : > { %6660 = vmatmul.msk.bf16.gmra.mxu1 %vm1135_vm1, %v1084_v15  ;;  %1903 = vmatpush.bf16.msrb.mxu0 %v6846_v13  ;;  %v6976_v15 = vld [vmem:[#allocation12 + $0x104] sm:$0xf]  ;;  %v6869_v13 = vld [vmem:[#allocation12 + $0x180] sm:$0xf] }
 0x134   : > { %v967_v16 = vpop.f32.mrf.mxu0  ;;  %1992 = vmatpush.bf16.msrb.mxu1 %v6850_v14  ;;  %v6996_v14 = vld [vmem:[#allocation12 + $0x19c] sm:$0xf0] }
 0x135   : > { %v968_v18 = vadd.f32 %v8035_v62, %v967_v16  ;;  %v6807_v16 = vld [vmem:[#allocation12 + $0x120] sm:$0xf0] }
 0x136   : > { %v6810_v17 = vor.u32 %v6976_v15, %v6807_v16  ;;  %v6870_v15 = vor.u32 %v6996_v14, %v6869_v13 }
 0x137   : > { %v1055_v21 = vmax.f32 %v968_v18, 0.0  ;;  %v6813_v18 = vld [vmem:[#allocation12 + $0x108] sm:$0xf] }
 0x138   : > { %1815 = vmatpush.bf16.msrb.mxu3 %v6810_v17 }
 0x13c   : > { %v970_v19 = vpop.f32.mrf.mxu0 }
 0x13d   : > { %v971_v20 = vadd.f32 %v8035_v62, %v970_v19  ;;  %v6981_v19 = vld [vmem:[#allocation12 + $0x124] sm:$0xf0] }
 0x13f   : > { %v1056_v22 = vmax.f32 %v971_v20, 0.0  ;;  %v6977_v20 = vld [vmem:[#allocation12 + $0x10c] sm:$0xf] }
 0x141   : > { %v1085_v24 = vpack.c.bf16 %v1056_v22, %v1055_v21  ;;  %v6901_v22 = vld [vmem:[#allocation12 + $0x1c0] sm:$0xf] }
 0x143   : > { %6661 = vmatmul.msk.bf16.gmra.mxu1 %vm1135_vm1, %v1085_v24  ;;  %v6814_v24 = vor.u32 %v6981_v19, %v6813_v18 }
 0x144   : > { %v973_v25 = vpop.f32.mrf.mxu0 }
 0x145   : > { %v974_v27 = vadd.f32 %v8035_v62, %v973_v25  ;;  %v6815_v25 = vld [vmem:[#allocation12 + $0x128] sm:$0xf0]  ;;  %1904 = vmatpush.bf16.msrb.mxu0 %v6814_v24 }
 0x147   : > { %v1057_v30 = vmax.f32 %v974_v27, 0.0  ;;  %v8077_v27 = vpop.f32.mrf.mxu3 }
 0x14c   : > { %v976_v28 = vpop.f32.mrf.mxu0 }
 0x14d   : > { %v977_v29 = vadd.f32 %v8035_v62, %v976_v28  ;;  %v6902_v28 = vor.u32 %v7004_v23, %v6901_v22 }
 0x14f   : > { %v1058_v31 = vmax.f32 %v977_v29, 0.0  ;;  %v6818_v29 = vor.u32 %v6977_v20, %v6815_v25  ;;  %1723 = vmatpush.bf16.msrb.mxu2 %v6902_v28  ;;  %v1012_v56 = vpop.f32.mrf.mxu3  ;;  %v1007_v20 = vadd.f32 %v8035_v62, %v8073_v61  ;;  %v6837_v28 = vld [vmem:[#allocation12 + $0x140] sm:$0xf] }
 0x150   : > { %v1013_v61 = vadd.f32 %v8035_v62, %v1012_v56 }
 0x151   : > { %v1086_v33 = vpack.c.bf16 %v1058_v31, %v1057_v30  ;;  %v6968_v31 = vld [vmem:[#allocation12 + $0xc4] sm:$0xf]  ;;  %1993 = vmatpush.bf16.msrb.mxu1 %v6818_v29  ;;  %v1068_v22 = vmax.f32 %v1007_v20, 0.0  ;;  %v6988_v29 = vld [vmem:[#allocation12 + $0x15c] sm:$0xf0] }
 0x153   : > { %6662 = vmatmul.msk.bf16.gmra.mxu1 %vm1135_vm1, %v1086_v33  ;;  %v6781_v33 = vld [vmem:[#allocation12 + $0xc8] sm:$0xf]  ;;  %1724 = vmatpush.bf16.msrb.mxu2 %v6870_v15  ;;  %v6741_v15 = vld [vmem:[#allocation12 + $0x80] sm:$0xf] }
 0x154   : > { %v979_v34 = vpop.f32.mrf.mxu0 }
 0x155   : > { %v980_v36 = vadd.f32 %v8035_v62, %v979_v34  ;;  %v6778_v34 = vor.u32 %v6968_v31, %v6775_v32  ;;  %v1010_v32 = vadd.f32 %v8035_v62, %v8077_v27  ;;  %v6805_v27 = vld [vmem:[#allocation12 + $0x100] sm:$0xf] }
 0x157   : > { %v1059_v39 = vmax.f32 %v980_v36, 0.0  ;;  %v6969_v36 = vld [vmem:[#allocation12 + $0xcc] sm:$0xf]  ;;  %1816 = vmatpush.bf16.msrb.mxu3 %v6778_v34  ;;  %v1015_v18 = vpop.f32.mrf.mxu3 }
 0x158   : > { %v1016_v48 = vadd.f32 %v8035_v62, %v1015_v18 }
 0x15c   : > { %v982_v37 = vpop.f32.mrf.mxu0 }
 0x15d   : > { %v983_v38 = vadd.f32 %v8035_v62, %v982_v37  ;;  %v6783_v37 = vld [vmem:[#allocation12 + $0xe8] sm:$0xf0] }
 0x15f   : > { %v1060_v40 = vmax.f32 %v983_v38, 0.0 }
 0x161   : > { %v1087_v41 = vpack.c.bf16 %v1060_v40, %v1059_v39  ;;  %v6782_v40 = vor.u32 %v6973_v35, %v6781_v33  ;;  %v8091_v33 = vld [vmem:[#allocation10] ss:$0 sm:$0xff]  ;;  %v1069_v35 = vmax.f32 %v1010_v32, 0.0  ;;  %v6709_v32 = vld [vmem:[#allocation12 + $0x40] sm:$0xf] }
 0x163   : > { %6663 = vmatmul.msk.bf16.gmra.mxu1 %vm1135_vm1, %v1087_v41  ;;  %v6786_v41 = vor.u32 %v6969_v36, %v6783_v37  ;;  %1905 = vmatpush.bf16.msrb.mxu0 %v6782_v40  ;;  %v1070_v36 = vmax.f32 %v1013_v61, 0.0  ;;  %v6956_v61 = vld [vmem:[#allocation12 + $0x5c] sm:$0xf0] }
 0x164   : > { %v985_v42 = vpop.f32.mrf.mxu0 }
 0x165   : > { %v986_v43 = vadd.f32 %v8035_v62, %v985_v42  ;;  %1994 = vmatpush.bf16.msrb.mxu1 %v6786_v41  ;;  %v1092_v40 = vpack.c.bf16 %v1070_v36, %v1069_v35 }
 0x167   : > { %v1061_v53 = vmax.f32 %v986_v43, 0.0  ;;  %v6960_v43 = vld [vmem:[#allocation12 + $0x84] sm:$0xf] }
 0x169   : > { %1995 = vmatpush.bf16.msrb.mxu1 %v6754_v51 }
 0x16c   : > { %v988_v44 = vpop.f32.mrf.mxu0 }
 0x16d   : > { %v989_v45 = vadd.f32 %v8035_v62, %v988_v44  ;;  %v6743_v44 = vld [vmem:[#allocation12 + $0xa0] sm:$0xf0]  ;;  %1996 = vmatpush.bf16.msrb.mxu1 %v6722_v0 }
 0x16e   : > { %v6746_v46 = vor.u32 %v6960_v43, %v6743_v44  ;;  %v6980_v44 = vld [vmem:[#allocation12 + $0x11c] sm:$0xf0] }
 0x16f   : > { %v1062_v54 = vmax.f32 %v989_v45, 0.0  ;;  %v6749_v45 = vld [vmem:[#allocation12 + $0x88] sm:$0xf] }
 0x170   : > { %v6750_v50 = vor.u32 %v6965_v47, %v6749_v45  ;;  %1817 = vmatpush.bf16.msrb.mxu3 %v6746_v46  ;;  %v6806_v46 = vor.u32 %v6980_v44, %v6805_v27 }
 0x171   : > { %v1088_v57 = vpack.c.bf16 %v1062_v54, %v1061_v53  ;;  %v6952_v53 = vld [vmem:[#allocation12 + $0x44] sm:$0xf]  ;;  %1997 = vmatpush.bf16.msrb.mxu1 %v6690_v10 }
 0x172   : > { %1906 = vmatpush.bf16.msrb.mxu0 %v6750_v50  ;;  %v6711_v54 = vld [vmem:[#allocation12 + $0x60] sm:$0xf0]  ;;  %v1071_v50 = vmax.f32 %v1016_v48, 0.0 }
 0x173   : > { %6664 = vmatmul.msk.bf16.gmra.mxu1 %vm1135_vm1, %v1088_v57  ;;  %v6714_v57 = vor.u32 %v6952_v53, %v6711_v54 }
 0x174   : > { %v991_v5 = vpop.f32.mrf.mxu0 }
 0x175   : > { %v992_v21 = vadd.f32 %v8035_v62, %v991_v5  ;;  %1818 = vmatpush.bf16.msrb.mxu3 %v6714_v57  ;;  %v6949_v5 = vld [vmem:[#allocation12 + $0x24] sm:$0xf0] }
 0x176   : > { %1907 = vmatpush.bf16.msrb.mxu0 %v6718_v63  ;;  %v6686_v9 = vor.u32 %v6949_v5, %v6685_v3  ;;  %v6972_v63 = vld [vmem:[#allocation12 + $0xdc] sm:$0xf0] }
 0x177   : > { %v1063_v38 = vmax.f32 %v992_v21, 0.0  ;;  %v6774_v0 = vor.u32 %v6972_v63, %v6773_v60 }
 0x179   : > { %1819 = vmatpush.bf16.msrb.mxu3 %v6682_v4 }
 0x17a   : > { %1908 = vmatpush.bf16.msrb.mxu0 %v6686_v9 }
 0x17c   : > { %v994_v26 = vpop.f32.mrf.mxu0 }
 0x17d   : > { %v995_v30 = vadd.f32 %v8035_v62, %v994_v26  ;;  %v1018_v26 = vpop.f32.mrf.mxu3 }
 0x17e   : > { %v1019_v49 = vadd.f32 %v8035_v62, %v1018_v26 }
 0x17f   : > { %v1064_v39 = vmax.f32 %v995_v30, 0.0  ;;  %v6838_v30 = vor.u32 %v6988_v29, %v6837_v28 }
 0x180   : > { %v1072_v51 = vmax.f32 %v1019_v49, 0.0  ;;  %v6677_v49 = vld [vmem:[#allocation12] sm:$0xf] }
 0x181   : > { %v1089_v42 = vpack.c.bf16 %v1064_v39, %v1063_v38  ;;  %1725 = vmatpush.bf16.msrb.mxu2 %v6838_v30 }
 0x182   : > { %v1093_v56 = vpack.c.bf16 %v1072_v51, %v1071_v50  ;;  %v6948_v50 = vld [vmem:[#allocation12 + $0x1c] sm:$0xf0] }
 0x183   : > { %6665 = vmatmul.msk.bf16.gmra.mxu1 %vm1135_vm1, %v1089_v42  ;;  %v6678_v51 = vor.u32 %v6948_v50, %v6677_v49  ;;  %v6895_v50 = vld [vmem:[#allocation12 + $0x1b8] sm:$0xf0] }
 0x184   : > { %v997_v52 = vpop.f32.mrf.mxu0 }
 0x185   : > { %v998_v8 = vadd.f32 %v8035_v62, %v997_v52  ;;  %v1021_v34 = vpop.f32.mrf.mxu3  ;;  %1726 = vmatpush.bf16.msrb.mxu2 %v6806_v46 }
 0x186   : > { %v1022_v2 = vadd.f32 %v8035_v62, %v1021_v34  ;;  %v6710_v34 = vor.u32 %v6956_v61, %v6709_v32 }
 0x187   : > { %v1065_v16 = vmax.f32 %v998_v8, 0.0 }
 0x188   : > { %v1073_v5 = vmax.f32 %v1022_v2, 0.0 }
 0x189   : > { %1727 = vmatpush.bf16.msrb.mxu2 %v6774_v0 }
 0x18c   : > { %v1000_v11 = vpop.f32.mrf.mxu0 }
 0x18d   : > { %v1001_v12 = vadd.f32 %v8035_v62, %v1000_v11  ;;  %v1024_v45 = vpop.f32.mrf.mxu3 }
 0x18e   : > { %v1025_v3 = vadd.f32 %v8035_v62, %v1024_v45 }
 0x18f   : > { %v1066_v17 = vmax.f32 %v1001_v12, 0.0 }
 0x190   : > { %v1074_v6 = vmax.f32 %v1025_v3, 0.0 }
 0x191   : > { %v1090_v19 = vpack.c.bf16 %v1066_v17, %v1065_v16  ;;  %v6964_v16 = vld [vmem:[#allocation12 + $0x9c] sm:$0xf0] }
 0x192   : > { %v1094_v10 = vpack.c.bf16 %v1074_v6, %v1073_v5  ;;  %v6742_v17 = vor.u32 %v6964_v16, %v6741_v15  ;;  %v7006_v5 = vld [vmem:[#allocation12 + $0x1ec] sm:$0xf0]  ;;  %v7002_v6 = vld [vmem:[#allocation12 + $0x1d4] sm:$0xf]  ;;  %v6925_v15 = vld [vmem:[#allocation12 + $0x1d8] sm:$0xf] }
 0x193   : > { %6666 = vmatmul.msk.bf16.gmra.mxu1 %vm1135_vm1, %v1090_v19  ;;  %v7007_v16 = vld [vmem:[#allocation12 + $0x1f4] sm:$0xf0] }
 0x194   : > { %v1003_v21 = vpop.f32.mrf.mxu0  ;;  %1728 = vmatpush.bf16.msrb.mxu2 %v6742_v17  ;;  %v7003_v17 = vld [vmem:[#allocation12 + $0x1dc] sm:$0xf] }
 0x195   : > { %v1004_v23 = vadd.f32 %v8035_v62, %v1003_v21  ;;  %v1027_v54 = vpop.f32.mrf.mxu3 }
 0x196   : > { %v1028_v19 = vadd.f32 %v8035_v62, %v1027_v54 }
 0x197   : > { %v1067_v24 = vmax.f32 %v1004_v23, 0.0 }
 0x198   : > { %v1075_v21 = vmax.f32 %v1028_v19, 0.0  ;;  %1729 = vmatpush.bf16.msrb.mxu2 %v6710_v34  ;;  %v6927_v19 = vld [vmem:[#allocation12 + $0x1f8] sm:$0xf0] }
 0x199   : > { %v1091_v25 = vpack.c.bf16 %v1068_v22, %v1067_v24 }
 0x19b   : > { %6667 = vmatmul.msk.bf16.vlgmr.msra.gmra.mxu2 %vm1135_vm1, %v1091_v25 }
 0x19c   : > { %1730 = vmatpush.bf16.msrb.mxu2 %v6678_v51 }
 0x19d   : > { %v1030_v4 = vpop.f32.mrf.mxu3 }
 0x19e   : > { %v1031_v20 = vadd.f32 %v8035_v62, %v1030_v4  ;;  %v6917_v4 = vld [vmem:[#allocation12 + $0x1d0] sm:$0xf] }
 0x1a0   : > { %v1193_v31 = vpop.f32.mrf.mxu1  ;;  %v1076_v22 = vmax.f32 %v1031_v20, 0.0  ;;  %v6930_v20 = vor.u32 %v7003_v17, %v6927_v19 }
 0x1a1   : > { %v1194_v37 = vadd.f32 %v8091_v33, %v1193_v31 }
 0x1a2   : > { %v1095_v28 = vpack.c.bf16 %v1076_v22, %v1075_v21  ;;  %2346 = vmatpush.bf16.msra.mxu1 %v6930_v20 }
 0x1a3   : > { %v1273_v41 = vmax.f32 %v1194_v37, 0.0 }
 0x1a5   : > { %v1033_v13 = vpop.f32.mrf.mxu3 }
 0x1a6   : > { %v1034_v37 = vadd.f32 %v8035_v62, %v1033_v13 }
 0x1a8   : > { %v1195_v38 = vpop.f32.mrf.mxu1 }
 0x1a9   : > { %v1196_v39 = vadd.f32 %v8091_v33, %v1195_v38 }
 0x1ab   : > { %v1274_v42 = vmax.f32 %v1196_v39, 0.0  ;;  %6668 = vmatmul.msk.bf16.gmra.mxu2 %vm1135_vm1, %v1092_v40  ;;  %v1077_v39 = vmax.f32 %v1034_v37, 0.0 }
 0x1ad   : > { %v8096_v43 = vpack.c.bf16 %v1274_v42, %v1273_v41  ;;  %v1036_v23 = vpop.f32.mrf.mxu3 }
 0x1ae   : > { %v1037_v38 = vadd.f32 %v8035_v62, %v1036_v23 }
 0x1af   : > { %1820 = vmatmul.bf16.vlgmr.msrb.gmra.mxu3 %v8096_v43  ;;  %1909 = vmatmul.bf16.vlgmr.msrb.gmra.mxu0 %v8096_v43 }
 0x1b0   : > { %1998 = vmatmul.bf16.vlgmr.msrb.gmra.mxu1 %v8096_v43  ;;  %v1198_v47 = vpop.f32.mrf.mxu1  ;;  %v1078_v40 = vmax.f32 %v1037_v38, 0.0  ;;  %v6885_v38 = vld [vmem:[#allocation12 + $0x190] sm:$0xf] }
 0x1b1   : > { %v1199_v52 = vadd.f32 %v8091_v33, %v1198_v47 }
 0x1b2   : > { %v1096_v44 = vpack.c.bf16 %v1078_v40, %v1077_v39  ;;  %v6998_v39 = vld [vmem:[#allocation12 + $0x1ac] sm:$0xf0]  ;;  %v6994_v40 = vld [vmem:[#allocation12 + $0x194] sm:$0xf] }
 0x1b3   : > { %v1275_v57 = vmax.f32 %v1199_v52, 0.0 }
 0x1b5   : > { %v1039_v36 = vpop.f32.mrf.mxu3 }
 0x1b8   : > { %v1200_v53 = vpop.f32.mrf.mxu1 }
 0x1b9   : > { %v1201_v55 = vadd.f32 %v8091_v33, %v1200_v53  ;;  %v1040_v53 = vadd.f32 %v8035_v62, %v1039_v36 }
 0x1bb   : > { %v1276_v58 = vmax.f32 %v1201_v55, 0.0  ;;  %6669 = vmatmul.msk.bf16.gmra.mxu2 %vm1135_vm1, %v1093_v56  ;;  %v1079_v56 = vmax.f32 %v1040_v53, 0.0  ;;  %v8169_v53 = vld [vmem:[#allocation13] sm:$0xff] }
 0x1bd   : > { %v8106_v59 = vpack.c.bf16 %v1276_v58, %v1275_v57  ;;  %v1042_v45 = vpop.f32.mrf.mxu3 }
 0x1be   : > { %v1043_v54 = vadd.f32 %v8035_v62, %v1042_v45  ;;  %v6893_v45 = vld [vmem:[#allocation12 + $0x198] sm:$0xf] }
 0x1bf   : > { %1825 = vmatmul.bf16.gmra.mxu3 %v8106_v59  ;;  %1914 = vmatmul.bf16.gmra.mxu0 %v8106_v59 }
 0x1c0   : > { %2003 = vmatmul.bf16.gmra.mxu1 %v8106_v59  ;;  %v1203_v1 = vpop.f32.mrf.mxu1  ;;  %v1080_v57 = vmax.f32 %v1043_v54, 0.0 }
 0x1c1   : > { %v1204_v7 = vadd.f32 %v8091_v33, %v1203_v1 }
 0x1c2   : > { %v1097_v0 = vpack.c.bf16 %v1080_v57, %v1079_v56  ;;  %v8174_v57 = vperm.slane %v8169_v53, 2 }
 0x1c3   : > { %v1277_v11 = vmax.f32 %v1204_v7, 0.0 }
 0x1c5   : > { %v1045_v55 = vpop.f32.mrf.mxu3 }
 0x1c8   : > { %v1205_v8 = vpop.f32.mrf.mxu1 }
 0x1c9   : > { %v1206_v9 = vadd.f32 %v8091_v33, %v1205_v8  ;;  %v6918_v8 = vor.u32 %v7006_v5, %v6917_v4 }
 0x1cb   : > { %v1278_v12 = vmax.f32 %v1206_v9, 0.0  ;;  %6670 = vmatmul.msk.bf16.gmra.mxu2 %vm1135_vm1, %v1094_v10  ;;  %v6919_v9 = vld [vmem:[#allocation12 + $0x1f0] sm:$0xf0] }
 0x1cc   : > { %v6922_v10 = vor.u32 %v7002_v6, %v6919_v9  ;;  %2079 = vmatpush.bf16.msra.mxu2 %v6918_v8 }
 0x1cd   : > { %v8116_v14 = vpack.c.bf16 %v1278_v12, %v1277_v11  ;;  %v1048_v7 = vpop.f32.mrf.mxu3  ;;  %v1046_v12 = vadd.f32 %v8035_v62, %v1045_v55 }
 0x1ce   : > { %v1049_v13 = vadd.f32 %v8035_v62, %v1048_v7  ;;  %2168 = vmatpush.bf16.msra.mxu3 %v6922_v10 }
 0x1cf   : > { %1830 = vmatmul.bf16.gmra.mxu3 %v8116_v14  ;;  %1919 = vmatmul.bf16.gmra.mxu0 %v8116_v14  ;;  %v1081_v21 = vmax.f32 %v1046_v12, 0.0 }
 0x1d0   : > { %2008 = vmatmul.bf16.gmra.mxu1 %v8116_v14  ;;  %v1208_v18 = vpop.f32.mrf.mxu1  ;;  %v1082_v22 = vmax.f32 %v1049_v13, 0.0 }
 0x1d1   : > { %v1209_v24 = vadd.f32 %v8091_v33, %v1208_v18  ;;  %v6926_v18 = vor.u32 %v7007_v16, %v6925_v15 }
 0x1d3   : > { %v1279_v29 = vmax.f32 %v1209_v24, 0.0  ;;  %2257 = vmatpush.bf16.msra.mxu0 %v6926_v18 }
 0x1d8   : > { %v1210_v25 = vpop.f32.mrf.mxu1 }
 0x1d9   : > { %v1211_v26 = vadd.f32 %v8091_v33, %v1210_v25 }
 0x1db   : > { %v1280_v30 = vmax.f32 %v1211_v26, 0.0  ;;  %6671 = vmatmul.msk.bf16.gmra.mxu2 %vm1135_vm1, %v1095_v28  ;;  %v1098_v26 = vpack.c.bf16 %v1082_v22, %v1081_v21 }
 0x1dd   : > { %v8126_v31 = vpack.c.bf16 %v1280_v30, %v1279_v29 }
 0x1df   : > { %1835 = vmatmul.bf16.gmra.mxu3 %v8126_v31  ;;  %1924 = vmatmul.bf16.gmra.mxu0 %v8126_v31 }
 0x1e0   : > { %2013 = vmatmul.bf16.gmra.mxu1 %v8126_v31  ;;  %v1213_v35 = vpop.f32.mrf.mxu1 }
 0x1e1   : > { %v1214_v41 = vadd.f32 %v8091_v33, %v1213_v35 }
 0x1e3   : > { %v1281_v46 = vmax.f32 %v1214_v41, 0.0 }
 0x1e8   : > { %v1215_v42 = vpop.f32.mrf.mxu1 }
 0x1e9   : > { %v1216_v27 = vadd.f32 %v8091_v33, %v1215_v42  ;;  %v6886_v42 = vor.u32 %v6998_v39, %v6885_v38 }
 0x1eb   : > { %v1282_v47 = vmax.f32 %v1216_v27, 0.0  ;;  %6672 = vmatmul.msk.bf16.gmra.mxu2 %vm1135_vm1, %v1096_v44  ;;  %v6887_v27 = vld [vmem:[#allocation12 + $0x1b0] sm:$0xf0] }
 0x1ec   : > { %v6890_v44 = vor.u32 %v6994_v40, %v6887_v27  ;;  %2080 = vmatpush.bf16.msra.mxu2 %v6886_v42  ;;  %v6861_v27 = vld [vmem:[#allocation12 + $0x158] sm:$0xf] }
 0x1ed   : > { %v8136_v48 = vpack.c.bf16 %v1282_v47, %v1281_v46  ;;  %v6999_v46 = vld [vmem:[#allocation12 + $0x1b4] sm:$0xf0]  ;;  %v6995_v47 = vld [vmem:[#allocation12 + $0x19c] sm:$0xf] }
 0x1ee   : > { %2169 = vmatpush.bf16.msra.mxu3 %v6890_v44  ;;  %v6894_v49 = vor.u32 %v6999_v46, %v6893_v45  ;;  %v6898_v51 = vor.u32 %v6995_v47, %v6895_v50  ;;  %v6991_v44 = vld [vmem:[#allocation12 + $0x174] sm:$0xf0]  ;;  %v6987_v45 = vld [vmem:[#allocation12 + $0x15c] sm:$0xf] }
 0x1ef   : > { %1840 = vmatmul.bf16.gmra.mxu3 %v8136_v48  ;;  %1929 = vmatmul.bf16.gmra.mxu0 %v8136_v48  ;;  %v6862_v46 = vor.u32 %v6991_v44, %v6861_v27  ;;  %v6863_v47 = vld [vmem:[#allocation12 + $0x178] sm:$0xf0] }
 0x1f0   : > { %2018 = vmatmul.bf16.gmra.mxu1 %v8136_v48  ;;  %v1218_v52 = vpop.f32.mrf.mxu1  ;;  %2258 = vmatpush.bf16.msra.mxu0 %v6894_v49  ;;  %v6866_v50 = vor.u32 %v6987_v45, %v6863_v47  ;;  %v6821_v45 = vld [vmem:[#allocation12 + $0x110] sm:$0xf] }
 0x1f1   : > { %v1219_v58 = vadd.f32 %v8091_v33, %v1218_v52  ;;  %2347 = vmatpush.bf16.msra.mxu1 %v6898_v51 }
 0x1f3   : > { %v1283_v1 = vmax.f32 %v1219_v58, 0.0  ;;  %v8177_v58 = vperm.slane %v8169_v53, 3 }
 0x1f4   : > { %2259 = vmatpush.bf16.msra.mxu0 %v6862_v46  ;;  %v6982_v46 = vld [vmem:[#allocation12 + $0x12c] sm:$0xf0] }
 0x1f5   : > { %2348 = vmatpush.bf16.msra.mxu1 %v6866_v50  ;;  %v6822_v50 = vor.u32 %v6982_v46, %v6821_v45 }
 0x1f8   : > { %v1220_v60 = vpop.f32.mrf.mxu1 }
 0x1f9   : > { %v1221_v63 = vadd.f32 %v8091_v33, %v1220_v60 }
 0x1fb   : > { %v1284_v2 = vmax.f32 %v1221_v63, 0.0  ;;  %6673 = vmatmul.msk.bf16.gmra.mxu2 %vm1135_vm1, %v1097_v0 }
 0x1fd   : > { %v8146_v3 = vpack.c.bf16 %v1284_v2, %v1283_v1 }
 0x1ff   : > { %1845 = vmatmul.bf16.gmra.mxu3 %v8146_v3  ;;  %1934 = vmatmul.bf16.gmra.mxu0 %v8146_v3 }
 0x200   : > { %2023 = vmatmul.bf16.gmra.mxu1 %v8146_v3  ;;  %v1223_v11 = vpop.f32.mrf.mxu1 }
 0x201   : > { %v1224_v23 = vadd.f32 %v8091_v33, %v1223_v11 }
 0x203   : > { %v1285_v28 = vmax.f32 %v1224_v23, 0.0 }
 0x208   : > { %v1225_v24 = vpop.f32.mrf.mxu1 }
 0x209   : > { %v1226_v25 = vadd.f32 %v8091_v33, %v1225_v24 }
 0x20b   : > { %v1286_v29 = vmax.f32 %v1226_v25, 0.0  ;;  %6674 = vmatmul.msk.bf16.gmra.mxu2 %vm1135_vm1, %v1098_v26 }
 0x20d   : > { %v8156_v62 = vpack.c.bf16 %v1286_v29, %v1285_v28  ;;  %v6853_v29 = vld [vmem:[#allocation12 + $0x150] sm:$0xf] }
 0x20f   : > { %1850 = vmatmul.bf16.gmra.mxu3 %v8156_v62  ;;  %1939 = vmatmul.bf16.gmra.mxu0 %v8156_v62 }
 0x210   : > { %2028 = vmatmul.bf16.gmra.mxu1 %v8156_v62  ;;  %v1228_v30 = vpop.f32.mrf.mxu1 }
 0x211   : > { %v1229_v32 = vadd.f32 %v8091_v33, %v1228_v30  ;;  %v6990_v30 = vld [vmem:[#allocation12 + $0x16c] sm:$0xf0] }
 0x213   : > { %v1287_v35 = vmax.f32 %v1229_v32, 0.0 }
 0x218   : > { %v1230_v61 = vpop.f32.mrf.mxu1 }
 0x219   : > { %v1231_v34 = vadd.f32 %v8091_v33, %v1230_v61 }
 0x21b   : > { %v1288_v36 = vmax.f32 %v1231_v34, 0.0  ;;  %1731 = vmatmul.bf16.vlgmr.msrb.gmra.mxu2 %v8096_v43  ;;  %v6854_v34 = vor.u32 %v6990_v30, %v6853_v29 }
 0x21d   : > { %v8164_v37 = vpack.c.bf16 %v1288_v36, %v1287_v35  ;;  %v6986_v35 = vld [vmem:[#allocation12 + $0x154] sm:$0xf]  ;;  %2081 = vmatpush.bf16.msra.mxu2 %v6854_v34 }
 0x21e   : > { %v1233_v41 = vpop.f32.mrf.mxu2  ;;  %v6855_v36 = vld [vmem:[#allocation12 + $0x170] sm:$0xf0] }
 0x21f   : > { %1855 = vmatmul.bf16.gmra.mxu3 %v8164_v37  ;;  %1944 = vmatmul.bf16.gmra.mxu0 %v8164_v37  ;;  %v1234_v54 = vadd.f32 %v8091_v33, %v1233_v41  ;;  %v6858_v39 = vor.u32 %v6986_v35, %v6855_v36 }
 0x220   : > { %2033 = vmatmul.bf16.gmra.mxu1 %v8164_v37 }
 0x221   : > { %v1289_v60 = vmax.f32 %v1234_v54, 0.0  ;;  %2170 = vmatpush.bf16.msra.mxu3 %v6858_v39  ;;  %2082 = vmatpush.bf16.msra.mxu2 %v6822_v50 }
 0x226   : > { %v1235_v52 = vpop.f32.mrf.mxu2 }
 0x227   : > { %v1236_v55 = vadd.f32 %v8091_v33, %v1235_v52 }
 0x229   : > { %v1290_v56 = vmax.f32 %v1236_v55, 0.0 }
 0x22b   : > { %1736 = vmatmul.bf16.gmra.mxu2 %v8106_v59  ;;  %v8180_v0 = vpack.c.bf16 %v1290_v56, %v1289_v60 }
 0x22c   : > { %v1910_v63 = vpop.f32.mrf.mxu0 }
 0x22d   : > { %v1911_v1 = vadd.f32 %v1910_v63, %v8174_v57  ;;  %v1999_v2 = vpop.f32.mrf.mxu1 }
 0x22e   : > { %v2000_v4 = vadd.f32 %v1999_v2, %v8177_v58  ;;  %v1238_v5 = vpop.f32.mrf.mxu2 }
 0x22f   : > { %v2821_v6 = vmax.f32 %v1911_v1, 0.0  ;;  %1860 = vmatmul.bf16.gmra.mxu3 %v8180_v0  ;;  %1949 = vmatmul.bf16.gmra.mxu0 %v8180_v0  ;;  %v1239_v16 = vadd.f32 %v8091_v33, %v1238_v5 }
 0x230   : > { %v2822_v7 = vmax.f32 %v2000_v4, 0.0  ;;  %2038 = vmatmul.bf16.gmra.mxu1 %v8180_v0 }
 0x231   : > { %v1291_v23 = vmax.f32 %v1239_v16, 0.0 }
 0x232   : > { %v8187_v8 = vpack.c.bf16 %v2822_v7, %v2821_v6  ;;  %v8189_v9 = vpop.f32.mrf.mxu3 }
 0x234   : > { %10963 = vst [vmem:[#allocation38_spill] sm:$0xff] %v8187_v8  ;;  %v1912_v10 = vpop.f32.mrf.mxu0 }
 0x235   : > { %v1913_v11 = vadd.f32 %v1912_v10, %v8174_v57  ;;  %v2001_v12 = vpop.f32.mrf.mxu1 }
 0x236   : > { %v2002_v13 = vadd.f32 %v2001_v12, %v8177_v58  ;;  %v1240_v15 = vpop.f32.mrf.mxu2 }
 0x237   : > { %v2829_v17 = vmax.f32 %v1913_v11, 0.0  ;;  %v1241_v18 = vadd.f32 %v8091_v33, %v1240_v15 }
 0x238   : > { %v2830_v19 = vmax.f32 %v2002_v13, 0.0 }
 0x239   : > { %v1292_v20 = vmax.f32 %v1241_v18, 0.0 }
 0x23a   : > { %v8195_v21 = vpack.c.bf16 %v2830_v19, %v2829_v17  ;;  %v8197_v22 = vpop.f32.mrf.mxu3 }
 0x23b   : > { %1741 = vmatmul.bf16.gmra.mxu2 %v8116_v14  ;;  %v8200_v25 = vpack.c.bf16 %v1292_v20, %v1291_v23 }
 0x23c   : > { %10964 = vst [vmem:[#allocation39_spill] sm:$0xff] %v8195_v21  ;;  %v1915_v24 = vpop.f32.mrf.mxu0 }
 0x23d   : > { %v1916_v26 = vadd.f32 %v1915_v24, %v8174_v57  ;;  %v2004_v28 = vpop.f32.mrf.mxu1 }
 0x23e   : > { %v2005_v32 = vadd.f32 %v2004_v28, %v8177_v58  ;;  %v1243_v61 = vpop.f32.mrf.mxu2 }
 0x23f   : > { %v2837_v38 = vmax.f32 %v1916_v26, 0.0  ;;  %1865 = vmatmul.bf16.gmra.mxu3 %v8200_v25  ;;  %1954 = vmatmul.bf16.gmra.mxu0 %v8200_v25  ;;  %v1244_v56 = vadd.f32 %v8091_v33, %v1243_v61 }
 0x240   : > { %v2838_v40 = vmax.f32 %v2005_v32, 0.0  ;;  %2043 = vmatmul.bf16.gmra.mxu1 %v8200_v25 }
 0x241   : > { %v1293_v6 = vmax.f32 %v1244_v56, 0.0 }
 0x242   : > { %v8207_v41 = vpack.c.bf16 %v2838_v40, %v2837_v38  ;;  %v8209_v42 = vpop.f32.mrf.mxu3 }
 0x244   : > { %10965 = vst [vmem:[#allocation40_spill] sm:$0xff] %v8207_v41  ;;  %v1917_v49 = vpop.f32.mrf.mxu0 }
 0x245   : > { %v1918_v51 = vadd.f32 %v1917_v49, %v8174_v57  ;;  %v2006_v52 = vpop.f32.mrf.mxu1 }
 0x246   : > { %v2007_v54 = vadd.f32 %v2006_v52, %v8177_v58  ;;  %v1245_v55 = vpop.f32.mrf.mxu2  ;;  %v6823_v52 = vld [vmem:[#allocation12 + $0x130] sm:$0xf0] }
 0x247   : > { %v2845_v60 = vmax.f32 %v1918_v51, 0.0  ;;  %v1246_v63 = vadd.f32 %v8091_v33, %v1245_v55  ;;  %v6978_v51 = vld [vmem:[#allocation12 + $0x114] sm:$0xf] }
 0x248   : > { %v2846_v1 = vmax.f32 %v2007_v54, 0.0  ;;  %v6826_v55 = vor.u32 %v6978_v51, %v6823_v52 }
 0x249   : > { %v1294_v2 = vmax.f32 %v1246_v63, 0.0 }
 0x24a   : > { %v8215_v4 = vpack.c.bf16 %v2846_v1, %v2845_v60  ;;  %v8217_v5 = vpop.f32.mrf.mxu3  ;;  %2171 = vmatpush.bf16.msra.mxu3 %v6826_v55  ;;  %v6829_v1 = vld [vmem:[#allocation12 + $0x118] sm:$0xf] }
 0x24b   : > { %1746 = vmatmul.bf16.gmra.mxu2 %v8126_v31  ;;  %v8220_v10 = vpack.c.bf16 %v1294_v2, %v1293_v6  ;;  %v6983_v2 = vld [vmem:[#allocation12 + $0x134] sm:$0xf0]  ;;  %v6979_v6 = vld [vmem:[#allocation12 + $0x11c] sm:$0xf] }
 0x24c   : > { %10966 = vst [vmem:[#allocation41_spill] sm:$0xff] %v8215_v4  ;;  %v1920_v7 = vpop.f32.mrf.mxu0 }
 0x24d   : > { %v1921_v11 = vadd.f32 %v1920_v7, %v8174_v57  ;;  %v2009_v12 = vpop.f32.mrf.mxu1  ;;  %v6830_v7 = vor.u32 %v6983_v2, %v6829_v1 }
 0x24e   : > { %v2010_v13 = vadd.f32 %v2009_v12, %v8177_v58  ;;  %v1248_v15 = vpop.f32.mrf.mxu2 }
 0x24f   : > { %v2853_v16 = vmax.f32 %v1921_v11, 0.0  ;;  %1870 = vmatmul.bf16.gmra.mxu3 %v8220_v10  ;;  %1959 = vmatmul.bf16.gmra.mxu0 %v8220_v10  ;;  %v1249_v29 = vadd.f32 %v8091_v33, %v1248_v15  ;;  %v6831_v11 = vld [vmem:[#allocation12 + $0x138] sm:$0xf0] }
 0x250   : > { %v2854_v17 = vmax.f32 %v2010_v13, 0.0  ;;  %2048 = vmatmul.bf16.gmra.mxu1 %v8220_v10  ;;  %v6834_v13 = vor.u32 %v6979_v6, %v6831_v11  ;;  %2260 = vmatpush.bf16.msra.mxu0 %v6830_v7 }
 0x251   : > { %v1295_v38 = vmax.f32 %v1249_v29, 0.0 }
 0x252   : > { %v8227_v18 = vpack.c.bf16 %v2854_v17, %v2853_v16  ;;  %v8229_v19 = vpop.f32.mrf.mxu3  ;;  %2349 = vmatpush.bf16.msra.mxu1 %v6834_v13 }
 0x254   : > { %10967 = vst [vmem:[#allocation42_spill] sm:$0xff] %v8227_v18  ;;  %v1922_v20 = vpop.f32.mrf.mxu0 }
 0x255   : > { %v1923_v23 = vadd.f32 %v1922_v20, %v8174_v57  ;;  %v2011_v24 = vpop.f32.mrf.mxu1 }
 0x256   : > { %v2012_v26 = vadd.f32 %v2011_v24, %v8177_v58  ;;  %v1250_v28 = vpop.f32.mrf.mxu2 }
 0x257   : > { %v2861_v30 = vmax.f32 %v1923_v23, 0.0  ;;  %v1251_v32 = vadd.f32 %v8091_v33, %v1250_v28 }
 0x258   : > { %v2862_v61 = vmax.f32 %v2012_v26, 0.0 }
 0x259   : > { %v1296_v34 = vmax.f32 %v1251_v32, 0.0 }
 0x25a   : > { %v8235_v35 = vpack.c.bf16 %v2862_v61, %v2861_v30  ;;  %v8237_v36 = vpop.f32.mrf.mxu3 }
 0x25b   : > { %1751 = vmatmul.bf16.gmra.mxu2 %v8136_v48  ;;  %v8240_v40 = vpack.c.bf16 %v1296_v34, %v1295_v38 }
 0x25c   : > { %10968 = vst [vmem:[#allocation43_spill] sm:$0xff] %v8235_v35  ;;  %v1925_v39 = vpop.f32.mrf.mxu0 }
 0x25d   : > { %v1926_v27 = vadd.f32 %v1925_v39, %v8174_v57  ;;  %v2014_v44 = vpop.f32.mrf.mxu1 }
 0x25e   : > { %v2015_v47 = vadd.f32 %v2014_v44, %v8177_v58  ;;  %v1253_v49 = vpop.f32.mrf.mxu2 }
 0x25f   : > { %v2869_v54 = vmax.f32 %v1926_v27, 0.0  ;;  %1875 = vmatmul.bf16.gmra.mxu3 %v8240_v40  ;;  %1964 = vmatmul.bf16.gmra.mxu0 %v8240_v40  ;;  %v1254_v23 = vadd.f32 %v8091_v33, %v1253_v49 }
 0x260   : > { %v2870_v56 = vmax.f32 %v2015_v47, 0.0  ;;  %2053 = vmatmul.bf16.gmra.mxu1 %v8240_v40 }
 0x261   : > { %v1297_v61 = vmax.f32 %v1254_v23, 0.0 }
 0x262   : > { %v8247_v60 = vpack.c.bf16 %v2870_v56, %v2869_v54  ;;  %v8249_v63 = vpop.f32.mrf.mxu3 }
 0x264   : > { %10969 = vst [vmem:[#allocation44_spill] sm:$0xff] %v8247_v60  ;;  %v1927_v12 = vpop.f32.mrf.mxu0 }
 0x265   : > { %v1928_v15 = vadd.f32 %v1927_v12, %v8174_v57  ;;  %v2016_v16 = vpop.f32.mrf.mxu1 }
 0x266   : > { %v2017_v17 = vadd.f32 %v2016_v16, %v8177_v58  ;;  %v1255_v20 = vpop.f32.mrf.mxu2 }
 0x267   : > { %v2877_v24 = vmax.f32 %v1928_v15, 0.0  ;;  %v1256_v26 = vadd.f32 %v8091_v33, %v1255_v20 }
 0x268   : > { %v2878_v28 = vmax.f32 %v2017_v17, 0.0 }
 0x269   : > { %v1298_v29 = vmax.f32 %v1256_v26, 0.0  ;;  %v6974_v26 = vld [vmem:[#allocation12 + $0xec] sm:$0xf0] }
 0x26a   : > { %v8255_v30 = vpack.c.bf16 %v2878_v28, %v2877_v24  ;;  %v8257_v32 = vpop.f32.mrf.mxu3  ;;  %v6789_v24 = vld [vmem:[#allocation12 + $0xd0] sm:$0xf] }
 0x26b   : > { %1756 = vmatmul.bf16.gmra.mxu2 %v8146_v3  ;;  %v8260_v38 = vpack.c.bf16 %v1298_v29, %v1297_v61  ;;  %v6790_v61 = vor.u32 %v6974_v26, %v6789_v24 }
 0x26c   : > { %10970 = vst [vmem:[#allocation45_spill] sm:$0xff] %v8255_v30  ;;  %v1930_v34 = vpop.f32.mrf.mxu0 }
 0x26d   : > { %v1931_v39 = vadd.f32 %v1930_v34, %v8174_v57  ;;  %v2019_v27 = vpop.f32.mrf.mxu1  ;;  %v6970_v34 = vld [vmem:[#allocation12 + $0xd4] sm:$0xf]  ;;  %2083 = vmatpush.bf16.msra.mxu2 %v6790_v61 }
 0x26e   : > { %v2020_v44 = vadd.f32 %v2019_v27, %v8177_v58  ;;  %v1258_v45 = vpop.f32.mrf.mxu2 }
 0x26f   : > { %v2885_v46 = vmax.f32 %v1931_v39, 0.0  ;;  %1880 = vmatmul.bf16.gmra.mxu3 %v8260_v38  ;;  %1969 = vmatmul.bf16.gmra.mxu0 %v8260_v38  ;;  %v1259_v1 = vadd.f32 %v8091_v33, %v1258_v45  ;;  %v6791_v39 = vld [vmem:[#allocation12 + $0xf0] sm:$0xf0]  ;;  %v6797_v45 = vld [vmem:[#allocation12 + $0xd8] sm:$0xf] }
 0x270   : > { %v2886_v47 = vmax.f32 %v2020_v44, 0.0  ;;  %2058 = vmatmul.bf16.gmra.mxu1 %v8260_v38  ;;  %v6794_v44 = vor.u32 %v6970_v34, %v6791_v39 }
 0x271   : > { %v1299_v15 = vmax.f32 %v1259_v1, 0.0 }
 0x272   : > { %v8267_v49 = vpack.c.bf16 %v2886_v47, %v2885_v46  ;;  %v8269_v50 = vpop.f32.mrf.mxu3  ;;  %v6975_v46 = vld [vmem:[#allocation12 + $0xf4] sm:$0xf0]  ;;  %2172 = vmatpush.bf16.msra.mxu3 %v6794_v44  ;;  %v6954_v44 = vld [vmem:[#allocation12 + $0x54] sm:$0xf] }
 0x274   : > { %10971 = vst [vmem:[#allocation46_spill] sm:$0xff] %v8267_v49  ;;  %v1932_v51 = vpop.f32.mrf.mxu0 }
 0x275   : > { %v1933_v52 = vadd.f32 %v1932_v51, %v8174_v57  ;;  %v2021_v54 = vpop.f32.mrf.mxu1  ;;  %v6798_v51 = vor.u32 %v6975_v46, %v6797_v45  ;;  %v6727_v45 = vld [vmem:[#allocation12 + $0x70] sm:$0xf0]  ;;  %v6733_v46 = vld [vmem:[#allocation12 + $0x58] sm:$0xf] }
 0x276   : > { %v2022_v55 = vadd.f32 %v2021_v54, %v8177_v58  ;;  %v1260_v56 = vpop.f32.mrf.mxu2  ;;  %v6799_v54 = vld [vmem:[#allocation12 + $0xf8] sm:$0xf0] }
 0x277   : > { %v2893_v2 = vmax.f32 %v1933_v52, 0.0  ;;  %v1261_v6 = vadd.f32 %v8091_v33, %v1260_v56  ;;  %v6971_v52 = vld [vmem:[#allocation12 + $0xdc] sm:$0xf]  ;;  %2261 = vmatpush.bf16.msra.mxu0 %v6798_v51 }
 0x278   : > { %v2894_v7 = vmax.f32 %v2022_v55, 0.0  ;;  %v6802_v55 = vor.u32 %v6971_v52, %v6799_v54  ;;  %v6730_v52 = vor.u32 %v6954_v44, %v6727_v45  ;;  %v6959_v54 = vld [vmem:[#allocation12 + $0x74] sm:$0xf0] }
 0x279   : > { %v1300_v11 = vmax.f32 %v1261_v6, 0.0  ;;  %v6759_v6 = vld [vmem:[#allocation12 + $0xb0] sm:$0xf0] }
 0x27a   : > { %v8275_v12 = vpack.c.bf16 %v2894_v7, %v2893_v2  ;;  %v8277_v13 = vpop.f32.mrf.mxu3  ;;  %v6962_v2 = vld [vmem:[#allocation12 + $0x94] sm:$0xf]  ;;  %v6765_v7 = vld [vmem:[#allocation12 + $0x98] sm:$0xf]  ;;  %2350 = vmatpush.bf16.msra.mxu1 %v6802_v55  ;;  %v6955_v55 = vld [vmem:[#allocation12 + $0x5c] sm:$0xf] }
 0x27b   : > { %1761 = vmatmul.bf16.gmra.mxu2 %v8156_v62  ;;  %v8280_v17 = vpack.c.bf16 %v1300_v11, %v1299_v15  ;;  %v6762_v11 = vor.u32 %v6962_v2, %v6759_v6  ;;  %v6967_v15 = vld [vmem:[#allocation12 + $0xb4] sm:$0xf0]  ;;  %v6735_v6 = vld [vmem:[#allocation12 + $0x78] sm:$0xf0] }
 0x27c   : > { %10972 = vst [vmem:[#allocation47_spill] sm:$0xff] %v8275_v12  ;;  %v1935_v16 = vpop.f32.mrf.mxu0  ;;  %v6766_v24 = vor.u32 %v6967_v15, %v6765_v7  ;;  %v6693_v12 = vld [vmem:[#allocation12 + $0x10] sm:$0xf] }
 0x27d   : > { %v1936_v20 = vadd.f32 %v1935_v16, %v8174_v57  ;;  %v2024_v23 = vpop.f32.mrf.mxu1  ;;  %v6963_v16 = vld [vmem:[#allocation12 + $0x9c] sm:$0xf]  ;;  %2173 = vmatpush.bf16.msra.mxu3 %v6762_v11  ;;  %v6738_v11 = vor.u32 %v6955_v55, %v6735_v6 }
 0x27e   : > { %v2025_v28 = vadd.f32 %v2024_v23, %v8177_v58  ;;  %v1263_v29 = vpop.f32.mrf.mxu2  ;;  %2262 = vmatpush.bf16.msra.mxu0 %v6766_v24  ;;  %v6695_v24 = vld [vmem:[#allocation12 + $0x30] sm:$0xf0] }
 0x27f   : > { %v2901_v27 = vmax.f32 %v1936_v20, 0.0  ;;  %1885 = vmatmul.bf16.gmra.mxu3 %v8280_v17  ;;  %1974 = vmatmul.bf16.gmra.mxu0 %v8280_v17  ;;  %v6767_v20 = vld [vmem:[#allocation12 + $0xb8] sm:$0xf0] }
 0x280   : > { %v2902_v47 = vmax.f32 %v2025_v28, 0.0  ;;  %2063 = vmatmul.bf16.gmra.mxu1 %v8280_v17  ;;  %v6770_v26 = vor.u32 %v6963_v16, %v6767_v20  ;;  %v1264_v28 = vadd.f32 %v8091_v33, %v1263_v29  ;;  %v6734_v29 = vor.u32 %v6959_v54, %v6733_v46 }
 0x281   : > { %2174 = vmatpush.bf16.msra.mxu3 %v6730_v52 }
 0x282   : > { %v8287_v56 = vpack.c.bf16 %v2902_v47, %v2901_v27  ;;  %v8289_v1 = vpop.f32.mrf.mxu3  ;;  %2351 = vmatpush.bf16.msra.mxu1 %v6770_v26  ;;  %v1301_v7 = vmax.f32 %v1264_v28, 0.0  ;;  %2263 = vmatpush.bf16.msra.mxu0 %v6734_v29 }
 0x284   : > { %10973 = vst [vmem:[#allocation48_spill] sm:$0xff] %v8287_v56  ;;  %v1937_v23 = vpop.f32.mrf.mxu0 }
 0x285   : > { %v1938_v61 = vadd.f32 %v1937_v23, %v8174_v57  ;;  %v2026_v34 = vpop.f32.mrf.mxu1  ;;  %v6946_v23 = vld [vmem:[#allocation12 + $0x14] sm:$0xf] }
 0x286   : > { %v2027_v39 = vadd.f32 %v2026_v34, %v8177_v58  ;;  %v1265_v27 = vpop.f32.mrf.mxu2  ;;  %2352 = vmatpush.bf16.msra.mxu1 %v6738_v11  ;;  %v6698_v26 = vor.u32 %v6946_v23, %v6695_v24  ;;  %v6951_v34 = vld [vmem:[#allocation12 + $0x34] sm:$0xf0] }
 0x287   : > { %v2909_v47 = vmax.f32 %v1938_v61, 0.0  ;;  %v1266_v51 = vadd.f32 %v8091_v33, %v1265_v27  ;;  %v6701_v61 = vld [vmem:[#allocation12 + $0x18] sm:$0xf]  ;;  %v6703_v27 = vld [vmem:[#allocation12 + $0x38] sm:$0xf0] }
 0x288   : > { %v2910_v2 = vmax.f32 %v2027_v39, 0.0  ;;  %v6947_v39 = vld [vmem:[#allocation12 + $0x1c] sm:$0xf]  ;;  %v6702_v28 = vor.u32 %v6951_v34, %v6701_v61  ;;  %2175 = vmatpush.bf16.msra.mxu3 %v6698_v26 }
 0x289   : > { %v1302_v15 = vmax.f32 %v1266_v51, 0.0  ;;  %v6706_v51 = vor.u32 %v6947_v39, %v6703_v27  ;;  %v8316_v27 = vperm.slane %v8169_v53, 1 }
 0x28a   : > { %v8295_v16 = vpack.c.bf16 %v2910_v2, %v2909_v47  ;;  %v8297_v20 = vpop.f32.mrf.mxu3  ;;  %2264 = vmatpush.bf16.msra.mxu0 %v6702_v28 }
 0x28b   : > { %1766 = vmatmul.bf16.gmra.mxu2 %v8164_v37  ;;  %v8300_v45 = vpack.c.bf16 %v1302_v15, %v1301_v7  ;;  %2353 = vmatpush.bf16.msra.mxu1 %v6706_v51  ;;  %v8324_v51 = vperm.slane %v8169_v53, 0 }
 0x28c   : > { %10974 = vst [vmem:[#allocation49_spill] sm:$0xff] %v8295_v16  ;;  %v1940_v44 = vpop.f32.mrf.mxu0 }
 0x28d   : > { %v1941_v46 = vadd.f32 %v1940_v44, %v8174_v57  ;;  %v2029_v47 = vpop.f32.mrf.mxu1 }
 0x28e   : > { %v2030_v52 = vadd.f32 %v2029_v47, %v8177_v58  ;;  %v1268_v54 = vpop.f32.mrf.mxu2 }
 0x28f   : > { %v2917_v55 = vmax.f32 %v1941_v46, 0.0  ;;  %1890 = vmatmul.bf16.gmra.mxu3 %v8300_v45  ;;  %1979 = vmatmul.bf16.gmra.mxu0 %v8300_v45  ;;  %v1269_v61 = vadd.f32 %v8091_v33, %v1268_v54  ;;  %v1822_v54 = vadd.f32 %v8189_v9, %v8316_v27 }
 0x290   : > { %v2918_v2 = vmax.f32 %v2030_v52, 0.0  ;;  %2068 = vmatmul.bf16.gmra.mxu1 %v8300_v45 }
 0x291   : > { %v1303_v46 = vmax.f32 %v1269_v61, 0.0  ;;  %v2820_v9 = vmax.f32 %v1822_v54, 0.0 }
 0x292   : > { %v8307_v29 = vpack.c.bf16 %v2918_v2, %v2917_v55  ;;  %v8309_v6 = vpop.f32.mrf.mxu3 }
 0x294   : > { %10975 = vst [vmem:[#allocation50_spill] sm:$0xff] %v8307_v29  ;;  %v1942_v7 = vpop.f32.mrf.mxu0 }
 0x295   : > { %v1943_v15 = vadd.f32 %v1942_v7, %v8174_v57  ;;  %v2031_v11 = vpop.f32.mrf.mxu1  ;;  %v6757_v7 = vld [vmem:[#allocation12 + $0x90] sm:$0xf] }
 0x296   : > { %v2032_v23 = vadd.f32 %v2031_v11, %v8177_v58  ;;  %v1270_v24 = vpop.f32.mrf.mxu2 }
 0x297   : > { %v2925_v26 = vmax.f32 %v1943_v15, 0.0  ;;  %v1271_v34 = vadd.f32 %v8091_v33, %v1270_v24  ;;  %v6966_v15 = vld [vmem:[#allocation12 + $0xac] sm:$0xf0] }
 0x298   : > { %v2926_v39 = vmax.f32 %v2032_v23, 0.0  ;;  %v6758_v24 = vor.u32 %v6966_v15, %v6757_v7 }
 0x299   : > { %v1304_v44 = vmax.f32 %v1271_v34, 0.0 }
 0x29a   : > { %v8318_v28 = vpack.c.bf16 %v2926_v39, %v2925_v26  ;;  %v8320_v47 = vpop.f32.mrf.mxu3  ;;  %2084 = vmatpush.bf16.msra.mxu2 %v6758_v24 }
 0x29b   : > { %1771 = vmatmul.bf16.gmra.mxu2 %v8180_v0  ;;  %v8328_v33 = vpack.c.bf16 %v1304_v44, %v1303_v46 }
 0x29c   : > { %10976 = vst [vmem:[#allocation51_spill] sm:$0xff] %v8318_v28  ;;  %v1945_v52 = vpop.f32.mrf.mxu0 }
 0x29d   : > { %v1946_v55 = vadd.f32 %v1945_v52, %v8174_v57  ;;  %v2034_v2 = vpop.f32.mrf.mxu1  ;;  %v1824_v52 = vadd.f32 %v8197_v22, %v8316_v27 }
 0x29e   : > { %v2035_v11 = vadd.f32 %v2034_v2, %v8177_v58  ;;  %v1732_v23 = vpop.f32.mrf.mxu2 }
 0x29f   : > { %v2933_v61 = vmax.f32 %v1946_v55, 0.0  ;;  %v1733_v26 = vadd.f32 %v1732_v23, %v8324_v51  ;;  %1895 = vmatmul.bf16.gmra.mxu3 %v8328_v33  ;;  %1984 = vmatmul.bf16.gmra.mxu0 %v8328_v33 }
 0x2a0   : > { %v2934_v53 = vmax.f32 %v2035_v11, 0.0  ;;  %2073 = vmatmul.bf16.gmra.mxu1 %v8328_v33 }
 0x2a1   : > { %v2819_v34 = vmax.f32 %v1733_v26, 0.0 }
 0x2a2   : > { %v8336_v39 = vpack.c.bf16 %v2934_v53, %v2933_v61  ;;  %v8342_v55 = vpop.f32.mrf.mxu3  ;;  %v2828_v61 = vmax.f32 %v1824_v52, 0.0 }
 0x2a3   : > { %v8338_v44 = vpack.c.bf16 %v2820_v9, %v2819_v34  ;;  %v1827_v34 = vadd.f32 %v8209_v42, %v8316_v27 }
 0x2a4   : > { %10977 = vst [vmem:[#allocation52_spill] sm:$0xff] %v8336_v39  ;;  %v1947_v46 = vpop.f32.mrf.mxu0 }
 0x2a5   : > { %10978 = vst [vmem:[#allocation53_spill] sm:$0xff] %v8338_v44  ;;  %v1948_v2 = vadd.f32 %v1947_v46, %v8174_v57  ;;  %v2036_v7 = vpop.f32.mrf.mxu1 }
 0x2a6   : > { %v2037_v15 = vadd.f32 %v2036_v7, %v8177_v58  ;;  %v1734_v11 = vpop.f32.mrf.mxu2 }
 0x2a7   : > { %v2941_v23 = vmax.f32 %v1948_v2, 0.0  ;;  %v1735_v54 = vadd.f32 %v1734_v11, %v8324_v51 }
 0x2a8   : > { %v2942_v24 = vmax.f32 %v2037_v15, 0.0 }
 0x2a9   : > { %v2827_v26 = vmax.f32 %v1735_v54, 0.0  ;;  %v2836_v54 = vmax.f32 %v1827_v34, 0.0 }
 0x2aa   : > { %v8347_v53 = vpack.c.bf16 %v2942_v24, %v2941_v23  ;;  %v8356_v11 = vpop.f32.mrf.mxu3 }
 0x2ab   : > { %v8349_v9 = vpack.c.bf16 %v2828_v61, %v2827_v26  ;;  %1776 = vmatmul.bf16.gmra.mxu2 %v8200_v25 }
 0x2ac   : > { %10979 = vst [vmem:[#allocation54_spill] sm:$0xff] %v8347_v53  ;;  %v1950_v22 = vpop.f32.mrf.mxu0 }
 0x2ad   : > { %10980 = vst [vmem:[#allocation55_spill] sm:$0xff] %v8349_v9  ;;  %v1951_v46 = vadd.f32 %v1950_v22, %v8174_v57  ;;  %v2039_v7 = vpop.f32.mrf.mxu1  ;;  %v1829_v22 = vadd.f32 %v8217_v5, %v8316_v27 }
 0x2ae   : > { %v2040_v2 = vadd.f32 %v2039_v7, %v8177_v58  ;;  %v1737_v39 = vpop.f32.mrf.mxu2 }
 0x2af   : > { %v2949_v52 = vmax.f32 %v1951_v46, 0.0  ;;  %v1738_v15 = vadd.f32 %v1737_v39, %v8324_v51  ;;  %2176 = vmatmul.bf16.vlgmr.msra.gmra.mxu3 %v8096_v43  ;;  %2265 = vmatmul.bf16.vlgmr.msra.gmra.mxu0 %v8096_v43  ;;  %v2844_v34 = vmax.f32 %v1829_v22, 0.0 }
 0x2b0   : > { %v2950_v23 = vmax.f32 %v2040_v2, 0.0  ;;  %2354 = vmatmul.bf16.vlgmr.msra.gmra.mxu1 %v8096_v43 }
 0x2b1   : > { %v2835_v42 = vmax.f32 %v1738_v15, 0.0 }
 0x2b2   : > { %v8362_v24 = vpack.c.bf16 %v2950_v23, %v2949_v52  ;;  %v8371_v15 = vpop.f32.mrf.mxu3 }
 0x2b3   : > { %v8364_v61 = vpack.c.bf16 %v2836_v54, %v2835_v42  ;;  %v1832_v42 = vadd.f32 %v8229_v19, %v8316_v27 }
 0x2b4   : > { %10981 = vst [vmem:[#allocation56_spill] sm:$0xff] %v8362_v24  ;;  %v1952_v26 = vpop.f32.mrf.mxu0 }
 0x2b5   : > { %10982 = vst [vmem:[#allocation57_spill] sm:$0xff] %v8364_v61  ;;  %v1953_v46 = vadd.f32 %v1952_v26, %v8174_v57  ;;  %v2041_v39 = vpop.f32.mrf.mxu1  ;;  %v2852_v19 = vmax.f32 %v1832_v42, 0.0 }
 0x2b6   : > { %v2042_v7 = vadd.f32 %v2041_v39, %v8177_v58  ;;  %v1739_v53 = vpop.f32.mrf.mxu2  ;;  %v6725_v39 = vld [vmem:[#allocation12 + $0x50] sm:$0xf] }
 0x2b7   : > { %v2957_v28 = vmax.f32 %v1953_v46, 0.0  ;;  %v1740_v2 = vadd.f32 %v1739_v53, %v8324_v51  ;;  %v6958_v53 = vld [vmem:[#allocation12 + $0x6c] sm:$0xf0] }
 0x2b8   : > { %v2958_v29 = vmax.f32 %v2042_v7, 0.0  ;;  %v6726_v24 = vor.u32 %v6958_v53, %v6725_v39 }
 0x2b9   : > { %v2843_v52 = vmax.f32 %v1740_v2, 0.0 }
 0x2ba   : > { %v8373_v23 = vpack.c.bf16 %v2958_v29, %v2957_v28  ;;  %2085 = vmatpush.bf16.msra.mxu2 %v6726_v24 }
 0x2bb   : > { %v8375_v54 = vpack.c.bf16 %v2844_v34, %v2843_v52  ;;  %1781 = vmatmul.bf16.gmra.mxu2 %v8220_v10 }
 0x2bc   : > { %10983 = vst [vmem:[#allocation58_spill] sm:$0xff] %v8373_v23  ;;  %v1955_v5 = vpop.f32.mrf.mxu0 }
 0x2bd   : > { %10984 = vst [vmem:[#allocation59_spill] sm:$0xff] %v8375_v54  ;;  %v1956_v26 = vadd.f32 %v1955_v5, %v8174_v57  ;;  %v2044_v46 = vpop.f32.mrf.mxu1  ;;  %v8388_v5 = vpop.f32.mrf.mxu3 }
 0x2be   : > { %v2045_v22 = vadd.f32 %v2044_v46, %v8177_v58  ;;  %v1742_v7 = vpop.f32.mrf.mxu2 }
 0x2bf   : > { %v2965_v2 = vmax.f32 %v1956_v26, 0.0  ;;  %v1743_v29 = vadd.f32 %v1742_v7, %v8324_v51  ;;  %2181 = vmatmul.bf16.gmra.mxu3 %v8106_v59  ;;  %2270 = vmatmul.bf16.gmra.mxu0 %v8106_v59  ;;  %v1834_v26 = vadd.f32 %v8237_v36, %v8316_v27  ;;  %v1837_v36 = vadd.f32 %v8249_v63, %v8316_v27 }
 0x2c0   : > { %v2966_v28 = vmax.f32 %v2045_v22, 0.0  ;;  %2359 = vmatmul.bf16.gmra.mxu1 %v8106_v59 }
 0x2c1   : > { %v2851_v34 = vmax.f32 %v1743_v29, 0.0 }
 0x2c2   : > { %v8386_v52 = vpack.c.bf16 %v2966_v28, %v2965_v2  ;;  %v2860_v2 = vmax.f32 %v1834_v26, 0.0 }
 0x2c3   : > { %v8390_v46 = vpack.c.bf16 %v2852_v19, %v2851_v34 }
 0x2c4   : > { %10985 = vst [vmem:[#allocation60_spill] sm:$0xff] %v8386_v52  ;;  %v1957_v39 = vpop.f32.mrf.mxu0 }
 0x2c5   : > { %10986 = vst [vmem:[#allocation61_spill] sm:$0xff] %v8390_v46  ;;  %v1958_v53 = vadd.f32 %v1957_v39, %v8174_v57  ;;  %v2046_v7 = vpop.f32.mrf.mxu1  ;;  %v8404_v39 = vpop.f32.mrf.mxu3 }
 0x2c6   : > { %v2047_v22 = vadd.f32 %v2046_v7, %v8177_v58  ;;  %v1744_v23 = vpop.f32.mrf.mxu2 }
 0x2c7   : > { %v2973_v16 = vmax.f32 %v1958_v53, 0.0  ;;  %v1745_v24 = vadd.f32 %v1744_v23, %v8324_v51 }
 0x2c8   : > { %v2974_v42 = vmax.f32 %v2047_v22, 0.0 }
 0x2c9   : > { %v2859_v29 = vmax.f32 %v1745_v24, 0.0 }
 0x2ca   : > { %v8397_v28 = vpack.c.bf16 %v2974_v42, %v2973_v16  ;;  %v2868_v42 = vmax.f32 %v1837_v36, 0.0 }
 0x2cb   : > { %v8399_v19 = vpack.c.bf16 %v2860_v2, %v2859_v29  ;;  %1786 = vmatmul.bf16.gmra.mxu2 %v8240_v40 }
 0x2cc   : > { %10987 = vst [vmem:[#allocation62_spill] sm:$0xff] %v8397_v28  ;;  %v1960_v34 = vpop.f32.mrf.mxu0 }
 0x2cd   : > { %10988 = vst [vmem:[#allocation63_spill] sm:$0xff] %v8399_v19  ;;  %v1961_v7 = vadd.f32 %v1960_v34, %v8174_v57  ;;  %v2049_v53 = vpop.f32.mrf.mxu1  ;;  %v8420_v56 = vpop.f32.mrf.mxu3 }
 0x2ce   : > { %v2050_v23 = vadd.f32 %v2049_v53, %v8177_v58  ;;  %v1747_v22 = vpop.f32.mrf.mxu2  ;;  %v1839_v53 = vadd.f32 %v8257_v32, %v8316_v27 }
 0x2cf   : > { %v2981_v26 = vmax.f32 %v1961_v7, 0.0  ;;  %v1748_v16 = vadd.f32 %v1747_v22, %v8324_v51  ;;  %2186 = vmatmul.bf16.gmra.mxu3 %v8116_v14  ;;  %2275 = vmatmul.bf16.gmra.mxu0 %v8116_v14 }
 0x2d0   : > { %v2982_v24 = vmax.f32 %v2050_v23, 0.0  ;;  %2364 = vmatmul.bf16.gmra.mxu1 %v8116_v14 }
 0x2d1   : > { %v2867_v63 = vmax.f32 %v1748_v16, 0.0 }
 0x2d2   : > { %v8412_v2 = vpack.c.bf16 %v2982_v24, %v2981_v26  ;;  %v2876_v26 = vmax.f32 %v1839_v53, 0.0 }
 0x2d3   : > { %v8414_v29 = vpack.c.bf16 %v2868_v42, %v2867_v63 }
 0x2d4   : > { %10989 = vst [vmem:[#allocation64_spill] sm:$0xff] %v8412_v2  ;;  %v1962_v34 = vpop.f32.mrf.mxu0 }
 0x2d5   : > { %10990 = vst [vmem:[#allocation65_spill] sm:$0xff] %v8414_v29  ;;  %v1963_v7 = vadd.f32 %v1962_v34, %v8174_v57  ;;  %v2051_v22 = vpop.f32.mrf.mxu1  ;;  %v1842_v34 = vadd.f32 %v8269_v50, %v8316_v27 }
 0x2d6   : > { %v2052_v28 = vadd.f32 %v2051_v22, %v8177_v58  ;;  %v1749_v52 = vpop.f32.mrf.mxu2 }
 0x2d7   : > { %v2989_v23 = vmax.f32 %v1963_v7, 0.0  ;;  %v1750_v36 = vadd.f32 %v1749_v52, %v8324_v51  ;;  %v6950_v7 = vld [vmem:[#allocation12 + $0x2c] sm:$0xf0]  ;;  %v2884_v50 = vmax.f32 %v1842_v34, 0.0 }
 0x2d8   : > { %v2990_v16 = vmax.f32 %v2052_v28, 0.0  ;;  %v6694_v53 = vor.u32 %v6950_v7, %v6693_v12 }
 0x2d9   : > { %v2875_v24 = vmax.f32 %v1750_v36, 0.0 }
 0x2da   : > { %v8423_v42 = vpack.c.bf16 %v2990_v16, %v2989_v23  ;;  %2086 = vmatpush.bf16.msra.mxu2 %v6694_v53 }
 0x2db   : > { %v8425_v63 = vpack.c.bf16 %v2876_v26, %v2875_v24  ;;  %1791 = vmatmul.bf16.gmra.mxu2 %v8260_v38  ;;  %v8436_v26 = vpop.f32.mrf.mxu3 }
 0x2dc   : > { %10991 = vst [vmem:[#allocation66_spill] sm:$0xff] %v8423_v42  ;;  %v1965_v32 = vpop.f32.mrf.mxu0 }
 0x2dd   : > { %10992 = vst [vmem:[#allocation67_spill] sm:$0xff] %v8425_v63  ;;  %v1966_v22 = vadd.f32 %v1965_v32, %v8174_v57  ;;  %v2054_v2 = vpop.f32.mrf.mxu1 }
 0x2de   : > { %v2055_v52 = vadd.f32 %v2054_v2, %v8177_v58  ;;  %v1752_v28 = vpop.f32.mrf.mxu2 }
 0x2df   : > { %v2997_v36 = vmax.f32 %v1966_v22, 0.0  ;;  %v1753_v23 = vadd.f32 %v1752_v28, %v8324_v51  ;;  %2191 = vmatmul.bf16.gmra.mxu3 %v8126_v31  ;;  %2280 = vmatmul.bf16.gmra.mxu0 %v8126_v31  ;;  %v1844_v22 = vadd.f32 %v8277_v13, %v8316_v27 }
 0x2e0   : > { %v2998_v16 = vmax.f32 %v2055_v52, 0.0  ;;  %2369 = vmatmul.bf16.gmra.mxu1 %v8126_v31 }
 0x2e1   : > { %v2883_v24 = vmax.f32 %v1753_v23, 0.0  ;;  %v2892_v30 = vmax.f32 %v1844_v22, 0.0 }
 0x2e2   : > { %v8438_v32 = vpack.c.bf16 %v2998_v16, %v2997_v36 }
 0x2e3   : > { %v8440_v2 = vpack.c.bf16 %v2884_v50, %v2883_v24  ;;  %v8449_v16 = vpop.f32.mrf.mxu3  ;;  %v1847_v24 = vadd.f32 %v8289_v1, %v8316_v27 }
 0x2e4   : > { %10993 = vst [vmem:[#allocation68_spill] sm:$0xff] %v8438_v32  ;;  %v1967_v12 = vpop.f32.mrf.mxu0 }
 0x2e5   : > { %10994 = vst [vmem:[#allocation69_spill] sm:$0xff] %v8440_v2  ;;  %v1968_v7 = vadd.f32 %v1967_v12, %v8174_v57  ;;  %v2056_v28 = vpop.f32.mrf.mxu1 }
 0x2e6   : > { %v2057_v52 = vadd.f32 %v2056_v28, %v8177_v58  ;;  %v1754_v42 = vpop.f32.mrf.mxu2 }
 0x2e7   : > { %v3005_v49 = vmax.f32 %v1968_v7, 0.0  ;;  %v1755_v34 = vadd.f32 %v1754_v42, %v8324_v51 }
 0x2e8   : > { %v3006_v53 = vmax.f32 %v2057_v52, 0.0  ;;  %v2900_v52 = vmax.f32 %v1847_v24, 0.0 }
 0x2e9   : > { %v2891_v23 = vmax.f32 %v1755_v34, 0.0 }
 0x2ea   : > { %v8447_v36 = vpack.c.bf16 %v3006_v53, %v3005_v49 }
 0x2eb   : > { %v8451_v50 = vpack.c.bf16 %v2892_v30, %v2891_v23  ;;  %1796 = vmatmul.bf16.gmra.mxu2 %v8280_v17 }
 0x2ec   : > { %10995 = vst [vmem:[#allocation70_spill] sm:$0xff] %v8447_v36  ;;  %v1970_v13 = vpop.f32.mrf.mxu0 }
 0x2ed   : > { %10996 = vst [vmem:[#allocation71_spill] sm:$0xff] %v8451_v50  ;;  %v1971_v12 = vadd.f32 %v1970_v13, %v8174_v57  ;;  %v2059_v7 = vpop.f32.mrf.mxu1  ;;  %v1849_v13 = vadd.f32 %v8297_v20, %v8316_v27 }
 0x2ee   : > { %v2060_v42 = vadd.f32 %v2059_v7, %v8177_v58  ;;  %v1757_v28 = vpop.f32.mrf.mxu2 }
 0x2ef   : > { %v3013_v22 = vmax.f32 %v1971_v12, 0.0  ;;  %v1758_v49 = vadd.f32 %v1757_v28, %v8324_v51  ;;  %2196 = vmatmul.bf16.gmra.mxu3 %v8136_v48  ;;  %2285 = vmatmul.bf16.gmra.mxu0 %v8136_v48  ;;  %v8468_v12 = vpop.f32.mrf.mxu3 }
 0x2f0   : > { %v3014_v30 = vmax.f32 %v2060_v42, 0.0  ;;  %2374 = vmatmul.bf16.gmra.mxu1 %v8136_v48 }
 0x2f1   : > { %v2899_v34 = vmax.f32 %v1758_v49, 0.0 }
 0x2f2   : > { %v8462_v53 = vpack.c.bf16 %v3014_v30, %v3013_v22  ;;  %v2908_v22 = vmax.f32 %v1849_v13, 0.0 }
 0x2f3   : > { %v8464_v1 = vpack.c.bf16 %v2900_v52, %v2899_v34 }
 0x2f4   : > { %10997 = vst [vmem:[#allocation72_spill] sm:$0xff] %v8462_v53  ;;  %v1972_v23 = vpop.f32.mrf.mxu0 }
 0x2f5   : > { %10998 = vst [vmem:[#allocation73_spill] sm:$0xff] %v8464_v1  ;;  %v1973_v7 = vadd.f32 %v1972_v23, %v8174_v57  ;;  %v2061_v28 = vpop.f32.mrf.mxu1  ;;  %v1852_v23 = vadd.f32 %v8309_v6, %v8316_v27 }
 0x2f6   : > { %v2062_v36 = vadd.f32 %v2061_v28, %v8177_v58  ;;  %v1759_v42 = vpop.f32.mrf.mxu2 }
 0x2f7   : > { %v3021_v32 = vmax.f32 %v1973_v7, 0.0  ;;  %v1760_v24 = vadd.f32 %v1759_v42, %v8324_v51  ;;  %v8482_v42 = vpop.f32.mrf.mxu3 }
 0x2f8   : > { %v3022_v49 = vmax.f32 %v2062_v36, 0.0 }
 0x2f9   : > { %v2907_v30 = vmax.f32 %v1760_v24, 0.0  ;;  %v2916_v24 = vmax.f32 %v1852_v23, 0.0 }
 0x2fa   : > { %v8473_v52 = vpack.c.bf16 %v3022_v49, %v3021_v32 }
 0x2fb   : > { %v8475_v34 = vpack.c.bf16 %v2908_v22, %v2907_v30  ;;  %1801 = vmatmul.bf16.gmra.mxu2 %v8300_v45 }
 0x2fc   : > { %10999 = vst [vmem:[#allocation74_spill] sm:$0xff] %v8473_v52  ;;  %v1975_v20 = vpop.f32.mrf.mxu0 }
 0x2fd   : > { %11000 = vst [vmem:[#allocation75_spill] sm:$0xff] %v8475_v34  ;;  %v1976_v53 = vadd.f32 %v1975_v20, %v8174_v57  ;;  %v2064_v28 = vpop.f32.mrf.mxu1  ;;  %v1854_v20 = vadd.f32 %v8320_v47, %v8316_v27 }
 0x2fe   : > { %v2065_v7 = vadd.f32 %v2064_v28, %v8177_v58  ;;  %v1762_v1 = vpop.f32.mrf.mxu2 }
 0x2ff   : > { %v3029_v36 = vmax.f32 %v1976_v53, 0.0  ;;  %v1763_v32 = vadd.f32 %v1762_v1, %v8324_v51  ;;  %2201 = vmatmul.bf16.gmra.mxu3 %v8146_v3  ;;  %2290 = vmatmul.bf16.gmra.mxu0 %v8146_v3  ;;  %v2924_v23 = vmax.f32 %v1854_v20, 0.0 }
 0x300   : > { %v3030_v13 = vmax.f32 %v2065_v7, 0.0  ;;  %2379 = vmatmul.bf16.gmra.mxu1 %v8146_v3 }
 0x301   : > { %v2915_v6 = vmax.f32 %v1763_v32, 0.0  ;;  %v8497_v32 = vpop.f32.mrf.mxu3 }
 0x302   : > { %v8488_v49 = vpack.c.bf16 %v3030_v13, %v3029_v36 }
 0x303   : > { %v8490_v22 = vpack.c.bf16 %v2916_v24, %v2915_v6  ;;  %v1857_v6 = vadd.f32 %v8342_v55, %v8316_v27 }
 0x304   : > { %11001 = vst [vmem:[#allocation76_spill] sm:$0xff] %v8488_v49  ;;  %v1977_v30 = vpop.f32.mrf.mxu0 }
 0x305   : > { %11002 = vst [vmem:[#allocation77_spill] sm:$0xff] %v8490_v22  ;;  %v1978_v53 = vadd.f32 %v1977_v30, %v8174_v57  ;;  %v2066_v1 = vpop.f32.mrf.mxu1 }
 0x306   : > { %v2067_v28 = vadd.f32 %v2066_v1, %v8177_v58  ;;  %v1764_v52 = vpop.f32.mrf.mxu2 }
 0x307   : > { %v3037_v34 = vmax.f32 %v1978_v53, 0.0  ;;  %v1765_v7 = vadd.f32 %v1764_v52, %v8324_v51 }
 0x308   : > { %v3038_v50 = vmax.f32 %v2067_v28, 0.0 }
 0x309   : > { %v2923_v36 = vmax.f32 %v1765_v7, 0.0  ;;  %v8514_v55 = vpop.f32.mrf.mxu3 }
 0x30a   : > { %v8499_v13 = vpack.c.bf16 %v3038_v50, %v3037_v34  ;;  %v2932_v34 = vmax.f32 %v1857_v6, 0.0 }
 0x30b   : > { %v8501_v24 = vpack.c.bf16 %v2924_v23, %v2923_v36  ;;  %1806 = vmatmul.bf16.gmra.mxu2 %v8328_v33 }
 0x30c   : > { %11003 = vst [vmem:[#allocation78_spill] sm:$0xff] %v8499_v13  ;;  %v1980_v47 = vpop.f32.mrf.mxu0 }
 0x30d   : > { %11004 = vst [vmem:[#allocation79_spill] sm:$0xff] %v8501_v24  ;;  %v1981_v30 = vadd.f32 %v1980_v47, %v8174_v57  ;;  %v2069_v53 = vpop.f32.mrf.mxu1 }
 0x30e   : > { %v2070_v52 = vadd.f32 %v2069_v53, %v8177_v58  ;;  %v1767_v1 = vpop.f32.mrf.mxu2 }
 0x30f   : > { %v3045_v20 = vmax.f32 %v1981_v30, 0.0  ;;  %v1768_v28 = vadd.f32 %v1767_v1, %v8324_v51  ;;  %2206 = vmatmul.bf16.gmra.mxu3 %v8156_v62  ;;  %2295 = vmatmul.bf16.gmra.mxu0 %v8156_v62  ;;  %v1859_v30 = vadd.f32 %v8356_v11, %v8316_v27  ;;  %v1862_v11 = vadd.f32 %v8371_v15, %v8316_v27 }
 0x310   : > { %v3046_v50 = vmax.f32 %v2070_v52, 0.0  ;;  %2384 = vmatmul.bf16.gmra.mxu1 %v8156_v62 }
 0x311   : > { %v2931_v7 = vmax.f32 %v1768_v28, 0.0 }
 0x312   : > { %v8512_v23 = vpack.c.bf16 %v3046_v50, %v3045_v20  ;;  %v2940_v20 = vmax.f32 %v1859_v30, 0.0 }
 0x313   : > { %v8516_v36 = vpack.c.bf16 %v2932_v34, %v2931_v7 }
 0x314   : > { %11005 = vst [vmem:[#allocation80_spill] sm:$0xff] %v8512_v23  ;;  %v1982_v47 = vpop.f32.mrf.mxu0 }
 0x315   : > { %11006 = vst [vmem:[#allocation81_spill] sm:$0xff] %v8516_v36  ;;  %v1983_v53 = vadd.f32 %v1982_v47, %v8174_v57  ;;  %v2071_v1 = vpop.f32.mrf.mxu1  ;;  %v8530_v47 = vpop.f32.mrf.mxu3 }
 0x316   : > { %v2072_v13 = vadd.f32 %v2071_v1, %v8177_v58  ;;  %v1769_v52 = vpop.f32.mrf.mxu2 }
 0x317   : > { %v3053_v49 = vmax.f32 %v1983_v53, 0.0  ;;  %v1770_v6 = vadd.f32 %v1769_v52, %v8324_v51 }
 0x318   : > { %v3054_v28 = vmax.f32 %v2072_v13, 0.0 }
 0x319   : > { %v2939_v50 = vmax.f32 %v1770_v6, 0.0  ;;  %v2948_v6 = vmax.f32 %v1862_v11, 0.0 }
 0x31a   : > { %v8523_v23 = vpack.c.bf16 %v3054_v28, %v3053_v49 }
 0x31b   : > { %v8525_v34 = vpack.c.bf16 %v2940_v20, %v2939_v50  ;;  %2087 = vmatmul.bf16.vlgmr.msra.gmra.mxu2 %v8096_v43 }
 0x31c   : > { %11007 = vst [vmem:[#allocation82_spill] sm:$0xff] %v8523_v23  ;;  %v1985_v7 = vpop.f32.mrf.mxu0 }
 0x31d   : > { %11008 = vst [vmem:[#allocation83_spill] sm:$0xff] %v8525_v34  ;;  %v1986_v1 = vadd.f32 %v1985_v7, %v8174_v57  ;;  %v2074_v53 = vpop.f32.mrf.mxu1  ;;  %v1864_v7 = vadd.f32 %v8388_v5, %v8316_v27  ;;  %v8546_v34 = vpop.f32.mrf.mxu3 }
 0x31e   : > { %v2075_v52 = vadd.f32 %v2074_v53, %v8177_v58  ;;  %v1772_v13 = vpop.f32.mrf.mxu2 }
 0x31f   : > { %v3061_v30 = vmax.f32 %v1986_v1, 0.0  ;;  %v1773_v49 = vadd.f32 %v1772_v13, %v8324_v51  ;;  %2211 = vmatmul.bf16.gmra.mxu3 %v8164_v37  ;;  %2300 = vmatmul.bf16.gmra.mxu0 %v8164_v37 }
 0x320   : > { %v3062_v43 = vmax.f32 %v2075_v52, 0.0  ;;  %2389 = vmatmul.bf16.gmra.mxu1 %v8164_v37 }
 0x321   : > { %v2947_v15 = vmax.f32 %v1773_v49, 0.0 }
 0x322   : > { %v8538_v28 = vpack.c.bf16 %v3062_v43, %v3061_v30  ;;  %v2956_v30 = vmax.f32 %v1864_v7, 0.0 }
 0x323   : > { %v8540_v20 = vpack.c.bf16 %v2948_v6, %v2947_v15  ;;  %v8549_v6 = vld [vmem:[#allocation13] sm:$0xff] }
 0x324   : > { %11009 = vst [vmem:[#allocation84_spill] sm:$0xff] %v8538_v28  ;;  %v1987_v50 = vpop.f32.mrf.mxu0  ;;  %v8552_v15 = vperm.slane %v8549_v6, 6 }
 0x325   : > { %11010 = vst [vmem:[#allocation85_spill] sm:$0xff] %v8540_v20  ;;  %v1988_v1 = vadd.f32 %v1987_v50, %v8174_v57  ;;  %v2076_v53 = vpop.f32.mrf.mxu1  ;;  %v8557_v57 = vperm.slane %v8549_v6, 7 }
 0x326   : > { %v2077_v13 = vadd.f32 %v2076_v53, %v8177_v58  ;;  %v1774_v23 = vpop.f32.mrf.mxu2 }
 0x327   : > { %v3069_v52 = vmax.f32 %v1988_v1, 0.0  ;;  %v1775_v11 = vadd.f32 %v1774_v23, %v8324_v51  ;;  %v1867_v23 = vadd.f32 %v8404_v39, %v8316_v27 }
 0x328   : > { %v3070_v49 = vmax.f32 %v2077_v13, 0.0 }
 0x329   : > { %v2955_v43 = vmax.f32 %v1775_v11, 0.0 }
 0x32a   : > { %v8554_v5 = vpack.c.bf16 %v3070_v49, %v3069_v52 }
 0x32b   : > { %v8559_v58 = vpack.c.bf16 %v2956_v30, %v2955_v43  ;;  %2092 = vmatmul.bf16.gmra.mxu2 %v8106_v59  ;;  %v2964_v59 = vmax.f32 %v1867_v23, 0.0  ;;  %v8570_v30 = vpop.f32.mrf.mxu3 }
 0x32c   : > { %11011 = vst [vmem:[#allocation86_spill] sm:$0xff] %v8554_v5  ;;  %v2266_v50 = vpop.f32.mrf.mxu0 }
 0x32d   : > { %11012 = vst [vmem:[#allocation87_spill] sm:$0xff] %v8559_v58  ;;  %v2267_v7 = vadd.f32 %v2266_v50, %v8552_v15  ;;  %v2355_v1 = vpop.f32.mrf.mxu1 }
 0x32e   : > { %v2356_v53 = vadd.f32 %v2355_v1, %v8557_v57  ;;  %v1777_v13 = vpop.f32.mrf.mxu2 }
 0x32f   : > { %v2825_v11 = vmax.f32 %v2267_v7, 0.0  ;;  %v1778_v52 = vadd.f32 %v1777_v13, %v8324_v51  ;;  %2216 = vmatmul.bf16.gmra.mxu3 %v8180_v0  ;;  %2305 = vmatmul.bf16.gmra.mxu0 %v8180_v0  ;;  %v1869_v7 = vadd.f32 %v8420_v56, %v8316_v27 }
 0x330   : > { %v2826_v49 = vmax.f32 %v2356_v53, 0.0  ;;  %2394 = vmatmul.bf16.gmra.mxu1 %v8180_v0 }
 0x331   : > { %v2963_v39 = vmax.f32 %v1778_v52, 0.0  ;;  %v2972_v36 = vmax.f32 %v1869_v7, 0.0 }
 0x332   : > { %v8572_v43 = vpack.c.bf16 %v2826_v49, %v2825_v11 }
 0x333   : > { %v8574_v50 = vpack.c.bf16 %v2964_v59, %v2963_v39  ;;  %v8583_v49 = vpop.f32.mrf.mxu3  ;;  %v1872_v39 = vadd.f32 %v8436_v26, %v8316_v27 }
 0x334   : > { %11013 = vst [vmem:[#allocation88_spill] sm:$0xff] %v8572_v43  ;;  %v2268_v1 = vpop.f32.mrf.mxu0 }
 0x335   : > { %11014 = vst [vmem:[#allocation89_spill] sm:$0xff] %v8574_v50  ;;  %v2269_v13 = vadd.f32 %v2268_v1, %v8552_v15  ;;  %v2357_v5 = vpop.f32.mrf.mxu1 }
 0x336   : > { %v2358_v28 = vadd.f32 %v2357_v5, %v8557_v57  ;;  %v1779_v53 = vpop.f32.mrf.mxu2 }
 0x337   : > { %v2833_v58 = vmax.f32 %v2269_v13, 0.0  ;;  %v1780_v23 = vadd.f32 %v1779_v53, %v8324_v51 }
 0x338   : > { %v2834_v20 = vmax.f32 %v2358_v28, 0.0 }
 0x339   : > { %v2971_v52 = vmax.f32 %v1780_v23, 0.0 }
 0x33a   : > { %v8581_v11 = vpack.c.bf16 %v2834_v20, %v2833_v58 }
 0x33b   : > { %v8585_v59 = vpack.c.bf16 %v2972_v36, %v2971_v52  ;;  %2097 = vmatmul.bf16.gmra.mxu2 %v8116_v14  ;;  %v2980_v14 = vmax.f32 %v1872_v39, 0.0  ;;  %v1874_v52 = vadd.f32 %v8449_v16, %v8316_v27 }
 0x33c   : > { %11015 = vst [vmem:[#allocation90_spill] sm:$0xff] %v8581_v11  ;;  %v2271_v56 = vpop.f32.mrf.mxu0 }
 0x33d   : > { %11016 = vst [vmem:[#allocation91_spill] sm:$0xff] %v8585_v59  ;;  %v2272_v5 = vadd.f32 %v2271_v56, %v8552_v15  ;;  %v2360_v1 = vpop.f32.mrf.mxu1  ;;  %v8602_v56 = vpop.f32.mrf.mxu3 }
 0x33e   : > { %v2361_v13 = vadd.f32 %v2360_v1, %v8557_v57  ;;  %v1782_v28 = vpop.f32.mrf.mxu2 }
 0x33f   : > { %v2841_v7 = vmax.f32 %v2272_v5, 0.0  ;;  %v1783_v20 = vadd.f32 %v1782_v28, %v8324_v51  ;;  %2221 = vmatmul.bf16.gmra.mxu3 %v8200_v25  ;;  %2310 = vmatmul.bf16.gmra.mxu0 %v8200_v25 }
 0x340   : > { %v2842_v36 = vmax.f32 %v2361_v13, 0.0  ;;  %2399 = vmatmul.bf16.gmra.mxu1 %v8200_v25 }
 0x341   : > { %v2979_v58 = vmax.f32 %v1783_v20, 0.0 }
 0x342   : > { %v8596_v53 = vpack.c.bf16 %v2842_v36, %v2841_v7  ;;  %v2988_v7 = vmax.f32 %v1874_v52, 0.0 }
 0x343   : > { %v8598_v26 = vpack.c.bf16 %v2980_v14, %v2979_v58 }
 0x344   : > { %11017 = vst [vmem:[#allocation92_spill] sm:$0xff] %v8596_v53  ;;  %v2273_v23 = vpop.f32.mrf.mxu0 }
 0x345   : > { %11018 = vst [vmem:[#allocation93_spill] sm:$0xff] %v8598_v26  ;;  %v2274_v5 = vadd.f32 %v2273_v23, %v8552_v15  ;;  %v2362_v1 = vpop.f32.mrf.mxu1  ;;  %v1877_v23 = vadd.f32 %v8468_v12, %v8316_v27 }
 0x346   : > { %v2363_v28 = vadd.f32 %v2362_v1, %v8557_v57  ;;  %v1784_v13 = vpop.f32.mrf.mxu2 }
 0x347   : > { %v2849_v59 = vmax.f32 %v2274_v5, 0.0  ;;  %v1785_v39 = vadd.f32 %v1784_v13, %v8324_v51  ;;  %v8616_v13 = vpop.f32.mrf.mxu3 }
 0x348   : > { %v2850_v20 = vmax.f32 %v2363_v28, 0.0  ;;  %v2996_v28 = vmax.f32 %v1877_v23, 0.0 }
 0x349   : > { %v2987_v36 = vmax.f32 %v1785_v39, 0.0 }
 0x34a   : > { %v8607_v14 = vpack.c.bf16 %v2850_v20, %v2849_v59 }
 0x34b   : > { %v8609_v58 = vpack.c.bf16 %v2988_v7, %v2987_v36  ;;  %2102 = vmatmul.bf16.gmra.mxu2 %v8126_v31  ;;  %v1879_v36 = vadd.f32 %v8482_v42, %v8316_v27 }
 0x34c   : > { %11019 = vst [vmem:[#allocation94_spill] sm:$0xff] %v8607_v14  ;;  %v2276_v16 = vpop.f32.mrf.mxu0 }
 0x34d   : > { %11020 = vst [vmem:[#allocation95_spill] sm:$0xff] %v8609_v58  ;;  %v2277_v26 = vadd.f32 %v2276_v16, %v8552_v15  ;;  %v2365_v1 = vpop.f32.mrf.mxu1  ;;  %v3004_v23 = vmax.f32 %v1879_v36, 0.0 }
 0x34e   : > { %v2366_v5 = vadd.f32 %v2365_v1, %v8557_v57  ;;  %v1787_v50 = vpop.f32.mrf.mxu2 }
 0x34f   : > { %v2857_v52 = vmax.f32 %v2277_v26, 0.0  ;;  %v1788_v59 = vadd.f32 %v1787_v50, %v8324_v51  ;;  %2226 = vmatmul.bf16.gmra.mxu3 %v8220_v10  ;;  %2315 = vmatmul.bf16.gmra.mxu0 %v8220_v10 }
 0x350   : > { %v2858_v31 = vmax.f32 %v2366_v5, 0.0  ;;  %2404 = vmatmul.bf16.gmra.mxu1 %v8220_v10 }
 0x351   : > { %v2995_v12 = vmax.f32 %v1788_v59, 0.0  ;;  %v8631_v59 = vpop.f32.mrf.mxu3 }
 0x352   : > { %v8622_v39 = vpack.c.bf16 %v2858_v31, %v2857_v52 }
 0x353   : > { %v8624_v20 = vpack.c.bf16 %v2996_v28, %v2995_v12  ;;  %v1882_v12 = vadd.f32 %v8497_v32, %v8316_v27 }
 0x354   : > { %11021 = vst [vmem:[#allocation96_spill] sm:$0xff] %v8622_v39  ;;  %v2278_v7 = vpop.f32.mrf.mxu0 }
 0x355   : > { %11022 = vst [vmem:[#allocation97_spill] sm:$0xff] %v8624_v20  ;;  %v2279_v26 = vadd.f32 %v2278_v7, %v8552_v15  ;;  %v2367_v50 = vpop.f32.mrf.mxu1 }
 0x356   : > { %v2368_v16 = vadd.f32 %v2367_v50, %v8557_v57  ;;  %v1789_v1 = vpop.f32.mrf.mxu2 }
 0x357   : > { %v2865_v58 = vmax.f32 %v2279_v26, 0.0  ;;  %v1790_v5 = vadd.f32 %v1789_v1, %v8324_v51 }
 0x358   : > { %v2866_v24 = vmax.f32 %v2368_v16, 0.0 }
 0x359   : > { %v3003_v52 = vmax.f32 %v1790_v5, 0.0  ;;  %v8648_v32 = vpop.f32.mrf.mxu3 }
 0x35a   : > { %v8633_v31 = vpack.c.bf16 %v2866_v24, %v2865_v58 }
 0x35b   : > { %v8635_v28 = vpack.c.bf16 %v3004_v23, %v3003_v52  ;;  %2107 = vmatmul.bf16.gmra.mxu2 %v8136_v48  ;;  %v3012_v48 = vmax.f32 %v1882_v12, 0.0 }
 0x35c   : > { %11023 = vst [vmem:[#allocation98_spill] sm:$0xff] %v8633_v31  ;;  %v2281_v42 = vpop.f32.mrf.mxu0 }
 0x35d   : > { %11024 = vst [vmem:[#allocation99_spill] sm:$0xff] %v8635_v28  ;;  %v2282_v7 = vadd.f32 %v2281_v42, %v8552_v15  ;;  %v2370_v26 = vpop.f32.mrf.mxu1  ;;  %v1884_v42 = vadd.f32 %v8514_v55, %v8316_v27  ;;  %v1887_v55 = vadd.f32 %v8530_v47, %v8316_v27 }
 0x35e   : > { %v2371_v50 = vadd.f32 %v2370_v26, %v8557_v57  ;;  %v1792_v16 = vpop.f32.mrf.mxu2 }
 0x35f   : > { %v2873_v36 = vmax.f32 %v2282_v7, 0.0  ;;  %v1793_v1 = vadd.f32 %v1792_v16, %v8324_v51  ;;  %2231 = vmatmul.bf16.gmra.mxu3 %v8240_v40  ;;  %2320 = vmatmul.bf16.gmra.mxu0 %v8240_v40 }
 0x360   : > { %v2874_v24 = vmax.f32 %v2371_v50, 0.0  ;;  %2409 = vmatmul.bf16.gmra.mxu1 %v8240_v40 }
 0x361   : > { %v3011_v58 = vmax.f32 %v1793_v1, 0.0 }
 0x362   : > { %v8646_v5 = vpack.c.bf16 %v2874_v24, %v2873_v36  ;;  %v3020_v36 = vmax.f32 %v1884_v42, 0.0 }
 0x363   : > { %v8650_v23 = vpack.c.bf16 %v3012_v48, %v3011_v58 }
 0x364   : > { %11025 = vst [vmem:[#allocation100_spill] sm:$0xff] %v8646_v5  ;;  %v2283_v52 = vpop.f32.mrf.mxu0 }
 0x365   : > { %11026 = vst [vmem:[#allocation101_spill] sm:$0xff] %v8650_v23  ;;  %v2284_v7 = vadd.f32 %v2283_v52, %v8552_v15  ;;  %v2372_v26 = vpop.f32.mrf.mxu1  ;;  %v8664_v52 = vpop.f32.mrf.mxu3 }
 0x366   : > { %v2373_v16 = vadd.f32 %v2372_v26, %v8557_v57  ;;  %v1794_v50 = vpop.f32.mrf.mxu2 }
 0x367   : > { %v2881_v28 = vmax.f32 %v2284_v7, 0.0  ;;  %v1795_v12 = vadd.f32 %v1794_v50, %v8324_v51 }
 0x368   : > { %v2882_v1 = vmax.f32 %v2373_v16, 0.0 }
 0x369   : > { %v3019_v24 = vmax.f32 %v1795_v12, 0.0  ;;  %v3028_v12 = vmax.f32 %v1887_v55, 0.0 }
 0x36a   : > { %v8657_v20 = vpack.c.bf16 %v2882_v1, %v2881_v28 }
 0x36b   : > { %v8659_v48 = vpack.c.bf16 %v3020_v36, %v3019_v24  ;;  %2112 = vmatmul.bf16.gmra.mxu2 %v8146_v3 }
 0x36c   : > { %11027 = vst [vmem:[#allocation102_spill] sm:$0xff] %v8657_v20  ;;  %v2286_v58 = vpop.f32.mrf.mxu0 }
 0x36d   : > { %11028 = vst [vmem:[#allocation103_spill] sm:$0xff] %v8659_v48  ;;  %v2287_v26 = vadd.f32 %v2286_v58, %v8552_v15  ;;  %v2375_v7 = vpop.f32.mrf.mxu1  ;;  %v1889_v58 = vadd.f32 %v8546_v34, %v8316_v27  ;;  %v8680_v23 = vpop.f32.mrf.mxu3 }
 0x36e   : > { %v2376_v50 = vadd.f32 %v2375_v7, %v8557_v57  ;;  %v1797_v16 = vpop.f32.mrf.mxu2 }
 0x36f   : > { %v2889_v42 = vmax.f32 %v2287_v26, 0.0  ;;  %v1798_v28 = vadd.f32 %v1797_v16, %v8324_v51  ;;  %2236 = vmatmul.bf16.gmra.mxu3 %v8260_v38  ;;  %2325 = vmatmul.bf16.gmra.mxu0 %v8260_v38 }
 0x370   : > { %v2890_v3 = vmax.f32 %v2376_v50, 0.0  ;;  %2414 = vmatmul.bf16.gmra.mxu1 %v8260_v38 }
 0x371   : > { %v3027_v47 = vmax.f32 %v1798_v28, 0.0 }
 0x372   : > { %v8672_v1 = vpack.c.bf16 %v2890_v3, %v2889_v42  ;;  %v3036_v42 = vmax.f32 %v1889_v58, 0.0 }
 0x373   : > { %v8674_v36 = vpack.c.bf16 %v3028_v12, %v3027_v47 }
 0x374   : > { %11029 = vst [vmem:[#allocation104_spill] sm:$0xff] %v8672_v1  ;;  %v2288_v24 = vpop.f32.mrf.mxu0 }
 0x375   : > { %11030 = vst [vmem:[#allocation105_spill] sm:$0xff] %v8674_v36  ;;  %v2289_v26 = vadd.f32 %v2288_v24, %v8552_v15  ;;  %v2377_v7 = vpop.f32.mrf.mxu1  ;;  %v1892_v24 = vadd.f32 %v8570_v30, %v8316_v27 }
 0x376   : > { %v2378_v16 = vadd.f32 %v2377_v7, %v8557_v57  ;;  %v1799_v48 = vpop.f32.mrf.mxu2 }
 0x377   : > { %v2897_v50 = vmax.f32 %v2289_v26, 0.0  ;;  %v1800_v55 = vadd.f32 %v1799_v48, %v8324_v51 }
 0x378   : > { %v2898_v28 = vmax.f32 %v2378_v16, 0.0 }
 0x379   : > { %v3035_v3 = vmax.f32 %v1800_v55, 0.0 }
 0x37a   : > { %v8683_v12 = vpack.c.bf16 %v2898_v28, %v2897_v50  ;;  %v8696_v50 = vpop.f32.mrf.mxu3 }
 0x37b   : > { %v8685_v47 = vpack.c.bf16 %v3036_v42, %v3035_v3  ;;  %2117 = vmatmul.bf16.gmra.mxu2 %v8156_v62  ;;  %v3044_v62 = vmax.f32 %v1892_v24, 0.0  ;;  %v1894_v42 = vadd.f32 %v8583_v49, %v8316_v27 }
 0x37c   : > { %11031 = vst [vmem:[#allocation106_spill] sm:$0xff] %v8683_v12  ;;  %v2291_v34 = vpop.f32.mrf.mxu0 }
 0x37d   : > { %11032 = vst [vmem:[#allocation107_spill] sm:$0xff] %v8685_v47  ;;  %v2292_v7 = vadd.f32 %v2291_v34, %v8552_v15  ;;  %v2380_v36 = vpop.f32.mrf.mxu1  ;;  %v3052_v12 = vmax.f32 %v1894_v42, 0.0 }
 0x37e   : > { %v2381_v26 = vadd.f32 %v2380_v36, %v8557_v57  ;;  %v1802_v22 = vpop.f32.mrf.mxu2 }
 0x37f   : > { %v2905_v48 = vmax.f32 %v2292_v7, 0.0  ;;  %v1803_v58 = vadd.f32 %v1802_v22, %v8324_v51  ;;  %2241 = vmatmul.bf16.gmra.mxu3 %v8280_v17  ;;  %2330 = vmatmul.bf16.gmra.mxu0 %v8280_v17 }
 0x380   : > { %v2906_v16 = vmax.f32 %v2381_v26, 0.0  ;;  %2419 = vmatmul.bf16.gmra.mxu1 %v8280_v17 }
 0x381   : > { %v3043_v30 = vmax.f32 %v1803_v58, 0.0 }
 0x382   : > { %v8698_v55 = vpack.c.bf16 %v2906_v16, %v2905_v48  ;;  %v8709_v16 = vpop.f32.mrf.mxu3 }
 0x383   : > { %v8700_v28 = vpack.c.bf16 %v3044_v62, %v3043_v30  ;;  %v1897_v30 = vadd.f32 %v8602_v56, %v8316_v27 }
 0x384   : > { %11033 = vst [vmem:[#allocation108_spill] sm:$0xff] %v8698_v55  ;;  %v2293_v36 = vpop.f32.mrf.mxu0 }
 0x385   : > { %11034 = vst [vmem:[#allocation109_spill] sm:$0xff] %v8700_v28  ;;  %v2294_v22 = vadd.f32 %v2293_v36, %v8552_v15  ;;  %v2382_v3 = vpop.f32.mrf.mxu1 }
 0x386   : > { %v2383_v34 = vadd.f32 %v2382_v3, %v8557_v57  ;;  %v1804_v7 = vpop.f32.mrf.mxu2 }
 0x387   : > { %v2913_v26 = vmax.f32 %v2294_v22, 0.0  ;;  %v1805_v24 = vadd.f32 %v1804_v7, %v8324_v51 }
 0x388   : > { %v2914_v47 = vmax.f32 %v2383_v34, 0.0 }
 0x389   : > { %v3051_v58 = vmax.f32 %v1805_v24, 0.0 }
 0x38a   : > { %v8707_v48 = vpack.c.bf16 %v2914_v47, %v2913_v26 }
 0x38b   : > { %v8711_v62 = vpack.c.bf16 %v3052_v12, %v3051_v58  ;;  %2122 = vmatmul.bf16.gmra.mxu2 %v8164_v37  ;;  %v3060_v37 = vmax.f32 %v1897_v30, 0.0  ;;  %v1899_v58 = vadd.f32 %v8616_v13, %v8316_v27  ;;  %v8742_v13 = vperm.slane %v8549_v6, 4 }
 0x38c   : > { %11035 = vst [vmem:[#allocation110_spill] sm:$0xff] %v8707_v48  ;;  %v2296_v49 = vpop.f32.mrf.mxu0 }
 0x38d   : > { %11036 = vst [vmem:[#allocation111_spill] sm:$0xff] %v8711_v62  ;;  %v2297_v36 = vadd.f32 %v2296_v49, %v8552_v15  ;;  %v2385_v22 = vpop.f32.mrf.mxu1  ;;  %v8728_v49 = vpop.f32.mrf.mxu3 }
 0x38e   : > { %v2386_v3 = vadd.f32 %v2385_v22, %v8557_v57  ;;  %v1807_v34 = vpop.f32.mrf.mxu2 }
 0x38f   : > { %v2921_v42 = vmax.f32 %v2297_v36, 0.0  ;;  %v1808_v47 = vadd.f32 %v1807_v34, %v8324_v51  ;;  %2246 = vmatmul.bf16.gmra.mxu3 %v8300_v45  ;;  %2335 = vmatmul.bf16.gmra.mxu0 %v8300_v45 }
 0x390   : > { %v2922_v12 = vmax.f32 %v2386_v3, 0.0  ;;  %2424 = vmatmul.bf16.gmra.mxu1 %v8300_v45 }
 0x391   : > { %v3059_v7 = vmax.f32 %v1808_v47, 0.0 }
 0x392   : > { %v8722_v26 = vpack.c.bf16 %v2922_v12, %v2921_v42  ;;  %v3068_v42 = vmax.f32 %v1899_v58, 0.0  ;;  %v8734_v12 = vperm.slane %v8549_v6, 5 }
 0x393   : > { %v8724_v56 = vpack.c.bf16 %v3060_v37, %v3059_v7 }
 0x394   : > { %11037 = vst [vmem:[#allocation112_spill] sm:$0xff] %v8722_v26  ;;  %v2298_v24 = vpop.f32.mrf.mxu0 }
 0x395   : > { %11038 = vst [vmem:[#allocation113_spill] sm:$0xff] %v8724_v56  ;;  %v2299_v36 = vadd.f32 %v2298_v24, %v8552_v15  ;;  %v2387_v22 = vpop.f32.mrf.mxu1 }
 0x396   : > { %v2388_v34 = vadd.f32 %v2387_v22, %v8557_v57  ;;  %v1809_v3 = vpop.f32.mrf.mxu2 }
 0x397   : > { %v2929_v62 = vmax.f32 %v2299_v36, 0.0  ;;  %v1810_v30 = vadd.f32 %v1809_v3, %v8324_v51  ;;  %v2178_v36 = vadd.f32 %v8631_v59, %v8734_v12  ;;  %v8748_v3 = vpop.f32.mrf.mxu3 }
 0x398   : > { %v2930_v47 = vmax.f32 %v2388_v34, 0.0 }
 0x399   : > { %v3067_v37 = vmax.f32 %v1810_v30, 0.0  ;;  %v2824_v6 = vmax.f32 %v2178_v36, 0.0 }
 0x39a   : > { %v8736_v7 = vpack.c.bf16 %v2930_v47, %v2929_v62 }
 0x39b   : > { %v8738_v27 = vpack.c.bf16 %v3068_v42, %v3067_v37  ;;  %2127 = vmatmul.bf16.gmra.mxu2 %v8180_v0 }
 0x39c   : > { %11039 = vst [vmem:[#allocation114_spill] sm:$0xff] %v8736_v7  ;;  %v2301_v24 = vpop.f32.mrf.mxu0 }
 0x39d   : > { %11040 = vst [vmem:[#allocation115_spill] sm:$0xff] %v8738_v27  ;;  %v2302_v51 = vadd.f32 %v2301_v24, %v8552_v15  ;;  %v2390_v58 = vpop.f32.mrf.mxu1  ;;  %v2180_v24 = vadd.f32 %v8648_v32, %v8734_v12 }
 0x39e   : > { %v2391_v22 = vadd.f32 %v2390_v58, %v8557_v57  ;;  %v2088_v34 = vpop.f32.mrf.mxu2 }
 0x39f   : > { %v2937_v62 = vmax.f32 %v2302_v51, 0.0  ;;  %v2089_v30 = vadd.f32 %v2088_v34, %v8742_v13  ;;  %2251 = vmatmul.bf16.gmra.mxu3 %v8328_v33  ;;  %2340 = vmatmul.bf16.gmra.mxu0 %v8328_v33  ;;  %v2832_v36 = vmax.f32 %v2180_v24, 0.0 }
 0x3a0   : > { %v2938_v0 = vmax.f32 %v2391_v22, 0.0  ;;  %2429 = vmatmul.bf16.gmra.mxu1 %v8328_v33 }
 0x3a1   : > { %v2823_v59 = vmax.f32 %v2089_v30, 0.0 }
 0x3a2   : > { %v8754_v47 = vpack.c.bf16 %v2938_v0, %v2937_v62 }
 0x3a3   : > { %v8756_v42 = vpack.c.bf16 %v2824_v6, %v2823_v59  ;;  %v8768_v6 = vpop.f32.mrf.mxu3  ;;  %v2183_v59 = vadd.f32 %v8664_v52, %v8734_v12  ;;  %v2185_v52 = vadd.f32 %v8680_v23, %v8734_v12 }
 0x3a4   : > { %11041 = vst [vmem:[#allocation116_spill] sm:$0xff] %v8754_v47  ;;  %v2303_v37 = vpop.f32.mrf.mxu0 }
 0x3a5   : > { %11042 = vst [vmem:[#allocation117_spill] sm:$0xff] %v8756_v42  ;;  %v2304_v51 = vadd.f32 %v2303_v37, %v8552_v15  ;;  %v2392_v58 = vpop.f32.mrf.mxu1 }
 0x3a6   : > { %v2393_v34 = vadd.f32 %v2392_v58, %v8557_v57  ;;  %v2090_v27 = vpop.f32.mrf.mxu2 }
 0x3a7   : > { %v2945_v56 = vmax.f32 %v2304_v51, 0.0  ;;  %v2091_v22 = vadd.f32 %v2090_v27, %v8742_v13 }
 0x3a8   : > { %v2946_v28 = vmax.f32 %v2393_v34, 0.0  ;;  %v2840_v34 = vmax.f32 %v2183_v59, 0.0 }
 0x3a9   : > { %v2831_v30 = vmax.f32 %v2091_v22, 0.0 }
 0x3aa   : > { %v8763_v62 = vpack.c.bf16 %v2946_v28, %v2945_v56 }
 0x3ab   : > { %v8765_v0 = vpack.c.bf16 %v2832_v36, %v2831_v30  ;;  %2132 = vmatmul.bf16.gmra.mxu2 %v8200_v25  ;;  %v8782_v47 = vpop.f32.mrf.mxu3 }
 0x3ac   : > { %11043 = vst [vmem:[#allocation118_spill] sm:$0xff] %v8763_v62  ;;  %v2306_v32 = vpop.f32.mrf.mxu0 }
 0x3ad   : > { %11044 = vst [vmem:[#allocation119_spill] sm:$0xff] %v8765_v0  ;;  %v2307_v37 = vadd.f32 %v2306_v32, %v8552_v15  ;;  %v2395_v51 = vpop.f32.mrf.mxu1 }
 0x3ae   : > { %v2396_v27 = vadd.f32 %v2395_v51, %v8557_v57  ;;  %v2093_v58 = vpop.f32.mrf.mxu2 }
 0x3af   : > { %v2953_v24 = vmax.f32 %v2307_v37, 0.0  ;;  %v2094_v28 = vadd.f32 %v2093_v58, %v8742_v13 }
 0x3b0   : > { %v2954_v56 = vmax.f32 %v2396_v27, 0.0 }
 0x3b1   : > { %v2839_v22 = vmax.f32 %v2094_v28, 0.0 }
 0x3b2   : > { %v8775_v36 = vpack.c.bf16 %v2954_v56, %v2953_v24  ;;  %v2848_v24 = vmax.f32 %v2185_v52, 0.0 }
 0x3b3   : > { %v8777_v25 = vpack.c.bf16 %v2840_v34, %v2839_v22  ;;  %v2188_v22 = vadd.f32 %v8696_v50, %v8734_v12  ;;  %v2190_v50 = vadd.f32 %v8709_v16, %v8734_v12 }
 0x3b4   : > { %11045 = vst [vmem:[#allocation120_spill] sm:$0xff] %v8775_v36  ;;  %v2308_v30 = vpop.f32.mrf.mxu0 }
 0x3b5   : > { %11046 = vst [vmem:[#allocation121_spill] sm:$0xff] %v8777_v25  ;;  %v2309_v32 = vadd.f32 %v2308_v30, %v8552_v15  ;;  %v2397_v62 = vpop.f32.mrf.mxu1 }
 0x3b6   : > { %v2398_v37 = vadd.f32 %v2397_v62, %v8557_v57  ;;  %v2095_v51 = vpop.f32.mrf.mxu2 }
 0x3b7   : > { %v2961_v58 = vmax.f32 %v2309_v32, 0.0  ;;  %v2096_v59 = vadd.f32 %v2095_v51, %v8742_v13 }
 0x3b8   : > { %v2962_v27 = vmax.f32 %v2398_v37, 0.0  ;;  %v8796_v37 = vpop.f32.mrf.mxu3 }
 0x3b9   : > { %v2847_v28 = vmax.f32 %v2096_v59, 0.0  ;;  %v2856_v59 = vmax.f32 %v2188_v22, 0.0  ;;  %v2864_v22 = vmax.f32 %v2190_v50, 0.0 }
 0x3ba   : > { %v8786_v56 = vpack.c.bf16 %v2962_v27, %v2961_v58 }
 0x3bb   : > { %v8788_v34 = vpack.c.bf16 %v2848_v24, %v2847_v28  ;;  %2137 = vmatmul.bf16.gmra.mxu2 %v8220_v10 }
 0x3bc   : > { %11047 = vst [vmem:[#allocation122_spill] sm:$0xff] %v8786_v56  ;;  %v2311_v23 = vpop.f32.mrf.mxu0 }
 0x3bd   : > { %11048 = vst [vmem:[#allocation123_spill] sm:$0xff] %v8788_v34  ;;  %v2312_v30 = vadd.f32 %v2311_v23, %v8552_v15  ;;  %v2400_v62 = vpop.f32.mrf.mxu1 }
 0x3be   : > { %v2401_v32 = vadd.f32 %v2400_v62, %v8557_v57  ;;  %v2098_v36 = vpop.f32.mrf.mxu2 }
 0x3bf   : > { %v2969_v51 = vmax.f32 %v2312_v30, 0.0  ;;  %v2099_v52 = vadd.f32 %v2098_v36, %v8742_v13 }
 0x3c0   : > { %v2970_v58 = vmax.f32 %v2401_v32, 0.0 }
 0x3c1   : > { %v2855_v27 = vmax.f32 %v2099_v52, 0.0 }
 0x3c2   : > { %v8798_v24 = vpack.c.bf16 %v2970_v58, %v2969_v51  ;;  %v8807_v51 = vpop.f32.mrf.mxu3 }
 0x3c3   : > { %v8800_v10 = vpack.c.bf16 %v2856_v59, %v2855_v27  ;;  %v2193_v27 = vadd.f32 %v8728_v49, %v8734_v12  ;;  %v2195_v49 = vadd.f32 %v8748_v3, %v8734_v12  ;;  %v2198_v3 = vadd.f32 %v8768_v6, %v8734_v12 }
 0x3c4   : > { %11049 = vst [vmem:[#allocation124_spill] sm:$0xff] %v8798_v24  ;;  %v2313_v28 = vpop.f32.mrf.mxu0  ;;  %v2200_v6 = vadd.f32 %v8782_v47, %v8734_v12 }
 0x3c5   : > { %11050 = vst [vmem:[#allocation125_spill] sm:$0xff] %v8800_v10  ;;  %v2314_v23 = vadd.f32 %v2313_v28, %v8552_v15  ;;  %v2402_v62 = vpop.f32.mrf.mxu1 }
 0x3c6   : > { %v2403_v30 = vadd.f32 %v2402_v62, %v8557_v57  ;;  %v2100_v56 = vpop.f32.mrf.mxu2 }
 0x3c7   : > { %v2977_v36 = vmax.f32 %v2314_v23, 0.0  ;;  %v2101_v7 = vadd.f32 %v2100_v56, %v8742_v13 }
 0x3c8   : > { %v2978_v32 = vmax.f32 %v2403_v30, 0.0 }
 0x3c9   : > { %v2863_v52 = vmax.f32 %v2101_v7, 0.0 }
 0x3ca   : > { %v8809_v58 = vpack.c.bf16 %v2978_v32, %v2977_v36  ;;  %v2872_v36 = vmax.f32 %v2193_v27, 0.0 }
 0x3cb   : > { %v8811_v59 = vpack.c.bf16 %v2864_v22, %v2863_v52  ;;  %2142 = vmatmul.bf16.gmra.mxu2 %v8240_v40  ;;  %v8823_v40 = vpop.f32.mrf.mxu3 }
 0x3cc   : > { %11051 = vst [vmem:[#allocation126_spill] sm:$0xff] %v8809_v58  ;;  %v2316_v16 = vpop.f32.mrf.mxu0 }
 0x3cd   : > { %11052 = vst [vmem:[#allocation127_spill] sm:$0xff] %v8811_v59  ;;  %v2317_v28 = vadd.f32 %v2316_v16, %v8552_v15  ;;  %v2405_v23 = vpop.f32.mrf.mxu1 }
 0x3ce   : > { %v2406_v56 = vadd.f32 %v2405_v23, %v8557_v57  ;;  %v2103_v62 = vpop.f32.mrf.mxu2 }
 0x3cf   : > { %v2985_v50 = vmax.f32 %v2317_v28, 0.0  ;;  %v2104_v7 = vadd.f32 %v2103_v62, %v8742_v13 }
 0x3d0   : > { %v2986_v30 = vmax.f32 %v2406_v56, 0.0 }
 0x3d1   : > { %v2871_v32 = vmax.f32 %v2104_v7, 0.0 }
 0x3d2   : > { %v8819_v22 = vpack.c.bf16 %v2986_v30, %v2985_v50  ;;  %v2880_v50 = vmax.f32 %v2195_v49, 0.0 }
 0x3d3   : > { %v8821_v52 = vpack.c.bf16 %v2872_v36, %v2871_v32 }
 0x3d4   : > { %11053 = vst [vmem:[#allocation128_spill] sm:$0xff] %v8819_v22  ;;  %v2318_v58 = vpop.f32.mrf.mxu0  ;;  %v8838_v22 = vpop.f32.mrf.mxu3 }
 0x3d5   : > { %11054 = vst [vmem:[#allocation129_spill] sm:$0xff] %v8821_v52  ;;  %v2319_v16 = vadd.f32 %v2318_v58, %v8552_v15  ;;  %v2407_v23 = vpop.f32.mrf.mxu1 }
 0x3d6   : > { %v2408_v28 = vadd.f32 %v2407_v23, %v8557_v57  ;;  %v2105_v24 = vpop.f32.mrf.mxu2 }
 0x3d7   : > { %v2993_v62 = vmax.f32 %v2319_v16, 0.0  ;;  %v2106_v27 = vadd.f32 %v2105_v24, %v8742_v13 }
 0x3d8   : > { %v2994_v56 = vmax.f32 %v2408_v28, 0.0 }
 0x3d9   : > { %v2879_v7 = vmax.f32 %v2106_v27, 0.0  ;;  %v2888_v27 = vmax.f32 %v2198_v3, 0.0 }
 0x3da   : > { %v8830_v30 = vpack.c.bf16 %v2994_v56, %v2993_v62 }
 0x3db   : > { %v8832_v36 = vpack.c.bf16 %v2880_v50, %v2879_v7  ;;  %2147 = vmatmul.bf16.gmra.mxu2 %v8260_v38 }
 0x3dc   : > { %11055 = vst [vmem:[#allocation130_spill] sm:$0xff] %v8830_v30  ;;  %v2321_v32 = vpop.f32.mrf.mxu0 }
 0x3dd   : > { %11056 = vst [vmem:[#allocation131_spill] sm:$0xff] %v8832_v36  ;;  %v2322_v58 = vadd.f32 %v2321_v32, %v8552_v15  ;;  %v2410_v23 = vpop.f32.mrf.mxu1 }
 0x3de   : > { %v2411_v24 = vadd.f32 %v2410_v23, %v8557_v57  ;;  %v2108_v16 = vpop.f32.mrf.mxu2 }
 0x3df   : > { %v3001_v49 = vmax.f32 %v2322_v58, 0.0  ;;  %v2109_v28 = vadd.f32 %v2108_v16, %v8742_v13 }
 0x3e0   : > { %v3002_v62 = vmax.f32 %v2411_v24, 0.0  ;;  %v8851_v24 = vpop.f32.mrf.mxu3 }
 0x3e1   : > { %v2887_v56 = vmax.f32 %v2109_v28, 0.0 }
 0x3e2   : > { %v8842_v50 = vpack.c.bf16 %v3002_v62, %v3001_v49  ;;  %v2896_v49 = vmax.f32 %v2200_v6, 0.0 }
 0x3e3   : > { %v8844_v38 = vpack.c.bf16 %v2888_v27, %v2887_v56  ;;  %v2203_v56 = vadd.f32 %v8796_v37, %v8734_v12  ;;  %v2205_v37 = vadd.f32 %v8807_v51, %v8734_v12 }
 0x3e4   : > { %11057 = vst [vmem:[#allocation132_spill] sm:$0xff] %v8842_v50  ;;  %v2323_v7 = vpop.f32.mrf.mxu0 }
 0x3e5   : > { %11058 = vst [vmem:[#allocation133_spill] sm:$0xff] %v8844_v38  ;;  %v2324_v32 = vadd.f32 %v2323_v7, %v8552_v15  ;;  %v2412_v30 = vpop.f32.mrf.mxu1 }
 0x3e6   : > { %v2413_v23 = vadd.f32 %v2412_v30, %v8557_v57  ;;  %v2110_v26 = vpop.f32.mrf.mxu2 }
 0x3e7   : > { %v3009_v58 = vmax.f32 %v2324_v32, 0.0  ;;  %v2111_v16 = vadd.f32 %v2110_v26, %v8742_v13 }
 0x3e8   : > { %v3010_v3 = vmax.f32 %v2413_v23, 0.0 }
 0x3e9   : > { %v2895_v28 = vmax.f32 %v2111_v16, 0.0 }
 0x3ea   : > { %v8853_v62 = vpack.c.bf16 %v3010_v3, %v3009_v58  ;;  %v2904_v58 = vmax.f32 %v2203_v56, 0.0  ;;  %v2214_v3 = vpop.f32.mrf.mxu3 }
 0x3eb   : > { %v8855_v27 = vpack.c.bf16 %v2896_v49, %v2895_v28  ;;  %2152 = vmatmul.bf16.gmra.mxu2 %v8280_v17 }
 0x3ec   : > { %11059 = vst [vmem:[#allocation134_spill] sm:$0xff] %v8853_v62  ;;  %v2326_v47 = vpop.f32.mrf.mxu0 }
 0x3ed   : > { %11060 = vst [vmem:[#allocation135_spill] sm:$0xff] %v8855_v27  ;;  %v2327_v30 = vadd.f32 %v2326_v47, %v8552_v15  ;;  %v2415_v7 = vpop.f32.mrf.mxu1 }
 0x3ee   : > { %v2416_v26 = vadd.f32 %v2415_v7, %v8557_v57  ;;  %v2113_v32 = vpop.f32.mrf.mxu2 }
 0x3ef   : > { %v3017_v50 = vmax.f32 %v2327_v30, 0.0  ;;  %v2114_v6 = vadd.f32 %v2113_v32, %v8742_v13  ;;  %v2912_v32 = vmax.f32 %v2205_v37, 0.0 }
 0x3f0   : > { %v3018_v23 = vmax.f32 %v2416_v26, 0.0 }
 0x3f1   : > { %v2903_v16 = vmax.f32 %v2114_v6, 0.0 }
 0x3f2   : > { %v8863_v49 = vpack.c.bf16 %v3018_v23, %v3017_v50 }
 0x3f3   : > { %v8865_v17 = vpack.c.bf16 %v2904_v58, %v2903_v16  ;;  %v2217_v58 = vpop.f32.mrf.mxu3  ;;  %v2208_v16 = vadd.f32 %v8823_v40, %v8734_v12  ;;  %v2210_v40 = vadd.f32 %v8838_v22, %v8734_v12 }
 0x3f4   : > { %11061 = vst [vmem:[#allocation136_spill] sm:$0xff] %v8863_v49  ;;  %v2328_v28 = vpop.f32.mrf.mxu0 }
 0x3f5   : > { %11062 = vst [vmem:[#allocation137_spill] sm:$0xff] %v8865_v17  ;;  %v2329_v47 = vadd.f32 %v2328_v28, %v8552_v15  ;;  %v2417_v62 = vpop.f32.mrf.mxu1 }
 0x3f6   : > { %v2418_v7 = vadd.f32 %v2417_v62, %v8557_v57  ;;  %v2115_v30 = vpop.f32.mrf.mxu2 }
 0x3f7   : > { %v3025_v48 = vmax.f32 %v2329_v47, 0.0  ;;  %v2116_v26 = vadd.f32 %v2115_v30, %v8742_v13 }
 0x3f8   : > { %v3026_v56 = vmax.f32 %v2418_v7, 0.0 }
 0x3f9   : > { %v2911_v6 = vmax.f32 %v2116_v26, 0.0  ;;  %v2920_v26 = vmax.f32 %v2208_v16, 0.0 }
 0x3fa   : > { %v8872_v50 = vpack.c.bf16 %v3026_v56, %v3025_v48 }
 0x3fb   : > { %v8874_v23 = vpack.c.bf16 %v2912_v32, %v2911_v6  ;;  %2157 = vmatmul.bf16.gmra.mxu2 %v8300_v45  ;;  %v2219_v49 = vpop.f32.mrf.mxu3 }
 0x3fc   : > { %11063 = vst [vmem:[#allocation138_spill] sm:$0xff] %v8872_v50  ;;  %v2331_v51 = vpop.f32.mrf.mxu0 }
 0x3fd   : > { %11064 = vst [vmem:[#allocation139_spill] sm:$0xff] %v8874_v23  ;;  %v2332_v62 = vadd.f32 %v2331_v51, %v8552_v15  ;;  %v2420_v28 = vpop.f32.mrf.mxu1 }
 0x3fe   : > { %v2421_v47 = vadd.f32 %v2420_v28, %v8557_v57  ;;  %v2118_v30 = vpop.f32.mrf.mxu2 }
 0x3ff   : > { %v3033_v7 = vmax.f32 %v2332_v62, 0.0  ;;  %v2119_v37 = vadd.f32 %v2118_v30, %v8742_v13  ;;  %v2928_v30 = vmax.f32 %v2210_v40, 0.0 }
 0x400   : > { %v3034_v48 = vmax.f32 %v2421_v47, 0.0 }
 0x401   : > { %v2919_v56 = vmax.f32 %v2119_v37, 0.0 }
 0x402   : > { %v8882_v32 = vpack.c.bf16 %v3034_v48, %v3033_v7 }
 0x403   : > { %v8884_v45 = vpack.c.bf16 %v2920_v26, %v2919_v56  ;;  %v2213_v26 = vadd.f32 %v8851_v24, %v8734_v12  ;;  %v2215_v24 = vadd.f32 %v2214_v3, %v8734_v12  ;;  %v2218_v3 = vadd.f32 %v2217_v58, %v8734_v12 }
 0x404   : > { %11065 = vst [vmem:[#allocation140_spill] sm:$0xff] %v8882_v32  ;;  %v2333_v6 = vpop.f32.mrf.mxu0  ;;  %v2220_v58 = vadd.f32 %v2219_v49, %v8734_v12 }
 0x405   : > { %11066 = vst [vmem:[#allocation141_spill] sm:$0xff] %v8884_v45  ;;  %v2334_v51 = vadd.f32 %v2333_v6, %v8552_v15  ;;  %v2422_v50 = vpop.f32.mrf.mxu1 }
 0x406   : > { %v2423_v28 = vadd.f32 %v2422_v50, %v8557_v57  ;;  %v2120_v62 = vpop.f32.mrf.mxu2 }
 0x407   : > { %v3041_v23 = vmax.f32 %v2334_v51, 0.0  ;;  %v2121_v47 = vadd.f32 %v2120_v62, %v8742_v13 }
 0x408   : > { %v3042_v16 = vmax.f32 %v2423_v28, 0.0  ;;  %v2222_v28 = vpop.f32.mrf.mxu3 }
 0x409   : > { %v2927_v7 = vmax.f32 %v2121_v47, 0.0  ;;  %v2936_v47 = vmax.f32 %v2213_v26, 0.0 }
 0x40a   : > { %v8891_v37 = vpack.c.bf16 %v3042_v16, %v3041_v23 }
 0x40b   : > { %v8893_v48 = vpack.c.bf16 %v2928_v30, %v2927_v7  ;;  %2162 = vmatmul.bf16.gmra.mxu2 %v8328_v33 }
 0x40c   : > { %11067 = vst [vmem:[#allocation142_spill] sm:$0xff] %v8891_v37  ;;  %v2336_v22 = vpop.f32.mrf.mxu0 }
 0x40d   : > { %11068 = vst [vmem:[#allocation143_spill] sm:$0xff] %v8893_v48  ;;  %v2337_v56 = vadd.f32 %v2336_v22, %v8552_v15  ;;  %v2425_v50 = vpop.f32.mrf.mxu1 }
 0x40e   : > { %v2426_v6 = vadd.f32 %v2425_v50, %v8557_v57  ;;  %v2123_v51 = vpop.f32.mrf.mxu2 }
 0x40f   : > { %v3049_v62 = vmax.f32 %v2337_v56, 0.0  ;;  %v2124_v40 = vadd.f32 %v2123_v51, %v8742_v13 }
 0x410   : > { %v3050_v23 = vmax.f32 %v2426_v6, 0.0  ;;  %v2944_v6 = vmax.f32 %v2215_v24, 0.0  ;;  %v2952_v24 = vmax.f32 %v2218_v3, 0.0  ;;  %v2960_v3 = vmax.f32 %v2220_v58, 0.0 }
 0x411   : > { %v2935_v16 = vmax.f32 %v2124_v40, 0.0  ;;  %v2224_v40 = vpop.f32.mrf.mxu3 }
 0x412   : > { %v8901_v30 = vpack.c.bf16 %v3050_v23, %v3049_v62 }
 0x413   : > { %v8903_v33 = vpack.c.bf16 %v2936_v47, %v2935_v16 }
 0x414   : > { %11069 = vst [vmem:[#allocation144_spill] sm:$0xff] %v8901_v30  ;;  %v2338_v7 = vpop.f32.mrf.mxu0 }
 0x415   : > { %11070 = vst [vmem:[#allocation145_spill] sm:$0xff] %v8903_v33  ;;  %v2339_v22 = vadd.f32 %v2338_v7, %v8552_v15  ;;  %v2427_v37 = vpop.f32.mrf.mxu1 }
 0x416   : > { %v2428_v50 = vadd.f32 %v2427_v37, %v8557_v57  ;;  %v2125_v32 = vpop.f32.mrf.mxu2 }
 0x417   : > { %v3057_v56 = vmax.f32 %v2339_v22, 0.0  ;;  %v2126_v51 = vadd.f32 %v2125_v32, %v8742_v13 }
 0x418   : > { %v3058_v48 = vmax.f32 %v2428_v50, 0.0 }
 0x419   : > { %v2943_v26 = vmax.f32 %v2126_v51, 0.0 }
 0x41a   : > { %v8909_v62 = vpack.c.bf16 %v3058_v48, %v3057_v56  ;;  %v2227_v56 = vpop.f32.mrf.mxu3 }
 0x41b   : > { %v8911_v23 = vpack.c.bf16 %v2944_v6, %v2943_v26 }
 0x41c   : > { %11071 = vst [vmem:[#allocation146_spill] sm:$0xff] %v8909_v62  ;;  %v2341_v47 = vpop.f32.mrf.mxu0 }
 0x41d   : > { %11072 = vst [vmem:[#allocation147_spill] sm:$0xff] %v8911_v23  ;;  %v2342_v16 = vadd.f32 %v2341_v47, %v8552_v15  ;;  %v2430_v7 = vpop.f32.mrf.mxu1 }
 0x41e   : > { %v2431_v37 = vadd.f32 %v2430_v7, %v8557_v57  ;;  %v2128_v30 = vpop.f32.mrf.mxu2 }
 0x41f   : > { %v3065_v22 = vmax.f32 %v2342_v16, 0.0  ;;  %v2129_v32 = vadd.f32 %v2128_v30, %v8742_v13 }
 0x420   : > { %v3066_v50 = vmax.f32 %v2431_v37, 0.0 }
 0x421   : > { %v2951_v51 = vmax.f32 %v2129_v32, 0.0 }
 0x422   : > { %v8917_v33 = vpack.c.bf16 %v3066_v50, %v3065_v22 }
 0x423   : > { %v8919_v48 = vpack.c.bf16 %v2952_v24, %v2951_v51  ;;  %v2223_v24 = vadd.f32 %v2222_v28, %v8734_v12  ;;  %v2229_v51 = vpop.f32.mrf.mxu3  ;;  %v2228_v28 = vadd.f32 %v2227_v56, %v8734_v12 }
 0x424   : > { %11073 = vst [vmem:[#allocation148_spill] sm:$0xff] %v8917_v33  ;;  %v2343_v6 = vpop.f32.mrf.mxu0 }
 0x425   : > { %11074 = vst [vmem:[#allocation149_spill] sm:$0xff] %v8919_v48  ;;  %v2344_v26 = vadd.f32 %v2343_v6, %v8552_v15  ;;  %v2432_v47 = vpop.f32.mrf.mxu1  ;;  %v2968_v6 = vmax.f32 %v2223_v24, 0.0 }
 0x426   : > { %v2433_v7 = vadd.f32 %v2432_v47, %v8557_v57  ;;  %v2130_v62 = vpop.f32.mrf.mxu2 }
 0x427   : > { %v3073_v16 = vmax.f32 %v2344_v26, 0.0  ;;  %v2131_v30 = vadd.f32 %v2130_v62, %v8742_v13  ;;  %v2225_v26 = vadd.f32 %v2224_v40, %v8734_v12  ;;  %v2230_v40 = vadd.f32 %v2229_v51, %v8734_v12 }
 0x428   : > { %v3074_v37 = vmax.f32 %v2433_v7, 0.0 }
 0x429   : > { %v2959_v32 = vmax.f32 %v2131_v30, 0.0  ;;  %v2976_v7 = vmax.f32 %v2225_v26, 0.0 }
 0x42a   : > { %v8925_v22 = vpack.c.bf16 %v3074_v37, %v3073_v16 }
 0x42b   : > { %v8927_v50 = vpack.c.bf16 %v2960_v3, %v2959_v32  ;;  %v2232_v47 = vpop.f32.mrf.mxu3  ;;  %v2984_v32 = vmax.f32 %v2228_v28, 0.0 }
 0x42c   : > { %11075 = vst [vmem:[#allocation150_spill] sm:$0xff] %v8925_v22  ;;  %v2233_v56 = vadd.f32 %v2232_v47, %v8734_v12 }
 0x42d   : > { %11076 = vst [vmem:[#allocation151_spill] sm:$0xff] %v8927_v50 }
 0x42e   : > { %v2133_v49 = vpop.f32.mrf.mxu2  ;;  %v3000_v28 = vmax.f32 %v2233_v56, 0.0 }
 0x42f   : > { %v2134_v15 = vadd.f32 %v2133_v49, %v8742_v13 }
 0x431   : > { %v2967_v33 = vmax.f32 %v2134_v15, 0.0 }
 0x433   : > { %v8931_v57 = vpack.c.bf16 %v2968_v6, %v2967_v33  ;;  %v2234_v49 = vpop.f32.mrf.mxu3 }
 0x435   : > { %11077 = vst [vmem:[#allocation152_spill] sm:$0xff] %v8931_v57 }
 0x436   : > { %v2135_v62 = vpop.f32.mrf.mxu2 }
 0x437   : > { %v2136_v58 = vadd.f32 %v2135_v62, %v8742_v13  ;;  %v2992_v62 = vmax.f32 %v2230_v40, 0.0 }
 0x439   : > { %v2975_v16 = vmax.f32 %v2136_v58, 0.0 }
 0x43b   : > { %v8935_v30 = vpack.c.bf16 %v2976_v7, %v2975_v16  ;;  %v2237_v7 = vpop.f32.mrf.mxu3 }
 0x43d   : > { %11078 = vst [vmem:[#allocation153_spill] sm:$0xff] %v8935_v30 }
 0x43e   : > { %v2138_v37 = vpop.f32.mrf.mxu2 }
 0x43f   : > { %v2139_v3 = vadd.f32 %v2138_v37, %v8742_v13 }
 0x441   : > { %v2983_v24 = vmax.f32 %v2139_v3, 0.0 }
 0x443   : > { %v8939_v33 = vpack.c.bf16 %v2984_v32, %v2983_v24  ;;  %v2235_v32 = vadd.f32 %v2234_v49, %v8734_v12  ;;  %v2239_v51 = vpop.f32.mrf.mxu3 }
 0x444   : > { %v2240_v49 = vadd.f32 %v2239_v51, %v8734_v12 }
 0x445   : > { %11079 = vst [vmem:[#allocation154_spill] sm:$0xff] %v8939_v33  ;;  %v3008_v40 = vmax.f32 %v2235_v32, 0.0 }
 0x446   : > { %v2140_v15 = vpop.f32.mrf.mxu2 }
 0x447   : > { %v2141_v6 = vadd.f32 %v2140_v15, %v8742_v13 }
 0x449   : > { %v2991_v26 = vmax.f32 %v2141_v6, 0.0 }
 0x44b   : > { %v8943_v58 = vpack.c.bf16 %v2992_v62, %v2991_v26  ;;  %v2238_v26 = vadd.f32 %v2237_v7, %v8734_v12 }
 0x44d   : > { %11080 = vst [vmem:[#allocation155_spill] sm:$0xff] %v8943_v58  ;;  %v3016_v56 = vmax.f32 %v2238_v26, 0.0 }
 0x44e   : > { %v2143_v16 = vpop.f32.mrf.mxu2 }
 0x44f   : > { %v2144_v37 = vadd.f32 %v2143_v16, %v8742_v13  ;;  %v2242_v16 = vpop.f32.mrf.mxu3 }
 0x450   : > { %v2243_v7 = vadd.f32 %v2242_v16, %v8734_v12 }
 0x451   : > { %v2999_v3 = vmax.f32 %v2144_v37, 0.0 }
 0x453   : > { %v8947_v22 = vpack.c.bf16 %v3000_v28, %v2999_v3 }
 0x455   : > { %11081 = vst [vmem:[#allocation156_spill] sm:$0xff] %v8947_v22 }
 0x456   : > { %v2145_v24 = vpop.f32.mrf.mxu2 }
 0x457   : > { %v2146_v15 = vadd.f32 %v2145_v24, %v8742_v13  ;;  %v3024_v24 = vmax.f32 %v2240_v49, 0.0 }
 0x459   : > { %v3007_v6 = vmax.f32 %v2146_v15, 0.0  ;;  %v2244_v15 = vpop.f32.mrf.mxu3 }
 0x45a   : > { %v2245_v51 = vadd.f32 %v2244_v15, %v8734_v12 }
 0x45b   : > { %v8951_v62 = vpack.c.bf16 %v3008_v40, %v3007_v6 }
 0x45c   : > { %v3040_v49 = vmax.f32 %v2245_v51, 0.0 }
 0x45d   : > { %11082 = vst [vmem:[#allocation157_spill] sm:$0xff] %v8951_v62  ;;  %v3032_v62 = vmax.f32 %v2243_v7, 0.0 }
 0x45e   : > { %v2148_v47 = vpop.f32.mrf.mxu2 }
 0x45f   : > { %v2149_v58 = vadd.f32 %v2148_v47, %v8742_v13 }
 0x461   : > { %v3015_v37 = vmax.f32 %v2149_v58, 0.0 }
 0x463   : > { %v8955_v28 = vpack.c.bf16 %v3016_v56, %v3015_v37  ;;  %v2247_v56 = vpop.f32.mrf.mxu3 }
 0x465   : > { %11083 = vst [vmem:[#allocation158_spill] sm:$0xff] %v8955_v28 }
 0x466   : > { %v2150_v3 = vpop.f32.mrf.mxu2 }
 0x467   : > { %v2151_v22 = vadd.f32 %v2150_v3, %v8742_v13 }
 0x469   : > { %v3023_v32 = vmax.f32 %v2151_v22, 0.0 }
 0x46b   : > { %v8959_v40 = vpack.c.bf16 %v3024_v24, %v3023_v32  ;;  %v2248_v24 = vadd.f32 %v2247_v56, %v8734_v12  ;;  %v2249_v16 = vpop.f32.mrf.mxu3 }
 0x46d   : > { %11084 = vst [vmem:[#allocation159_spill] sm:$0xff] %v8959_v40  ;;  %v3048_v7 = vmax.f32 %v2248_v24, 0.0 }
 0x46e   : > { %v2153_v6 = vpop.f32.mrf.mxu2 }
 0x46f   : > { %v2154_v47 = vadd.f32 %v2153_v6, %v8742_v13 }
 0x471   : > { %v3031_v26 = vmax.f32 %v2154_v47, 0.0 }
 0x473   : > { %v8963_v58 = vpack.c.bf16 %v3032_v62, %v3031_v26  ;;  %v2250_v26 = vadd.f32 %v2249_v16, %v8734_v12 }
 0x475   : > { %11085 = vst [vmem:[#allocation160_spill] sm:$0xff] %v8963_v58  ;;  %v3056_v51 = vmax.f32 %v2250_v26, 0.0 }
 0x476   : > { %v2155_v37 = vpop.f32.mrf.mxu2 }
 0x477   : > { %v2156_v3 = vadd.f32 %v2155_v37, %v8742_v13  ;;  %v2252_v37 = vpop.f32.mrf.mxu3 }
 0x478   : > { %v2253_v56 = vadd.f32 %v2252_v37, %v8734_v12 }
 0x479   : > { %v3039_v22 = vmax.f32 %v2156_v3, 0.0 }
 0x47b   : > { %v8967_v28 = vpack.c.bf16 %v3040_v49, %v3039_v22 }
 0x47d   : > { %11086 = vst [vmem:[#allocation161_spill] sm:$0xff] %v8967_v28 }
 0x47e   : > { %v2158_v32 = vpop.f32.mrf.mxu2 }
 0x47f   : > { %v2159_v6 = vadd.f32 %v2158_v32, %v8742_v13  ;;  %v3064_v32 = vmax.f32 %v2253_v56, 0.0 }
 0x481   : > { %v3047_v47 = vmax.f32 %v2159_v6, 0.0  ;;  %v2254_v6 = vpop.f32.mrf.mxu3 }
 0x482   : > { %v2255_v16 = vadd.f32 %v2254_v6, %v8734_v12 }
 0x483   : > { %v8971_v62 = vpack.c.bf16 %v3048_v7, %v3047_v47 }
 0x485   : > { %11087 = vst [vmem:[#allocation162_spill] sm:$0xff] %v8971_v62  ;;  %v3072_v62 = vmax.f32 %v2255_v16, 0.0 }
 0x486   : > { %v2160_v15 = vpop.f32.mrf.mxu2 }
 0x487   : > { %v2161_v58 = vadd.f32 %v2160_v15, %v8742_v13 }
 0x489   : > { %v3055_v3 = vmax.f32 %v2161_v58, 0.0 }
 0x48b   : > { %v8975_v49 = vpack.c.bf16 %v3056_v51, %v3055_v3 }
 0x48d   : > { %11088 = vst [vmem:[#allocation163_spill] sm:$0xff] %v8975_v49 }
 0x48e   : > { %v2163_v22 = vpop.f32.mrf.mxu2 }
 0x48f   : > { %v2164_v28 = vadd.f32 %v2163_v22, %v8742_v13 }
 0x491   : > { %v3063_v24 = vmax.f32 %v2164_v28, 0.0 }
 0x493   : > { %v8979_v7 = vpack.c.bf16 %v3064_v32, %v3063_v24 }
 0x495   : > { %11089 = vst [vmem:[#allocation164_spill] sm:$0xff] %v8979_v7 }
 0x496   : > { %v2165_v47 = vpop.f32.mrf.mxu2 }
 0x497   : > { %v2166_v15 = vadd.f32 %v2165_v47, %v8742_v13 }
 0x499   : > { %v3071_v26 = vmax.f32 %v2166_v15, 0.0  ;;  %3206 = sbr.rel (%p6931_p13) target bundleno = 1445 (0x5a5), region = 166 }
 0x49b   : > { %v8983_v58 = vpack.c.bf16 %v3072_v62, %v3071_v26 }
 0x49d   : > { %11090 = vst [vmem:[#allocation165_spill] sm:$0xff] %v8983_v58 }
 0x49e   : > { %v3208_v37 = vlaneseq  ;;  %s11092_s1 = sld [smem:[#allocation34_spill]] }
 0x4a0   : > { %v3209_v28 = vshrl.u32 %v3208_v37, 7 }
 0x4a2   : > { %v3210_v51 = vadd.s32 8, %v3209_v28  ;;  %v3211_v3 = vadd.s32 16, %v3209_v28  ;;  %v3212_v12 = vadd.s32 24, %v3209_v28  ;;  %v3213_v22 = vadd.s32 32, %v3209_v28 }
 0x4a3   : > { %v3214_v32 = vadd.s32 40, %v3209_v28  ;;  %v3215_v13 = vadd.s32 48, %v3209_v28  ;;  %v3216_v24 = vadd.s32 56, %v3209_v28  ;;  %v3217_v6 = vadd.s32 64, %v3209_v28 }
 0x4a4   : > { %s6932_s14 = sshll.u32 %s11092_s1, 7  ;;  %v3218_v62 = vadd.s32 72, %v3209_v28  ;;  %v3219_v47 = vadd.s32 80, %v3209_v28  ;;  %v3220_v15 = vadd.s32 88, %v3209_v28  ;;  %v3221_v26 = vadd.s32 96, %v3209_v28 }
 0x4a5   : > { %v3225_v56 = vstv %s6932_s14  ;;  %v3222_v48 = vadd.s32 104, %v3209_v28  ;;  %v3223_v23 = vadd.s32 112, %v3209_v28  ;;  %v3224_v45 = vadd.s32 120, %v3209_v28 }
 0x4a6   : > { %v3226_v16 = vadd.s32 %v3225_v56, %v3209_v28  ;;  %v3227_v58 = vadd.s32 %v3225_v56, %v3210_v51  ;;  %v3228_v7 = vadd.s32 %v3225_v56, %v3211_v3  ;;  %v3229_v49 = vadd.s32 %v3225_v56, %v3212_v12  ;;  %v11195_v3 = vld [vmem:[#allocation122_spill] sm:$0xff]  ;;  %v11201_v12 = vld [vmem:[#allocation124_spill] sm:$0xff] }
 0x4a7   : > { %v3230_v40 = vadd.s32 %v3225_v56, %v3213_v22  ;;  %v3231_v33 = vadd.s32 %v3225_v56, %v3214_v32  ;;  %v3232_v37 = vadd.s32 %v3225_v56, %v3215_v13  ;;  %v8989_v30 = vadd.s32 %v3225_v56, %v3216_v24 }
 0x4a8   : > { %v8991_v57 = vadd.s32 %v3225_v56, %v3217_v6  ;;  %v8993_v50 = vadd.s32 %v3225_v56, %v3218_v62  ;;  %vm3242_vm2 = vcmp.lt.s32.totalorder %v3226_v16, 200  ;;  %v8995_v55 = vadd.s32 %v3225_v56, %v3219_v47  ;;  %v11216_v16 = vld [vmem:[#allocation128_spill] sm:$0xff] }
 0x4a9   : > { %v8997_v17 = vadd.s32 %v3225_v56, %v3220_v15  ;;  %v8999_v51 = vadd.s32 %v3225_v56, %v3221_v26  ;;  %vm3243_vm3 = vcmp.lt.s32.totalorder %v3227_v58, 200  ;;  %vm3244_vm4 = vcmp.lt.s32.totalorder %v3228_v7, 200  ;;  %vm9001_vm9 = vmpackc.low %vm3242_vm2, %vm3242_vm2 }
 0x4aa   : > { %vm3245_vm5 = vcmp.lt.s32.totalorder %v3229_v49, 200  ;;  %vm3246_vm6 = vcmp.lt.s32.totalorder %v3230_v40, 200  ;;  %vm3247_vm7 = vcmp.lt.s32.totalorder %v3231_v33, 200  ;;  %vm3248_vm8 = vcmp.lt.s32.totalorder %v3232_v37, 200  ;;  %vm9015_vm13 = vmpackc.low %vm3243_vm3, %vm3243_vm3  ;;  %v11247_v37 = vld [vmem:[#allocation136_spill] sm:$0xff] }
 0x4ab   : > { %vm3249_vm10 = vcmp.lt.s32.totalorder %v8989_v30, 200  ;;  %vm3250_vm11 = vcmp.lt.s32.totalorder %v8991_v57, 200  ;;  %vm3251_vm12 = vcmp.lt.s32.totalorder %v8993_v50, 200  ;;  %v9011_v28 = vsel %vm9001_vm9, %v8338_v44, 4286644096  ;;  %vm9039_vm15 = vmpackc.low %vm3244_vm4, %vm3244_vm4  ;;  %v11270_v50 = vld [vmem:[#allocation142_spill] sm:$0xff] }
 0x4ac   : > { %11095 = vst [vmem:[#allocation166_spill] sm:$0xff] %v9011_v28  ;;  %v9013_v58 = vadd.s32 %v3225_v56, %v3222_v48  ;;  %v9022_v22 = vsel %vm9001_vm9, %v8187_v8, 4286644096  ;;  %v9027_v32 = vsel %vm9001_vm9, %v8756_v42, 4286644096  ;;  %v9034_v48 = vadd.s32 %v3225_v56, %v3223_v23  ;;  %vm9063_vm1 = vmpackc.low %vm3245_vm5, %vm3245_vm5 }
 0x4ad   : > { %11098 = vst [vmem:[#allocation167_spill] sm:$0xff] %v9022_v22  ;;  %v9032_v13 = vsel %vm9001_vm9, %v8572_v43, 4286644096  ;;  %vm3252_vm14 = vcmp.lt.s32.totalorder %v8995_v55, 200  ;;  %v9046_v6 = vsel %vm9015_vm13, %v8349_v9, 4286644096  ;;  %v9058_v7 = vadd.s32 %v3225_v56, %v3224_v45  ;;  %vm9101_vm3 = vmpackc.low %vm3246_vm6, %vm3246_vm6 }
 0x4ae   : > { %11099 = vst [vmem:[#allocation168_spill] sm:$0xff] %v9027_v32  ;;  %v9051_v62 = vsel %vm9015_vm13, %v8195_v21, 4286644096  ;;  %v9056_v23 = vsel %vm9015_vm13, %v8765_v0, 4286644096  ;;  %vm3253_vm0 = vcmp.lt.s32.totalorder %v8997_v17, 200  ;;  %vm9124_vm5 = vmpackc.low %vm3247_vm7, %vm3247_vm7 }
 0x4af   : > { %11100 = vst [vmem:[#allocation169_spill] sm:$0xff] %v9032_v13  ;;  %v9070_v47 = vsel %vm9015_vm13, %v8581_v11, 4286644096  ;;  %v9075_v15 = vsel %vm9039_vm15, %v8364_v61, 4286644096  ;;  %vm3254_vm2 = vcmp.lt.s32.totalorder %v8999_v51, 200  ;;  %vm9147_vm7 = vmpackc.low %vm3248_vm8, %vm3248_vm8 }
 0x4b0   : > { %11103 = vst [vmem:[#allocation170_spill] sm:$0xff] %v9046_v6  ;;  %v9080_v45 = vsel %vm9039_vm15, %v8207_v41, 4286644096  ;;  %v9086_v49 = vsel %vm9039_vm15, %v8777_v25, 4286644096  ;;  %vm3255_vm4 = vcmp.lt.s32.totalorder %v9013_v58, 200  ;;  %vm9187_vm8 = vmpackc.low %vm3249_vm10, %vm3249_vm10 }
 0x4b1   : > { %11104 = vst [vmem:[#allocation171_spill] sm:$0xff] %v9051_v62  ;;  %v9091_v56 = vsel %vm9039_vm15, %v8596_v53, 4286644096  ;;  %v9096_v26 = vsel %vm9063_vm1, %v8375_v54, 4286644096  ;;  %vm3256_vm6 = vcmp.lt.s32.totalorder %v9034_v48, 200  ;;  %vm9210_vm10 = vmpackc.low %vm3250_vm11, %vm3250_vm11  ;;  %v11232_v54 = vunpack.c.l.bf16 %v9075_v15 }
 0x4b2   : > { %11105 = vst [vmem:[#allocation172_spill] sm:$0xff] %v9056_v23  ;;  %v9108_v25 = vsel %vm9063_vm1, %v8215_v4, 4286644096  ;;  %v9113_v53 = vsel %vm9063_vm1, %v8788_v34, 4286644096  ;;  %vm9233_vm11 = vmpackc.low %vm3251_vm12, %vm3251_vm12  ;;  %v11123_v21 = vld [vmem:[#allocation71_spill] sm:$0xff]  ;;  %v11279_v43 = vunpack.c.l.bf16 %v9086_v49  ;;  %v11305_v32 = vunpack.c.l.bf16 %v9091_v56 }
 0x4b3   : > { %11108 = vst [vmem:[#allocation173_spill] sm:$0xff] %v9070_v47  ;;  %v9118_v41 = vsel %vm9063_vm1, %v8607_v14, 4286644096  ;;  %v9131_v34 = vsel %vm9101_vm3, %v8390_v46, 4286644096  ;;  %vm9272_vm12 = vmpackc.low %vm3252_vm14, %vm3252_vm14  ;;  %v11136_v44 = vmov 0 }
 0x4b4   : > { %v9136_v14 = vsel %vm9101_vm3, %v8227_v18, 4286644096  ;;  %v9141_v40 = vsel %vm9101_vm3, %v8800_v10, 4286644096  ;;  %v9154_v18 = vsel %vm9101_vm3, %v8622_v39, 4286644096  ;;  %vm9295_vm14 = vmpackc.low %vm3253_vm0, %vm3253_vm0 }
 0x4b5   : > { %v9159_v10 = vsel %vm9124_vm5, %v8399_v19, 4286644096  ;;  %v9164_v33 = vsel %vm9124_vm5, %v8235_v35, 4286644096  ;;  %v9171_v46 = vsel %vm9124_vm5, %v8811_v59, 4286644096  ;;  %vm9318_vm0 = vmpackc.low %vm3254_vm2, %vm3254_vm2 }
 0x4b6   : > { %v9176_v39 = vsel %vm9124_vm5, %v8633_v31, 4286644096  ;;  %v9181_v19 = vsel %vm9147_vm7, %v8414_v29, 4286644096  ;;  %v9194_v59 = vsel %vm9147_vm7, %v8247_v60, 4286644096  ;;  %vm9357_vm2 = vmpackc.low %vm3255_vm4, %vm3255_vm4  ;;  %v11255_v29 = vunpack.c.l.bf16 %v9080_v45 }
 0x4b7   : > { %v9199_v31 = vsel %vm9147_vm7, %v8821_v52, 4286644096  ;;  %v9204_v35 = vsel %vm9147_vm7, %v8646_v5, 4286644096  ;;  %v9217_v60 = vsel %vm9187_vm8, %v8425_v63, 4286644096  ;;  %vm9380_vm4 = vmpackc.low %vm3256_vm6, %vm3256_vm6 }
 0x4b8   : > { %v11119_v52 = vld [vmem:[#allocation45_spill] sm:$0xff]  ;;  %v9227_v30 = vsel %vm9187_vm8, %v8832_v36, 4286644096  ;;  %v9240_v63 = vsel %vm9187_vm8, %v8657_v20, 4286644096  ;;  %v11122_v36 = vld [vmem:[#allocation46_spill] sm:$0xff] }
 0x4b9   : > { %v9222_v11 = vsel %vm9187_vm8, %v11119_v52, 4286644096  ;;  %v9245_v52 = vsel %vm9210_vm10, %v8440_v2, 4286644096  ;;  %v9250_v57 = vsel %vm9210_vm10, %v11122_v36, 4286644096 }
 0x4ba   : > { %v9256_v0 = vsel %vm9210_vm10, %v8844_v38, 4286644096  ;;  %v9261_v20 = vsel %vm9210_vm10, %v8672_v1, 4286644096  ;;  %v9266_v2 = vsel %vm9233_vm11, %v11123_v21, 4286644096 }
 0x4bb   : > { %v11126_v38 = vld [vmem:[#allocation47_spill] sm:$0xff]  ;;  %v9284_v1 = vsel %vm9233_vm11, %v8855_v27, 4286644096  ;;  %v11127_v21 = vld [vmem:[#allocation106_spill] sm:$0xff]  ;;  %v11132_v27 = vld [vmem:[#allocation48_spill] sm:$0xff]  ;;  %v11137_v44 = vsel %vm9318_vm0, 4294967295, %v11136_v44 }
 0x4bc   : > { %v9279_v9 = vsel %vm9233_vm11, %v11126_v38, 4286644096  ;;  %v9289_v36 = vsel %vm9233_vm11, %v11127_v21, 4286644096  ;;  %v11130_v38 = vld [vmem:[#allocation73_spill] sm:$0xff]  ;;  %v11142_v22 = vld [vmem:[#allocation139_spill] sm:$0xff] }
 0x4bd   : > { %v9302_v42 = vsel %vm9272_vm12, %v11130_v38, 4286644096  ;;  %v9307_v8 = vsel %vm9272_vm12, %v11132_v27, 4286644096  ;;  %v11134_v21 = vld [vmem:[#allocation137_spill] sm:$0xff]  ;;  %v11138_v38 = vld [vmem:[#allocation108_spill] sm:$0xff] }
 0x4be   : > { %11131 = vst [vmem:[#allocation174_spill] sm:$0xff] %v9302_v42  ;;  %v9312_v55 = vsel %vm9272_vm12, %v11134_v21, 4286644096  ;;  %v9325_v28 = vsel %vm9272_vm12, %v11138_v38, 4286644096  ;;  %v11140_v27 = vld [vmem:[#allocation75_spill] sm:$0xff] }
 0x4bf   : > { %11133 = vst [vmem:[#allocation175_spill] sm:$0xff] %v9307_v8  ;;  %v9330_v8 = vsel %vm9295_vm14, %v11140_v27, 4286644096  ;;  %v11141_v21 = vld [vmem:[#allocation49_spill] sm:$0xff]  ;;  %v11144_v42 = vld [vmem:[#allocation110_spill] sm:$0xff]  ;;  %vm11164_vm6 = vcmp.lt.s32.totalorder %v9058_v7, 200 }
 0x4c0   : > { %11135 = vst [vmem:[#allocation176_spill] sm:$0xff] %v9312_v55  ;;  %v9335_v17 = vsel %vm9295_vm14, %v11141_v21, 4286644096  ;;  %v9341_v55 = vsel %vm9295_vm14, %v11142_v22, 4286644096  ;;  %v11150_v22 = vld [vmem:[#allocation50_spill] sm:$0xff] }
 0x4c1   : > { %11139 = vst [vmem:[#allocation177_spill] sm:$0xff] %v9325_v28  ;;  %v9346_v38 = vsel %vm9295_vm14, %v11144_v42, 4286644096  ;;  %v11146_v28 = vld [vmem:[#allocation77_spill] sm:$0xff]  ;;  %v11186_v6 = vld [vmem:[#allocation56_spill] sm:$0xff]  ;;  %v11205_v23 = vld [vmem:[#allocation62_spill] sm:$0xff] }
 0x4c2   : > { %11143 = vst [vmem:[#allocation178_spill] sm:$0xff] %v9341_v55  ;;  %v9351_v27 = vsel %vm9318_vm0, %v11146_v28, 4286644096  ;;  %v9364_v55 = vsel %vm9318_vm0, %v11150_v22, 4286644096  ;;  %v11152_v42 = vld [vmem:[#allocation141_spill] sm:$0xff] }
 0x4c3   : > { %11145 = vst [vmem:[#allocation179_spill] sm:$0xff] %v9346_v38  ;;  %v9369_v38 = vsel %vm9318_vm0, %v11152_v42, 4286644096  ;;  %v11154_v28 = vld [vmem:[#allocation112_spill] sm:$0xff]  ;;  %v11158_v22 = vld [vmem:[#allocation79_spill] sm:$0xff]  ;;  %v11173_v13 = vld [vmem:[#allocation145_spill] sm:$0xff] }
 0x4c4   : > { %11147 = vst [vmem:[#allocation180_spill] sm:$0xff] %v9351_v27  ;;  %v9374_v21 = vsel %vm9318_vm0, %v11154_v28, 4286644096  ;;  %v11160_v42 = vld [vmem:[#allocation51_spill] sm:$0xff]  ;;  %vm9403_vm0 = vmpackc.low %vm11164_vm6, %vm11164_vm6  ;;  %v11175_v27 = vld [vmem:[#allocation116_spill] sm:$0xff] }
 0x4c5   : > { %11151 = vst [vmem:[#allocation181_spill] sm:$0xff] %v9364_v55  ;;  %v9387_v55 = vsel %vm9357_vm2, %v11158_v22, 4286644096  ;;  %v11162_v28 = vld [vmem:[#allocation143_spill] sm:$0xff]  ;;  %v11167_v22 = vld [vmem:[#allocation114_spill] sm:$0xff]  ;;  %v11196_v62 = vld [vmem:[#allocation89_spill] sm:$0xff] }
 0x4c6   : > { %11153 = vst [vmem:[#allocation182_spill] sm:$0xff] %v9369_v38  ;;  %v9392_v38 = vsel %vm9357_vm2, %v11160_v42, 4286644096  ;;  %v9397_v58 = vsel %vm9357_vm2, %v11162_v28, 4286644096  ;;  %v11169_v42 = vld [vmem:[#allocation81_spill] sm:$0xff] }
 0x4c7   : > { %11155 = vst [vmem:[#allocation183_spill] sm:$0xff] %v9374_v21  ;;  %v11171_v28 = vld [vmem:[#allocation52_spill] sm:$0xff]  ;;  %v11218_v47 = vld [vmem:[#allocation95_spill] sm:$0xff]  ;;  %v11224_v61 = vld [vmem:[#allocation130_spill] sm:$0xff]  ;;  %v3475_v21 = vunpack.c.h.bf16 %v9154_v18 }
 0x4c8   : > { %11159 = vst [vmem:[#allocation184_spill] sm:$0xff] %v9387_v55  ;;  %v9410_v55 = vsel %vm9357_vm2, %v11167_v22, 4286644096  ;;  %v9420_v48 = vsel %vm9380_vm4, %v11171_v28, 4286644096  ;;  %v11239_v4 = vld [vmem:[#allocation134_spill] sm:$0xff] }
 0x4c9   : > { %11161 = vst [vmem:[#allocation185_spill] sm:$0xff] %v9392_v38  ;;  %v9415_v38 = vsel %vm9380_vm4, %v11169_v42, 4286644096  ;;  %v9431_v22 = vsel %vm9380_vm4, %v11175_v27, 4286644096  ;;  %v11262_v5 = vld [vmem:[#allocation140_spill] sm:$0xff] }
 0x4ca   : > { %11163 = vst [vmem:[#allocation186_spill] sm:$0xff] %v9397_v58  ;;  %v9426_v58 = vsel %vm9380_vm4, %v11173_v13, 4286644096  ;;  %v11297_v51 = vld [vmem:[#allocation148_spill] sm:$0xff] }
 0x4cb   : > { %11168 = vst [vmem:[#allocation187_spill] sm:$0xff] %v9410_v55  ;;  %v11176_v55 = vld [vmem:[#allocation83_spill] sm:$0xff] }
 0x4cc   : > { %11170 = vst [vmem:[#allocation188_spill] sm:$0xff] %v9415_v38  ;;  %v9436_v42 = vsel %vm9403_vm0, %v11176_v55, 4286644096  ;;  %v11180_v38 = vld [vmem:[#allocation147_spill] sm:$0xff] }
 0x4cd   : > { %11172 = vst [vmem:[#allocation189_spill] sm:$0xff] %v9420_v48  ;;  %v11178_v48 = vld [vmem:[#allocation54_spill] sm:$0xff]  ;;  %v9447_v13 = vsel %vm9403_vm0, %v11180_v38, 4286644096 }
 0x4ce   : > { %11174 = vst [vmem:[#allocation190_spill] sm:$0xff] %v9426_v58  ;;  %v9442_v7 = vsel %vm9403_vm0, %v11178_v48, 4286644096  ;;  %v11182_v58 = vld [vmem:[#allocation118_spill] sm:$0xff]  ;;  %v9463_v48 = vsel %vm9001_vm9, %v11186_v6, 4286644096 }
 0x4cf   : > { %11177 = vst [vmem:[#allocation191_spill] sm:$0xff] %v9436_v42  ;;  %v9452_v27 = vsel %vm9403_vm0, %v11182_v58, 4286644096  ;;  %v11184_v42 = vld [vmem:[#allocation85_spill] sm:$0xff] }
 0x4d0   : > { %11179 = vst [vmem:[#allocation192_spill] sm:$0xff] %v9442_v7  ;;  %v9458_v28 = vsel %vm9001_vm9, %v11184_v42, 4286644096  ;;  %v11187_v7 = vld [vmem:[#allocation149_spill] sm:$0xff] }
 0x4d1   : > { %11181 = vst [vmem:[#allocation193_spill] sm:$0xff] %v9447_v13  ;;  %v9468_v38 = vsel %vm9001_vm9, %v11187_v7, 4286644096  ;;  %v11190_v13 = vld [vmem:[#allocation87_spill] sm:$0xff] }
 0x4d2   : > { %11183 = vst [vmem:[#allocation194_spill] sm:$0xff] %v9452_v27  ;;  %v11189_v27 = vld [vmem:[#allocation120_spill] sm:$0xff]  ;;  %v9479_v42 = vsel %vm9015_vm13, %v11190_v13, 4286644096  ;;  %v9500_v13 = vsel %vm9039_vm15, %v11196_v62, 4286644096 }
 0x4d3   : > { %11185 = vst [vmem:[#allocation195_spill] sm:$0xff] %v9458_v28  ;;  %v9474_v55 = vsel %vm9001_vm9, %v11189_v27, 4286644096  ;;  %v11192_v28 = vld [vmem:[#allocation58_spill] sm:$0xff]  ;;  %v9495_v27 = vsel %vm9015_vm13, %v11195_v3, 4286644096  ;;  %vm11273_vm9 = vnez %v11137_v44 }
 0x4d4   : > { %11188 = vst [vmem:[#allocation196_spill] sm:$0xff] %v9468_v38  ;;  %v9484_v6 = vsel %vm9015_vm13, %v11192_v28, 4286644096  ;;  %v11194_v38 = vld [vmem:[#allocation151_spill] sm:$0xff]  ;;  %v9516_v3 = vsel %vm9039_vm15, %v11201_v12, 4286644096 }
 0x4d5   : > { %11191 = vst [vmem:[#allocation197_spill] sm:$0xff] %v9479_v42  ;;  %v9490_v58 = vsel %vm9015_vm13, %v11194_v38, 4286644096  ;;  %v11200_v42 = vld [vmem:[#allocation152_spill] sm:$0xff]  ;;  %v11208_v12 = vld [vmem:[#allocation126_spill] sm:$0xff]  ;;  %vm4080_vm13 = vcmask 1041408  }
 0x4d6   : > { %11193 = vst [vmem:[#allocation198_spill] sm:$0xff] %v9484_v6  ;;  %v11198_v6 = vld [vmem:[#allocation60_spill] sm:$0xff]  ;;  %v9511_v38 = vsel %vm9039_vm15, %v11200_v42, 4286644096  ;;  %v9538_v62 = vsel %vm9063_vm1, %v11208_v12, 4286644096 }
 0x4d7   : > { %11197 = vst [vmem:[#allocation199_spill] sm:$0xff] %v9500_v13  ;;  %v9506_v7 = vsel %vm9039_vm15, %v11198_v6, 4286644096  ;;  %v11203_v13 = vld [vmem:[#allocation91_spill] sm:$0xff]  ;;  %v9527_v6 = vsel %vm9063_vm1, %v11205_v23, 4286644096 }
 0x4d8   : > { %11199 = vst [vmem:[#allocation200_spill] sm:$0xff] %v9506_v7  ;;  %v9522_v28 = vsel %vm9063_vm1, %v11203_v13, 4286644096  ;;  %v11206_v7 = vld [vmem:[#allocation153_spill] sm:$0xff]  ;;  %v9559_v12 = vsel %vm9101_vm3, %v11216_v16, 4286644096 }
 0x4d9   : > { %11202 = vst [vmem:[#allocation201_spill] sm:$0xff] %v9516_v3  ;;  %v9532_v42 = vsel %vm9063_vm1, %v11206_v7, 4286644096  ;;  %v11210_v3 = vld [vmem:[#allocation93_spill] sm:$0xff]  ;;  %v3459_v7 = vunpack.c.h.bf16 %v9091_v56  ;;  %v9580_v16 = vsel %vm9124_vm5, %v11224_v61, 4286644096 }
 0x4da   : > { %11204 = vst [vmem:[#allocation202_spill] sm:$0xff] %v9522_v28  ;;  %v9543_v13 = vsel %vm9101_vm3, %v11210_v3, 4286644096  ;;  %v11212_v28 = vld [vmem:[#allocation64_spill] sm:$0xff]  ;;  %v9564_v3 = vsel %vm9124_vm5, %v11218_v47, 4286644096  ;;  %v3461_v47 = vunpack.c.h.bf16 %v9096_v26 }
 0x4db   : > { %11207 = vst [vmem:[#allocation203_spill] sm:$0xff] %v9532_v42  ;;  %v9548_v23 = vsel %vm9101_vm3, %v11212_v28, 4286644096  ;;  %v11214_v42 = vld [vmem:[#allocation154_spill] sm:$0xff]  ;;  %v3460_v28 = vunpack.c.l.bf16 %v9096_v26  ;;  %vm4082_vm15 = vcmask 1045508   ;;  %vm4084_vm1 = vcmask 1043456  }
 0x4dc   : > { %11209 = vst [vmem:[#allocation204_spill] sm:$0xff] %v9538_v62  ;;  %v9554_v24 = vsel %vm9101_vm3, %v11214_v42, 4286644096  ;;  %v11222_v62 = vld [vmem:[#allocation155_spill] sm:$0xff]  ;;  %v11289_v44 = vld [vmem:[#allocation146_spill] sm:$0xff]  ;;  %vm4100_vm3 = vcmask 1041409  }
 0x4dd   : > { %11211 = vst [vmem:[#allocation205_spill] sm:$0xff] %v9543_v13  ;;  %v9575_v42 = vsel %vm9124_vm5, %v11222_v62, 4286644096  ;;  %v3693_v61 = vmax.f32 %v3460_v28, %v11232_v54  ;;  %v11241_v54 = vld [vmem:[#allocation101_spill] sm:$0xff] }
 0x4de   : > { %11213 = vst [vmem:[#allocation206_spill] sm:$0xff] %v9548_v23  ;;  %v11220_v23 = vld [vmem:[#allocation66_spill] sm:$0xff] }
 0x4df   : > { %11215 = vst [vmem:[#allocation207_spill] sm:$0xff] %v9554_v24  ;;  %v9570_v13 = vsel %vm9124_vm5, %v11220_v23, 4286644096  ;;  %v11228_v24 = vld [vmem:[#allocation68_spill] sm:$0xff]  ;;  %vm4102_vm5 = vcmask 1043459  }
 0x4e0   : > { %11217 = vst [vmem:[#allocation208_spill] sm:$0xff] %v9559_v12  ;;  %v9591_v23 = vsel %vm9147_vm7, %v11228_v24, 4286644096  ;;  %v11235_v24 = vld [vmem:[#allocation70_spill] sm:$0xff] }
 0x4e1   : > { %11219 = vst [vmem:[#allocation209_spill] sm:$0xff] %v9564_v3  ;;  %v11226_v3 = vld [vmem:[#allocation97_spill] sm:$0xff] }
 0x4e2   : > { %11221 = vst [vmem:[#allocation210_spill] sm:$0xff] %v9570_v13  ;;  %v9586_v12 = vsel %vm9147_vm7, %v11226_v3, 4286644096  ;;  %v11230_v13 = vld [vmem:[#allocation156_spill] sm:$0xff]  ;;  %v11234_v3 = vld [vmem:[#allocation99_spill] sm:$0xff] }
 0x4e3   : > { %11223 = vst [vmem:[#allocation211_spill] sm:$0xff] %v9575_v42  ;;  %v9596_v62 = vsel %vm9147_vm7, %v11230_v13, 4286644096  ;;  %v11237_v13 = vunpack.c.h.bf16 %v9075_v15  ;;  %v11238_v42 = vld [vmem:[#allocation157_spill] sm:$0xff] }
 0x4e4   : > { %11225 = vst [vmem:[#allocation212_spill] sm:$0xff] %v9580_v16  ;;  %v11233_v16 = vld [vmem:[#allocation132_spill] sm:$0xff]  ;;  %v9620_v28 = vsel %vm9187_vm8, %v11238_v42, 4286644096 }
 0x4e5   : > { %11227 = vst [vmem:[#allocation213_spill] sm:$0xff] %v9586_v12  ;;  %v9603_v26 = vsel %vm9147_vm7, %v11233_v16, 4286644096  ;;  %v9608_v12 = vsel %vm9187_vm8, %v11234_v3, 4286644096  ;;  %vm4104_vm7 = vcmask 1045509  }
 0x4e6   : > { %11229 = vst [vmem:[#allocation214_spill] sm:$0xff] %v9591_v23  ;;  %v9613_v23 = vsel %vm9187_vm8, %v11235_v24, 4286644096  ;;  %v9625_v16 = vsel %vm9187_vm8, %v11239_v4, 4286644096  ;;  %v3462_v24 = vunpack.c.l.bf16 %v9108_v25  ;;  %v3463_v4 = vunpack.c.h.bf16 %v9108_v25 }
 0x4e7   : > { %11231 = vst [vmem:[#allocation215_spill] sm:$0xff] %v9596_v62  ;;  %v3714_v62 = vmax.f32 %v3461_v47, %v11237_v13  ;;  %v9630_v3 = vsel %vm9210_vm10, %v11241_v54, 4286644096  ;;  %v11245_v47 = vld [vmem:[#allocation158_spill] sm:$0xff]  ;;  %v9646_v13 = vsel %vm9210_vm10, %v11247_v37, 4286644096 }
 0x4e8   : > { %11236 = vst [vmem:[#allocation216_spill] sm:$0xff] %v9613_v23  ;;  %v11243_v23 = vld [vmem:[#allocation72_spill] sm:$0xff]  ;;  %v9641_v42 = vsel %vm9210_vm10, %v11245_v47, 4286644096  ;;  %v11249_v54 = vld [vmem:[#allocation103_spill] sm:$0xff]  ;;  %v3735_v37 = vmax.f32 %v3462_v24, %v11255_v29  ;;  %vm4106_vm8 = vcmask 1047559  }
 0x4e9   : > { %11240 = vst [vmem:[#allocation217_spill] sm:$0xff] %v9625_v16  ;;  %v9636_v15 = vsel %vm9210_vm10, %v11243_v23, 4286644096  ;;  %v11251_v16 = vld [vmem:[#allocation74_spill] sm:$0xff]  ;;  %v11264_v29 = vld [vmem:[#allocation107_spill] sm:$0xff] }
 0x4ea   : > { %11242 = vst [vmem:[#allocation218_spill] sm:$0xff] %v9630_v3  ;;  %v9652_v3 = vsel %vm9233_vm11, %v11249_v54, 4286644096  ;;  %v9657_v23 = vsel %vm9233_vm11, %v11251_v16, 4286644096  ;;  %v11257_v54 = vld [vmem:[#allocation105_spill] sm:$0xff] }
 0x4eb   : > { %11244 = vst [vmem:[#allocation219_spill] sm:$0xff] %v9636_v15  ;;  %v11253_v15 = vld [vmem:[#allocation159_spill] sm:$0xff]  ;;  %v11258_v16 = vld [vmem:[#allocation76_spill] sm:$0xff] }
 0x4ec   : > { %11246 = vst [vmem:[#allocation220_spill] sm:$0xff] %v9641_v42  ;;  %v9662_v47 = vsel %vm9233_vm11, %v11253_v15, 4286644096  ;;  %v11260_v15 = vunpack.c.h.bf16 %v9080_v45  ;;  %v11261_v42 = vld [vmem:[#allocation160_spill] sm:$0xff] }
 0x4ed   : > { %11248 = vst [vmem:[#allocation221_spill] sm:$0xff] %v9646_v13  ;;  %v11256_v13 = vld [vmem:[#allocation138_spill] sm:$0xff]  ;;  %v9686_v24 = vsel %vm9272_vm12, %v11261_v42, 4286644096 }
 0x4ee   : > { %11250 = vst [vmem:[#allocation222_spill] sm:$0xff] %v9652_v3  ;;  %v9669_v25 = vsel %vm9233_vm11, %v11256_v13, 4286644096  ;;  %v9674_v3 = vsel %vm9272_vm12, %v11257_v54, 4286644096 }
 0x4ef   : > { %11252 = vst [vmem:[#allocation223_spill] sm:$0xff] %v9657_v23  ;;  %v9679_v23 = vsel %vm9272_vm12, %v11258_v16, 4286644096  ;;  %v9691_v13 = vsel %vm9272_vm12, %v11262_v5, 4286644096  ;;  %v3464_v16 = vunpack.c.l.bf16 %v9113_v53  ;;  %v3465_v5 = vunpack.c.h.bf16 %v9113_v53 }
 0x4f0   : > { %11254 = vst [vmem:[#allocation224_spill] sm:$0xff] %v9662_v47  ;;  %v3756_v47 = vmax.f32 %v3463_v4, %v11260_v15  ;;  %v9696_v54 = vsel %vm9295_vm14, %v11264_v29, 4286644096  ;;  %v11268_v4 = vld [vmem:[#allocation161_spill] sm:$0xff]  ;;  %v9712_v15 = vsel %vm9295_vm14, %v11270_v50, 4286644096 }
 0x4f1   : > { %11259 = vst [vmem:[#allocation225_spill] sm:$0xff] %v9679_v23  ;;  %v11266_v23 = vld [vmem:[#allocation78_spill] sm:$0xff]  ;;  %v9707_v42 = vsel %vm9295_vm14, %v11268_v4, 4286644096  ;;  %v11272_v29 = vld [vmem:[#allocation109_spill] sm:$0xff]  ;;  %v3777_v50 = vmax.f32 %v3464_v16, %v11279_v43 }
 0x4f2   : > { %11263 = vst [vmem:[#allocation226_spill] sm:$0xff] %v9691_v13  ;;  %v9702_v45 = vsel %vm9295_vm14, %v11266_v23, 4286644096  ;;  %v11275_v13 = vld [vmem:[#allocation80_spill] sm:$0xff]  ;;  %v11291_v43 = vld [vmem:[#allocation113_spill] sm:$0xff] }
 0x4f3   : > { %11265 = vst [vmem:[#allocation227_spill] sm:$0xff] %v9696_v54  ;;  %v9718_v54 = vsel %vm11273_vm9, %v11272_v29, 4286644096  ;;  %v9723_v23 = vsel %vm11273_vm9, %v11275_v13, 4286644096  ;;  %v11282_v29 = vld [vmem:[#allocation111_spill] sm:$0xff] }
 0x4f4   : > { %11267 = vst [vmem:[#allocation228_spill] sm:$0xff] %v9702_v45  ;;  %v11277_v45 = vld [vmem:[#allocation162_spill] sm:$0xff] }
 0x4f5   : > { %11269 = vst [vmem:[#allocation229_spill] sm:$0xff] %v9707_v42  ;;  %v9728_v4 = vsel %vm11273_vm9, %v11277_v45, 4286644096  ;;  %v11284_v13 = vld [vmem:[#allocation82_spill] sm:$0xff]  ;;  %v11286_v45 = vunpack.c.h.bf16 %v9086_v49  ;;  %v11287_v42 = vld [vmem:[#allocation163_spill] sm:$0xff] }
 0x4f6   : > { %11271 = vst [vmem:[#allocation230_spill] sm:$0xff] %v9712_v15  ;;  %v11280_v15 = vld [vmem:[#allocation144_spill] sm:$0xff]  ;;  %v9752_v16 = vsel %vm9357_vm2, %v11287_v42, 4286644096 }
 0x4f7   : > { %11274 = vst [vmem:[#allocation231_spill] sm:$0xff] %v9718_v54  ;;  %v9735_v53 = vsel %vm11273_vm9, %v11280_v15, 4286644096  ;;  %v9740_v54 = vsel %vm9357_vm2, %v11282_v29, 4286644096 }
 0x4f8   : > { %11276 = vst [vmem:[#allocation232_spill] sm:$0xff] %v9723_v23  ;;  %v9745_v23 = vsel %vm9357_vm2, %v11284_v13, 4286644096  ;;  %v9757_v15 = vsel %vm9357_vm2, %v11289_v44, 4286644096  ;;  %v3466_v13 = vunpack.c.l.bf16 %v9118_v41  ;;  %v3467_v44 = vunpack.c.h.bf16 %v9118_v41 }
 0x4f9   : > { %11278 = vst [vmem:[#allocation233_spill] sm:$0xff] %v9728_v4  ;;  %v3798_v4 = vmax.f32 %v3465_v5, %v11286_v45  ;;  %v9762_v29 = vsel %vm9380_vm4, %v11291_v43, 4286644096  ;;  %v11295_v5 = vld [vmem:[#allocation164_spill] sm:$0xff]  ;;  %v9778_v45 = vsel %vm9380_vm4, %v11297_v51, 4286644096 }
 0x4fa   : > { %11281 = vst [vmem:[#allocation234_spill] sm:$0xff] %v9735_v53  ;;  %v9773_v42 = vsel %vm9380_vm4, %v11295_v5, 4286644096  ;;  %v11299_v43 = vld [vmem:[#allocation115_spill] sm:$0xff]  ;;  %v3819_v51 = vmax.f32 %v3466_v13, %v11305_v32  ;;  %v3474_v32 = vunpack.c.l.bf16 %v9154_v18  ;;  %v3478_v53 = vunpack.c.l.bf16 %v9164_v33 }
 0x4fb   : > { %11283 = vst [vmem:[#allocation235_spill] sm:$0xff] %v9740_v54  ;;  %v3476_v54 = vunpack.c.l.bf16 %v9159_v10 }
 0x4fc   : > { %11285 = vst [vmem:[#allocation236_spill] sm:$0xff] %v9745_v23  ;;  %v11293_v23 = vld [vmem:[#allocation84_spill] sm:$0xff] }
 0x4fd   : > { %11288 = vst [vmem:[#allocation237_spill] sm:$0xff] %v9752_v16  ;;  %v9768_v49 = vsel %vm9380_vm4, %v11293_v23, 4286644096  ;;  %v3820_v16 = vmax.f32 %v3819_v51, %v3474_v32  ;;  %v3484_v51 = vunpack.c.l.bf16 %v9181_v19 }
 0x4fe   : > { %11290 = vst [vmem:[#allocation238_spill] sm:$0xff] %v9757_v15  ;;  %v11301_v15 = vld [vmem:[#allocation86_spill] sm:$0xff] }
 0x4ff   : > { %11292 = vst [vmem:[#allocation239_spill] sm:$0xff] %v9762_v29  ;;  %v9784_v29 = vsel %vm9403_vm0, %v11299_v43, 4286644096  ;;  %v9789_v23 = vsel %vm9403_vm0, %v11301_v15, 4286644096  ;;  %v3840_v43 = vmax.f32 %v3467_v44, %v3459_v7  ;;  %v3470_v15 = vunpack.c.l.bf16 %v9136_v14 }
 0x500   : > { %11294 = vst [vmem:[#allocation240_spill] sm:$0xff] %v9768_v49  ;;  %v11303_v49 = vld [vmem:[#allocation165_spill] sm:$0xff] }
 0x501   : > { %11296 = vst [vmem:[#allocation241_spill] sm:$0xff] %v9773_v42  ;;  %v9794_v5 = vsel %vm9403_vm0, %v11303_v49, 4286644096  ;;  %v3469_v42 = vunpack.c.h.bf16 %v9131_v34  ;;  %v3472_v49 = vunpack.c.l.bf16 %v9141_v40 }
 0x502   : > { %11298 = vst [vmem:[#allocation242_spill] sm:$0xff] %v9778_v45  ;;  %v11306_v45 = vld [vmem:[#allocation150_spill] sm:$0xff] }
 0x503   : > { %11300 = vst [vmem:[#allocation243_spill] sm:$0xff] %v9784_v29  ;;  %v9801_v41 = vsel %vm9403_vm0, %v11306_v45, 4286644096  ;;  %v3468_v29 = vunpack.c.l.bf16 %v9131_v34  ;;  %v3715_v13 = vmax.f32 %v3714_v62, %v3469_v42  ;;  %v3736_v45 = vmax.f32 %v3735_v37, %v3470_v15 }
 0x504   : > { %11302 = vst [vmem:[#allocation244_spill] sm:$0xff] %v9789_v23  ;;  %v3471_v23 = vunpack.c.h.bf16 %v9136_v14  ;;  %v3778_v44 = vmax.f32 %v3777_v50, %v3472_v49  ;;  %v3841_v34 = vmax.f32 %v3840_v43, %v3475_v21  ;;  %v3477_v14 = vunpack.c.h.bf16 %v9159_v10 }
 0x505   : > { %11304 = vst [vmem:[#allocation245_spill] sm:$0xff] %v9794_v5  ;;  %v3473_v5 = vunpack.c.h.bf16 %v9141_v40  ;;  %v3694_v56 = vmax.f32 %v3693_v61, %v3468_v29  ;;  %v3479_v40 = vunpack.c.h.bf16 %v9164_v33  ;;  %v3480_v62 = vunpack.c.l.bf16 %v9171_v46 }
 0x506   : > { %11307 = vst [vmem:[#allocation246_spill] sm:$0xff] %v9801_v41  ;;  %v3757_v7 = vmax.f32 %v3756_v47, %v3471_v23  ;;  %v3481_v61 = vunpack.c.h.bf16 %v9171_v46  ;;  %v3716_v18 = vmax.f32 %v3715_v13, %v3477_v14  ;;  %v3482_v47 = vunpack.c.l.bf16 %v9176_v39 }
 0x507   : > { %v3799_v41 = vmax.f32 %v3798_v4, %v3473_v5  ;;  %v3695_v29 = vmax.f32 %v3694_v56, %v3476_v54  ;;  %v3483_v37 = vunpack.c.h.bf16 %v9176_v39  ;;  %v3737_v4 = vmax.f32 %v3736_v45, %v3478_v53 }
 0x508   : > { %v3758_v50 = vmax.f32 %v3757_v7, %v3479_v40  ;;  %v3779_v42 = vmax.f32 %v3778_v44, %v3480_v62  ;;  %v3821_v5 = vmax.f32 %v3820_v16, %v3482_v47  ;;  %v3485_v33 = vunpack.c.h.bf16 %v9181_v19 }
 0x509   : > { %v3800_v23 = vmax.f32 %v3799_v41, %v3481_v61  ;;  %v3842_v10 = vmax.f32 %v3841_v34, %v3483_v37  ;;  %v3486_v43 = vunpack.c.l.bf16 %v9194_v59  ;;  %v3487_v46 = vunpack.c.h.bf16 %v9194_v59 }
 0x50a   : > { %v3488_v54 = vunpack.c.l.bf16 %v9199_v31  ;;  %v3489_v15 = vunpack.c.h.bf16 %v9199_v31  ;;  %v3696_v49 = vmax.f32 %v3695_v29, %v3484_v51  ;;  %v3717_v39 = vmax.f32 %v3716_v18, %v3485_v33 }
 0x50b   : > { %v3490_v53 = vunpack.c.l.bf16 %v9204_v35  ;;  %v3491_v41 = vunpack.c.h.bf16 %v9204_v35  ;;  %v3738_v16 = vmax.f32 %v3737_v4, %v3486_v43  ;;  %v3759_v56 = vmax.f32 %v3758_v50, %v3487_v46 }
 0x50c   : > { %v3780_v13 = vmax.f32 %v3779_v42, %v3488_v54  ;;  %v3801_v32 = vmax.f32 %v3800_v23, %v3489_v15  ;;  %v3492_v45 = vunpack.c.l.bf16 %v9217_v60  ;;  %v3493_v59 = vunpack.c.h.bf16 %v9217_v60 }
 0x50d   : > { %v3822_v21 = vmax.f32 %v3821_v5, %v3490_v53  ;;  %v3843_v19 = vmax.f32 %v3842_v10, %v3491_v41  ;;  %v3494_v7 = vunpack.c.l.bf16 %v9222_v11  ;;  %v3495_v31 = vunpack.c.h.bf16 %v9222_v11 }
 0x50e   : > { %v3496_v44 = vunpack.c.l.bf16 %v9227_v30  ;;  %v3497_v34 = vunpack.c.h.bf16 %v9227_v30  ;;  %v3697_v14 = vmax.f32 %v3696_v49, %v3492_v45  ;;  %v3718_v35 = vmax.f32 %v3717_v39, %v3493_v59 }
 0x50f   : > { %v3498_v40 = vunpack.c.l.bf16 %v9240_v63  ;;  %v3499_v62 = vunpack.c.h.bf16 %v9240_v63  ;;  %v3739_v61 = vmax.f32 %v3738_v16, %v3494_v7  ;;  %v3760_v29 = vmax.f32 %v3759_v56, %v3495_v31  ;;  %v11308_v7 = vld [vmem:[#allocation174_spill] sm:$0xff] }
 0x510   : > { %v3781_v18 = vmax.f32 %v3780_v13, %v3496_v44  ;;  %v3802_v47 = vmax.f32 %v3801_v32, %v3497_v34  ;;  %v3500_v4 = vunpack.c.l.bf16 %v9245_v52  ;;  %v3501_v11 = vunpack.c.h.bf16 %v9245_v52  ;;  %v11309_v44 = vld [vmem:[#allocation175_spill] sm:$0xff] }
 0x511   : > { %v3823_v37 = vmax.f32 %v3822_v21, %v3498_v40  ;;  %v3844_v60 = vmax.f32 %v3843_v19, %v3499_v62  ;;  %v3502_v50 = vunpack.c.l.bf16 %v9250_v57  ;;  %v3503_v30 = vunpack.c.h.bf16 %v9250_v57 }
 0x512   : > { %v3504_v42 = vunpack.c.l.bf16 %v9256_v0  ;;  %v3505_v23 = vunpack.c.h.bf16 %v9256_v0  ;;  %v3698_v5 = vmax.f32 %v3697_v14, %v3500_v4  ;;  %v3719_v63 = vmax.f32 %v3718_v35, %v3501_v11  ;;  %v11310_v14 = vld [vmem:[#allocation176_spill] sm:$0xff] }
 0x513   : > { %v3506_v10 = vunpack.c.l.bf16 %v9261_v20  ;;  %v3507_v51 = vunpack.c.h.bf16 %v9261_v20  ;;  %v3740_v33 = vmax.f32 %v3739_v61, %v3502_v50  ;;  %v3761_v43 = vmax.f32 %v3760_v29, %v3503_v30  ;;  %v11311_v61 = vld [vmem:[#allocation177_spill] sm:$0xff] }
 0x514   : > { %v3782_v46 = vmax.f32 %v3781_v18, %v3504_v42  ;;  %v3803_v54 = vmax.f32 %v3802_v47, %v3505_v23  ;;  %v3508_v49 = vunpack.c.l.bf16 %v9266_v2  ;;  %v3509_v57 = vunpack.c.h.bf16 %v9266_v2 }
 0x515   : > { %v3824_v15 = vmax.f32 %v3823_v37, %v3506_v10  ;;  %v3845_v52 = vmax.f32 %v3844_v60, %v3507_v51  ;;  %v3510_v39 = vunpack.c.l.bf16 %v9279_v9  ;;  %v3511_v0 = vunpack.c.h.bf16 %v9279_v9 }
 0x516   : > { %v3512_v53 = vunpack.c.l.bf16 %v9284_v1  ;;  %v3513_v41 = vunpack.c.h.bf16 %v9284_v1  ;;  %v3699_v16 = vmax.f32 %v3698_v5, %v3508_v49  ;;  %v3720_v20 = vmax.f32 %v3719_v63, %v3509_v57  ;;  %v11312_v63 = vld [vmem:[#allocation178_spill] sm:$0xff] }
 0x517   : > { %v3514_v56 = vunpack.c.l.bf16 %v9289_v36  ;;  %v3515_v13 = vunpack.c.h.bf16 %v9289_v36  ;;  %v3741_v32 = vmax.f32 %v3740_v33, %v3510_v39  ;;  %v3762_v21 = vmax.f32 %v3761_v43, %v3511_v0 }
 0x518   : > { %v3783_v19 = vmax.f32 %v3782_v46, %v3512_v53  ;;  %v3804_v45 = vmax.f32 %v3803_v54, %v3513_v41  ;;  %v3516_v31 = vunpack.c.l.bf16 %v11308_v7  ;;  %v3517_v9 = vunpack.c.h.bf16 %v11308_v7  ;;  %v11313_v46 = vld [vmem:[#allocation179_spill] sm:$0xff]  ;;  %v11314_v53 = vld [vmem:[#allocation180_spill] sm:$0xff] }
 0x519   : > { %v3825_v59 = vmax.f32 %v3824_v15, %v3514_v56  ;;  %v3846_v2 = vmax.f32 %v3845_v52, %v3515_v13  ;;  %v3518_v34 = vunpack.c.l.bf16 %v11309_v44  ;;  %v3519_v1 = vunpack.c.h.bf16 %v11309_v44  ;;  %v11316_v13 = vld [vmem:[#allocation182_spill] sm:$0xff] }
 0x51a   : > { %v3520_v35 = vunpack.c.l.bf16 %v11310_v14  ;;  %v3521_v40 = vunpack.c.h.bf16 %v11310_v14  ;;  %v3700_v62 = vmax.f32 %v3699_v16, %v3516_v31  ;;  %v3721_v36 = vmax.f32 %v3720_v20, %v3517_v9  ;;  %v11315_v16 = vld [vmem:[#allocation181_spill] sm:$0xff] }
 0x51b   : > { %v3522_v29 = vunpack.c.l.bf16 %v11311_v61  ;;  %v3523_v18 = vunpack.c.h.bf16 %v11311_v61  ;;  %v3742_v47 = vmax.f32 %v3741_v32, %v3518_v34  ;;  %v3763_v37 = vmax.f32 %v3762_v21, %v3519_v1 }
 0x51c   : > { %v3784_v60 = vmax.f32 %v3783_v19, %v3520_v35  ;;  %v3805_v4 = vmax.f32 %v3804_v45, %v3521_v40  ;;  %v3524_v30 = vunpack.c.l.bf16 %v9330_v8  ;;  %v3525_v42 = vunpack.c.h.bf16 %v9330_v8  ;;  %v11318_v35 = vld [vmem:[#allocation184_spill] sm:$0xff] }
 0x51d   : > { %v3826_v11 = vmax.f32 %v3825_v59, %v3522_v29  ;;  %v3847_v50 = vmax.f32 %v3846_v2, %v3523_v18  ;;  %v3526_v23 = vunpack.c.l.bf16 %v9335_v17  ;;  %v3527_v5 = vunpack.c.h.bf16 %v9335_v17  ;;  %v11317_v59 = vld [vmem:[#allocation183_spill] sm:$0xff]  ;;  %v11320_v18 = vld [vmem:[#allocation186_spill] sm:$0xff] }
 0x51e   : > { %v3528_v10 = vunpack.c.l.bf16 %v11312_v63  ;;  %v3529_v51 = vunpack.c.h.bf16 %v11312_v63  ;;  %v3701_v33 = vmax.f32 %v3700_v62, %v3524_v30  ;;  %v3722_v43 = vmax.f32 %v3721_v36, %v3525_v42  ;;  %v11319_v36 = vld [vmem:[#allocation185_spill] sm:$0xff] }
 0x51f   : > { %v3530_v54 = vunpack.c.l.bf16 %v11313_v46  ;;  %v3531_v15 = vunpack.c.h.bf16 %v11313_v46  ;;  %v3743_v52 = vmax.f32 %v3742_v47, %v3526_v23  ;;  %v3764_v49 = vmax.f32 %v3763_v37, %v3527_v5 }
 0x520   : > { %v3785_v57 = vmax.f32 %v3784_v60, %v3528_v10  ;;  %v3806_v39 = vmax.f32 %v3805_v4, %v3529_v51  ;;  %v3532_v41 = vunpack.c.l.bf16 %v11314_v53  ;;  %v3533_v17 = vunpack.c.h.bf16 %v11314_v53 }
 0x521   : > { %v3827_v0 = vmax.f32 %v3826_v11, %v3530_v54  ;;  %v3848_v8 = vmax.f32 %v3847_v50, %v3531_v15  ;;  %v3534_v20 = vunpack.c.l.bf16 %v11315_v16  ;;  %v3535_v56 = vunpack.c.h.bf16 %v11315_v16  ;;  %v11321_v11 = vld [vmem:[#allocation187_spill] sm:$0xff]  ;;  %v11323_v54 = vld [vmem:[#allocation189_spill] sm:$0xff] }
 0x522   : > { %v3536_v32 = vunpack.c.l.bf16 %v11316_v13  ;;  %v3537_v21 = vunpack.c.h.bf16 %v11316_v13  ;;  %v3702_v19 = vmax.f32 %v3701_v33, %v3532_v41  ;;  %v3723_v45 = vmax.f32 %v3722_v43, %v3533_v17  ;;  %v11322_v33 = vld [vmem:[#allocation188_spill] sm:$0xff] }
 0x523   : > { %v3538_v2 = vunpack.c.l.bf16 %v11317_v59  ;;  %v3539_v7 = vunpack.c.h.bf16 %v11317_v59  ;;  %v3744_v31 = vmax.f32 %v3743_v52, %v3534_v20  ;;  %v3765_v9 = vmax.f32 %v3764_v49, %v3535_v56  ;;  %v11324_v49 = vld [vmem:[#allocation190_spill] sm:$0xff]  ;;  %v11326_v59 = vld [vmem:[#allocation192_spill] sm:$0xff] }
 0x524   : > { %v3786_v44 = vmax.f32 %v3785_v57, %v3536_v32  ;;  %v3807_v34 = vmax.f32 %v3806_v39, %v3537_v21  ;;  %v3540_v40 = vunpack.c.l.bf16 %v11318_v35  ;;  %v3541_v62 = vunpack.c.h.bf16 %v11318_v35  ;;  %v11325_v21 = vld [vmem:[#allocation191_spill] sm:$0xff] }
 0x525   : > { %v3828_v1 = vmax.f32 %v3827_v0, %v3538_v2  ;;  %v3849_v14 = vmax.f32 %v3848_v8, %v3539_v7  ;;  %v3542_v61 = vunpack.c.l.bf16 %v11319_v36  ;;  %v3543_v29 = vunpack.c.h.bf16 %v11319_v36 }
 0x526   : > { %v3544_v47 = vunpack.c.l.bf16 %v11320_v18  ;;  %v3545_v37 = vunpack.c.h.bf16 %v11320_v18  ;;  %v3703_v60 = vmax.f32 %v3702_v19, %v3540_v40  ;;  %v3724_v4 = vmax.f32 %v3723_v45, %v3541_v62 }
 0x527   : > { %v3546_v50 = vunpack.c.l.bf16 %v11321_v11  ;;  %v3547_v30 = vunpack.c.h.bf16 %v11321_v11  ;;  %v3745_v42 = vmax.f32 %v3744_v31, %v3542_v61  ;;  %v3766_v23 = vmax.f32 %v3765_v9, %v3543_v29  ;;  %v11327_v31 = vld [vmem:[#allocation193_spill] sm:$0xff] }
 0x528   : > { %v3787_v5 = vmax.f32 %v3786_v44, %v3544_v47  ;;  %v3808_v63 = vmax.f32 %v3807_v34, %v3545_v37  ;;  %v3548_v43 = vunpack.c.l.bf16 %v11322_v33  ;;  %v3549_v46 = vunpack.c.h.bf16 %v11322_v33  ;;  %v11329_v47 = vld [vmem:[#allocation195_spill] sm:$0xff]  ;;  %v11332_v33 = vld [vmem:[#allocation198_spill] sm:$0xff] }
 0x529   : > { %v3829_v10 = vmax.f32 %v3828_v1, %v3546_v50  ;;  %v3850_v51 = vmax.f32 %v3849_v14, %v3547_v30  ;;  %v3550_v15 = vunpack.c.l.bf16 %v11323_v54  ;;  %v3551_v52 = vunpack.c.h.bf16 %v11323_v54  ;;  %v11328_v1 = vld [vmem:[#allocation194_spill] sm:$0xff]  ;;  %v11330_v50 = vld [vmem:[#allocation196_spill] sm:$0xff] }
 0x52a   : > { %v3552_v57 = vunpack.c.l.bf16 %v11324_v49  ;;  %v3553_v39 = vunpack.c.h.bf16 %v11324_v49  ;;  %v3704_v0 = vmax.f32 %v3703_v60, %v3548_v43  ;;  %v3725_v8 = vmax.f32 %v3724_v4, %v3549_v46  ;;  %v11339_v49 = vld [vmem:[#allocation205_spill] sm:$0xff] }
 0x52b   : > { %v3554_v53 = vunpack.c.l.bf16 %v9431_v22  ;;  %v3555_v41 = vunpack.c.h.bf16 %v9431_v22  ;;  %v3746_v17 = vmax.f32 %v3745_v42, %v3550_v15  ;;  %v3767_v16 = vmax.f32 %v3766_v23, %v3551_v52  ;;  %v11340_v52 = vld [vmem:[#allocation206_spill] sm:$0xff] }
 0x52c   : > { %v3788_v20 = vmax.f32 %v3787_v5, %v3552_v57  ;;  %v3809_v56 = vmax.f32 %v3808_v63, %v3553_v39  ;;  %v3556_v19 = vunpack.c.l.bf16 %v11325_v21  ;;  %v3557_v45 = vunpack.c.h.bf16 %v11325_v21  ;;  %v11331_v63 = vld [vmem:[#allocation197_spill] sm:$0xff]  ;;  %v11333_v57 = vld [vmem:[#allocation199_spill] sm:$0xff] }
 0x52d   : > { %v3830_v13 = vmax.f32 %v3829_v10, %v3554_v53  ;;  %v3851_v32 = vmax.f32 %v3850_v51, %v3555_v41  ;;  %v3558_v2 = vunpack.c.l.bf16 %v11326_v59  ;;  %v3559_v7 = vunpack.c.h.bf16 %v11326_v59 }
 0x52e   : > { %v3560_v9 = vunpack.c.l.bf16 %v11327_v31  ;;  %v3561_v44 = vunpack.c.h.bf16 %v11327_v31  ;;  %v9897_v34 = vmax.f32 %v3704_v0, %v3556_v19  ;;  %v9899_v22 = vmax.f32 %v3725_v8, %v3557_v45  ;;  %v11334_v8 = vld [vmem:[#allocation200_spill] sm:$0xff] }
 0x52f   : > { %v3562_v14 = vunpack.c.l.bf16 %v11328_v1  ;;  %v3563_v35 = vunpack.c.h.bf16 %v11328_v1  ;;  %v9903_v40 = vmax.f32 %v3746_v17, %v3558_v2  ;;  %v9905_v62 = vmax.f32 %v3767_v16, %v3559_v7  ;;  %v11337_v2 = vld [vmem:[#allocation203_spill] sm:$0xff]  ;;  %v11338_v1 = vld [vmem:[#allocation204_spill] sm:$0xff] }
 0x530   : > { %v9907_v36 = vmax.f32 %v3788_v20, %v3560_v9  ;;  %v9909_v61 = vmax.f32 %v3809_v56, %v3561_v44  ;;  %v3564_v37 = vunpack.c.l.bf16 %v11329_v47  ;;  %v3565_v60 = vunpack.c.h.bf16 %v11329_v47  ;;  %v11335_v20 = vld [vmem:[#allocation201_spill] sm:$0xff] }
 0x531   : > { %v9911_v29 = vmax.f32 %v3830_v13, %v3562_v14  ;;  %v9913_v18 = vmax.f32 %v3851_v32, %v3563_v35  ;;  %v3566_v4 = vunpack.c.l.bf16 %v9463_v48  ;;  %v3567_v11 = vunpack.c.h.bf16 %v9463_v48  ;;  %v11336_v32 = vld [vmem:[#allocation202_spill] sm:$0xff] }
 0x532   : > { %v3568_v30 = vunpack.c.l.bf16 %v11330_v50  ;;  %v3572_v10 = vunpack.c.l.bf16 %v11331_v63  ;;  %v3573_v51 = vunpack.c.h.bf16 %v11331_v63  ;;  %v3574_v43 = vunpack.c.l.bf16 %v11332_v33 }
 0x533   : > { %v3575_v46 = vunpack.c.h.bf16 %v11332_v33  ;;  %v3576_v54 = vunpack.c.l.bf16 %v9490_v58  ;;  %v3577_v15 = vunpack.c.h.bf16 %v9490_v58  ;;  %v3580_v39 = vunpack.c.l.bf16 %v11333_v57 }
 0x534   : > { %v3581_v0 = vunpack.c.h.bf16 %v11333_v57  ;;  %v3582_v53 = vunpack.c.l.bf16 %v11334_v8  ;;  %v3583_v41 = vunpack.c.h.bf16 %v11334_v8  ;;  %v3584_v17 = vunpack.c.l.bf16 %v9511_v38 }
 0x535   : > { %v3585_v16 = vunpack.c.h.bf16 %v9511_v38  ;;  %v3586_v56 = vunpack.c.l.bf16 %v11335_v20  ;;  %v3587_v13 = vunpack.c.h.bf16 %v11335_v20  ;;  %v3588_v21 = vunpack.c.l.bf16 %v11336_v32 }
 0x536   : > { %v3589_v19 = vunpack.c.h.bf16 %v11336_v32  ;;  %v3590_v45 = vunpack.c.l.bf16 %v9527_v6  ;;  %v3591_v59 = vunpack.c.h.bf16 %v9527_v6  ;;  %v3592_v7 = vunpack.c.l.bf16 %v11337_v2 }
 0x537   : > { %v3593_v31 = vunpack.c.h.bf16 %v11337_v2  ;;  %v3861_v9 = vmax.f32 %v3588_v21, %v3580_v39  ;;  %v3594_v38 = vunpack.c.l.bf16 %v11338_v1  ;;  %v3595_v14 = vunpack.c.h.bf16 %v11338_v1  ;;  %v11341_v39 = vld [vmem:[#allocation207_spill] sm:$0xff] }
 0x538   : > { %v3882_v44 = vmax.f32 %v3589_v19, %v3581_v0  ;;  %v3903_v35 = vmax.f32 %v3590_v45, %v3582_v53  ;;  %v3924_v57 = vmax.f32 %v3591_v59, %v3583_v41  ;;  %v3945_v8 = vmax.f32 %v3592_v7, %v3584_v17  ;;  %v11342_v53 = vld [vmem:[#allocation208_spill] sm:$0xff]  ;;  %v11343_v7 = vld [vmem:[#allocation209_spill] sm:$0xff] }
 0x539   : > { %v3966_v20 = vmax.f32 %v3593_v31, %v3585_v16  ;;  %v3987_v5 = vmax.f32 %v3594_v38, %v3586_v56  ;;  %v4008_v32 = vmax.f32 %v3595_v14, %v3587_v13  ;;  %v3596_v23 = vunpack.c.l.bf16 %v11339_v49  ;;  %v11344_v38 = vld [vmem:[#allocation210_spill] sm:$0xff] }
 0x53a   : > { %v3597_v6 = vunpack.c.h.bf16 %v11339_v49  ;;  %v3598_v42 = vunpack.c.l.bf16 %v11340_v52  ;;  %v3599_v2 = vunpack.c.h.bf16 %v11340_v52  ;;  %v3600_v0 = vunpack.c.l.bf16 %v11341_v39 }
 0x53b   : > { %v3601_v21 = vunpack.c.h.bf16 %v11341_v39  ;;  %v3862_v19 = vmax.f32 %v3861_v9, %v3596_v23  ;;  %v3602_v41 = vunpack.c.l.bf16 %v11342_v53  ;;  %v3603_v17 = vunpack.c.h.bf16 %v11342_v53  ;;  %v11345_v23 = vld [vmem:[#allocation211_spill] sm:$0xff] }
 0x53c   : > { %v3883_v1 = vmax.f32 %v3882_v44, %v3597_v6  ;;  %v3904_v16 = vmax.f32 %v3903_v35, %v3598_v42  ;;  %v3925_v56 = vmax.f32 %v3924_v57, %v3599_v2  ;;  %v3946_v13 = vmax.f32 %v3945_v8, %v3600_v0  ;;  %v11346_v42 = vld [vmem:[#allocation212_spill] sm:$0xff] }
 0x53d   : > { %v3967_v45 = vmax.f32 %v3966_v20, %v3601_v21  ;;  %v3988_v59 = vmax.f32 %v3987_v5, %v3602_v41  ;;  %v4009_v49 = vmax.f32 %v4008_v32, %v3603_v17  ;;  %v3604_v31 = vunpack.c.l.bf16 %v11343_v7  ;;  %v11347_v21 = vld [vmem:[#allocation213_spill] sm:$0xff] }
 0x53e   : > { %v3605_v52 = vunpack.c.h.bf16 %v11343_v7  ;;  %v3606_v14 = vunpack.c.l.bf16 %v11344_v38  ;;  %v3607_v39 = vunpack.c.h.bf16 %v11344_v38  ;;  %v3608_v9 = vunpack.c.l.bf16 %v11345_v23  ;;  %v11348_v7 = vld [vmem:[#allocation214_spill] sm:$0xff] }
 0x53f   : > { %v3609_v44 = vunpack.c.h.bf16 %v11345_v23  ;;  %v3863_v6 = vmax.f32 %v3862_v19, %v3604_v31  ;;  %v3610_v35 = vunpack.c.l.bf16 %v11346_v42  ;;  %v3611_v57 = vunpack.c.h.bf16 %v11346_v42  ;;  %v11349_v19 = vld [vmem:[#allocation215_spill] sm:$0xff] }
 0x540   : > { %v3884_v53 = vmax.f32 %v3883_v1, %v3605_v52  ;;  %v3905_v5 = vmax.f32 %v3904_v16, %v3606_v14  ;;  %v3926_v8 = vmax.f32 %v3925_v56, %v3607_v39  ;;  %v3947_v20 = vmax.f32 %v3946_v13, %v3608_v9 }
 0x541   : > { %v3968_v32 = vmax.f32 %v3967_v45, %v3609_v44  ;;  %v3989_v2 = vmax.f32 %v3988_v59, %v3610_v35  ;;  %v4010_v0 = vmax.f32 %v4009_v49, %v3611_v57  ;;  %v3612_v41 = vunpack.c.l.bf16 %v11347_v21  ;;  %v11350_v35 = vld [vmem:[#allocation216_spill] sm:$0xff] }
 0x542   : > { %v3613_v17 = vunpack.c.h.bf16 %v11347_v21  ;;  %v3614_v38 = vunpack.c.l.bf16 %v11348_v7  ;;  %v3615_v23 = vunpack.c.h.bf16 %v11348_v7  ;;  %v3616_v1 = vunpack.c.l.bf16 %v11349_v19 }
 0x543   : > { %v3617_v31 = vunpack.c.h.bf16 %v11349_v19  ;;  %v3864_v52 = vmax.f32 %v3863_v6, %v3612_v41  ;;  %v3618_v16 = vunpack.c.l.bf16 %v9603_v26  ;;  %v3619_v56 = vunpack.c.h.bf16 %v9603_v26 }
 0x544   : > { %v3885_v42 = vmax.f32 %v3884_v53, %v3613_v17  ;;  %v3906_v13 = vmax.f32 %v3905_v5, %v3614_v38  ;;  %v3927_v45 = vmax.f32 %v3926_v8, %v3615_v23  ;;  %v3948_v59 = vmax.f32 %v3947_v20, %v3616_v1  ;;  %v11351_v5 = vld [vmem:[#allocation217_spill] sm:$0xff]  ;;  %v11352_v38 = vld [vmem:[#allocation218_spill] sm:$0xff]  ;;  %v11353_v1 = vld [vmem:[#allocation219_spill] sm:$0xff] }
 0x545   : > { %v3969_v49 = vmax.f32 %v3968_v32, %v3617_v31  ;;  %v3990_v14 = vmax.f32 %v3989_v2, %v3618_v16  ;;  %v4011_v39 = vmax.f32 %v4010_v0, %v3619_v56  ;;  %v3620_v9 = vunpack.c.l.bf16 %v9608_v12 }
 0x546   : > { %v3621_v44 = vunpack.c.h.bf16 %v9608_v12  ;;  %v3622_v57 = vunpack.c.l.bf16 %v11350_v35  ;;  %v3623_v21 = vunpack.c.h.bf16 %v11350_v35  ;;  %v3624_v6 = vunpack.c.l.bf16 %v9620_v28 }
 0x547   : > { %v3625_v53 = vunpack.c.h.bf16 %v9620_v28  ;;  %v3865_v41 = vmax.f32 %v3864_v52, %v3620_v9  ;;  %v3626_v8 = vunpack.c.l.bf16 %v11351_v5  ;;  %v3627_v20 = vunpack.c.h.bf16 %v11351_v5  ;;  %v11354_v52 = vld [vmem:[#allocation220_spill] sm:$0xff]  ;;  %v11357_v5 = vld [vmem:[#allocation223_spill] sm:$0xff] }
 0x548   : > { %v3886_v26 = vmax.f32 %v3885_v42, %v3621_v44  ;;  %v3907_v32 = vmax.f32 %v3906_v13, %v3622_v57  ;;  %v3928_v2 = vmax.f32 %v3927_v45, %v3623_v21  ;;  %v3949_v0 = vmax.f32 %v3948_v59, %v3624_v6  ;;  %v11355_v13 = vld [vmem:[#allocation221_spill] sm:$0xff]  ;;  %v11356_v21 = vld [vmem:[#allocation222_spill] sm:$0xff] }
 0x549   : > { %v3970_v17 = vmax.f32 %v3969_v49, %v3625_v53  ;;  %v3991_v7 = vmax.f32 %v3990_v14, %v3626_v8  ;;  %v4012_v12 = vmax.f32 %v4011_v39, %v3627_v20  ;;  %v3628_v23 = vunpack.c.l.bf16 %v11352_v38 }
 0x54a   : > { %v3629_v19 = vunpack.c.h.bf16 %v11352_v38  ;;  %v3630_v31 = vunpack.c.l.bf16 %v11353_v1  ;;  %v3631_v28 = vunpack.c.h.bf16 %v11353_v1  ;;  %v3632_v42 = vunpack.c.l.bf16 %v11354_v52 }
 0x54b   : > { %v3633_v16 = vunpack.c.h.bf16 %v11354_v52  ;;  %v3866_v56 = vmax.f32 %v3865_v41, %v3628_v23  ;;  %v3634_v45 = vunpack.c.l.bf16 %v11355_v13  ;;  %v3635_v59 = vunpack.c.h.bf16 %v11355_v13  ;;  %v11358_v41 = vld [vmem:[#allocation224_spill] sm:$0xff] }
 0x54c   : > { %v3887_v9 = vmax.f32 %v3886_v26, %v3629_v19  ;;  %v3908_v49 = vmax.f32 %v3907_v32, %v3630_v31  ;;  %v3929_v14 = vmax.f32 %v3928_v2, %v3631_v28  ;;  %v3950_v39 = vmax.f32 %v3949_v0, %v3632_v42  ;;  %v11359_v42 = vld [vmem:[#allocation225_spill] sm:$0xff] }
 0x54d   : > { %v3971_v44 = vmax.f32 %v3970_v17, %v3633_v16  ;;  %v3992_v35 = vmax.f32 %v3991_v7, %v3634_v45  ;;  %v4013_v57 = vmax.f32 %v4012_v12, %v3635_v59  ;;  %v3636_v6 = vunpack.c.l.bf16 %v11356_v21  ;;  %v11360_v59 = vld [vmem:[#allocation226_spill] sm:$0xff] }
 0x54e   : > { %v3637_v53 = vunpack.c.h.bf16 %v11356_v21  ;;  %v3638_v8 = vunpack.c.l.bf16 %v11357_v5  ;;  %v3639_v20 = vunpack.c.h.bf16 %v11357_v5  ;;  %v3640_v26 = vunpack.c.l.bf16 %v11358_v41 }
 0x54f   : > { %v3641_v38 = vunpack.c.h.bf16 %v11358_v41  ;;  %v3867_v23 = vmax.f32 %v3866_v56, %v3636_v6  ;;  %v3642_v32 = vunpack.c.l.bf16 %v9669_v25  ;;  %v3643_v2 = vunpack.c.h.bf16 %v9669_v25  ;;  %v11361_v6 = vld [vmem:[#allocation227_spill] sm:$0xff]  ;;  %v11363_v41 = vld [vmem:[#allocation229_spill] sm:$0xff] }
 0x550   : > { %v3888_v19 = vmax.f32 %v3887_v9, %v3637_v53  ;;  %v3909_v0 = vmax.f32 %v3908_v49, %v3638_v8  ;;  %v3930_v17 = vmax.f32 %v3929_v14, %v3639_v20  ;;  %v3951_v7 = vmax.f32 %v3950_v39, %v3640_v26  ;;  %v11362_v8 = vld [vmem:[#allocation228_spill] sm:$0xff] }
 0x551   : > { %v3972_v12 = vmax.f32 %v3971_v44, %v3641_v38  ;;  %v3993_v1 = vmax.f32 %v3992_v35, %v3642_v32  ;;  %v4014_v31 = vmax.f32 %v4013_v57, %v3643_v2  ;;  %v3644_v28 = vunpack.c.l.bf16 %v9674_v3  ;;  %v11364_v32 = vld [vmem:[#allocation230_spill] sm:$0xff] }
 0x552   : > { %v3645_v52 = vunpack.c.h.bf16 %v9674_v3  ;;  %v3646_v16 = vunpack.c.l.bf16 %v11359_v42  ;;  %v3647_v13 = vunpack.c.h.bf16 %v11359_v42  ;;  %v3648_v56 = vunpack.c.l.bf16 %v9686_v24 }
 0x553   : > { %v3649_v9 = vunpack.c.h.bf16 %v9686_v24  ;;  %v3868_v45 = vmax.f32 %v3867_v23, %v3644_v28  ;;  %v3650_v49 = vunpack.c.l.bf16 %v11360_v59  ;;  %v3651_v14 = vunpack.c.h.bf16 %v11360_v59 }
 0x554   : > { %v3889_v25 = vmax.f32 %v3888_v19, %v3645_v52  ;;  %v3910_v39 = vmax.f32 %v3909_v0, %v3646_v16  ;;  %v3931_v44 = vmax.f32 %v3930_v17, %v3647_v13  ;;  %v3952_v35 = vmax.f32 %v3951_v7, %v3648_v56  ;;  %v11365_v52 = vld [vmem:[#allocation231_spill] sm:$0xff]  ;;  %v11366_v13 = vld [vmem:[#allocation232_spill] sm:$0xff] }
 0x555   : > { %v3973_v57 = vmax.f32 %v3972_v12, %v3649_v9  ;;  %v3994_v21 = vmax.f32 %v3993_v1, %v3650_v49  ;;  %v4015_v3 = vmax.f32 %v4014_v31, %v3651_v14  ;;  %v3652_v53 = vunpack.c.l.bf16 %v11361_v6 }
 0x556   : > { %v3653_v5 = vunpack.c.h.bf16 %v11361_v6  ;;  %v3654_v20 = vunpack.c.l.bf16 %v11362_v8  ;;  %v3655_v24 = vunpack.c.h.bf16 %v11362_v8  ;;  %v3656_v26 = vunpack.c.l.bf16 %v11363_v41  ;;  %v11369_v8 = vld [vmem:[#allocation235_spill] sm:$0xff] }
 0x557   : > { %v3657_v38 = vunpack.c.h.bf16 %v11363_v41  ;;  %v3869_v23 = vmax.f32 %v3868_v45, %v3652_v53  ;;  %v3658_v2 = vunpack.c.l.bf16 %v11364_v32  ;;  %v3659_v0 = vunpack.c.h.bf16 %v11364_v32  ;;  %v11367_v45 = vld [vmem:[#allocation233_spill] sm:$0xff]  ;;  %v11370_v41 = vld [vmem:[#allocation236_spill] sm:$0xff] }
 0x558   : > { %v3890_v19 = vmax.f32 %v3889_v25, %v3653_v5  ;;  %v3911_v17 = vmax.f32 %v3910_v39, %v3654_v20  ;;  %v3932_v7 = vmax.f32 %v3931_v44, %v3655_v24  ;;  %v3953_v12 = vmax.f32 %v3952_v35, %v3656_v26  ;;  %v11368_v39 = vld [vmem:[#allocation234_spill] sm:$0xff] }
 0x559   : > { %v3974_v1 = vmax.f32 %v3973_v57, %v3657_v38  ;;  %v3995_v31 = vmax.f32 %v3994_v21, %v3658_v2  ;;  %v4016_v28 = vmax.f32 %v4015_v3, %v3659_v0  ;;  %v3660_v42 = vunpack.c.l.bf16 %v11365_v52 }
 0x55a   : > { %v3661_v16 = vunpack.c.h.bf16 %v11365_v52  ;;  %v3662_v56 = vunpack.c.l.bf16 %v11366_v13  ;;  %v3663_v9 = vunpack.c.h.bf16 %v11366_v13  ;;  %v3664_v25 = vunpack.c.l.bf16 %v11367_v45  ;;  %v11373_v13 = vld [vmem:[#allocation239_spill] sm:$0xff] }
 0x55b   : > { %v3665_v59 = vunpack.c.h.bf16 %v11367_v45  ;;  %v3870_v49 = vmax.f32 %v3869_v23, %v3660_v42  ;;  %v3666_v44 = vunpack.c.l.bf16 %v11368_v39  ;;  %v3667_v35 = vunpack.c.h.bf16 %v11368_v39  ;;  %v11371_v23 = vld [vmem:[#allocation237_spill] sm:$0xff]  ;;  %v11374_v45 = vld [vmem:[#allocation240_spill] sm:$0xff] }
 0x55c   : > { %v3891_v14 = vmax.f32 %v3890_v19, %v3661_v16  ;;  %v3912_v57 = vmax.f32 %v3911_v17, %v3662_v56  ;;  %v3933_v21 = vmax.f32 %v3932_v7, %v3663_v9  ;;  %v3954_v3 = vmax.f32 %v3953_v12, %v3664_v25  ;;  %v11372_v17 = vld [vmem:[#allocation238_spill] sm:$0xff] }
 0x55d   : > { %v3975_v6 = vmax.f32 %v3974_v1, %v3665_v59  ;;  %v3996_v53 = vmax.f32 %v3995_v31, %v3666_v44  ;;  %v4017_v5 = vmax.f32 %v4016_v28, %v3667_v35  ;;  %v3668_v20 = vunpack.c.l.bf16 %v11369_v8 }
 0x55e   : > { %v3669_v24 = vunpack.c.h.bf16 %v11369_v8  ;;  %v3670_v26 = vunpack.c.l.bf16 %v11370_v41  ;;  %v3671_v38 = vunpack.c.h.bf16 %v11370_v41  ;;  %v3672_v19 = vunpack.c.l.bf16 %v11371_v23  ;;  %v11377_v41 = vld [vmem:[#allocation243_spill] sm:$0xff] }
 0x55f   : > { %v3673_v32 = vunpack.c.h.bf16 %v11371_v23  ;;  %v3871_v2 = vmax.f32 %v3870_v49, %v3668_v20  ;;  %v3674_v7 = vunpack.c.l.bf16 %v11372_v17  ;;  %v3675_v12 = vunpack.c.h.bf16 %v11372_v17  ;;  %v11375_v49 = vld [vmem:[#allocation241_spill] sm:$0xff]  ;;  %v11378_v23 = vld [vmem:[#allocation244_spill] sm:$0xff] }
 0x560   : > { %v3892_v0 = vmax.f32 %v3891_v14, %v3669_v24  ;;  %v3913_v1 = vmax.f32 %v3912_v57, %v3670_v26  ;;  %v3934_v31 = vmax.f32 %v3933_v21, %v3671_v38  ;;  %v3955_v28 = vmax.f32 %v3954_v3, %v3672_v19  ;;  %v11376_v57 = vld [vmem:[#allocation242_spill] sm:$0xff] }
 0x561   : > { %v3976_v52 = vmax.f32 %v3975_v6, %v3673_v32  ;;  %v3997_v42 = vmax.f32 %v3996_v53, %v3674_v7  ;;  %v4018_v16 = vmax.f32 %v4017_v5, %v3675_v12  ;;  %v3676_v56 = vunpack.c.l.bf16 %v11373_v13 }
 0x562   : > { %v3677_v9 = vunpack.c.h.bf16 %v11373_v13  ;;  %v3678_v25 = vunpack.c.l.bf16 %v11374_v45  ;;  %v3679_v59 = vunpack.c.h.bf16 %v11374_v45  ;;  %v3680_v14 = vunpack.c.l.bf16 %v11375_v49  ;;  %v11381_v45 = vld [vmem:[#allocation170_spill] sm:$0xff] }
 0x563   : > { %v3681_v39 = vunpack.c.h.bf16 %v11375_v49  ;;  %v3872_v44 = vmax.f32 %v3871_v2, %v3676_v56  ;;  %v3682_v21 = vunpack.c.l.bf16 %v11376_v57  ;;  %v3683_v3 = vunpack.c.h.bf16 %v11376_v57  ;;  %v11379_v2 = vld [vmem:[#allocation245_spill] sm:$0xff]  ;;  %v11387_v57 = vld [vmem:[#allocation171_spill] sm:$0xff] }
 0x564   : > { %v3893_v35 = vmax.f32 %v3892_v0, %v3677_v9  ;;  %v3914_v6 = vmax.f32 %v3913_v1, %v3678_v25  ;;  %v3935_v53 = vmax.f32 %v3934_v31, %v3679_v59  ;;  %v3956_v5 = vmax.f32 %v3955_v28, %v3680_v14  ;;  %v11380_v1 = vld [vmem:[#allocation246_spill] sm:$0xff] }
 0x565   : > { %v3977_v8 = vmax.f32 %v3976_v52, %v3681_v39  ;;  %v3998_v20 = vmax.f32 %v3997_v42, %v3682_v21  ;;  %v4019_v24 = vmax.f32 %v4018_v16, %v3683_v3  ;;  %v3684_v26 = vunpack.c.l.bf16 %v11377_v41  ;;  %v11383_v59 = vld [vmem:[#allocation166_spill] sm:$0xff]  ;;  %v11389_v3 = vld [vmem:[#allocation167_spill] sm:$0xff] }
 0x566   : > { %v3685_v38 = vunpack.c.h.bf16 %v11377_v41  ;;  %v3686_v19 = vunpack.c.l.bf16 %v11378_v23  ;;  %v3687_v32 = vunpack.c.h.bf16 %v11378_v23  ;;  %v3688_v0 = vunpack.c.l.bf16 %v11379_v2 }
 0x567   : > { %v3689_v17 = vunpack.c.h.bf16 %v11379_v2  ;;  %v10041_v7 = vmax.f32 %v3872_v44, %v3684_v26  ;;  %v3690_v31 = vunpack.c.l.bf16 %v11380_v1  ;;  %v3691_v28 = vunpack.c.h.bf16 %v11380_v1  ;;  %v11395_v26 = vld [vmem:[#allocation168_spill] sm:$0xff]  ;;  %v11399_v1 = vld [vmem:[#allocation173_spill] sm:$0xff] }
 0x568   : > { %v10043_v12 = vmax.f32 %v3893_v35, %v3685_v38  ;;  %v10047_v52 = vmax.f32 %v3914_v6, %v3686_v19  ;;  %v10049_v42 = vmax.f32 %v3935_v53, %v3687_v32  ;;  %v10051_v16 = vmax.f32 %v3956_v5, %v3688_v0 }
 0x569   : > { %v10053_v13 = vmax.f32 %v3977_v8, %v3689_v17  ;;  %v10055_v56 = vmax.f32 %v3998_v20, %v3690_v31  ;;  %v10057_v9 = vmax.f32 %v4019_v24, %v3691_v28  ;;  %v11382_v25 = vunpack.c.l.bf16 %v11381_v45  ;;  %v11393_v24 = vld [vmem:[#allocation172_spill] sm:$0xff]  ;;  %v11401_v28 = vld [vmem:[#allocation169_spill] sm:$0xff] }
 0x56a   : > { %v11384_v49 = vunpack.c.l.bf16 %v11383_v59  ;;  %v11385_v39 = vunpack.c.h.bf16 %v11381_v45  ;;  %v11386_v44 = vunpack.c.h.bf16 %v11383_v59  ;;  %v11388_v21 = vunpack.c.l.bf16 %v11387_v57 }
 0x56b   : > { %v11390_v6 = vunpack.c.l.bf16 %v11389_v3  ;;  %v11391_v5 = vunpack.c.h.bf16 %v11387_v57  ;;  %v11392_v8 = vunpack.c.h.bf16 %v11389_v3  ;;  %v11394_v41 = vunpack.c.l.bf16 %v11393_v24 }
 0x56c   : > { %v3692_v14 = vmax.f32 %v11384_v49, %v11382_v25  ;;  %v3713_v35 = vmax.f32 %v11386_v44, %v11385_v39  ;;  %v11396_v38 = vunpack.c.l.bf16 %v11395_v26  ;;  %v11397_v19 = vunpack.c.h.bf16 %v11393_v24 }
 0x56d   : > { %v3734_v53 = vmax.f32 %v11390_v6, %v11388_v21  ;;  %v3755_v20 = vmax.f32 %v11392_v8, %v11391_v5  ;;  %v11398_v32 = vunpack.c.h.bf16 %v11395_v26  ;;  %v11400_v31 = vunpack.c.l.bf16 %v11399_v1 }
 0x56e   : > { %v3776_v23 = vmax.f32 %v11396_v38, %v11394_v41  ;;  %v3706_v0 = vmax.f32 %v9897_v34, %v3692_v14  ;;  %v3727_v17 = vmax.f32 %v9899_v22, %v3713_v35  ;;  %v11402_v45 = vunpack.c.l.bf16 %v11401_v28 }
 0x56f   : > { %v3797_v2 = vmax.f32 %v11398_v32, %v11397_v19  ;;  %v11403_v59 = vunpack.c.h.bf16 %v11399_v1  ;;  %v11404_v49 = vunpack.c.h.bf16 %v11401_v28  ;;  %v3748_v44 = vmax.f32 %v9903_v40, %v3734_v53 }
 0x570   : > { %v3818_v25 = vmax.f32 %v11402_v45, %v11400_v31  ;;  %v3769_v57 = vmax.f32 %v9905_v62, %v3755_v20  ;;  %v3790_v21 = vmax.f32 %v9907_v36, %v3776_v23  ;;  %v3707_v14 = vrot.slane %v3706_v0, 4 }
 0x571   : > { %v3839_v39 = vmax.f32 %v11404_v49, %v11403_v59  ;;  %v3811_v34 = vmax.f32 %v9909_v61, %v3797_v2  ;;  %v3728_v22 = vrot.slane %v3727_v17, 4  ;;  %v3749_v6 = vrot.slane %v3748_v44, 4 }
 0x572   : > { %v3832_v35 = vmax.f32 %v9911_v29, %v3818_v25  ;;  %v3770_v5 = vrot.slane %v3769_v57, 4  ;;  %v3791_v8 = vrot.slane %v3790_v21, 4  ;;  %v3708_v41 = vmax.f32 %v3706_v0, %v3707_v14 }
 0x573   : > { %v3853_v3 = vmax.f32 %v9913_v18, %v3839_v39  ;;  %v3812_v24 = vrot.slane %v3811_v34, 4  ;;  %v3729_v26 = vmax.f32 %v3727_v17, %v3728_v22  ;;  %v3750_v53 = vmax.f32 %v3748_v44, %v3749_v6 }
 0x574   : > { %v3833_v38 = vrot.slane %v3832_v35, 4  ;;  %v3771_v62 = vmax.f32 %v3769_v57, %v3770_v5  ;;  %v3792_v20 = vmax.f32 %v3790_v21, %v3791_v8  ;;  %v3709_v23 = vrot.slane %v3708_v41, 2 }
 0x575   : > { %v3854_v40 = vrot.slane %v3853_v3, 4  ;;  %v3813_v36 = vmax.f32 %v3811_v34, %v3812_v24  ;;  %v3730_v61 = vrot.slane %v3729_v26, 2  ;;  %v3751_v2 = vrot.slane %v3750_v53, 2 }
 0x576   : > { %v3834_v19 = vmax.f32 %v3832_v35, %v3833_v38  ;;  %v3772_v29 = vrot.slane %v3771_v62, 2  ;;  %v3793_v1 = vrot.slane %v3792_v20, 2  ;;  %v3710_v31 = vmax.f32 %v3708_v41, %v3709_v23 }
 0x577   : > { %v3855_v32 = vmax.f32 %v3853_v3, %v3854_v40  ;;  %v3814_v18 = vrot.slane %v3813_v36, 2  ;;  %v3731_v28 = vmax.f32 %v3729_v26, %v3730_v61  ;;  %v3752_v0 = vmax.f32 %v3750_v53, %v3751_v2 }
 0x578   : > { %v3835_v45 = vrot.slane %v3834_v19, 2  ;;  %v3773_v17 = vmax.f32 %v3771_v62, %v3772_v29  ;;  %v3794_v59 = vmax.f32 %v3792_v20, %v3793_v1  ;;  %v3711_v39 = vrot.slane %v3710_v31, 1 }
 0x579   : > { %v3856_v25 = vrot.slane %v3855_v32, 2  ;;  %v3815_v49 = vmax.f32 %v3813_v36, %v3814_v18  ;;  %v3732_v44 = vrot.slane %v3731_v28, 1  ;;  %v3753_v34 = vrot.slane %v3752_v0, 1 }
 0x57a   : > { %v3836_v57 = vmax.f32 %v3834_v19, %v3835_v45  ;;  %v3774_v14 = vrot.slane %v3773_v17, 1  ;;  %v3795_v22 = vrot.slane %v3794_v59, 1  ;;  %v10099_v3 = vmax.f32 %v3710_v31, %v3711_v39 }
 0x57b   : > { %v3857_v21 = vmax.f32 %v3855_v32, %v3856_v25  ;;  %v3816_v35 = vrot.slane %v3815_v49, 1  ;;  %v10101_v6 = vmax.f32 %v3731_v28, %v3732_v44  ;;  %v10103_v24 = vmax.f32 %v3752_v0, %v3753_v34 }
 0x57c   : > { %v3837_v5 = vrot.slane %v3836_v57, 1  ;;  %v10105_v41 = vmax.f32 %v3773_v17, %v3774_v14  ;;  %v10107_v26 = vmax.f32 %v3794_v59, %v3795_v22  ;;  %v3860_v62 = vmax.f32 %v3564_v37, %v3572_v10 }
 0x57d   : > { %v3858_v8 = vrot.slane %v3857_v21, 1  ;;  %v10109_v38 = vmax.f32 %v3815_v49, %v3816_v35  ;;  %v3881_v20 = vmax.f32 %v3565_v60, %v3573_v51  ;;  %v3902_v36 = vmax.f32 %v3566_v4, %v3574_v43 }
 0x57e   : > { %v10111_v40 = vmax.f32 %v3836_v57, %v3837_v5  ;;  %v3923_v23 = vmax.f32 %v3567_v11, %v3575_v46  ;;  %v3944_v37 = vmax.f32 %v3568_v30, %v3576_v54  ;;  %v11405_v47 = vunpack.c.h.bf16 %v11330_v50 }
 0x57f   : > { %v10113_v53 = vmax.f32 %v3857_v21, %v3858_v8  ;;  %v3874_v63 = vmax.f32 %v10041_v7, %v3860_v62  ;;  %v3895_v10 = vmax.f32 %v10043_v12, %v3881_v20  ;;  %v11406_v4 = vunpack.c.l.bf16 %v9495_v27 }
 0x580   : > { %v3965_v60 = vmax.f32 %v11405_v47, %v3577_v15  ;;  %v11407_v51 = vunpack.c.l.bf16 %v9474_v55  ;;  %v11408_v11 = vunpack.c.h.bf16 %v9495_v27  ;;  %v11409_v33 = vunpack.c.h.bf16 %v9474_v55 }
 0x581   : > { %v3916_v30 = vmax.f32 %v10047_v52, %v3902_v36  ;;  %v3937_v58 = vmax.f32 %v10049_v42, %v3923_v23  ;;  %v3958_v50 = vmax.f32 %v10051_v16, %v3944_v37  ;;  %v3875_v54 = vrot.slane %v3874_v63, 4 }
 0x582   : > { %v3986_v48 = vmax.f32 %v11407_v51, %v11406_v4  ;;  %v4007_v43 = vmax.f32 %v11409_v33, %v11408_v11  ;;  %v3979_v46 = vmax.f32 %v10053_v13, %v3965_v60  ;;  %v3896_v15 = vrot.slane %v3895_v10, 4 }
 0x583   : > { %v3917_v61 = vrot.slane %v3916_v30, 4  ;;  %v3938_v19 = vrot.slane %v3937_v58, 4  ;;  %v3959_v27 = vrot.slane %v3958_v50, 4  ;;  %v3876_v55 = vmax.f32 %v3874_v63, %v3875_v54 }
 0x584   : > { %v4000_v7 = vmax.f32 %v10055_v56, %v3986_v48  ;;  %v4021_v12 = vmax.f32 %v10057_v9, %v4007_v43  ;;  %v3980_v32 = vrot.slane %v3979_v46, 4  ;;  %v3897_v2 = vmax.f32 %v3895_v10, %v3896_v15 }
 0x585   : > { %v3918_v1 = vmax.f32 %v3916_v30, %v3917_v61  ;;  %v3939_v42 = vmax.f32 %v3937_v58, %v3938_v19  ;;  %v3960_v18 = vmax.f32 %v3958_v50, %v3959_v27  ;;  %v3877_v31 = vrot.slane %v3876_v55, 2 }
 0x586   : > { %v4001_v29 = vrot.slane %v4000_v7, 4  ;;  %v4022_v52 = vrot.slane %v4021_v12, 4  ;;  %v3981_v16 = vmax.f32 %v3979_v46, %v3980_v32  ;;  %v3898_v13 = vrot.slane %v3897_v2, 2 }
 0x587   : > { %v3919_v25 = vrot.slane %v3918_v1, 2  ;;  %v3940_v56 = vrot.slane %v3939_v42, 2  ;;  %v3961_v0 = vrot.slane %v3960_v18, 2  ;;  %v3878_v17 = vmax.f32 %v3876_v55, %v3877_v31 }
 0x588   : > { %v4002_v28 = vmax.f32 %v4000_v7, %v4001_v29  ;;  %v4023_v45 = vmax.f32 %v4021_v12, %v4022_v52  ;;  %v3982_v9 = vrot.slane %v3981_v16, 2  ;;  %v3899_v59 = vmax.f32 %v3897_v2, %v3898_v13 }
 0x589   : > { %v3920_v44 = vmax.f32 %v3918_v1, %v3919_v25  ;;  %v3941_v57 = vmax.f32 %v3939_v42, %v3940_v56  ;;  %v3962_v21 = vmax.f32 %v3960_v18, %v3961_v0  ;;  %v3879_v14 = vrot.slane %v3878_v17, 1 }
 0x58a   : > { %v4003_v49 = vrot.slane %v4002_v28, 2  ;;  %v4024_v39 = vrot.slane %v4023_v45, 2  ;;  %v3983_v34 = vmax.f32 %v3981_v16, %v3982_v9  ;;  %v3900_v22 = vrot.slane %v3899_v59, 1 }
 0x58b   : > { %v3921_v8 = vrot.slane %v3920_v44, 1  ;;  %v3942_v62 = vrot.slane %v3941_v57, 1  ;;  %v3963_v20 = vrot.slane %v3962_v21, 1  ;;  %v3880_v23 = vmax.f32 %v3878_v17, %v3879_v14 }
 0x58c   : > { %v4004_v35 = vmax.f32 %v4002_v28, %v4003_v49  ;;  %v4025_v5 = vmax.f32 %v4023_v45, %v4024_v39  ;;  %v3984_v36 = vrot.slane %v3983_v34, 1  ;;  %v3901_v37 = vmax.f32 %v3899_v59, %v3900_v22 }
 0x58d   : > { %v3922_v63 = vmax.f32 %v3920_v44, %v3921_v8  ;;  %v3943_v10 = vmax.f32 %v3941_v57, %v3942_v62  ;;  %v3964_v4 = vmax.f32 %v3962_v21, %v3963_v20  ;;  %v4028_v33 = vpack.c.bf16 %v10101_v6, %v10099_v3  ;;  %v3434_v62 = vld [vmem:[#allocation2] sm:$0xff] }
 0x58e   : > { %v4005_v47 = vrot.slane %v4004_v35, 1  ;;  %v4026_v60 = vrot.slane %v4025_v5, 1  ;;  %v3985_v51 = vmax.f32 %v3983_v34, %v3984_v36  ;;  %v4029_v43 = vpack.c.bf16 %v10105_v41, %v10103_v24 }
 0x58f   : > { %v4030_v30 = vpack.c.bf16 %v10109_v38, %v10107_v26  ;;  %v4031_v58 = vpack.c.bf16 %v10113_v53, %v10111_v40  ;;  %v4032_v50 = vpack.c.bf16 %v3901_v37, %v3880_v23  ;;  %v4033_v46 = vpack.c.bf16 %v3943_v10, %v3922_v63  ;;  %v3435_v23 = vld [vmem:[#allocation2 + $0x8] sm:$0xff] }
 0x590   : > { %v4006_v48 = vmax.f32 %v4004_v35, %v4005_v47  ;;  %v4027_v11 = vmax.f32 %v4025_v5, %v4026_v60  ;;  %v4034_v54 = vpack.c.bf16 %v3985_v51, %v3964_v4  ;;  %v4036_v7 = vunpack.c.l.bf16 %v4028_v33 }
 0x591   : > { %v4037_v12 = vunpack.c.h.bf16 %v4028_v33  ;;  %v4038_v61 = vunpack.c.l.bf16 %v4029_v43  ;;  %v4039_v19 = vunpack.c.h.bf16 %v4029_v43  ;;  %v4040_v27 = vunpack.c.l.bf16 %v4030_v30 }
 0x592   : > { %v4035_v15 = vpack.c.bf16 %v4027_v11, %v4006_v48  ;;  %v4041_v32 = vunpack.c.h.bf16 %v4030_v30  ;;  %v4042_v3 = vunpack.c.l.bf16 %v4031_v58  ;;  %v4043_v6 = vunpack.c.h.bf16 %v4031_v58 }
 0x593   : > { %v4044_v55 = vunpack.c.l.bf16 %v4032_v50  ;;  %v4045_v24 = vunpack.c.h.bf16 %v4032_v50  ;;  %v4046_v41 = vunpack.c.l.bf16 %v4033_v46  ;;  %v4047_v2 = vunpack.c.h.bf16 %v4033_v46 }
 0x594   : > { %v4048_v26 = vunpack.c.l.bf16 %v4034_v54  ;;  %v4049_v38 = vunpack.c.h.bf16 %v4034_v54  ;;  %v4050_v29 = vunpack.c.l.bf16 %v4035_v15  ;;  %v4051_v40 = vunpack.c.h.bf16 %v4035_v15 }
 0x595   : > { %v4068_v53 = vrot.slane %v4037_v12, 6  ;;  %v4069_v52 = vrot.slane %v4038_v61, 4  ;;  %v4070_v1 = vrot.slane %v4039_v19, 2  ;;  %v4071_v42 = vrot.slane %v4041_v32, 6 }
 0x596   : > { %v4072_v18 = vrot.slane %v4042_v3, 4  ;;  %v4073_v16 = vrot.slane %v4043_v6, 2  ;;  %v4074_v31 = vrot.slane %v4045_v24, 6  ;;  %v4075_v13 = vrot.slane %v4046_v41, 4 }
 0x597   : > { %v4076_v28 = vrot.slane %v4047_v2, 2  ;;  %v4077_v45 = vrot.slane %v4049_v38, 6  ;;  %v4078_v25 = vrot.slane %v4050_v29, 4  ;;  %v4079_v56 = vrot.slane %v4051_v40, 2 }
 0x598   : > { %v4081_v0 = vsel %vm4080_vm13, %v4036_v7, %v4068_v53  ;;  %v4083_v9 = vsel %vm4082_vm15, %v4069_v52, %v4070_v1  ;;  %v4086_v17 = vsel %vm4080_vm13, %v4040_v27, %v4071_v42  ;;  %v4087_v49 = vsel %vm4082_vm15, %v4072_v18, %v4073_v16 }
 0x599   : > { %v4085_v59 = vsel %vm4084_vm1, %v4081_v0, %v4083_v9  ;;  %v4089_v39 = vsel %vm4080_vm13, %v4044_v55, %v4074_v31  ;;  %v4090_v44 = vsel %vm4082_vm15, %v4075_v13, %v4076_v28  ;;  %v4088_v57 = vsel %vm4084_vm1, %v4086_v17, %v4087_v49 }
 0x59a   : > { %v4091_v21 = vsel %vm4084_vm1, %v4089_v39, %v4090_v44  ;;  %v4092_v34 = vsel %vm4080_vm13, %v4048_v26, %v4077_v45  ;;  %v4093_v14 = vsel %vm4082_vm15, %v4078_v25, %v4079_v56 }
 0x59b   : > { %v4094_v22 = vsel %vm4084_vm1, %v4092_v34, %v4093_v14  ;;  %v4099_v35 = vrot.slane %v4091_v21, 7 }
 0x59c   : > { %v4110_v5 = vrot.slane %v4094_v22, 7 }
 0x59d   : > { %v4101_v8 = vsel %vm4100_vm3, %v4099_v35, %v4085_v59 }
 0x59e   : > { %v4103_v20 = vsel %vm4102_vm5, %v4099_v35, %v4101_v8  ;;  %v4111_v36 = vsel %vm4100_vm3, %v4110_v5, %v4088_v57 }
 0x59f   : > { %v4105_v37 = vsel %vm4104_vm7, %v4099_v35, %v4103_v20  ;;  %v4112_v47 = vsel %vm4102_vm5, %v4110_v5, %v4111_v36 }
 0x5a0   : > { %v4107_v60 = vsel %vm4106_vm8, %v4099_v35, %v4105_v37  ;;  %v4113_v63 = vsel %vm4104_vm7, %v4110_v5, %v4112_v47 }
 0x5a1   : > { %v4114_v10 = vsel %vm4106_vm8, %v4110_v5, %v4113_v63  ;;  %v4117_v4 = vmax.f32 %v3434_v62, %v4107_v60 }
 0x5a2   : > { %v4118_v51 = vmax.f32 %v3435_v23, %v4114_v10 }
 0x5a3   : > { %4119 = vst [vmem:[#allocation2] sm:$0xff] %v4117_v4 }
 0x5a4   : > { %4120 = vst [vmem:[#allocation2 + $0x8] sm:$0xff] %v4118_v51 }
 0x5a5 PF: > { %s11410_s15 = sld [smem:[#allocation34_spill]] }
 0x5ab   : > { %p6933_p0 = scmp.eq.s32.totalorder %s11410_s15, 1 }
 0x5ad   : > { %4124 = sbr.rel (%p6933_p0) target bundleno = 1629 (0x65d), region = 170 }
 0x5b2   : > { %v11411_v48 = vld [vmem:[#allocation53_spill] sm:$0xff]  ;;  %v11412_v43 = vld [vmem:[#allocation38_spill] sm:$0xff]  ;;  %v11414_v15 = vld [vmem:[#allocation88_spill] sm:$0xff]  ;;  %vm4771_vm10 = vcmask 1041408   ;;  %vm4773_vm11 = vcmask 1045508   ;;  %vm4775_vm12 = vcmask 1043456  }
 0x5b3   : > { %v4127_v11 = vunpack.c.l.bf16 %v11411_v48  ;;  %v4128_v33 = vunpack.c.h.bf16 %v11411_v48  ;;  %v4129_v30 = vunpack.c.l.bf16 %v11412_v43  ;;  %v11413_v50 = vld [vmem:[#allocation117_spill] sm:$0xff]  ;;  %v11415_v61 = vld [vmem:[#allocation55_spill] sm:$0xff]  ;;  %v11418_v2 = vld [vmem:[#allocation90_spill] sm:$0xff]  ;;  %vm4791_vm14 = vcmask 1041409  }
 0x5b4   : > { %v4135_v19 = vunpack.c.l.bf16 %v11415_v61  ;;  %v4136_v27 = vunpack.c.h.bf16 %v11415_v61  ;;  %v11416_v32 = vld [vmem:[#allocation39_spill] sm:$0xff]  ;;  %v11419_v29 = vld [vmem:[#allocation57_spill] sm:$0xff]  ;;  %v11420_v52 = vld [vmem:[#allocation40_spill] sm:$0xff]  ;;  %v11543_v48 = vunpack.c.h.bf16 %v11413_v50  ;;  %vm4793_vm0 = vcmask 1043459  }
 0x5b5   : > { %v4137_v3 = vunpack.c.l.bf16 %v11416_v32  ;;  %v4138_v6 = vunpack.c.h.bf16 %v11416_v32  ;;  %v11417_v55 = vld [vmem:[#allocation119_spill] sm:$0xff]  ;;  %v4143_v40 = vunpack.c.l.bf16 %v11419_v29  ;;  %v4144_v53 = vunpack.c.h.bf16 %v11419_v29  ;;  %v11421_v18 = vld [vmem:[#allocation121_spill] sm:$0xff]  ;;  %v11422_v13 = vld [vmem:[#allocation92_spill] sm:$0xff] }
 0x5b6   : > { %v4145_v1 = vunpack.c.l.bf16 %v11420_v52  ;;  %v4146_v42 = vunpack.c.h.bf16 %v11420_v52  ;;  %v4147_v16 = vunpack.c.l.bf16 %v11421_v18  ;;  %v4148_v31 = vunpack.c.h.bf16 %v11421_v18  ;;  %v11423_v25 = vld [vmem:[#allocation59_spill] sm:$0xff]  ;;  %v11424_v9 = vld [vmem:[#allocation41_spill] sm:$0xff]  ;;  %v11426_v57 = vld [vmem:[#allocation94_spill] sm:$0xff] }
 0x5b7   : > { %v4149_v28 = vunpack.c.l.bf16 %v11422_v13  ;;  %v4150_v45 = vunpack.c.h.bf16 %v11422_v13  ;;  %v4151_v56 = vunpack.c.l.bf16 %v11423_v25  ;;  %v4152_v0 = vunpack.c.h.bf16 %v11423_v25  ;;  %v11425_v49 = vld [vmem:[#allocation123_spill] sm:$0xff]  ;;  %v11427_v23 = vld [vmem:[#allocation61_spill] sm:$0xff]  ;;  %v11428_v60 = vld [vmem:[#allocation42_spill] sm:$0xff] }
 0x5b8   : > { %v4153_v17 = vunpack.c.l.bf16 %v11424_v9  ;;  %v4154_v59 = vunpack.c.h.bf16 %v11424_v9  ;;  %v4155_v39 = vunpack.c.l.bf16 %v11425_v49  ;;  %v4156_v44 = vunpack.c.h.bf16 %v11425_v49  ;;  %v11429_v4 = vld [vmem:[#allocation125_spill] sm:$0xff]  ;;  %v11431_v25 = vld [vmem:[#allocation63_spill] sm:$0xff]  ;;  %v11492_v41 = vld [vmem:[#allocation64_spill] sm:$0xff] }
 0x5b9   : > { %v4157_v21 = vunpack.c.l.bf16 %v11426_v57  ;;  %v4158_v34 = vunpack.c.h.bf16 %v11426_v57  ;;  %v4384_v14 = vmax.f32 %v4151_v56, %v4143_v40  ;;  %v4405_v22 = vmax.f32 %v4152_v0, %v4144_v53  ;;  %v11430_v40 = vld [vmem:[#allocation96_spill] sm:$0xff]  ;;  %v11432_v9 = vld [vmem:[#allocation43_spill] sm:$0xff]  ;;  %v11434_v57 = vld [vmem:[#allocation98_spill] sm:$0xff] }
 0x5ba   : > { %v4426_v35 = vmax.f32 %v4153_v17, %v4145_v1  ;;  %v4447_v5 = vmax.f32 %v4154_v59, %v4146_v42  ;;  %v4468_v8 = vmax.f32 %v4155_v39, %v4147_v16  ;;  %v4489_v62 = vmax.f32 %v4156_v44, %v4148_v31  ;;  %v11433_v49 = vld [vmem:[#allocation127_spill] sm:$0xff]  ;;  %v11491_v26 = vld [vmem:[#allocation93_spill] sm:$0xff]  ;;  %v11493_v24 = vld [vmem:[#allocation154_spill] sm:$0xff] }
 0x5bb   : > { %v4510_v20 = vmax.f32 %v4157_v21, %v4149_v28  ;;  %v4531_v36 = vmax.f32 %v4158_v34, %v4150_v45  ;;  %v4159_v37 = vunpack.c.l.bf16 %v11427_v23  ;;  %v4160_v47 = vunpack.c.h.bf16 %v11427_v23  ;;  %v11435_v23 = vld [vmem:[#allocation65_spill] sm:$0xff] }
 0x5bc   : > { %v4161_v63 = vunpack.c.l.bf16 %v11428_v60  ;;  %v4162_v10 = vunpack.c.h.bf16 %v11428_v60  ;;  %v4163_v51 = vunpack.c.l.bf16 %v11429_v4  ;;  %v4164_v29 = vunpack.c.h.bf16 %v11429_v4  ;;  %v11436_v60 = vld [vmem:[#allocation44_spill] sm:$0xff]  ;;  %v11437_v4 = vld [vmem:[#allocation129_spill] sm:$0xff] }
 0x5bd   : > { %v4165_v53 = vunpack.c.l.bf16 %v11430_v40  ;;  %v4166_v52 = vunpack.c.h.bf16 %v11430_v40  ;;  %v4385_v1 = vmax.f32 %v4384_v14, %v4159_v37  ;;  %v4406_v42 = vmax.f32 %v4405_v22, %v4160_v47  ;;  %v11438_v40 = vld [vmem:[#allocation100_spill] sm:$0xff] }
 0x5be   : > { %v4427_v18 = vmax.f32 %v4426_v35, %v4161_v63  ;;  %v4448_v16 = vmax.f32 %v4447_v5, %v4162_v10  ;;  %v4469_v31 = vmax.f32 %v4468_v8, %v4163_v51  ;;  %v4490_v13 = vmax.f32 %v4489_v62, %v4164_v29 }
 0x5bf   : > { %v4511_v28 = vmax.f32 %v4510_v20, %v4165_v53  ;;  %v4532_v45 = vmax.f32 %v4531_v36, %v4166_v52  ;;  %v4167_v56 = vunpack.c.l.bf16 %v11431_v25  ;;  %v4168_v0 = vunpack.c.h.bf16 %v11431_v25  ;;  %v11439_v25 = vld [vmem:[#allocation67_spill] sm:$0xff] }
 0x5c0   : > { %v4169_v17 = vunpack.c.l.bf16 %v11432_v9  ;;  %v4170_v59 = vunpack.c.h.bf16 %v11432_v9  ;;  %v4171_v39 = vunpack.c.l.bf16 %v11433_v49  ;;  %v4172_v44 = vunpack.c.h.bf16 %v11433_v49  ;;  %v11440_v9 = vld [vmem:[#allocation45_spill] sm:$0xff]  ;;  %v11441_v49 = vld [vmem:[#allocation131_spill] sm:$0xff] }
 0x5c1   : > { %v4173_v21 = vunpack.c.l.bf16 %v11434_v57  ;;  %v4174_v34 = vunpack.c.h.bf16 %v11434_v57  ;;  %v4386_v14 = vmax.f32 %v4385_v1, %v4167_v56  ;;  %v4407_v22 = vmax.f32 %v4406_v42, %v4168_v0  ;;  %v11442_v57 = vld [vmem:[#allocation102_spill] sm:$0xff] }
 0x5c2   : > { %v4428_v35 = vmax.f32 %v4427_v18, %v4169_v17  ;;  %v4449_v5 = vmax.f32 %v4448_v16, %v4170_v59  ;;  %v4470_v8 = vmax.f32 %v4469_v31, %v4171_v39  ;;  %v4491_v62 = vmax.f32 %v4490_v13, %v4172_v44 }
 0x5c3   : > { %v4512_v20 = vmax.f32 %v4511_v28, %v4173_v21  ;;  %v4533_v36 = vmax.f32 %v4532_v45, %v4174_v34  ;;  %v4175_v37 = vunpack.c.l.bf16 %v11435_v23  ;;  %v4176_v47 = vunpack.c.h.bf16 %v11435_v23  ;;  %v11443_v23 = vld [vmem:[#allocation69_spill] sm:$0xff] }
 0x5c4   : > { %v4177_v63 = vunpack.c.l.bf16 %v11436_v60  ;;  %v4178_v10 = vunpack.c.h.bf16 %v11436_v60  ;;  %v4179_v51 = vunpack.c.l.bf16 %v11437_v4  ;;  %v4180_v29 = vunpack.c.h.bf16 %v11437_v4  ;;  %v11444_v60 = vld [vmem:[#allocation46_spill] sm:$0xff]  ;;  %v11445_v4 = vld [vmem:[#allocation133_spill] sm:$0xff] }
 0x5c5   : > { %v4181_v53 = vunpack.c.l.bf16 %v11438_v40  ;;  %v4182_v52 = vunpack.c.h.bf16 %v11438_v40  ;;  %v4387_v1 = vmax.f32 %v4386_v14, %v4175_v37  ;;  %v4408_v42 = vmax.f32 %v4407_v22, %v4176_v47  ;;  %v11446_v40 = vld [vmem:[#allocation104_spill] sm:$0xff] }
 0x5c6   : > { %v4429_v18 = vmax.f32 %v4428_v35, %v4177_v63  ;;  %v4450_v16 = vmax.f32 %v4449_v5, %v4178_v10  ;;  %v4471_v31 = vmax.f32 %v4470_v8, %v4179_v51  ;;  %v4492_v13 = vmax.f32 %v4491_v62, %v4180_v29 }
 0x5c7   : > { %v4513_v28 = vmax.f32 %v4512_v20, %v4181_v53  ;;  %v4534_v45 = vmax.f32 %v4533_v36, %v4182_v52  ;;  %v4183_v56 = vunpack.c.l.bf16 %v11439_v25  ;;  %v4184_v0 = vunpack.c.h.bf16 %v11439_v25  ;;  %v11447_v25 = vld [vmem:[#allocation71_spill] sm:$0xff] }
 0x5c8   : > { %v4185_v17 = vunpack.c.l.bf16 %v11440_v9  ;;  %v4186_v59 = vunpack.c.h.bf16 %v11440_v9  ;;  %v4187_v39 = vunpack.c.l.bf16 %v11441_v49  ;;  %v4188_v44 = vunpack.c.h.bf16 %v11441_v49  ;;  %v11448_v9 = vld [vmem:[#allocation47_spill] sm:$0xff] }
 0x5c9   : > { %v4189_v21 = vunpack.c.l.bf16 %v11442_v57  ;;  %v4190_v34 = vunpack.c.h.bf16 %v11442_v57  ;;  %v4388_v14 = vmax.f32 %v4387_v1, %v4183_v56  ;;  %v4409_v22 = vmax.f32 %v4408_v42, %v4184_v0  ;;  %v11449_v49 = vld [vmem:[#allocation135_spill] sm:$0xff]  ;;  %v11450_v57 = vld [vmem:[#allocation106_spill] sm:$0xff] }
 0x5ca   : > { %v4430_v35 = vmax.f32 %v4429_v18, %v4185_v17  ;;  %v4451_v5 = vmax.f32 %v4450_v16, %v4186_v59  ;;  %v4472_v8 = vmax.f32 %v4471_v31, %v4187_v39  ;;  %v4493_v62 = vmax.f32 %v4492_v13, %v4188_v44 }
 0x5cb   : > { %v4514_v20 = vmax.f32 %v4513_v28, %v4189_v21  ;;  %v4535_v36 = vmax.f32 %v4534_v45, %v4190_v34  ;;  %v4191_v37 = vunpack.c.l.bf16 %v11443_v23  ;;  %v4192_v47 = vunpack.c.h.bf16 %v11443_v23  ;;  %v11451_v23 = vld [vmem:[#allocation73_spill] sm:$0xff] }
 0x5cc   : > { %v4193_v63 = vunpack.c.l.bf16 %v11444_v60  ;;  %v4194_v10 = vunpack.c.h.bf16 %v11444_v60  ;;  %v4195_v51 = vunpack.c.l.bf16 %v11445_v4  ;;  %v4196_v29 = vunpack.c.h.bf16 %v11445_v4  ;;  %v11452_v60 = vld [vmem:[#allocation48_spill] sm:$0xff]  ;;  %v11453_v4 = vld [vmem:[#allocation137_spill] sm:$0xff] }
 0x5cd   : > { %v4197_v53 = vunpack.c.l.bf16 %v11446_v40  ;;  %v4198_v52 = vunpack.c.h.bf16 %v11446_v40  ;;  %v4389_v1 = vmax.f32 %v4388_v14, %v4191_v37  ;;  %v4410_v42 = vmax.f32 %v4409_v22, %v4192_v47  ;;  %v11454_v40 = vld [vmem:[#allocation108_spill] sm:$0xff] }
 0x5ce   : > { %v4431_v18 = vmax.f32 %v4430_v35, %v4193_v63  ;;  %v4452_v16 = vmax.f32 %v4451_v5, %v4194_v10  ;;  %v4473_v31 = vmax.f32 %v4472_v8, %v4195_v51  ;;  %v4494_v13 = vmax.f32 %v4493_v62, %v4196_v29 }
 0x5cf   : > { %v4515_v28 = vmax.f32 %v4514_v20, %v4197_v53  ;;  %v4536_v45 = vmax.f32 %v4535_v36, %v4198_v52  ;;  %v4199_v56 = vunpack.c.l.bf16 %v11447_v25  ;;  %v4200_v0 = vunpack.c.h.bf16 %v11447_v25  ;;  %v11455_v25 = vld [vmem:[#allocation75_spill] sm:$0xff] }
 0x5d0   : > { %v4201_v17 = vunpack.c.l.bf16 %v11448_v9  ;;  %v4202_v59 = vunpack.c.h.bf16 %v11448_v9  ;;  %v4203_v39 = vunpack.c.l.bf16 %v11449_v49  ;;  %v4204_v44 = vunpack.c.h.bf16 %v11449_v49  ;;  %v11456_v9 = vld [vmem:[#allocation49_spill] sm:$0xff]  ;;  %v11457_v49 = vld [vmem:[#allocation139_spill] sm:$0xff] }
 0x5d1   : > { %v4205_v21 = vunpack.c.l.bf16 %v11450_v57  ;;  %v4206_v34 = vunpack.c.h.bf16 %v11450_v57  ;;  %v4390_v14 = vmax.f32 %v4389_v1, %v4199_v56  ;;  %v4411_v22 = vmax.f32 %v4410_v42, %v4200_v0  ;;  %v11458_v57 = vld [vmem:[#allocation110_spill] sm:$0xff] }
 0x5d2   : > { %v4432_v35 = vmax.f32 %v4431_v18, %v4201_v17  ;;  %v4453_v5 = vmax.f32 %v4452_v16, %v4202_v59  ;;  %v4474_v8 = vmax.f32 %v4473_v31, %v4203_v39  ;;  %v4495_v62 = vmax.f32 %v4494_v13, %v4204_v44 }
 0x5d3   : > { %v4516_v20 = vmax.f32 %v4515_v28, %v4205_v21  ;;  %v4537_v36 = vmax.f32 %v4536_v45, %v4206_v34  ;;  %v4207_v37 = vunpack.c.l.bf16 %v11451_v23  ;;  %v4208_v47 = vunpack.c.h.bf16 %v11451_v23  ;;  %v11459_v23 = vld [vmem:[#allocation77_spill] sm:$0xff] }
 0x5d4   : > { %v4209_v63 = vunpack.c.l.bf16 %v11452_v60  ;;  %v4210_v10 = vunpack.c.h.bf16 %v11452_v60  ;;  %v4211_v51 = vunpack.c.l.bf16 %v11453_v4  ;;  %v4212_v29 = vunpack.c.h.bf16 %v11453_v4  ;;  %v11460_v60 = vld [vmem:[#allocation50_spill] sm:$0xff]  ;;  %v11461_v4 = vld [vmem:[#allocation141_spill] sm:$0xff] }
 0x5d5   : > { %v4213_v53 = vunpack.c.l.bf16 %v11454_v40  ;;  %v4214_v52 = vunpack.c.h.bf16 %v11454_v40  ;;  %v4391_v1 = vmax.f32 %v4390_v14, %v4207_v37  ;;  %v4412_v42 = vmax.f32 %v4411_v22, %v4208_v47  ;;  %v11462_v40 = vld [vmem:[#allocation112_spill] sm:$0xff] }
 0x5d6   : > { %v4433_v18 = vmax.f32 %v4432_v35, %v4209_v63  ;;  %v4454_v16 = vmax.f32 %v4453_v5, %v4210_v10  ;;  %v4475_v31 = vmax.f32 %v4474_v8, %v4211_v51  ;;  %v4496_v13 = vmax.f32 %v4495_v62, %v4212_v29 }
 0x5d7   : > { %v4517_v28 = vmax.f32 %v4516_v20, %v4213_v53  ;;  %v4538_v45 = vmax.f32 %v4537_v36, %v4214_v52  ;;  %v4215_v56 = vunpack.c.l.bf16 %v11455_v25  ;;  %v4216_v0 = vunpack.c.h.bf16 %v11455_v25  ;;  %v11463_v25 = vld [vmem:[#allocation79_spill] sm:$0xff] }
 0x5d8   : > { %v4217_v17 = vunpack.c.l.bf16 %v11456_v9  ;;  %v4218_v59 = vunpack.c.h.bf16 %v11456_v9  ;;  %v4219_v39 = vunpack.c.l.bf16 %v11457_v49  ;;  %v4220_v44 = vunpack.c.h.bf16 %v11457_v49  ;;  %v11464_v9 = vld [vmem:[#allocation51_spill] sm:$0xff] }
 0x5d9   : > { %v4221_v21 = vunpack.c.l.bf16 %v11458_v57  ;;  %v4222_v34 = vunpack.c.h.bf16 %v11458_v57  ;;  %v4392_v14 = vmax.f32 %v4391_v1, %v4215_v56  ;;  %v4413_v22 = vmax.f32 %v4412_v42, %v4216_v0  ;;  %v11465_v49 = vld [vmem:[#allocation143_spill] sm:$0xff]  ;;  %v11466_v57 = vld [vmem:[#allocation114_spill] sm:$0xff] }
 0x5da   : > { %v4434_v35 = vmax.f32 %v4433_v18, %v4217_v17  ;;  %v4455_v5 = vmax.f32 %v4454_v16, %v4218_v59  ;;  %v4476_v8 = vmax.f32 %v4475_v31, %v4219_v39  ;;  %v4497_v62 = vmax.f32 %v4496_v13, %v4220_v44 }
 0x5db   : > { %v4518_v20 = vmax.f32 %v4517_v28, %v4221_v21  ;;  %v4539_v36 = vmax.f32 %v4538_v45, %v4222_v34  ;;  %v4223_v37 = vunpack.c.l.bf16 %v11459_v23  ;;  %v4224_v47 = vunpack.c.h.bf16 %v11459_v23  ;;  %v11467_v23 = vld [vmem:[#allocation81_spill] sm:$0xff] }
 0x5dc   : > { %v4225_v63 = vunpack.c.l.bf16 %v11460_v60  ;;  %v4226_v10 = vunpack.c.h.bf16 %v11460_v60  ;;  %v4227_v51 = vunpack.c.l.bf16 %v11461_v4  ;;  %v4228_v29 = vunpack.c.h.bf16 %v11461_v4  ;;  %v11468_v60 = vld [vmem:[#allocation52_spill] sm:$0xff]  ;;  %v11469_v4 = vld [vmem:[#allocation145_spill] sm:$0xff] }
 0x5dd   : > { %v4229_v53 = vunpack.c.l.bf16 %v11462_v40  ;;  %v4230_v52 = vunpack.c.h.bf16 %v11462_v40  ;;  %v4393_v1 = vmax.f32 %v4392_v14, %v4223_v37  ;;  %v4414_v42 = vmax.f32 %v4413_v22, %v4224_v47  ;;  %v11470_v40 = vld [vmem:[#allocation116_spill] sm:$0xff] }
 0x5de   : > { %v4435_v18 = vmax.f32 %v4434_v35, %v4225_v63  ;;  %v4456_v16 = vmax.f32 %v4455_v5, %v4226_v10  ;;  %v4477_v31 = vmax.f32 %v4476_v8, %v4227_v51  ;;  %v4498_v13 = vmax.f32 %v4497_v62, %v4228_v29 }
 0x5df   : > { %v4519_v28 = vmax.f32 %v4518_v20, %v4229_v53  ;;  %v4540_v45 = vmax.f32 %v4539_v36, %v4230_v52  ;;  %v4231_v56 = vunpack.c.l.bf16 %v11463_v25  ;;  %v4232_v0 = vunpack.c.h.bf16 %v11463_v25  ;;  %v11471_v25 = vld [vmem:[#allocation83_spill] sm:$0xff] }
 0x5e0   : > { %v4233_v17 = vunpack.c.l.bf16 %v11464_v9  ;;  %v4234_v59 = vunpack.c.h.bf16 %v11464_v9  ;;  %v4235_v39 = vunpack.c.l.bf16 %v11465_v49  ;;  %v4236_v44 = vunpack.c.h.bf16 %v11465_v49  ;;  %v11472_v9 = vld [vmem:[#allocation54_spill] sm:$0xff]  ;;  %v11473_v49 = vld [vmem:[#allocation147_spill] sm:$0xff] }
 0x5e1   : > { %v4237_v21 = vunpack.c.l.bf16 %v11466_v57  ;;  %v4238_v34 = vunpack.c.h.bf16 %v11466_v57  ;;  %v4394_v14 = vmax.f32 %v4393_v1, %v4231_v56  ;;  %v4415_v22 = vmax.f32 %v4414_v42, %v4232_v0  ;;  %v11474_v57 = vld [vmem:[#allocation118_spill] sm:$0xff] }
 0x5e2   : > { %v4436_v35 = vmax.f32 %v4435_v18, %v4233_v17  ;;  %v4457_v5 = vmax.f32 %v4456_v16, %v4234_v59  ;;  %v4478_v8 = vmax.f32 %v4477_v31, %v4235_v39  ;;  %v4499_v62 = vmax.f32 %v4498_v13, %v4236_v44 }
 0x5e3   : > { %v4520_v20 = vmax.f32 %v4519_v28, %v4237_v21  ;;  %v4541_v36 = vmax.f32 %v4540_v45, %v4238_v34  ;;  %v4239_v37 = vunpack.c.l.bf16 %v11467_v23  ;;  %v4240_v47 = vunpack.c.h.bf16 %v11467_v23  ;;  %v11475_v23 = vld [vmem:[#allocation85_spill] sm:$0xff] }
 0x5e4   : > { %v4241_v63 = vunpack.c.l.bf16 %v11468_v60  ;;  %v4242_v10 = vunpack.c.h.bf16 %v11468_v60  ;;  %v4243_v51 = vunpack.c.l.bf16 %v11469_v4  ;;  %v4244_v29 = vunpack.c.h.bf16 %v11469_v4  ;;  %v11476_v60 = vld [vmem:[#allocation56_spill] sm:$0xff]  ;;  %v11477_v4 = vld [vmem:[#allocation149_spill] sm:$0xff] }
 0x5e5   : > { %v4245_v53 = vunpack.c.l.bf16 %v11470_v40  ;;  %v4246_v52 = vunpack.c.h.bf16 %v11470_v40  ;;  %v4395_v1 = vmax.f32 %v4394_v14, %v4239_v37  ;;  %v4416_v42 = vmax.f32 %v4415_v22, %v4240_v47  ;;  %v11478_v40 = vld [vmem:[#allocation120_spill] sm:$0xff] }
 0x5e6   : > { %v4437_v18 = vmax.f32 %v4436_v35, %v4241_v63  ;;  %v4458_v16 = vmax.f32 %v4457_v5, %v4242_v10  ;;  %v4479_v31 = vmax.f32 %v4478_v8, %v4243_v51  ;;  %v4500_v13 = vmax.f32 %v4499_v62, %v4244_v29  ;;  %v11487_v51 = vld [vmem:[#allocation91_spill] sm:$0xff] }
 0x5e7   : > { %v4521_v28 = vmax.f32 %v4520_v20, %v4245_v53  ;;  %v4542_v45 = vmax.f32 %v4541_v36, %v4246_v52  ;;  %v4247_v56 = vunpack.c.l.bf16 %v11471_v25  ;;  %v4248_v0 = vunpack.c.h.bf16 %v11471_v25  ;;  %v11486_v53 = vld [vmem:[#allocation124_spill] sm:$0xff] }
 0x5e8   : > { %v4249_v17 = vunpack.c.l.bf16 %v11472_v9  ;;  %v4250_v59 = vunpack.c.h.bf16 %v11472_v9  ;;  %v4251_v39 = vunpack.c.l.bf16 %v11473_v49  ;;  %v4252_v44 = vunpack.c.h.bf16 %v11473_v49 }
 0x5e9   : > { %v4253_v21 = vunpack.c.l.bf16 %v11474_v57  ;;  %v4254_v34 = vunpack.c.h.bf16 %v11474_v57  ;;  %v10292_v14 = vmax.f32 %v4395_v1, %v4247_v56  ;;  %v10294_v22 = vmax.f32 %v4416_v42, %v4248_v0  ;;  %v11479_v1 = vld [vmem:[#allocation87_spill] sm:$0xff]  ;;  %v11482_v56 = vld [vmem:[#allocation122_spill] sm:$0xff] }
 0x5ea   : > { %v10296_v35 = vmax.f32 %v4437_v18, %v4249_v17  ;;  %v10298_v5 = vmax.f32 %v4458_v16, %v4250_v59  ;;  %v10300_v8 = vmax.f32 %v4479_v31, %v4251_v39  ;;  %v10302_v62 = vmax.f32 %v4500_v13, %v4252_v44  ;;  %v11480_v16 = vld [vmem:[#allocation58_spill] sm:$0xff]  ;;  %v11483_v17 = vld [vmem:[#allocation89_spill] sm:$0xff]  ;;  %v11484_v39 = vld [vmem:[#allocation60_spill] sm:$0xff] }
 0x5eb   : > { %v10304_v20 = vmax.f32 %v4521_v28, %v4253_v21  ;;  %v10306_v36 = vmax.f32 %v4542_v45, %v4254_v34  ;;  %v11481_v28 = vld [vmem:[#allocation151_spill] sm:$0xff]  ;;  %v4271_v59 = vunpack.c.l.bf16 %v11483_v17  ;;  %v4272_v49 = vunpack.c.h.bf16 %v11483_v17  ;;  %v11485_v21 = vld [vmem:[#allocation152_spill] sm:$0xff]  ;;  %v11488_v45 = vld [vmem:[#allocation62_spill] sm:$0xff] }
 0x5ec   : > { %v4273_v44 = vunpack.c.l.bf16 %v11484_v39  ;;  %v4274_v57 = vunpack.c.h.bf16 %v11484_v39  ;;  %v4275_v34 = vunpack.c.l.bf16 %v11485_v21  ;;  %v4276_v52 = vunpack.c.h.bf16 %v11485_v21  ;;  %v11489_v13 = vld [vmem:[#allocation153_spill] sm:$0xff]  ;;  %v11490_v31 = vld [vmem:[#allocation126_spill] sm:$0xff] }
 0x5ed   : > { %v4277_v29 = vunpack.c.l.bf16 %v11486_v53  ;;  %v4278_v25 = vunpack.c.h.bf16 %v11486_v53  ;;  %v4279_v0 = vunpack.c.l.bf16 %v11487_v51  ;;  %v4280_v9 = vunpack.c.h.bf16 %v11487_v51 }
 0x5ee   : > { %v4281_v10 = vunpack.c.l.bf16 %v11488_v45  ;;  %v4282_v17 = vunpack.c.h.bf16 %v11488_v45  ;;  %v4283_v63 = vunpack.c.l.bf16 %v11489_v13  ;;  %v4284_v39 = vunpack.c.h.bf16 %v11489_v13 }
 0x5ef   : > { %v4285_v47 = vunpack.c.l.bf16 %v11490_v31  ;;  %v4286_v21 = vunpack.c.h.bf16 %v11490_v31  ;;  %v4552_v18 = vmax.f32 %v4279_v0, %v4271_v59  ;;  %v4573_v37 = vmax.f32 %v4280_v9, %v4272_v49  ;;  %v11494_v0 = vld [vmem:[#allocation128_spill] sm:$0xff] }
 0x5f0   : > { %v4594_v42 = vmax.f32 %v4281_v10, %v4273_v44  ;;  %v4615_v53 = vmax.f32 %v4282_v17, %v4274_v57  ;;  %v4636_v12 = vmax.f32 %v4283_v63, %v4275_v34  ;;  %v4657_v38 = vmax.f32 %v4284_v39, %v4276_v52  ;;  %v11495_v44 = vld [vmem:[#allocation95_spill] sm:$0xff]  ;;  %v11496_v34 = vld [vmem:[#allocation66_spill] sm:$0xff] }
 0x5f1   : > { %v4678_v7 = vmax.f32 %v4285_v47, %v4277_v29  ;;  %v4699_v51 = vmax.f32 %v4286_v21, %v4278_v25  ;;  %v4287_v54 = vunpack.c.l.bf16 %v11491_v26  ;;  %v4288_v45 = vunpack.c.h.bf16 %v11491_v26  ;;  %v11497_v39 = vld [vmem:[#allocation155_spill] sm:$0xff] }
 0x5f2   : > { %v4289_v46 = vunpack.c.l.bf16 %v11492_v41  ;;  %v4290_v13 = vunpack.c.h.bf16 %v11492_v41  ;;  %v4291_v58 = vunpack.c.l.bf16 %v11493_v24  ;;  %v4292_v31 = vunpack.c.h.bf16 %v11493_v24 }
 0x5f3   : > { %v4293_v9 = vunpack.c.l.bf16 %v11494_v0  ;;  %v4294_v10 = vunpack.c.h.bf16 %v11494_v0  ;;  %v4553_v63 = vmax.f32 %v4552_v18, %v4287_v54  ;;  %v4574_v52 = vmax.f32 %v4573_v37, %v4288_v45  ;;  %v11498_v54 = vld [vmem:[#allocation130_spill] sm:$0xff]  ;;  %v11499_v45 = vld [vmem:[#allocation97_spill] sm:$0xff] }
 0x5f4   : > { %v4595_v47 = vmax.f32 %v4594_v42, %v4289_v46  ;;  %v4616_v29 = vmax.f32 %v4615_v53, %v4290_v13  ;;  %v4637_v25 = vmax.f32 %v4636_v12, %v4291_v58  ;;  %v4658_v59 = vmax.f32 %v4657_v38, %v4292_v31 }
 0x5f5   : > { %v4679_v49 = vmax.f32 %v4678_v7, %v4293_v9  ;;  %v4700_v26 = vmax.f32 %v4699_v51, %v4294_v10  ;;  %v4295_v57 = vunpack.c.l.bf16 %v11495_v44  ;;  %v4296_v41 = vunpack.c.h.bf16 %v11495_v44  ;;  %v11500_v9 = vld [vmem:[#allocation68_spill] sm:$0xff] }
 0x5f6   : > { %v4297_v17 = vunpack.c.l.bf16 %v11496_v34  ;;  %v4298_v24 = vunpack.c.h.bf16 %v11496_v34  ;;  %v4299_v21 = vunpack.c.l.bf16 %v11497_v39  ;;  %v4300_v0 = vunpack.c.h.bf16 %v11497_v39  ;;  %v11501_v34 = vld [vmem:[#allocation156_spill] sm:$0xff] }
 0x5f7   : > { %v4301_v37 = vunpack.c.l.bf16 %v11498_v54  ;;  %v4302_v46 = vunpack.c.h.bf16 %v11498_v54  ;;  %v4554_v58 = vmax.f32 %v4553_v63, %v4295_v57  ;;  %v4575_v12 = vmax.f32 %v4574_v52, %v4296_v41  ;;  %v11502_v63 = vld [vmem:[#allocation132_spill] sm:$0xff] }
 0x5f8   : > { %v4596_v7 = vmax.f32 %v4595_v47, %v4297_v17  ;;  %v4617_v38 = vmax.f32 %v4616_v29, %v4298_v24  ;;  %v4638_v42 = vmax.f32 %v4637_v25, %v4299_v21  ;;  %v4659_v18 = vmax.f32 %v4658_v59, %v4300_v0  ;;  %v11503_v24 = vld [vmem:[#allocation99_spill] sm:$0xff] }
 0x5f9   : > { %v4680_v53 = vmax.f32 %v4679_v49, %v4301_v37  ;;  %v4701_v51 = vmax.f32 %v4700_v26, %v4302_v46  ;;  %v4303_v13 = vunpack.c.l.bf16 %v11499_v45  ;;  %v4304_v31 = vunpack.c.h.bf16 %v11499_v45  ;;  %v11504_v37 = vld [vmem:[#allocation70_spill] sm:$0xff] }
 0x5fa   : > { %v4305_v10 = vunpack.c.l.bf16 %v11500_v9  ;;  %v4306_v44 = vunpack.c.h.bf16 %v11500_v9  ;;  %v4307_v39 = vunpack.c.l.bf16 %v11501_v34  ;;  %v4308_v54 = vunpack.c.h.bf16 %v11501_v34  ;;  %v11505_v9 = vld [vmem:[#allocation157_spill] sm:$0xff] }
 0x5fb   : > { %v4309_v52 = vunpack.c.l.bf16 %v11502_v63  ;;  %v4310_v47 = vunpack.c.h.bf16 %v11502_v63  ;;  %v4555_v29 = vmax.f32 %v4554_v58, %v4303_v13  ;;  %v4576_v25 = vmax.f32 %v4575_v12, %v4304_v31  ;;  %v11506_v58 = vld [vmem:[#allocation134_spill] sm:$0xff] }
 0x5fc   : > { %v4597_v59 = vmax.f32 %v4596_v7, %v4305_v10  ;;  %v4618_v49 = vmax.f32 %v4617_v38, %v4306_v44  ;;  %v4639_v26 = vmax.f32 %v4638_v42, %v4307_v39  ;;  %v4660_v57 = vmax.f32 %v4659_v18, %v4308_v54  ;;  %v11507_v44 = vld [vmem:[#allocation101_spill] sm:$0xff] }
 0x5fd   : > { %v4681_v41 = vmax.f32 %v4680_v53, %v4309_v52  ;;  %v4702_v17 = vmax.f32 %v4701_v51, %v4310_v47  ;;  %v4311_v21 = vunpack.c.l.bf16 %v11503_v24  ;;  %v4312_v0 = vunpack.c.h.bf16 %v11503_v24  ;;  %v11508_v52 = vld [vmem:[#allocation72_spill] sm:$0xff] }
 0x5fe   : > { %v4313_v46 = vunpack.c.l.bf16 %v11504_v37  ;;  %v4314_v45 = vunpack.c.h.bf16 %v11504_v37  ;;  %v4315_v34 = vunpack.c.l.bf16 %v11505_v9  ;;  %v4316_v63 = vunpack.c.h.bf16 %v11505_v9  ;;  %v11509_v37 = vld [vmem:[#allocation158_spill] sm:$0xff] }
 0x5ff   : > { %v4317_v12 = vunpack.c.l.bf16 %v11506_v58  ;;  %v4318_v7 = vunpack.c.h.bf16 %v11506_v58  ;;  %v4556_v38 = vmax.f32 %v4555_v29, %v4311_v21  ;;  %v4577_v42 = vmax.f32 %v4576_v25, %v4312_v0  ;;  %v11510_v29 = vld [vmem:[#allocation136_spill] sm:$0xff] }
 0x600   : > { %v4598_v18 = vmax.f32 %v4597_v59, %v4313_v46  ;;  %v4619_v53 = vmax.f32 %v4618_v49, %v4314_v45  ;;  %v4640_v51 = vmax.f32 %v4639_v26, %v4315_v34  ;;  %v4661_v13 = vmax.f32 %v4660_v57, %v4316_v63  ;;  %v11511_v45 = vld [vmem:[#allocation103_spill] sm:$0xff] }
 0x601   : > { %v4682_v31 = vmax.f32 %v4681_v41, %v4317_v12  ;;  %v4703_v10 = vmax.f32 %v4702_v17, %v4318_v7  ;;  %v4319_v39 = vunpack.c.l.bf16 %v11507_v44  ;;  %v4320_v54 = vunpack.c.h.bf16 %v11507_v44  ;;  %v11512_v12 = vld [vmem:[#allocation74_spill] sm:$0xff] }
 0x602   : > { %v4321_v47 = vunpack.c.l.bf16 %v11508_v52  ;;  %v4322_v24 = vunpack.c.h.bf16 %v11508_v52  ;;  %v4323_v9 = vunpack.c.l.bf16 %v11509_v37  ;;  %v4324_v58 = vunpack.c.h.bf16 %v11509_v37  ;;  %v11513_v52 = vld [vmem:[#allocation159_spill] sm:$0xff] }
 0x603   : > { %v4325_v25 = vunpack.c.l.bf16 %v11510_v29  ;;  %v4326_v59 = vunpack.c.h.bf16 %v11510_v29  ;;  %v4557_v49 = vmax.f32 %v4556_v38, %v4319_v39  ;;  %v4578_v26 = vmax.f32 %v4577_v42, %v4320_v54  ;;  %v11514_v38 = vld [vmem:[#allocation138_spill] sm:$0xff] }
 0x604   : > { %v4599_v57 = vmax.f32 %v4598_v18, %v4321_v47  ;;  %v4620_v41 = vmax.f32 %v4619_v53, %v4322_v24  ;;  %v4641_v17 = vmax.f32 %v4640_v51, %v4323_v9  ;;  %v4662_v21 = vmax.f32 %v4661_v13, %v4324_v58  ;;  %v11515_v24 = vld [vmem:[#allocation105_spill] sm:$0xff] }
 0x605   : > { %v4683_v0 = vmax.f32 %v4682_v31, %v4325_v25  ;;  %v4704_v46 = vmax.f32 %v4703_v10, %v4326_v59  ;;  %v4327_v34 = vunpack.c.l.bf16 %v11511_v45  ;;  %v4328_v63 = vunpack.c.h.bf16 %v11511_v45  ;;  %v11516_v25 = vld [vmem:[#allocation76_spill] sm:$0xff] }
 0x606   : > { %v4329_v7 = vunpack.c.l.bf16 %v11512_v12  ;;  %v4330_v44 = vunpack.c.h.bf16 %v11512_v12  ;;  %v4331_v37 = vunpack.c.l.bf16 %v11513_v52  ;;  %v4332_v29 = vunpack.c.h.bf16 %v11513_v52  ;;  %v11517_v12 = vld [vmem:[#allocation160_spill] sm:$0xff] }
 0x607   : > { %v4333_v42 = vunpack.c.l.bf16 %v11514_v38  ;;  %v4334_v18 = vunpack.c.h.bf16 %v11514_v38  ;;  %v4558_v53 = vmax.f32 %v4557_v49, %v4327_v34  ;;  %v4579_v51 = vmax.f32 %v4578_v26, %v4328_v63  ;;  %v11518_v49 = vld [vmem:[#allocation140_spill] sm:$0xff] }
 0x608   : > { %v4600_v13 = vmax.f32 %v4599_v57, %v4329_v7  ;;  %v4621_v31 = vmax.f32 %v4620_v41, %v4330_v44  ;;  %v4642_v10 = vmax.f32 %v4641_v17, %v4331_v37  ;;  %v4663_v39 = vmax.f32 %v4662_v21, %v4332_v29  ;;  %v11519_v44 = vld [vmem:[#allocation107_spill] sm:$0xff] }
 0x609   : > { %v4684_v54 = vmax.f32 %v4683_v0, %v4333_v42  ;;  %v4705_v47 = vmax.f32 %v4704_v46, %v4334_v18  ;;  %v4335_v9 = vunpack.c.l.bf16 %v11515_v24  ;;  %v4336_v58 = vunpack.c.h.bf16 %v11515_v24  ;;  %v11520_v42 = vld [vmem:[#allocation78_spill] sm:$0xff] }
 0x60a   : > { %v4337_v59 = vunpack.c.l.bf16 %v11516_v25  ;;  %v4338_v45 = vunpack.c.h.bf16 %v11516_v25  ;;  %v4339_v52 = vunpack.c.l.bf16 %v11517_v12  ;;  %v4340_v38 = vunpack.c.h.bf16 %v11517_v12  ;;  %v11521_v25 = vld [vmem:[#allocation161_spill] sm:$0xff] }
 0x60b   : > { %v4341_v26 = vunpack.c.l.bf16 %v11518_v49  ;;  %v4342_v57 = vunpack.c.h.bf16 %v11518_v49  ;;  %v4559_v41 = vmax.f32 %v4558_v53, %v4335_v9  ;;  %v4580_v17 = vmax.f32 %v4579_v51, %v4336_v58  ;;  %v11522_v53 = vld [vmem:[#allocation142_spill] sm:$0xff] }
 0x60c   : > { %v4601_v21 = vmax.f32 %v4600_v13, %v4337_v59  ;;  %v4622_v0 = vmax.f32 %v4621_v31, %v4338_v45  ;;  %v4643_v46 = vmax.f32 %v4642_v10, %v4339_v52  ;;  %v4664_v34 = vmax.f32 %v4663_v39, %v4340_v38  ;;  %v11523_v45 = vld [vmem:[#allocation109_spill] sm:$0xff] }
 0x60d   : > { %v4685_v63 = vmax.f32 %v4684_v54, %v4341_v26  ;;  %v4706_v7 = vmax.f32 %v4705_v47, %v4342_v57  ;;  %v4343_v37 = vunpack.c.l.bf16 %v11519_v44  ;;  %v4344_v29 = vunpack.c.h.bf16 %v11519_v44  ;;  %v11524_v26 = vld [vmem:[#allocation80_spill] sm:$0xff] }
 0x60e   : > { %v4345_v18 = vunpack.c.l.bf16 %v11520_v42  ;;  %v4346_v24 = vunpack.c.h.bf16 %v11520_v42  ;;  %v4347_v12 = vunpack.c.l.bf16 %v11521_v25  ;;  %v4348_v49 = vunpack.c.h.bf16 %v11521_v25  ;;  %v11525_v42 = vld [vmem:[#allocation162_spill] sm:$0xff] }
 0x60f   : > { %v4349_v51 = vunpack.c.l.bf16 %v11522_v53  ;;  %v4350_v13 = vunpack.c.h.bf16 %v11522_v53  ;;  %v4560_v31 = vmax.f32 %v4559_v41, %v4343_v37  ;;  %v4581_v10 = vmax.f32 %v4580_v17, %v4344_v29  ;;  %v11526_v41 = vld [vmem:[#allocation144_spill] sm:$0xff] }
 0x610   : > { %v4602_v39 = vmax.f32 %v4601_v21, %v4345_v18  ;;  %v4623_v54 = vmax.f32 %v4622_v0, %v4346_v24  ;;  %v4644_v47 = vmax.f32 %v4643_v46, %v4347_v12  ;;  %v4665_v9 = vmax.f32 %v4664_v34, %v4348_v49  ;;  %v11527_v24 = vld [vmem:[#allocation111_spill] sm:$0xff] }
 0x611   : > { %v4686_v58 = vmax.f32 %v4685_v63, %v4349_v51  ;;  %v4707_v59 = vmax.f32 %v4706_v7, %v4350_v13  ;;  %v4351_v52 = vunpack.c.l.bf16 %v11523_v45  ;;  %v4352_v38 = vunpack.c.h.bf16 %v11523_v45  ;;  %v11528_v51 = vld [vmem:[#allocation82_spill] sm:$0xff] }
 0x612   : > { %v4353_v57 = vunpack.c.l.bf16 %v11524_v26  ;;  %v4354_v44 = vunpack.c.h.bf16 %v11524_v26  ;;  %v4355_v25 = vunpack.c.l.bf16 %v11525_v42  ;;  %v4356_v53 = vunpack.c.h.bf16 %v11525_v42  ;;  %v11529_v26 = vld [vmem:[#allocation163_spill] sm:$0xff] }
 0x613   : > { %v4357_v17 = vunpack.c.l.bf16 %v11526_v41  ;;  %v4358_v21 = vunpack.c.h.bf16 %v11526_v41  ;;  %v4561_v0 = vmax.f32 %v4560_v31, %v4351_v52  ;;  %v4582_v46 = vmax.f32 %v4581_v10, %v4352_v38  ;;  %v11530_v31 = vld [vmem:[#allocation146_spill] sm:$0xff] }
 0x614   : > { %v4603_v34 = vmax.f32 %v4602_v39, %v4353_v57  ;;  %v4624_v63 = vmax.f32 %v4623_v54, %v4354_v44  ;;  %v4645_v7 = vmax.f32 %v4644_v47, %v4355_v25  ;;  %v4666_v37 = vmax.f32 %v4665_v9, %v4356_v53  ;;  %v11531_v44 = vld [vmem:[#allocation113_spill] sm:$0xff] }
 0x615   : > { %v4687_v29 = vmax.f32 %v4686_v58, %v4357_v17  ;;  %v4708_v18 = vmax.f32 %v4707_v59, %v4358_v21  ;;  %v4359_v12 = vunpack.c.l.bf16 %v11527_v24  ;;  %v4360_v49 = vunpack.c.h.bf16 %v11527_v24  ;;  %v11532_v17 = vld [vmem:[#allocation84_spill] sm:$0xff] }
 0x616   : > { %v4361_v13 = vunpack.c.l.bf16 %v11528_v51  ;;  %v4362_v45 = vunpack.c.h.bf16 %v11528_v51  ;;  %v4363_v42 = vunpack.c.l.bf16 %v11529_v26  ;;  %v4364_v41 = vunpack.c.h.bf16 %v11529_v26  ;;  %v11533_v51 = vld [vmem:[#allocation164_spill] sm:$0xff] }
 0x617   : > { %v4365_v10 = vunpack.c.l.bf16 %v11530_v31  ;;  %v4366_v39 = vunpack.c.h.bf16 %v11530_v31  ;;  %v4562_v54 = vmax.f32 %v4561_v0, %v4359_v12  ;;  %v4583_v47 = vmax.f32 %v4582_v46, %v4360_v49  ;;  %v11534_v0 = vld [vmem:[#allocation148_spill] sm:$0xff] }
 0x618   : > { %v4604_v9 = vmax.f32 %v4603_v34, %v4361_v13  ;;  %v4625_v58 = vmax.f32 %v4624_v63, %v4362_v45  ;;  %v4646_v59 = vmax.f32 %v4645_v7, %v4363_v42  ;;  %v4667_v52 = vmax.f32 %v4666_v37, %v4364_v41  ;;  %v11535_v45 = vld [vmem:[#allocation115_spill] sm:$0xff] }
 0x619   : > { %v4688_v38 = vmax.f32 %v4687_v29, %v4365_v10  ;;  %v4709_v57 = vmax.f32 %v4708_v18, %v4366_v39  ;;  %v4367_v25 = vunpack.c.l.bf16 %v11531_v44  ;;  %v4368_v53 = vunpack.c.h.bf16 %v11531_v44  ;;  %v11536_v10 = vld [vmem:[#allocation86_spill] sm:$0xff] }
 0x61a   : > { %v4369_v21 = vunpack.c.l.bf16 %v11532_v17  ;;  %v4370_v24 = vunpack.c.h.bf16 %v11532_v17  ;;  %v4371_v26 = vunpack.c.l.bf16 %v11533_v51  ;;  %v4372_v31 = vunpack.c.h.bf16 %v11533_v51  ;;  %v11537_v17 = vld [vmem:[#allocation165_spill] sm:$0xff] }
 0x61b   : > { %v4373_v46 = vunpack.c.l.bf16 %v11534_v0  ;;  %v4374_v34 = vunpack.c.h.bf16 %v11534_v0  ;;  %v4563_v63 = vmax.f32 %v4562_v54, %v4367_v25  ;;  %v4584_v7 = vmax.f32 %v4583_v47, %v4368_v53  ;;  %v11538_v54 = vld [vmem:[#allocation150_spill] sm:$0xff] }
 0x61c   : > { %v4605_v37 = vmax.f32 %v4604_v9, %v4369_v21  ;;  %v4626_v29 = vmax.f32 %v4625_v58, %v4370_v24  ;;  %v4647_v18 = vmax.f32 %v4646_v59, %v4371_v26  ;;  %v4668_v12 = vmax.f32 %v4667_v52, %v4372_v31 }
 0x61d   : > { %v4689_v49 = vmax.f32 %v4688_v38, %v4373_v46  ;;  %v4710_v13 = vmax.f32 %v4709_v57, %v4374_v34  ;;  %v4375_v42 = vunpack.c.l.bf16 %v11535_v45  ;;  %v4376_v41 = vunpack.c.h.bf16 %v11535_v45 }
 0x61e   : > { %v4377_v39 = vunpack.c.l.bf16 %v11536_v10  ;;  %v4378_v44 = vunpack.c.h.bf16 %v11536_v10  ;;  %v4379_v51 = vunpack.c.l.bf16 %v11537_v17  ;;  %v4380_v0 = vunpack.c.h.bf16 %v11537_v17 }
 0x61f   : > { %v4381_v47 = vunpack.c.l.bf16 %v11538_v54  ;;  %v4382_v9 = vunpack.c.h.bf16 %v11538_v54  ;;  %v10436_v58 = vmax.f32 %v4563_v63, %v4375_v42  ;;  %v10438_v59 = vmax.f32 %v4584_v7, %v4376_v41 }
 0x620   : > { %v10440_v52 = vmax.f32 %v4605_v37, %v4377_v39  ;;  %v10442_v38 = vmax.f32 %v4626_v29, %v4378_v44  ;;  %v10444_v57 = vmax.f32 %v4647_v18, %v4379_v51  ;;  %v10446_v25 = vmax.f32 %v4668_v12, %v4380_v0 }
 0x621   : > { %v10448_v53 = vmax.f32 %v4689_v49, %v4381_v47  ;;  %v10450_v21 = vmax.f32 %v4710_v13, %v4382_v9  ;;  %v4383_v24 = vmax.f32 %v4127_v11, %v4135_v19  ;;  %v4404_v26 = vmax.f32 %v4128_v33, %v4136_v27 }
 0x622   : > { %v4425_v31 = vmax.f32 %v4129_v30, %v4137_v3  ;;  %v11539_v46 = vunpack.c.h.bf16 %v11412_v43  ;;  %v11540_v63 = vunpack.c.l.bf16 %v11417_v55  ;;  %v11541_v7 = vunpack.c.l.bf16 %v11413_v50 }
 0x623   : > { %v11542_v61 = vunpack.c.h.bf16 %v11417_v55  ;;  %v11544_v19 = vunpack.c.l.bf16 %v11418_v2  ;;  %v11545_v27 = vunpack.c.l.bf16 %v11414_v15  ;;  %v11546_v32 = vunpack.c.h.bf16 %v11418_v2 }
 0x624   : > { %v4446_v34 = vmax.f32 %v11539_v46, %v4138_v6  ;;  %v4467_v11 = vmax.f32 %v11541_v7, %v11540_v63  ;;  %v11547_v43 = vunpack.c.h.bf16 %v11414_v15  ;;  %v4397_v6 = vmax.f32 %v10292_v14, %v4383_v24 }
 0x625   : > { %v4488_v33 = vmax.f32 %v11543_v48, %v11542_v61  ;;  %v4509_v30 = vmax.f32 %v11545_v27, %v11544_v19  ;;  %v4418_v37 = vmax.f32 %v10294_v22, %v4404_v26  ;;  %v4439_v29 = vmax.f32 %v10296_v35, %v4425_v31 }
 0x626   : > { %v4530_v3 = vmax.f32 %v11547_v43, %v11546_v32  ;;  %v4460_v55 = vmax.f32 %v10298_v5, %v4446_v34  ;;  %v4481_v50 = vmax.f32 %v10300_v8, %v4467_v11  ;;  %v4398_v2 = vrot.slane %v4397_v6, 4 }
 0x627   : > { %v4502_v18 = vmax.f32 %v10302_v62, %v4488_v33  ;;  %v4523_v12 = vmax.f32 %v10304_v20, %v4509_v30  ;;  %v4419_v13 = vrot.slane %v4418_v37, 4  ;;  %v4440_v15 = vrot.slane %v4439_v29, 4 }
 0x628   : > { %v4544_v49 = vmax.f32 %v10306_v36, %v4530_v3  ;;  %v4461_v45 = vrot.slane %v4460_v55, 4  ;;  %v4482_v42 = vrot.slane %v4481_v50, 4  ;;  %v4399_v10 = vmax.f32 %v4397_v6, %v4398_v2 }
 0x629   : > { %v4503_v14 = vrot.slane %v4502_v18, 4  ;;  %v4524_v41 = vrot.slane %v4523_v12, 4  ;;  %v4420_v35 = vmax.f32 %v4418_v37, %v4419_v13  ;;  %v4441_v39 = vmax.f32 %v4439_v29, %v4440_v15 }
 0x62a   : > { %v4545_v22 = vrot.slane %v4544_v49, 4  ;;  %v4462_v5 = vmax.f32 %v4460_v55, %v4461_v45  ;;  %v4483_v44 = vmax.f32 %v4481_v50, %v4482_v42  ;;  %v4400_v51 = vrot.slane %v4399_v10, 2 }
 0x62b   : > { %v4504_v8 = vmax.f32 %v4502_v18, %v4503_v14  ;;  %v4525_v17 = vmax.f32 %v4523_v12, %v4524_v41  ;;  %v4421_v20 = vrot.slane %v4420_v35, 2  ;;  %v4442_v0 = vrot.slane %v4441_v39, 2 }
 0x62c   : > { %v4546_v62 = vmax.f32 %v4544_v49, %v4545_v22  ;;  %v4463_v36 = vrot.slane %v4462_v5, 2  ;;  %v4484_v54 = vrot.slane %v4483_v44, 2  ;;  %v4401_v26 = vmax.f32 %v4399_v10, %v4400_v51 }
 0x62d   : > { %v4505_v47 = vrot.slane %v4504_v8, 2  ;;  %v4526_v9 = vrot.slane %v4525_v17, 2  ;;  %v4422_v31 = vmax.f32 %v4420_v35, %v4421_v20  ;;  %v4443_v46 = vmax.f32 %v4441_v39, %v4442_v0 }
 0x62e   : > { %v4547_v24 = vrot.slane %v4546_v62, 2  ;;  %v4464_v34 = vmax.f32 %v4462_v5, %v4463_v36  ;;  %v4485_v63 = vmax.f32 %v4483_v44, %v4484_v54  ;;  %v4402_v48 = vrot.slane %v4401_v26, 1 }
 0x62f   : > { %v4506_v7 = vmax.f32 %v4504_v8, %v4505_v47  ;;  %v4527_v11 = vmax.f32 %v4525_v17, %v4526_v9  ;;  %v4423_v33 = vrot.slane %v4422_v31, 1  ;;  %v4444_v19 = vrot.slane %v4443_v46, 1 }
 0x630   : > { %v4548_v61 = vmax.f32 %v4546_v62, %v4547_v24  ;;  %v4465_v27 = vrot.slane %v4464_v34, 1  ;;  %v4486_v30 = vrot.slane %v4485_v63, 1  ;;  %v10492_v6 = vmax.f32 %v4401_v26, %v4402_v48 }
 0x631   : > { %v4507_v32 = vrot.slane %v4506_v7, 1  ;;  %v4528_v43 = vrot.slane %v4527_v11, 1  ;;  %v10494_v37 = vmax.f32 %v4422_v31, %v4423_v33  ;;  %v10496_v29 = vmax.f32 %v4443_v46, %v4444_v19 }
 0x632   : > { %v4549_v3 = vrot.slane %v4548_v61, 1  ;;  %v10498_v55 = vmax.f32 %v4464_v34, %v4465_v27  ;;  %v10500_v50 = vmax.f32 %v4485_v63, %v4486_v30  ;;  %v11548_v2 = vunpack.c.l.bf16 %v11479_v1 }
 0x633   : > { %v10502_v18 = vmax.f32 %v4506_v7, %v4507_v32  ;;  %v10504_v12 = vmax.f32 %v4527_v11, %v4528_v43  ;;  %v11549_v13 = vunpack.c.l.bf16 %v11475_v23  ;;  %v11550_v45 = vunpack.c.h.bf16 %v11479_v1 }
 0x634   : > { %v10506_v49 = vmax.f32 %v4548_v61, %v4549_v3  ;;  %v11551_v42 = vunpack.c.h.bf16 %v11475_v23  ;;  %v11552_v41 = vunpack.c.l.bf16 %v11480_v16  ;;  %v11553_v22 = vunpack.c.l.bf16 %v11476_v60 }
 0x635   : > { %v4551_v15 = vmax.f32 %v11549_v13, %v11548_v2  ;;  %v11554_v35 = vunpack.c.h.bf16 %v11480_v16  ;;  %v11555_v39 = vunpack.c.h.bf16 %v11476_v60  ;;  %v11556_v44 = vunpack.c.l.bf16 %v11481_v28 }
 0x636   : > { %v4572_v14 = vmax.f32 %v11551_v42, %v11550_v45  ;;  %v4593_v10 = vmax.f32 %v11553_v22, %v11552_v41  ;;  %v11557_v8 = vunpack.c.l.bf16 %v11477_v4  ;;  %v11558_v1 = vunpack.c.h.bf16 %v11481_v28 }
 0x637   : > { %v4614_v5 = vmax.f32 %v11555_v39, %v11554_v35  ;;  %v11559_v23 = vunpack.c.h.bf16 %v11477_v4  ;;  %v11560_v51 = vunpack.c.l.bf16 %v11482_v56  ;;  %v11561_v20 = vunpack.c.l.bf16 %v11478_v40 }
 0x638   : > { %v4635_v17 = vmax.f32 %v11557_v8, %v11556_v44  ;;  %v11562_v16 = vunpack.c.h.bf16 %v11482_v56  ;;  %v11563_v60 = vunpack.c.h.bf16 %v11478_v40  ;;  %v4565_v54 = vmax.f32 %v10436_v58, %v4551_v15 }
 0x639   : > { %v4656_v62 = vmax.f32 %v11559_v23, %v11558_v1  ;;  %v4677_v0 = vmax.f32 %v11561_v20, %v11560_v51  ;;  %v4586_v47 = vmax.f32 %v10438_v59, %v4572_v14  ;;  %v4607_v9 = vmax.f32 %v10440_v52, %v4593_v10 }
 0x63a   : > { %v4698_v36 = vmax.f32 %v11563_v60, %v11562_v16  ;;  %v4628_v28 = vmax.f32 %v10442_v38, %v4614_v5  ;;  %v4649_v4 = vmax.f32 %v10444_v57, %v4635_v17  ;;  %v4566_v56 = vrot.slane %v4565_v54, 4 }
 0x63b   : > { %v4670_v24 = vmax.f32 %v10446_v25, %v4656_v62  ;;  %v4691_v26 = vmax.f32 %v10448_v53, %v4677_v0  ;;  %v4587_v46 = vrot.slane %v4586_v47, 4  ;;  %v4608_v40 = vrot.slane %v4607_v9, 4 }
 0x63c   : > { %v4712_v31 = vmax.f32 %v10450_v21, %v4698_v36  ;;  %v4629_v34 = vrot.slane %v4628_v28, 4  ;;  %v4650_v63 = vrot.slane %v4649_v4, 4  ;;  %v4567_v11 = vmax.f32 %v4565_v54, %v4566_v56 }
 0x63d   : > { %v4671_v58 = vrot.slane %v4670_v24, 4  ;;  %v4692_v7 = vrot.slane %v4691_v26, 4  ;;  %v4588_v52 = vmax.f32 %v4586_v47, %v4587_v46  ;;  %v4609_v61 = vmax.f32 %v4607_v9, %v4608_v40 }
 0x63e   : > { %v4713_v59 = vrot.slane %v4712_v31, 4  ;;  %v4630_v38 = vmax.f32 %v4628_v28, %v4629_v34  ;;  %v4651_v48 = vmax.f32 %v4649_v4, %v4650_v63  ;;  %v4568_v19 = vrot.slane %v4567_v11, 2 }
 0x63f   : > { %v4672_v57 = vmax.f32 %v4670_v24, %v4671_v58  ;;  %v4693_v33 = vmax.f32 %v4691_v26, %v4692_v7  ;;  %v4589_v53 = vrot.slane %v4588_v52, 2  ;;  %v4610_v27 = vrot.slane %v4609_v61, 2 }
 0x640   : > { %v4714_v25 = vmax.f32 %v4712_v31, %v4713_v59  ;;  %v4631_v21 = vrot.slane %v4630_v38, 2  ;;  %v4652_v30 = vrot.slane %v4651_v48, 2  ;;  %v4569_v2 = vmax.f32 %v4567_v11, %v4568_v19 }
 0x641   : > { %v4673_v32 = vrot.slane %v4672_v57, 2  ;;  %v4694_v43 = vrot.slane %v4693_v33, 2  ;;  %v4590_v13 = vmax.f32 %v4588_v52, %v4589_v53  ;;  %v4611_v15 = vmax.f32 %v4609_v61, %v4610_v27 }
 0x642   : > { %v4715_v3 = vrot.slane %v4714_v25, 2  ;;  %v4632_v45 = vmax.f32 %v4630_v38, %v4631_v21  ;;  %v4653_v42 = vmax.f32 %v4651_v48, %v4652_v30  ;;  %v4570_v10 = vrot.slane %v4569_v2, 1 }
 0x643   : > { %v4674_v14 = vmax.f32 %v4672_v57, %v4673_v32  ;;  %v4695_v41 = vmax.f32 %v4693_v33, %v4694_v43  ;;  %v4591_v35 = vrot.slane %v4590_v13, 1  ;;  %v4612_v39 = vrot.slane %v4611_v15, 1 }
 0x644   : > { %v4716_v22 = vmax.f32 %v4714_v25, %v4715_v3  ;;  %v4633_v5 = vrot.slane %v4632_v45, 1  ;;  %v4654_v44 = vrot.slane %v4653_v42, 1  ;;  %v4571_v23 = vmax.f32 %v4569_v2, %v4570_v10 }
 0x645   : > { %v4675_v8 = vrot.slane %v4674_v14, 1  ;;  %v4696_v17 = vrot.slane %v4695_v41, 1  ;;  %v4592_v62 = vmax.f32 %v4590_v13, %v4591_v35  ;;  %v4613_v51 = vmax.f32 %v4611_v15, %v4612_v39 }
 0x646   : > { %v4717_v1 = vrot.slane %v4716_v22, 1  ;;  %v4634_v20 = vmax.f32 %v4632_v45, %v4633_v5  ;;  %v4655_v0 = vmax.f32 %v4653_v42, %v4654_v44  ;;  %v4719_v54 = vpack.c.bf16 %v10494_v37, %v10492_v6  ;;  %v4125_v5 = vld [vmem:[#allocation2] sm:$0xff] }
 0x647   : > { %v4676_v16 = vmax.f32 %v4674_v14, %v4675_v8  ;;  %v4697_v60 = vmax.f32 %v4695_v41, %v4696_v17  ;;  %v4720_v47 = vpack.c.bf16 %v10498_v55, %v10496_v29  ;;  %v4721_v9 = vpack.c.bf16 %v10502_v18, %v10500_v50  ;;  %v4126_v17 = vld [vmem:[#allocation2 + $0x8] sm:$0xff] }
 0x648   : > { %v4718_v36 = vmax.f32 %v4716_v22, %v4717_v1  ;;  %v4722_v28 = vpack.c.bf16 %v10506_v49, %v10504_v12  ;;  %v4723_v4 = vpack.c.bf16 %v4592_v62, %v4571_v23  ;;  %v4724_v24 = vpack.c.bf16 %v4634_v20, %v4613_v51 }
 0x649   : > { %v4725_v26 = vpack.c.bf16 %v4676_v16, %v4655_v0  ;;  %v4727_v56 = vunpack.c.l.bf16 %v4719_v54  ;;  %v4728_v46 = vunpack.c.h.bf16 %v4719_v54  ;;  %v4729_v40 = vunpack.c.l.bf16 %v4720_v47 }
 0x64a   : > { %v4726_v31 = vpack.c.bf16 %v4718_v36, %v4697_v60  ;;  %v4730_v34 = vunpack.c.h.bf16 %v4720_v47  ;;  %v4731_v63 = vunpack.c.l.bf16 %v4721_v9  ;;  %v4732_v58 = vunpack.c.h.bf16 %v4721_v9 }
 0x64b   : > { %v4733_v6 = vunpack.c.l.bf16 %v4722_v28  ;;  %v4734_v37 = vunpack.c.h.bf16 %v4722_v28  ;;  %v4735_v7 = vunpack.c.l.bf16 %v4723_v4  ;;  %v4736_v29 = vunpack.c.h.bf16 %v4723_v4 }
 0x64c   : > { %v4737_v55 = vunpack.c.l.bf16 %v4724_v24  ;;  %v4738_v59 = vunpack.c.h.bf16 %v4724_v24  ;;  %v4739_v50 = vunpack.c.l.bf16 %v4725_v26  ;;  %v4740_v18 = vunpack.c.h.bf16 %v4725_v26 }
 0x64d   : > { %v4741_v11 = vunpack.c.l.bf16 %v4726_v31  ;;  %v4742_v12 = vunpack.c.h.bf16 %v4726_v31  ;;  %v4759_v49 = vrot.slane %v4728_v46, 6  ;;  %v4760_v52 = vrot.slane %v4729_v40, 4 }
 0x64e   : > { %v4761_v61 = vrot.slane %v4730_v34, 2  ;;  %v4762_v38 = vrot.slane %v4732_v58, 6  ;;  %v4763_v48 = vrot.slane %v4733_v6, 4  ;;  %v4764_v57 = vrot.slane %v4734_v37, 2 }
 0x64f   : > { %v4765_v33 = vrot.slane %v4736_v29, 6  ;;  %v4766_v25 = vrot.slane %v4737_v55, 4  ;;  %v4767_v19 = vrot.slane %v4738_v59, 2  ;;  %v4768_v53 = vrot.slane %v4740_v18, 6 }
 0x650   : > { %v4769_v27 = vrot.slane %v4741_v11, 4  ;;  %v4770_v21 = vrot.slane %v4742_v12, 2  ;;  %v4772_v30 = vsel %vm4771_vm10, %v4727_v56, %v4759_v49  ;;  %v4774_v32 = vsel %vm4773_vm11, %v4760_v52, %v4761_v61 }
 0x651   : > { %v4777_v43 = vsel %vm4771_vm10, %v4731_v63, %v4762_v38  ;;  %v4778_v3 = vsel %vm4773_vm11, %v4763_v48, %v4764_v57  ;;  %v4780_v2 = vsel %vm4771_vm10, %v4735_v7, %v4765_v33  ;;  %v4781_v13 = vsel %vm4773_vm11, %v4766_v25, %v4767_v19 }
 0x652   : > { %v4776_v15 = vsel %vm4775_vm12, %v4772_v30, %v4774_v32  ;;  %v4782_v45 = vsel %vm4775_vm12, %v4780_v2, %v4781_v13  ;;  %v4783_v42 = vsel %vm4771_vm10, %v4739_v50, %v4768_v53  ;;  %v4784_v14 = vsel %vm4773_vm11, %v4769_v27, %v4770_v21 }
 0x653   : > { %v4779_v41 = vsel %vm4775_vm12, %v4777_v43, %v4778_v3  ;;  %v4785_v22 = vsel %vm4775_vm12, %v4783_v42, %v4784_v14  ;;  %v4790_v10 = vrot.slane %v4782_v45, 7  ;;  %vm4795_vm2 = vcmask 1045509  }
 0x654   : > { %v4801_v35 = vrot.slane %v4785_v22, 7  ;;  %vm4797_vm4 = vcmask 1047559  }
 0x655   : > { %v4792_v39 = vsel %vm4791_vm14, %v4790_v10, %v4776_v15 }
 0x656   : > { %v4794_v44 = vsel %vm4793_vm0, %v4790_v10, %v4792_v39  ;;  %v4802_v8 = vsel %vm4791_vm14, %v4801_v35, %v4779_v41 }
 0x657   : > { %v4796_v1 = vsel %vm4795_vm2, %v4790_v10, %v4794_v44  ;;  %v4803_v23 = vsel %vm4793_vm0, %v4801_v35, %v4802_v8 }
 0x658   : > { %v4798_v62 = vsel %vm4797_vm4, %v4790_v10, %v4796_v1  ;;  %v4804_v51 = vsel %vm4795_vm2, %v4801_v35, %v4803_v23 }
 0x659   : > { %v4805_v20 = vsel %vm4797_vm4, %v4801_v35, %v4804_v51  ;;  %v4808_v0 = vmax.f32 %v4125_v5, %v4798_v62 }
 0x65a   : > { %v4809_v16 = vmax.f32 %v4126_v17, %v4805_v20 }
 0x65b   : > { %4810 = vst [vmem:[#allocation2] sm:$0xff] %v4808_v0 }
 0x65c   : > { %4811 = vst [vmem:[#allocation2 + $0x8] sm:$0xff] %v4809_v16 }
 0x65d PF: > { %4814 = sbr.rel (%p6931_p13) target bundleno = 2676 (0xa74), region = 174 }
 0x662   : > { %v4877_v60 = vld [vmem:[#allocation15 + $0x1e0] sm:$0xff]  ;;  %vm6376_vm6 = vcmask 1041408  }
 0x663   : > { %v4941_v36 = vld [vmem:[#allocation15 + $0x3e0] sm:$0xff]  ;;  %5360 = vmatpush.msra.mxu0 %v4877_v60 }
 0x664   : > { %v5005_v54 = vld [vmem:[#allocation15 + $0x5e0] sm:$0xff]  ;;  %5380 = vmatpush.msra.mxu1 %v4941_v36 }
 0x665   : > { %v4873_v47 = vld [vmem:[#allocation15 + $0x1c0] sm:$0xff]  ;;  %5400 = vmatpush.msra.mxu2 %v5005_v54 }
 0x666   : > { %v4937_v9 = vld [vmem:[#allocation15 + $0x3c0] sm:$0xff]  ;;  %5361 = vmatpush.msra.mxu0 %v4873_v47 }
 0x667   : > { %v5001_v28 = vld [vmem:[#allocation15 + $0x5c0] sm:$0xff]  ;;  %5381 = vmatpush.msra.mxu1 %v4937_v9 }
 0x668   : > { %v5069_v4 = vld [vmem:[#allocation15 + $0x7e0] sm:$0xff]  ;;  %5401 = vmatpush.msra.mxu2 %v5001_v28 }
 0x669   : > { %v4869_v24 = vld [vmem:[#allocation15 + $0x1a0] sm:$0xff]  ;;  %5420 = vmatpush.msra.mxu3 %v5069_v4 }
 0x66a   : > { %v4933_v26 = vld [vmem:[#allocation15 + $0x3a0] sm:$0xff]  ;;  %5362 = vmatpush.msra.mxu0 %v4869_v24 }
 0x66b   : > { %v4997_v31 = vld [vmem:[#allocation15 + $0x5a0] sm:$0xff]  ;;  %5382 = vmatpush.msra.mxu1 %v4933_v26 }
 0x66c   : > { %v5065_v56 = vld [vmem:[#allocation15 + $0x7c0] sm:$0xff]  ;;  %5402 = vmatpush.msra.mxu2 %v4997_v31 }
 0x66d   : > { %v4865_v46 = vld [vmem:[#allocation15 + $0x180] sm:$0xff]  ;;  %5421 = vmatpush.msra.mxu3 %v5065_v56 }
 0x66e   : > { %v4929_v40 = vld [vmem:[#allocation15 + $0x380] sm:$0xff]  ;;  %5363 = vmatpush.msra.mxu0 %v4865_v46 }
 0x66f   : > { %v4993_v34 = vld [vmem:[#allocation15 + $0x580] sm:$0xff]  ;;  %5383 = vmatpush.msra.mxu1 %v4929_v40 }
 0x670   : > { %v5061_v63 = vld [vmem:[#allocation15 + $0x7a0] sm:$0xff]  ;;  %5403 = vmatpush.msra.mxu2 %v4993_v34 }
 0x671   : > { %v4861_v58 = vld [vmem:[#allocation15 + $0x160] sm:$0xff]  ;;  %5422 = vmatpush.msra.mxu3 %v5061_v63 }
 0x672   : > { %v4925_v6 = vld [vmem:[#allocation15 + $0x360] sm:$0xff]  ;;  %5364 = vmatpush.msra.mxu0 %v4861_v58 }
 0x673   : > { %v4989_v37 = vld [vmem:[#allocation15 + $0x560] sm:$0xff]  ;;  %5384 = vmatpush.msra.mxu1 %v4925_v6 }
 0x674   : > { %v5057_v7 = vld [vmem:[#allocation15 + $0x780] sm:$0xff]  ;;  %5404 = vmatpush.msra.mxu2 %v4989_v37 }
 0x675   : > { %v4857_v29 = vld [vmem:[#allocation15 + $0x140] sm:$0xff]  ;;  %5423 = vmatpush.msra.mxu3 %v5057_v7 }
 0x676   : > { %v4921_v55 = vld [vmem:[#allocation15 + $0x340] sm:$0xff]  ;;  %5365 = vmatpush.msra.mxu0 %v4857_v29 }
 0x677   : > { %v4985_v59 = vld [vmem:[#allocation15 + $0x540] sm:$0xff]  ;;  %5385 = vmatpush.msra.mxu1 %v4921_v55 }
 0x678   : > { %v5053_v50 = vld [vmem:[#allocation15 + $0x760] sm:$0xff]  ;;  %5405 = vmatpush.msra.mxu2 %v4985_v59 }
 0x679   : > { %v4853_v18 = vld [vmem:[#allocation15 + $0x120] sm:$0xff]  ;;  %5424 = vmatpush.msra.mxu3 %v5053_v50 }
 0x67a   : > { %v4917_v11 = vld [vmem:[#allocation15 + $0x320] sm:$0xff]  ;;  %5366 = vmatpush.msra.mxu0 %v4853_v18 }
 0x67b   : > { %v4981_v12 = vld [vmem:[#allocation15 + $0x520] sm:$0xff]  ;;  %5386 = vmatpush.msra.mxu1 %v4917_v11 }
 0x67c   : > { %v5049_v49 = vld [vmem:[#allocation15 + $0x740] sm:$0xff]  ;;  %5406 = vmatpush.msra.mxu2 %v4981_v12 }
 0x67d   : > { %v4849_v52 = vld [vmem:[#allocation15 + $0x100] sm:$0xff]  ;;  %5425 = vmatpush.msra.mxu3 %v5049_v49 }
 0x67e   : > { %v4913_v61 = vld [vmem:[#allocation15 + $0x300] sm:$0xff]  ;;  %5367 = vmatpush.msra.mxu0 %v4849_v52 }
 0x67f   : > { %v4977_v38 = vld [vmem:[#allocation15 + $0x500] sm:$0xff]  ;;  %5387 = vmatpush.msra.mxu1 %v4913_v61 }
 0x680   : > { %v5045_v48 = vld [vmem:[#allocation15 + $0x720] sm:$0xff]  ;;  %5407 = vmatpush.msra.mxu2 %v4977_v38 }
 0x681   : > { %v4845_v57 = vld [vmem:[#allocation15 + $0xe0] sm:$0xff]  ;;  %5426 = vmatpush.msra.mxu3 %v5045_v48 }
 0x682   : > { %v4909_v33 = vld [vmem:[#allocation15 + $0x2e0] sm:$0xff]  ;;  %5368 = vmatpush.msra.mxu0 %v4845_v57 }
 0x683   : > { %v4973_v25 = vld [vmem:[#allocation15 + $0x4e0] sm:$0xff]  ;;  %5388 = vmatpush.msra.mxu1 %v4909_v33 }
 0x684   : > { %v5041_v19 = vld [vmem:[#allocation15 + $0x700] sm:$0xff]  ;;  %5408 = vmatpush.msra.mxu2 %v4973_v25 }
 0x685   : > { %v4841_v53 = vld [vmem:[#allocation15 + $0xc0] sm:$0xff]  ;;  %5427 = vmatpush.msra.mxu3 %v5041_v19 }
 0x686   : > { %v4905_v27 = vld [vmem:[#allocation15 + $0x2c0] sm:$0xff]  ;;  %5369 = vmatpush.msra.mxu0 %v4841_v53 }
 0x687   : > { %v4969_v21 = vld [vmem:[#allocation15 + $0x4c0] sm:$0xff]  ;;  %5389 = vmatpush.msra.mxu1 %v4905_v27 }
 0x688   : > { %v5037_v30 = vld [vmem:[#allocation15 + $0x6e0] sm:$0xff]  ;;  %5409 = vmatpush.msra.mxu2 %v4969_v21 }
 0x689   : > { %v4837_v32 = vld [vmem:[#allocation15 + $0xa0] sm:$0xff]  ;;  %5428 = vmatpush.msra.mxu3 %v5037_v30 }
 0x68a   : > { %v4901_v43 = vld [vmem:[#allocation15 + $0x2a0] sm:$0xff]  ;;  %5370 = vmatpush.msra.mxu0 %v4837_v32 }
 0x68b   : > { %v4965_v3 = vld [vmem:[#allocation15 + $0x4a0] sm:$0xff]  ;;  %5390 = vmatpush.msra.mxu1 %v4901_v43 }
 0x68c   : > { %v5033_v2 = vld [vmem:[#allocation15 + $0x6c0] sm:$0xff]  ;;  %5410 = vmatpush.msra.mxu2 %v4965_v3 }
 0x68d   : > { %v4833_v13 = vld [vmem:[#allocation15 + $0x80] sm:$0xff]  ;;  %5429 = vmatpush.msra.mxu3 %v5033_v2 }
 0x68e   : > { %v4897_v15 = vld [vmem:[#allocation15 + $0x280] sm:$0xff]  ;;  %5371 = vmatpush.msra.mxu0 %v4833_v13 }
 0x68f   : > { %v4961_v45 = vld [vmem:[#allocation15 + $0x480] sm:$0xff]  ;;  %5391 = vmatpush.msra.mxu1 %v4897_v15 }
 0x690   : > { %v5029_v42 = vld [vmem:[#allocation15 + $0x6a0] sm:$0xff]  ;;  %5411 = vmatpush.msra.mxu2 %v4961_v45 }
 0x691   : > { %v4829_v14 = vld [vmem:[#allocation15 + $0x60] sm:$0xff]  ;;  %5430 = vmatpush.msra.mxu3 %v5029_v42 }
 0x692   : > { %v4893_v41 = vld [vmem:[#allocation15 + $0x260] sm:$0xff]  ;;  %5372 = vmatpush.msra.mxu0 %v4829_v14 }
 0x693   : > { %v4957_v22 = vld [vmem:[#allocation15 + $0x460] sm:$0xff]  ;;  %5392 = vmatpush.msra.mxu1 %v4893_v41 }
 0x694   : > { %v5025_v10 = vld [vmem:[#allocation15 + $0x680] sm:$0xff]  ;;  %5412 = vmatpush.msra.mxu2 %v4957_v22 }
 0x695   : > { %v4825_v35 = vld [vmem:[#allocation15 + $0x40] sm:$0xff]  ;;  %5431 = vmatpush.msra.mxu3 %v5025_v10 }
 0x696   : > { %v4889_v39 = vld [vmem:[#allocation15 + $0x240] sm:$0xff]  ;;  %5373 = vmatpush.msra.mxu0 %v4825_v35 }
 0x697   : > { %v4953_v5 = vld [vmem:[#allocation15 + $0x440] sm:$0xff]  ;;  %5393 = vmatpush.msra.mxu1 %v4889_v39 }
 0x698   : > { %v5021_v44 = vld [vmem:[#allocation15 + $0x660] sm:$0xff]  ;;  %5413 = vmatpush.msra.mxu2 %v4953_v5 }
 0x699   : > { %v4821_v8 = vld [vmem:[#allocation15 + $0x20] sm:$0xff]  ;;  %5432 = vmatpush.msra.mxu3 %v5021_v44 }
 0x69a   : > { %v4885_v17 = vld [vmem:[#allocation15 + $0x220] sm:$0xff]  ;;  %5374 = vmatpush.msra.mxu0 %v4821_v8 }
 0x69b   : > { %v4949_v1 = vld [vmem:[#allocation15 + $0x420] sm:$0xff]  ;;  %5394 = vmatpush.msra.mxu1 %v4885_v17 }
 0x69c   : > { %v5017_v23 = vld [vmem:[#allocation15 + $0x640] sm:$0xff]  ;;  %5414 = vmatpush.msra.mxu2 %v4949_v1 }
 0x69d   : > { %v4817_v62 = vld [vmem:[#allocation15] sm:$0xff]  ;;  %5433 = vmatpush.msra.mxu3 %v5017_v23 }
 0x69e   : > { %v4881_v51 = vld [vmem:[#allocation15 + $0x200] sm:$0xff]  ;;  %5375 = vmatpush.msra.mxu0 %v4817_v62 }
 0x69f   : > { %v4945_v20 = vld [vmem:[#allocation15 + $0x400] sm:$0xff]  ;;  %5395 = vmatpush.msra.mxu1 %v4881_v51 }
 0x6a0   : > { %v5013_v0 = vld [vmem:[#allocation15 + $0x620] sm:$0xff]  ;;  %5415 = vmatpush.msra.mxu2 %v4945_v20 }
 0x6a1   : > { %v5133_v16 = vld [vmem:[#allocation15 + $0x9e0] sm:$0xff]  ;;  %5434 = vmatpush.msra.mxu3 %v5013_v0 }
 0x6a2   : > { %v5197_v60 = vld [vmem:[#allocation15 + $0xbe0] sm:$0xff]  ;;  %5440 = vmatpush.msrb.mxu0 %v5133_v16 }
 0x6a3   : > { %v5261_v36 = vld [vmem:[#allocation15 + $0xde0] sm:$0xff]  ;;  %5460 = vmatpush.msrb.mxu1 %v5197_v60 }
 0x6a4   : > { %v5009_v54 = vld [vmem:[#allocation15 + $0x600] sm:$0xff]  ;;  %5480 = vmatpush.msrb.mxu2 %v5261_v36 }
 0x6a5   : > { %v5129_v47 = vld [vmem:[#allocation15 + $0x9c0] sm:$0xff]  ;;  %5435 = vmatpush.msra.mxu3 %v5009_v54 }
 0x6a6   : > { %v5193_v9 = vld [vmem:[#allocation15 + $0xbc0] sm:$0xff]  ;;  %5441 = vmatpush.msrb.mxu0 %v5129_v47 }
 0x6a7   : > { %v5257_v28 = vld [vmem:[#allocation15 + $0xdc0] sm:$0xff]  ;;  %5461 = vmatpush.msrb.mxu1 %v5193_v9  ;;  %v4878_v9 = vld [vmem:[#allocation15 + $0x1e8] sm:$0xff] }
 0x6a8   : > { %v5325_v4 = vld [vmem:[#allocation15 + $0xfe0] sm:$0xff]  ;;  %5481 = vmatpush.msrb.mxu2 %v5257_v28  ;;  %v4942_v28 = vld [vmem:[#allocation15 + $0x3e8] sm:$0xff] }
 0x6a9   : > { %v5125_v24 = vld [vmem:[#allocation15 + $0x9a0] sm:$0xff]  ;;  %5500 = vmatpush.msrb.mxu3 %v5325_v4  ;;  %v5006_v4 = vld [vmem:[#allocation15 + $0x5e8] sm:$0xff] }
 0x6aa   : > { %v5189_v26 = vld [vmem:[#allocation15 + $0xba0] sm:$0xff]  ;;  %5442 = vmatpush.msrb.mxu0 %v5125_v24 }
 0x6ab   : > { %v5253_v31 = vld [vmem:[#allocation15 + $0xda0] sm:$0xff]  ;;  %5462 = vmatpush.msrb.mxu1 %v5189_v26  ;;  %v4874_v26 = vld [vmem:[#allocation15 + $0x1c8] sm:$0xff] }
 0x6ac   : > { %v5321_v56 = vld [vmem:[#allocation15 + $0xfc0] sm:$0xff]  ;;  %5482 = vmatpush.msrb.mxu2 %v5253_v31 }
 0x6ad   : > { %v5121_v46 = vld [vmem:[#allocation15 + $0x980] sm:$0xff]  ;;  %5501 = vmatpush.msrb.mxu3 %v5321_v56  ;;  %v4938_v56 = vld [vmem:[#allocation15 + $0x3c8] sm:$0xff] }
 0x6ae   : > { %v5185_v40 = vld [vmem:[#allocation15 + $0xb80] sm:$0xff]  ;;  %5443 = vmatpush.msrb.mxu0 %v5121_v46  ;;  %v5002_v46 = vld [vmem:[#allocation15 + $0x5c8] sm:$0xff] }
 0x6af   : > { %v5249_v34 = vld [vmem:[#allocation15 + $0xd80] sm:$0xff]  ;;  %5463 = vmatpush.msrb.mxu1 %v5185_v40  ;;  %v5070_v40 = vld [vmem:[#allocation15 + $0x7e8] sm:$0xff] }
 0x6b0   : > { %v5317_v63 = vld [vmem:[#allocation15 + $0xfa0] sm:$0xff]  ;;  %5483 = vmatpush.msrb.mxu2 %v5249_v34  ;;  %v4870_v34 = vld [vmem:[#allocation15 + $0x1a8] sm:$0xff] }
 0x6b1   : > { %v5117_v58 = vld [vmem:[#allocation15 + $0x960] sm:$0xff]  ;;  %5502 = vmatpush.msrb.mxu3 %v5317_v63  ;;  %v4934_v63 = vld [vmem:[#allocation15 + $0x3a8] sm:$0xff] }
 0x6b2   : > { %v5181_v6 = vld [vmem:[#allocation15 + $0xb60] sm:$0xff]  ;;  %5444 = vmatpush.msrb.mxu0 %v5117_v58  ;;  %v4998_v58 = vld [vmem:[#allocation15 + $0x5a8] sm:$0xff] }
 0x6b3   : > { %v5245_v37 = vld [vmem:[#allocation15 + $0xd60] sm:$0xff]  ;;  %5464 = vmatpush.msrb.mxu1 %v5181_v6  ;;  %v5066_v6 = vld [vmem:[#allocation15 + $0x7c8] sm:$0xff] }
 0x6b4   : > { %v5313_v7 = vld [vmem:[#allocation15 + $0xf80] sm:$0xff]  ;;  %5484 = vmatpush.msrb.mxu2 %v5245_v37  ;;  %v4866_v37 = vld [vmem:[#allocation15 + $0x188] sm:$0xff] }
 0x6b5   : > { %v5113_v29 = vld [vmem:[#allocation15 + $0x940] sm:$0xff]  ;;  %5503 = vmatpush.msrb.mxu3 %v5313_v7  ;;  %v4930_v7 = vld [vmem:[#allocation15 + $0x388] sm:$0xff] }
 0x6b6   : > { %v5177_v55 = vld [vmem:[#allocation15 + $0xb40] sm:$0xff]  ;;  %5445 = vmatpush.msrb.mxu0 %v5113_v29  ;;  %v4994_v29 = vld [vmem:[#allocation15 + $0x588] sm:$0xff] }
 0x6b7   : > { %v5241_v59 = vld [vmem:[#allocation15 + $0xd40] sm:$0xff]  ;;  %5465 = vmatpush.msrb.mxu1 %v5177_v55  ;;  %v5062_v55 = vld [vmem:[#allocation15 + $0x7a8] sm:$0xff] }
 0x6b8   : > { %v5309_v50 = vld [vmem:[#allocation15 + $0xf60] sm:$0xff]  ;;  %5485 = vmatpush.msrb.mxu2 %v5241_v59 }
 0x6b9   : > { %v5109_v18 = vld [vmem:[#allocation15 + $0x920] sm:$0xff]  ;;  %5504 = vmatpush.msrb.mxu3 %v5309_v50  ;;  %v4862_v50 = vld [vmem:[#allocation15 + $0x168] sm:$0xff] }
 0x6ba   : > { %v5173_v11 = vld [vmem:[#allocation15 + $0xb20] sm:$0xff]  ;;  %5446 = vmatpush.msrb.mxu0 %v5109_v18  ;;  %v4926_v18 = vld [vmem:[#allocation15 + $0x368] sm:$0xff] }
 0x6bb   : > { %v4815_v12 = vld [vmem:[#allocation2] sm:$0xff]  ;;  %5466 = vmatpush.msrb.mxu1 %v5173_v11  ;;  %v4816_v30 = vld [vmem:[#allocation2 + $0x8] sm:$0xff] }
 0x6bc   : > { %v5237_v49 = vld [vmem:[#allocation15 + $0xd20] sm:$0xff]  ;;  %5341 = vst [vmem:[#allocation1] ss:$4 sm:$0xff] %v4815_v12  ;;  %v4990_v11 = vld [vmem:[#allocation15 + $0x568] sm:$0xff] }
 0x6bd   : > { %v5305_v52 = vld [vmem:[#allocation15 + $0xf40] sm:$0xff]  ;;  %5486 = vmatpush.msrb.mxu2 %v5237_v49  ;;  %5343 = vst [vmem:[#allocation1 + $0x20] ss:$4 sm:$0xff] %v4816_v30  ;;  %v5058_v12 = vld [vmem:[#allocation15 + $0x788] sm:$0xff] }
 0x6be   : > { %v5105_v61 = vld [vmem:[#allocation15 + $0x900] sm:$0xff]  ;;  %5505 = vmatpush.msrb.mxu3 %v5305_v52  ;;  %v4914_v30 = vld [vmem:[#allocation15 + $0x308] sm:$0xff] }
 0x6bf   : > { %v5169_v38 = vld [vmem:[#allocation15 + $0xb00] sm:$0xff]  ;;  %5447 = vmatpush.msrb.mxu0 %v5105_v61  ;;  %v4858_v61 = vld [vmem:[#allocation15 + $0x148] sm:$0xff] }
 0x6c0   : > { %v5233_v48 = vld [vmem:[#allocation15 + $0xd00] sm:$0xff]  ;;  %5467 = vmatpush.msrb.mxu1 %v5169_v38  ;;  %v4922_v38 = vld [vmem:[#allocation15 + $0x348] sm:$0xff] }
 0x6c1   : > { %v5301_v57 = vld [vmem:[#allocation15 + $0xf20] sm:$0xff]  ;;  %5487 = vmatpush.msrb.mxu2 %v5233_v48  ;;  %v4986_v48 = vld [vmem:[#allocation15 + $0x548] sm:$0xff] }
 0x6c2   : > { %v5101_v33 = vld [vmem:[#allocation15 + $0x8e0] sm:$0xff]  ;;  %5506 = vmatpush.msrb.mxu3 %v5301_v57  ;;  %v5054_v57 = vld [vmem:[#allocation15 + $0x768] sm:$0xff] }
 0x6c3   : > { %v5165_v25 = vld [vmem:[#allocation15 + $0xae0] sm:$0xff]  ;;  %5448 = vmatpush.msrb.mxu0 %v5101_v33  ;;  %v10558_v36 = vld.sshfl [vmem:[#allocation1] sm:$0xff pattern:$0x73625140] }
 0x6c4   : > { %v5229_v19 = vld [vmem:[#allocation15 + $0xce0] sm:$0xff]  ;;  %5468 = vmatpush.msrb.mxu1 %v5165_v25  ;;  %5376 = vmatmul.f32.vlgmr.msra.gmra.mxu0 %v10558_v36  ;;  %v10567_v31 = vld.sshfl [vmem:[#allocation1 + $0x18] sm:$0xff pattern:$0x73625140] }
 0x6c5   : > { %v5297_v53 = vld [vmem:[#allocation15 + $0xf00] sm:$0xff]  ;;  %5488 = vmatpush.msrb.mxu2 %v5229_v19  ;;  %5436 = vmatmul.f32.vlgmr.msra.gmra.mxu3 %v10567_v31  ;;  %v10572_v49 = vld.sshfl [vmem:[#allocation1 + $0x20] sm:$0xff pattern:$0x73625140]  ;;  %v4854_v25 = vld [vmem:[#allocation15 + $0x128] sm:$0xff] }
 0x6c6   : > { %v5097_v27 = vld [vmem:[#allocation15 + $0x8c0] sm:$0xff]  ;;  %5507 = vmatpush.msrb.mxu3 %v5297_v53  ;;  %v10575_v52 = vld.sshfl [vmem:[#allocation1 + $0x38] sm:$0xff pattern:$0x73625140] }
 0x6c7   : > { %v5161_v21 = vld [vmem:[#allocation15 + $0xac0] sm:$0xff]  ;;  %5449 = vmatpush.msrb.mxu0 %v5097_v27  ;;  %v4918_v19 = vld [vmem:[#allocation15 + $0x328] sm:$0xff] }
 0x6c8   : > { %v5225_v32 = vld [vmem:[#allocation15 + $0xcc0] sm:$0xff]  ;;  %5469 = vmatpush.msrb.mxu1 %v5161_v21  ;;  %v4982_v53 = vld [vmem:[#allocation15 + $0x528] sm:$0xff] }
 0x6c9   : > { %v5293_v43 = vld [vmem:[#allocation15 + $0xee0] sm:$0xff]  ;;  %5489 = vmatpush.msrb.mxu2 %v5225_v32  ;;  %v5050_v27 = vld [vmem:[#allocation15 + $0x748] sm:$0xff] }
 0x6ca   : > { %v5093_v3 = vld [vmem:[#allocation15 + $0x8a0] sm:$0xff]  ;;  %5508 = vmatpush.msrb.mxu3 %v5293_v43  ;;  %v4850_v21 = vld [vmem:[#allocation15 + $0x108] sm:$0xff] }
 0x6cb   : > { %v5157_v2 = vld [vmem:[#allocation15 + $0xaa0] sm:$0xff]  ;;  %5450 = vmatpush.msrb.mxu0 %v5093_v3  ;;  %v4978_v32 = vld [vmem:[#allocation15 + $0x508] sm:$0xff] }
 0x6cc   : > { %v5221_v13 = vld [vmem:[#allocation15 + $0xca0] sm:$0xff]  ;;  %5470 = vmatpush.msrb.mxu1 %v5157_v2  ;;  %v5046_v43 = vld [vmem:[#allocation15 + $0x728] sm:$0xff] }
 0x6cd   : > { %v5289_v15 = vld [vmem:[#allocation15 + $0xec0] sm:$0xff]  ;;  %5490 = vmatpush.msrb.mxu2 %v5221_v13  ;;  %v4846_v3 = vld [vmem:[#allocation15 + $0xe8] sm:$0xff] }
 0x6ce   : > { %v5089_v45 = vld [vmem:[#allocation15 + $0x880] sm:$0xff]  ;;  %5509 = vmatpush.msrb.mxu3 %v5289_v15  ;;  %v4910_v2 = vld [vmem:[#allocation15 + $0x2e8] sm:$0xff] }
 0x6cf   : > { %v5153_v42 = vld [vmem:[#allocation15 + $0xa80] sm:$0xff]  ;;  %5451 = vmatpush.msrb.mxu0 %v5089_v45  ;;  %v4974_v13 = vld [vmem:[#allocation15 + $0x4e8] sm:$0xff] }
 0x6d0   : > { %v5217_v14 = vld [vmem:[#allocation15 + $0xc80] sm:$0xff]  ;;  %5471 = vmatpush.msrb.mxu1 %v5153_v42  ;;  %v5042_v15 = vld [vmem:[#allocation15 + $0x708] sm:$0xff] }
 0x6d1   : > { %v5285_v41 = vld [vmem:[#allocation15 + $0xea0] sm:$0xff]  ;;  %5491 = vmatpush.msrb.mxu2 %v5217_v14  ;;  %v4842_v45 = vld [vmem:[#allocation15 + $0xc8] sm:$0xff] }
 0x6d2   : > { %v5085_v22 = vld [vmem:[#allocation15 + $0x860] sm:$0xff]  ;;  %5510 = vmatpush.msrb.mxu3 %v5285_v41  ;;  %v4906_v42 = vld [vmem:[#allocation15 + $0x2c8] sm:$0xff] }
 0x6d3   : > { %v5149_v10 = vld [vmem:[#allocation15 + $0xa60] sm:$0xff]  ;;  %5452 = vmatpush.msrb.mxu0 %v5085_v22  ;;  %v4970_v14 = vld [vmem:[#allocation15 + $0x4c8] sm:$0xff] }
 0x6d4   : > { %v5213_v35 = vld [vmem:[#allocation15 + $0xc60] sm:$0xff]  ;;  %5472 = vmatpush.msrb.mxu1 %v5149_v10  ;;  %v5038_v41 = vld [vmem:[#allocation15 + $0x6e8] sm:$0xff] }
 0x6d5   : > { %v5281_v39 = vld [vmem:[#allocation15 + $0xe80] sm:$0xff]  ;;  %5492 = vmatpush.msrb.mxu2 %v5213_v35  ;;  %v4838_v22 = vld [vmem:[#allocation15 + $0xa8] sm:$0xff] }
 0x6d6   : > { %v5081_v5 = vld [vmem:[#allocation15 + $0x840] sm:$0xff]  ;;  %5511 = vmatpush.msrb.mxu3 %v5281_v39  ;;  %v4902_v10 = vld [vmem:[#allocation15 + $0x2a8] sm:$0xff] }
 0x6d7   : > { %v5145_v44 = vld [vmem:[#allocation15 + $0xa40] sm:$0xff]  ;;  %5453 = vmatpush.msrb.mxu0 %v5081_v5  ;;  %v4966_v35 = vld [vmem:[#allocation15 + $0x4a8] sm:$0xff] }
 0x6d8   : > { %v5209_v8 = vld [vmem:[#allocation15 + $0xc40] sm:$0xff]  ;;  %5473 = vmatpush.msrb.mxu1 %v5145_v44  ;;  %v5034_v39 = vld [vmem:[#allocation15 + $0x6c8] sm:$0xff] }
 0x6d9   : > { %v5277_v17 = vld [vmem:[#allocation15 + $0xe60] sm:$0xff]  ;;  %5493 = vmatpush.msrb.mxu2 %v5209_v8  ;;  %v4834_v5 = vld [vmem:[#allocation15 + $0x88] sm:$0xff] }
 0x6da   : > { %v5077_v1 = vld [vmem:[#allocation15 + $0x820] sm:$0xff]  ;;  %5512 = vmatpush.msrb.mxu3 %v5277_v17  ;;  %v4898_v44 = vld [vmem:[#allocation15 + $0x288] sm:$0xff] }
 0x6db   : > { %v5141_v23 = vld [vmem:[#allocation15 + $0xa20] sm:$0xff]  ;;  %5454 = vmatpush.msrb.mxu0 %v5077_v1  ;;  %v4962_v8 = vld [vmem:[#allocation15 + $0x488] sm:$0xff] }
 0x6dc   : > { %v5205_v62 = vld [vmem:[#allocation15 + $0xc20] sm:$0xff]  ;;  %5474 = vmatpush.msrb.mxu1 %v5141_v23  ;;  %v5030_v17 = vld [vmem:[#allocation15 + $0x6a8] sm:$0xff] }
 0x6dd   : > { %v5273_v51 = vld [vmem:[#allocation15 + $0xe40] sm:$0xff]  ;;  %5494 = vmatpush.msrb.mxu2 %v5205_v62  ;;  %v4830_v1 = vld [vmem:[#allocation15 + $0x68] sm:$0xff] }
 0x6de   : > { %v5073_v20 = vld [vmem:[#allocation15 + $0x800] sm:$0xff]  ;;  %5513 = vmatpush.msrb.mxu3 %v5273_v51  ;;  %v4894_v23 = vld [vmem:[#allocation15 + $0x268] sm:$0xff] }
 0x6df   : > { %v5137_v0 = vld [vmem:[#allocation15 + $0xa00] sm:$0xff]  ;;  %5455 = vmatpush.msrb.mxu0 %v5073_v20  ;;  %v4958_v62 = vld [vmem:[#allocation15 + $0x468] sm:$0xff] }
 0x6e0   : > { %v5201_v16 = vld [vmem:[#allocation15 + $0xc00] sm:$0xff]  ;;  %5475 = vmatpush.msrb.mxu1 %v5137_v0  ;;  %5456 = vmatmul.f32.vlgmr.msrb.gmra.mxu0 %v10572_v49  ;;  %v5026_v51 = vld [vmem:[#allocation15 + $0x688] sm:$0xff] }
 0x6e1   : > { %v5269_v60 = vld [vmem:[#allocation15 + $0xe20] sm:$0xff]  ;;  %5495 = vmatpush.msrb.mxu2 %v5201_v16  ;;  %5520 = vmatpush.msra.mxu0 %v4878_v9  ;;  %v4826_v20 = vld [vmem:[#allocation15 + $0x48] sm:$0xff] }
 0x6e2   : > { %v10560_v54 = vld.sshfl [vmem:[#allocation1 + $0x8] sm:$0xff pattern:$0x73625140]  ;;  %v10562_v47 = vld.sshfl [vmem:[#allocation1 + $0x10] sm:$0xff pattern:$0x73625140]  ;;  %5514 = vmatpush.msrb.mxu3 %v5269_v60 }
 0x6e3   : > { %5396 = vmatmul.f32.vlgmr.msra.gmra.mxu1 %v10560_v54  ;;  %v5265_v24 = vld [vmem:[#allocation15 + $0xe00] sm:$0xff]  ;;  %5416 = vmatmul.f32.vlgmr.msra.gmra.mxu2 %v10562_v47  ;;  %v4890_v0 = vld [vmem:[#allocation15 + $0x248] sm:$0xff] }
 0x6e4   : > { %5540 = vmatpush.msra.mxu1 %v4942_v28  ;;  %5560 = vmatpush.msra.mxu2 %v5006_v4  ;;  %v10570_v59 = vld.sshfl [vmem:[#allocation1 + $0x30] sm:$0xff pattern:$0x73625140]  ;;  %v10578_v33 = vld.sshfl [vmem:[#allocation1 + $0x28] sm:$0xff pattern:$0x73625140] }
 0x6e5   : > { %5515 = vmatpush.msrb.mxu3 %v5265_v24  ;;  %5521 = vmatpush.msra.mxu0 %v4874_v26  ;;  %v4954_v16 = vld [vmem:[#allocation15 + $0x448] sm:$0xff] }
 0x6e6   : > { %5541 = vmatpush.msra.mxu1 %v4938_v56  ;;  %5561 = vmatpush.msra.mxu2 %v5002_v46  ;;  %v5022_v60 = vld [vmem:[#allocation15 + $0x668] sm:$0xff] }
 0x6e7   : > { %5580 = vmatpush.msra.mxu3 %v5070_v40  ;;  %5522 = vmatpush.msra.mxu0 %v4870_v34  ;;  %v4822_v9 = vld [vmem:[#allocation15 + $0x28] sm:$0xff] }
 0x6e8   : > { %5542 = vmatpush.msra.mxu1 %v4934_v63  ;;  %5562 = vmatpush.msra.mxu2 %v4998_v58  ;;  %v4886_v28 = vld [vmem:[#allocation15 + $0x228] sm:$0xff] }
 0x6e9   : > { %5581 = vmatpush.msra.mxu3 %v5066_v6  ;;  %5523 = vmatpush.msra.mxu0 %v4866_v37  ;;  %v4950_v4 = vld [vmem:[#allocation15 + $0x428] sm:$0xff] }
 0x6ea   : > { %5543 = vmatpush.msra.mxu1 %v4930_v7  ;;  %5563 = vmatpush.msra.mxu2 %v4994_v29  ;;  %v5018_v24 = vld [vmem:[#allocation15 + $0x648] sm:$0xff] }
 0x6eb   : > { %5582 = vmatpush.msra.mxu3 %v5062_v55  ;;  %5496 = vmatmul.f32.vlgmr.msrb.gmra.mxu2 %v10570_v59  ;;  %v4818_v26 = vld [vmem:[#allocation15 + $0x8] sm:$0xff] }
 0x6ec   : > { %5524 = vmatpush.msra.mxu0 %v4862_v50  ;;  %5544 = vmatpush.msra.mxu1 %v4926_v18  ;;  %v4882_v56 = vld [vmem:[#allocation15 + $0x208] sm:$0xff] }
 0x6ed   : > { %5564 = vmatpush.msra.mxu2 %v4990_v11  ;;  %5583 = vmatpush.msra.mxu3 %v5058_v12  ;;  %v4946_v46 = vld [vmem:[#allocation15 + $0x408] sm:$0xff] }
 0x6ee   : > { %5516 = vmatmul.f32.vlgmr.msrb.gmra.mxu3 %v10575_v52  ;;  %5525 = vmatpush.msra.mxu0 %v4858_v61  ;;  %v5014_v40 = vld [vmem:[#allocation15 + $0x628] sm:$0xff] }
 0x6ef   : > { %5545 = vmatpush.msra.mxu1 %v4922_v38  ;;  %5565 = vmatpush.msra.mxu2 %v4986_v48  ;;  %v5134_v34 = vld [vmem:[#allocation15 + $0x9e8] sm:$0xff] }
 0x6f0   : > { %5584 = vmatpush.msra.mxu3 %v5054_v57  ;;  %5476 = vmatmul.f32.vlgmr.msrb.gmra.mxu1 %v10578_v33  ;;  %v5198_v63 = vld [vmem:[#allocation15 + $0xbe8] sm:$0xff] }
 0x6f1   : > { %5526 = vmatpush.msra.mxu0 %v4854_v25  ;;  %5546 = vmatpush.msra.mxu1 %v4918_v19  ;;  %v5262_v58 = vld [vmem:[#allocation15 + $0xde8] sm:$0xff] }
 0x6f2   : > { %5566 = vmatpush.msra.mxu2 %v4982_v53  ;;  %5585 = vmatpush.msra.mxu3 %v5050_v27  ;;  %v5010_v6 = vld [vmem:[#allocation15 + $0x608] sm:$0xff] }
 0x6f3   : > { %5527 = vmatpush.msra.mxu0 %v4850_v21  ;;  %5547 = vmatpush.msra.mxu1 %v4914_v30  ;;  %v5130_v37 = vld [vmem:[#allocation15 + $0x9c8] sm:$0xff] }
 0x6f4   : > { %5567 = vmatpush.msra.mxu2 %v4978_v32  ;;  %5586 = vmatpush.msra.mxu3 %v5046_v43  ;;  %v5194_v7 = vld [vmem:[#allocation15 + $0xbc8] sm:$0xff] }
 0x6f5   : > { %5528 = vmatpush.msra.mxu0 %v4846_v3  ;;  %5548 = vmatpush.msra.mxu1 %v4910_v2  ;;  %v5258_v29 = vld [vmem:[#allocation15 + $0xdc8] sm:$0xff] }
 0x6f6   : > { %5568 = vmatpush.msra.mxu2 %v4974_v13  ;;  %5587 = vmatpush.msra.mxu3 %v5042_v15  ;;  %v5326_v55 = vld [vmem:[#allocation15 + $0xfe8] sm:$0xff] }
 0x6f7   : > { %5529 = vmatpush.msra.mxu0 %v4842_v45  ;;  %5549 = vmatpush.msra.mxu1 %v4906_v42  ;;  %v5126_v50 = vld [vmem:[#allocation15 + $0x9a8] sm:$0xff] }
 0x6f8   : > { %5569 = vmatpush.msra.mxu2 %v4970_v14  ;;  %5588 = vmatpush.msra.mxu3 %v5038_v41  ;;  %v5190_v18 = vld [vmem:[#allocation15 + $0xba8] sm:$0xff] }
 0x6f9   : > { %5530 = vmatpush.msra.mxu0 %v4838_v22  ;;  %5550 = vmatpush.msra.mxu1 %v4902_v10  ;;  %v5254_v11 = vld [vmem:[#allocation15 + $0xda8] sm:$0xff] }
 0x6fa   : > { %5570 = vmatpush.msra.mxu2 %v4966_v35  ;;  %5589 = vmatpush.msra.mxu3 %v5034_v39  ;;  %v5322_v12 = vld [vmem:[#allocation15 + $0xfc8] sm:$0xff] }
 0x6fb   : > { %5531 = vmatpush.msra.mxu0 %v4834_v5  ;;  %5551 = vmatpush.msra.mxu1 %v4898_v44  ;;  %v5122_v61 = vld [vmem:[#allocation15 + $0x988] sm:$0xff] }
 0x6fc   : > { %5571 = vmatpush.msra.mxu2 %v4962_v8  ;;  %5590 = vmatpush.msra.mxu3 %v5030_v17  ;;  %v5186_v38 = vld [vmem:[#allocation15 + $0xb88] sm:$0xff] }
 0x6fd   : > { %5532 = vmatpush.msra.mxu0 %v4830_v1  ;;  %5552 = vmatpush.msra.mxu1 %v4894_v23  ;;  %v5250_v48 = vld [vmem:[#allocation15 + $0xd88] sm:$0xff] }
 0x6fe   : > { %5572 = vmatpush.msra.mxu2 %v4958_v62  ;;  %5591 = vmatpush.msra.mxu3 %v5026_v51  ;;  %v5318_v57 = vld [vmem:[#allocation15 + $0xfa8] sm:$0xff] }
 0x6ff   : > { %5533 = vmatpush.msra.mxu0 %v4826_v20  ;;  %5553 = vmatpush.msra.mxu1 %v4890_v0  ;;  %v5118_v25 = vld [vmem:[#allocation15 + $0x968] sm:$0xff] }
 0x700   : > { %5573 = vmatpush.msra.mxu2 %v4954_v16  ;;  %5592 = vmatpush.msra.mxu3 %v5022_v60  ;;  %v5182_v19 = vld [vmem:[#allocation15 + $0xb68] sm:$0xff] }
 0x701   : > { %5534 = vmatpush.msra.mxu0 %v4822_v9  ;;  %5554 = vmatpush.msra.mxu1 %v4886_v28  ;;  %v5246_v53 = vld [vmem:[#allocation15 + $0xd68] sm:$0xff] }
 0x702   : > { %5574 = vmatpush.msra.mxu2 %v4950_v4  ;;  %5593 = vmatpush.msra.mxu3 %v5018_v24  ;;  %v5314_v27 = vld [vmem:[#allocation15 + $0xf88] sm:$0xff] }
 0x703   : > { %5535 = vmatpush.msra.mxu0 %v4818_v26  ;;  %5555 = vmatpush.msra.mxu1 %v4882_v56  ;;  %v5114_v21 = vld [vmem:[#allocation15 + $0x948] sm:$0xff] }
 0x704   : > { %5575 = vmatpush.msra.mxu2 %v4946_v46  ;;  %5594 = vmatpush.msra.mxu3 %v5014_v40  ;;  %v5178_v30 = vld [vmem:[#allocation15 + $0xb48] sm:$0xff] }
 0x705   : > { %5600 = vmatpush.msrb.mxu0 %v5134_v34  ;;  %5620 = vmatpush.msrb.mxu1 %v5198_v63  ;;  %v5242_v32 = vld [vmem:[#allocation15 + $0xd48] sm:$0xff] }
 0x706   : > { %5640 = vmatpush.msrb.mxu2 %v5262_v58  ;;  %5595 = vmatpush.msra.mxu3 %v5010_v6  ;;  %v5310_v43 = vld [vmem:[#allocation15 + $0xf68] sm:$0xff] }
 0x707   : > { %5601 = vmatpush.msrb.mxu0 %v5130_v37  ;;  %5621 = vmatpush.msrb.mxu1 %v5194_v7  ;;  %v5110_v3 = vld [vmem:[#allocation15 + $0x928] sm:$0xff] }
 0x708   : > { %5641 = vmatpush.msrb.mxu2 %v5258_v29  ;;  %5660 = vmatpush.msrb.mxu3 %v5326_v55  ;;  %v5174_v2 = vld [vmem:[#allocation15 + $0xb28] sm:$0xff] }
 0x709   : > { %5602 = vmatpush.msrb.mxu0 %v5126_v50  ;;  %5622 = vmatpush.msrb.mxu1 %v5190_v18  ;;  %v5238_v13 = vld [vmem:[#allocation15 + $0xd28] sm:$0xff]  ;;  %v4879_v50 = vld [vmem:[#allocation15 + $0x1f0] sm:$0xff] }
 0x70a   : > { %5642 = vmatpush.msrb.mxu2 %v5254_v11  ;;  %5661 = vmatpush.msrb.mxu3 %v5322_v12  ;;  %v5306_v15 = vld [vmem:[#allocation15 + $0xf48] sm:$0xff]  ;;  %v4943_v18 = vld [vmem:[#allocation15 + $0x3f0] sm:$0xff] }
 0x70b   : > { %5603 = vmatpush.msrb.mxu0 %v5122_v61  ;;  %5623 = vmatpush.msrb.mxu1 %v5186_v38  ;;  %v5106_v45 = vld [vmem:[#allocation15 + $0x908] sm:$0xff]  ;;  %v5007_v11 = vld [vmem:[#allocation15 + $0x5f0] sm:$0xff] }
 0x70c   : > { %5643 = vmatpush.msrb.mxu2 %v5250_v48  ;;  %5662 = vmatpush.msrb.mxu3 %v5318_v57  ;;  %v5170_v42 = vld [vmem:[#allocation15 + $0xb08] sm:$0xff]  ;;  %v4875_v61 = vld [vmem:[#allocation15 + $0x1d0] sm:$0xff] }
 0x70d   : > { %5604 = vmatpush.msrb.mxu0 %v5118_v25  ;;  %5624 = vmatpush.msrb.mxu1 %v5182_v19  ;;  %v5234_v14 = vld [vmem:[#allocation15 + $0xd08] sm:$0xff]  ;;  %v4939_v38 = vld [vmem:[#allocation15 + $0x3d0] sm:$0xff] }
 0x70e   : > { %5644 = vmatpush.msrb.mxu2 %v5246_v53  ;;  %5663 = vmatpush.msrb.mxu3 %v5314_v27  ;;  %v5302_v41 = vld [vmem:[#allocation15 + $0xf28] sm:$0xff]  ;;  %v5003_v48 = vld [vmem:[#allocation15 + $0x5d0] sm:$0xff] }
 0x70f   : > { %5605 = vmatpush.msrb.mxu0 %v5114_v21  ;;  %5625 = vmatpush.msrb.mxu1 %v5178_v30  ;;  %v5102_v22 = vld [vmem:[#allocation15 + $0x8e8] sm:$0xff]  ;;  %v5071_v57 = vld [vmem:[#allocation15 + $0x7f0] sm:$0xff] }
 0x710   : > { %5645 = vmatpush.msrb.mxu2 %v5242_v32  ;;  %5664 = vmatpush.msrb.mxu3 %v5310_v43  ;;  %v5166_v10 = vld [vmem:[#allocation15 + $0xae8] sm:$0xff]  ;;  %v4871_v25 = vld [vmem:[#allocation15 + $0x1b0] sm:$0xff] }
 0x711   : > { %5606 = vmatpush.msrb.mxu0 %v5110_v3  ;;  %5626 = vmatpush.msrb.mxu1 %v5174_v2  ;;  %v5230_v35 = vld [vmem:[#allocation15 + $0xce8] sm:$0xff]  ;;  %v4935_v19 = vld [vmem:[#allocation15 + $0x3b0] sm:$0xff] }
 0x712   : > { %5646 = vmatpush.msrb.mxu2 %v5238_v13  ;;  %5665 = vmatpush.msrb.mxu3 %v5306_v15  ;;  %v5298_v39 = vld [vmem:[#allocation15 + $0xf08] sm:$0xff]  ;;  %v5067_v53 = vld [vmem:[#allocation15 + $0x7d0] sm:$0xff] }
 0x713   : > { %5607 = vmatpush.msrb.mxu0 %v5106_v45  ;;  %5627 = vmatpush.msrb.mxu1 %v5170_v42  ;;  %v5098_v5 = vld [vmem:[#allocation15 + $0x8c8] sm:$0xff]  ;;  %v4931_v27 = vld [vmem:[#allocation15 + $0x390] sm:$0xff] }
 0x714   : > { %5647 = vmatpush.msrb.mxu2 %v5234_v14  ;;  %5666 = vmatpush.msrb.mxu3 %v5302_v41  ;;  %v5162_v44 = vld [vmem:[#allocation15 + $0xac8] sm:$0xff]  ;;  %v4995_v21 = vld [vmem:[#allocation15 + $0x590] sm:$0xff] }
 0x715   : > { %5608 = vmatpush.msrb.mxu0 %v5102_v22  ;;  %5628 = vmatpush.msrb.mxu1 %v5166_v10  ;;  %v5226_v8 = vld [vmem:[#allocation15 + $0xcc8] sm:$0xff]  ;;  %v5063_v30 = vld [vmem:[#allocation15 + $0x7b0] sm:$0xff] }
 0x716   : > { %v5294_v17 = vld [vmem:[#allocation15 + $0xee8] sm:$0xff]  ;;  %5648 = vmatpush.msrb.mxu2 %v5230_v35  ;;  %5667 = vmatpush.msrb.mxu3 %v5298_v39  ;;  %v4863_v32 = vld [vmem:[#allocation15 + $0x170] sm:$0xff] }
 0x717   : > { %v5094_v1 = vld [vmem:[#allocation15 + $0x8a8] sm:$0xff]  ;;  %5609 = vmatpush.msrb.mxu0 %v5098_v5  ;;  %5629 = vmatpush.msrb.mxu1 %v5162_v44  ;;  %v4927_v43 = vld [vmem:[#allocation15 + $0x370] sm:$0xff] }
 0x718   : > { %v5158_v23 = vld [vmem:[#allocation15 + $0xaa8] sm:$0xff]  ;;  %5649 = vmatpush.msrb.mxu2 %v5226_v8  ;;  %5668 = vmatpush.msrb.mxu3 %v5294_v17  ;;  %v4991_v3 = vld [vmem:[#allocation15 + $0x570] sm:$0xff] }
 0x719   : > { %v5222_v62 = vld [vmem:[#allocation15 + $0xca8] sm:$0xff]  ;;  %5610 = vmatpush.msrb.mxu0 %v5094_v1  ;;  %5630 = vmatpush.msrb.mxu1 %v5158_v23  ;;  %v5059_v2 = vld [vmem:[#allocation15 + $0x790] sm:$0xff] }
 0x71a   : > { %v5290_v51 = vld [vmem:[#allocation15 + $0xec8] sm:$0xff]  ;;  %5650 = vmatpush.msrb.mxu2 %v5222_v62  ;;  %5536 = vmatmul.f32.vlgmr.msra.gmra.mxu0 %v10558_v36  ;;  %v4999_v36 = vld [vmem:[#allocation15 + $0x5b0] sm:$0xff] }
 0x71b   : > { %v5090_v20 = vld [vmem:[#allocation15 + $0x888] sm:$0xff]  ;;  %5669 = vmatpush.msrb.mxu3 %v5290_v51  ;;  %5556 = vmatmul.f32.vlgmr.msra.gmra.mxu1 %v10560_v54  ;;  %v4867_v54 = vld [vmem:[#allocation15 + $0x190] sm:$0xff] }
 0x71c   : > { %v5154_v0 = vld [vmem:[#allocation15 + $0xa88] sm:$0xff]  ;;  %5611 = vmatpush.msrb.mxu0 %v5090_v20  ;;  %5576 = vmatmul.f32.vlgmr.msra.gmra.mxu2 %v10562_v47  ;;  %v4859_v13 = vld [vmem:[#allocation15 + $0x150] sm:$0xff] }
 0x71d   : > { %v5218_v16 = vld [vmem:[#allocation15 + $0xc88] sm:$0xff]  ;;  %5631 = vmatpush.msrb.mxu1 %v5154_v0  ;;  %5596 = vmatmul.f32.vlgmr.msra.gmra.mxu3 %v10567_v31  ;;  %v4923_v15 = vld [vmem:[#allocation15 + $0x350] sm:$0xff] }
 0x71e   : > { %v5286_v60 = vld [vmem:[#allocation15 + $0xea8] sm:$0xff]  ;;  %5651 = vmatpush.msrb.mxu2 %v5218_v16  ;;  %v4987_v45 = vld [vmem:[#allocation15 + $0x550] sm:$0xff] }
 0x71f   : > { %v5086_v9 = vld [vmem:[#allocation15 + $0x868] sm:$0xff]  ;;  %5670 = vmatpush.msrb.mxu3 %v5286_v60  ;;  %v5055_v42 = vld [vmem:[#allocation15 + $0x770] sm:$0xff] }
 0x720   : > { %v5150_v28 = vld [vmem:[#allocation15 + $0xa68] sm:$0xff]  ;;  %5612 = vmatpush.msrb.mxu0 %v5086_v9  ;;  %v4855_v14 = vld [vmem:[#allocation15 + $0x130] sm:$0xff] }
 0x721   : > { %v5214_v4 = vld [vmem:[#allocation15 + $0xc68] sm:$0xff]  ;;  %5632 = vmatpush.msrb.mxu1 %v5150_v28  ;;  %v4919_v41 = vld [vmem:[#allocation15 + $0x330] sm:$0xff] }
 0x722   : > { %v5282_v24 = vld [vmem:[#allocation15 + $0xe88] sm:$0xff]  ;;  %5652 = vmatpush.msrb.mxu2 %v5214_v4  ;;  %v4983_v22 = vld [vmem:[#allocation15 + $0x530] sm:$0xff] }
 0x723   : > { %v5082_v26 = vld [vmem:[#allocation15 + $0x848] sm:$0xff]  ;;  %5671 = vmatpush.msrb.mxu3 %v5282_v24  ;;  %v5051_v10 = vld [vmem:[#allocation15 + $0x750] sm:$0xff] }
 0x724   : > { %v5146_v56 = vld [vmem:[#allocation15 + $0xa48] sm:$0xff]  ;;  %5613 = vmatpush.msrb.mxu0 %v5082_v26  ;;  %v4851_v35 = vld [vmem:[#allocation15 + $0x110] sm:$0xff] }
 0x725   : > { %v5210_v46 = vld [vmem:[#allocation15 + $0xc48] sm:$0xff]  ;;  %5633 = vmatpush.msrb.mxu1 %v5146_v56  ;;  %v4915_v39 = vld [vmem:[#allocation15 + $0x310] sm:$0xff] }
 0x726   : > { %v5278_v40 = vld [vmem:[#allocation15 + $0xe68] sm:$0xff]  ;;  %5653 = vmatpush.msrb.mxu2 %v5210_v46  ;;  %v4979_v5 = vld [vmem:[#allocation15 + $0x510] sm:$0xff] }
 0x727   : > { %v5078_v34 = vld [vmem:[#allocation15 + $0x828] sm:$0xff]  ;;  %5672 = vmatpush.msrb.mxu3 %v5278_v40  ;;  %v5047_v44 = vld [vmem:[#allocation15 + $0x730] sm:$0xff] }
 0x728   : > { %v5142_v63 = vld [vmem:[#allocation15 + $0xa28] sm:$0xff]  ;;  %5614 = vmatpush.msrb.mxu0 %v5078_v34  ;;  %v4847_v8 = vld [vmem:[#allocation15 + $0xf0] sm:$0xff] }
 0x729   : > { %v5206_v58 = vld [vmem:[#allocation15 + $0xc28] sm:$0xff]  ;;  %5634 = vmatpush.msrb.mxu1 %v5142_v63  ;;  %v4911_v17 = vld [vmem:[#allocation15 + $0x2f0] sm:$0xff] }
 0x72a   : > { %v5274_v6 = vld [vmem:[#allocation15 + $0xe48] sm:$0xff]  ;;  %5654 = vmatpush.msrb.mxu2 %v5206_v58  ;;  %v4975_v1 = vld [vmem:[#allocation15 + $0x4f0] sm:$0xff] }
 0x72b   : > { %v5074_v37 = vld [vmem:[#allocation15 + $0x808] sm:$0xff]  ;;  %5673 = vmatpush.msrb.mxu3 %v5274_v6  ;;  %v5043_v23 = vld [vmem:[#allocation15 + $0x710] sm:$0xff] }
 0x72c   : > { %v5138_v7 = vld [vmem:[#allocation15 + $0xa08] sm:$0xff]  ;;  %5615 = vmatpush.msrb.mxu0 %v5074_v37  ;;  %v4843_v62 = vld [vmem:[#allocation15 + $0xd0] sm:$0xff] }
 0x72d   : > { %v5202_v29 = vld [vmem:[#allocation15 + $0xc08] sm:$0xff]  ;;  %5635 = vmatpush.msrb.mxu1 %v5138_v7  ;;  %5616 = vmatmul.f32.vlgmr.msrb.gmra.mxu0 %v10572_v49  ;;  %v4907_v51 = vld [vmem:[#allocation15 + $0x2d0] sm:$0xff] }
 0x72e   : > { %v5270_v55 = vld [vmem:[#allocation15 + $0xe28] sm:$0xff]  ;;  %5655 = vmatpush.msrb.mxu2 %v5202_v29  ;;  %5680 = vmatpush.msra.mxu0 %v4879_v50  ;;  %v4971_v20 = vld [vmem:[#allocation15 + $0x4d0] sm:$0xff] }
 0x72f   : > { %5674 = vmatpush.msrb.mxu3 %v5270_v55  ;;  %v5266_v12 = vld [vmem:[#allocation15 + $0xe08] sm:$0xff]  ;;  %5700 = vmatpush.msra.mxu1 %v4943_v18  ;;  %v5039_v0 = vld [vmem:[#allocation15 + $0x6f0] sm:$0xff] }
 0x730   : > { %5720 = vmatpush.msra.mxu2 %v5007_v11  ;;  %5681 = vmatpush.msra.mxu0 %v4875_v61  ;;  %v4839_v16 = vld [vmem:[#allocation15 + $0xb0] sm:$0xff] }
 0x731   : > { %5675 = vmatpush.msrb.mxu3 %v5266_v12  ;;  %5701 = vmatpush.msra.mxu1 %v4939_v38  ;;  %v4903_v60 = vld [vmem:[#allocation15 + $0x2b0] sm:$0xff] }
 0x732   : > { %5721 = vmatpush.msra.mxu2 %v5003_v48  ;;  %5682 = vmatpush.msra.mxu0 %v4871_v25  ;;  %v4967_v9 = vld [vmem:[#allocation15 + $0x4b0] sm:$0xff] }
 0x733   : > { %5740 = vmatpush.msra.mxu3 %v5071_v57  ;;  %5702 = vmatpush.msra.mxu1 %v4935_v19  ;;  %v5035_v28 = vld [vmem:[#allocation15 + $0x6d0] sm:$0xff] }
 0x734   : > { %5722 = vmatpush.msra.mxu2 %v4999_v36  ;;  %5683 = vmatpush.msra.mxu0 %v4867_v54  ;;  %v4835_v4 = vld [vmem:[#allocation15 + $0x90] sm:$0xff] }
 0x735   : > { %5741 = vmatpush.msra.mxu3 %v5067_v53  ;;  %5703 = vmatpush.msra.mxu1 %v4931_v27  ;;  %v4899_v24 = vld [vmem:[#allocation15 + $0x290] sm:$0xff] }
 0x736   : > { %5723 = vmatpush.msra.mxu2 %v4995_v21  ;;  %5684 = vmatpush.msra.mxu0 %v4863_v32  ;;  %v4963_v26 = vld [vmem:[#allocation15 + $0x490] sm:$0xff] }
 0x737   : > { %5742 = vmatpush.msra.mxu3 %v5063_v30  ;;  %5656 = vmatmul.f32.vlgmr.msrb.gmra.mxu2 %v10570_v59  ;;  %v5031_v56 = vld [vmem:[#allocation15 + $0x6b0] sm:$0xff] }
 0x738   : > { %5704 = vmatpush.msra.mxu1 %v4927_v43  ;;  %5724 = vmatpush.msra.mxu2 %v4991_v3  ;;  %v4831_v46 = vld [vmem:[#allocation15 + $0x70] sm:$0xff] }
 0x739   : > { %5743 = vmatpush.msra.mxu3 %v5059_v2  ;;  %5685 = vmatpush.msra.mxu0 %v4859_v13  ;;  %v4895_v40 = vld [vmem:[#allocation15 + $0x270] sm:$0xff] }
 0x73a   : > { %5676 = vmatmul.f32.vlgmr.msrb.gmra.mxu3 %v10575_v52  ;;  %5705 = vmatpush.msra.mxu1 %v4923_v15  ;;  %v4959_v34 = vld [vmem:[#allocation15 + $0x470] sm:$0xff] }
 0x73b   : > { %5725 = vmatpush.msra.mxu2 %v4987_v45  ;;  %5744 = vmatpush.msra.mxu3 %v5055_v42  ;;  %v5027_v63 = vld [vmem:[#allocation15 + $0x690] sm:$0xff] }
 0x73c   : > { %5636 = vmatmul.f32.vlgmr.msrb.gmra.mxu1 %v10578_v33  ;;  %5686 = vmatpush.msra.mxu0 %v4855_v14  ;;  %v4827_v58 = vld [vmem:[#allocation15 + $0x50] sm:$0xff] }
 0x73d   : > { %5706 = vmatpush.msra.mxu1 %v4919_v41  ;;  %5726 = vmatpush.msra.mxu2 %v4983_v22  ;;  %v4891_v6 = vld [vmem:[#allocation15 + $0x250] sm:$0xff] }
 0x73e   : > { %5745 = vmatpush.msra.mxu3 %v5051_v10  ;;  %5687 = vmatpush.msra.mxu0 %v4851_v35  ;;  %v4955_v37 = vld [vmem:[#allocation15 + $0x450] sm:$0xff] }
 0x73f   : > { %5707 = vmatpush.msra.mxu1 %v4915_v39  ;;  %5727 = vmatpush.msra.mxu2 %v4979_v5  ;;  %v5023_v7 = vld [vmem:[#allocation15 + $0x670] sm:$0xff] }
 0x740   : > { %5746 = vmatpush.msra.mxu3 %v5047_v44  ;;  %5688 = vmatpush.msra.mxu0 %v4847_v8  ;;  %v4823_v29 = vld [vmem:[#allocation15 + $0x30] sm:$0xff] }
 0x741   : > { %5708 = vmatpush.msra.mxu1 %v4911_v17  ;;  %5728 = vmatpush.msra.mxu2 %v4975_v1  ;;  %v4887_v55 = vld [vmem:[#allocation15 + $0x230] sm:$0xff] }
 0x742   : > { %5747 = vmatpush.msra.mxu3 %v5043_v23  ;;  %5689 = vmatpush.msra.mxu0 %v4843_v62  ;;  %v4951_v50 = vld [vmem:[#allocation15 + $0x430] sm:$0xff] }
 0x743   : > { %5709 = vmatpush.msra.mxu1 %v4907_v51  ;;  %5729 = vmatpush.msra.mxu2 %v4971_v20  ;;  %v5019_v18 = vld [vmem:[#allocation15 + $0x650] sm:$0xff] }
 0x744   : > { %5748 = vmatpush.msra.mxu3 %v5039_v0  ;;  %5690 = vmatpush.msra.mxu0 %v4839_v16  ;;  %v4819_v11 = vld [vmem:[#allocation15 + $0x10] sm:$0xff] }
 0x745   : > { %5710 = vmatpush.msra.mxu1 %v4903_v60  ;;  %5730 = vmatpush.msra.mxu2 %v4967_v9  ;;  %v4883_v12 = vld [vmem:[#allocation15 + $0x210] sm:$0xff] }
 0x746   : > { %5749 = vmatpush.msra.mxu3 %v5035_v28  ;;  %5691 = vmatpush.msra.mxu0 %v4835_v4  ;;  %v4947_v61 = vld [vmem:[#allocation15 + $0x410] sm:$0xff] }
 0x747   : > { %5711 = vmatpush.msra.mxu1 %v4899_v24  ;;  %5731 = vmatpush.msra.mxu2 %v4963_v26  ;;  %v5015_v38 = vld [vmem:[#allocation15 + $0x630] sm:$0xff] }
 0x748   : > { %5750 = vmatpush.msra.mxu3 %v5031_v56  ;;  %5692 = vmatpush.msra.mxu0 %v4831_v46  ;;  %v5135_v48 = vld [vmem:[#allocation15 + $0x9f0] sm:$0xff] }
 0x749   : > { %5712 = vmatpush.msra.mxu1 %v4895_v40  ;;  %5732 = vmatpush.msra.mxu2 %v4959_v34  ;;  %v5199_v57 = vld [vmem:[#allocation15 + $0xbf0] sm:$0xff] }
 0x74a   : > { %5751 = vmatpush.msra.mxu3 %v5027_v63  ;;  %5693 = vmatpush.msra.mxu0 %v4827_v58  ;;  %v5263_v25 = vld [vmem:[#allocation15 + $0xdf0] sm:$0xff] }
 0x74b   : > { %5713 = vmatpush.msra.mxu1 %v4891_v6  ;;  %5733 = vmatpush.msra.mxu2 %v4955_v37  ;;  %v5011_v19 = vld [vmem:[#allocation15 + $0x610] sm:$0xff] }
 0x74c   : > { %5752 = vmatpush.msra.mxu3 %v5023_v7  ;;  %5694 = vmatpush.msra.mxu0 %v4823_v29  ;;  %v5131_v36 = vld [vmem:[#allocation15 + $0x9d0] sm:$0xff] }
 0x74d   : > { %5714 = vmatpush.msra.mxu1 %v4887_v55  ;;  %5734 = vmatpush.msra.mxu2 %v4951_v50  ;;  %v5195_v53 = vld [vmem:[#allocation15 + $0xbd0] sm:$0xff] }
 0x74e   : > { %5753 = vmatpush.msra.mxu3 %v5019_v18  ;;  %5695 = vmatpush.msra.mxu0 %v4819_v11  ;;  %v5259_v54 = vld [vmem:[#allocation15 + $0xdd0] sm:$0xff] }
 0x74f   : > { %5715 = vmatpush.msra.mxu1 %v4883_v12  ;;  %5735 = vmatpush.msra.mxu2 %v4947_v61  ;;  %v5327_v27 = vld [vmem:[#allocation15 + $0xff0] sm:$0xff] }
 0x750   : > { %5754 = vmatpush.msra.mxu3 %v5015_v38  ;;  %5760 = vmatpush.msrb.mxu0 %v5135_v48  ;;  %v5127_v21 = vld [vmem:[#allocation15 + $0x9b0] sm:$0xff] }
 0x751   : > { %5780 = vmatpush.msrb.mxu1 %v5199_v57  ;;  %5800 = vmatpush.msrb.mxu2 %v5263_v25  ;;  %v5191_v30 = vld [vmem:[#allocation15 + $0xbb0] sm:$0xff]  ;;  %v10595_v25 = vld.sshfl [vmem:[#allocation1 + $0x8] sm:$0xff pattern:$0x73625140] }
 0x752   : > { %5755 = vmatpush.msra.mxu3 %v5011_v19  ;;  %5761 = vmatpush.msrb.mxu0 %v5131_v36  ;;  %v5255_v32 = vld [vmem:[#allocation15 + $0xdb0] sm:$0xff] }
 0x753   : > { %5781 = vmatpush.msrb.mxu1 %v5195_v53  ;;  %v5323_v43 = vld [vmem:[#allocation15 + $0xfd0] sm:$0xff]  ;;  %5801 = vmatpush.msrb.mxu2 %v5259_v54 }
 0x754   : > { %5820 = vmatpush.msrb.mxu3 %v5327_v27  ;;  %v5123_v3 = vld [vmem:[#allocation15 + $0x990] sm:$0xff]  ;;  %5762 = vmatpush.msrb.mxu0 %v5127_v21  ;;  %v4944_v27 = vld [vmem:[#allocation15 + $0x3f8] sm:$0xff] }
 0x755   : > { %v5187_v2 = vld [vmem:[#allocation15 + $0xb90] sm:$0xff]  ;;  %5782 = vmatpush.msrb.mxu1 %v5191_v30  ;;  %5802 = vmatpush.msrb.mxu2 %v5255_v32  ;;  %v5008_v21 = vld [vmem:[#allocation15 + $0x5f8] sm:$0xff] }
 0x756   : > { %v5251_v13 = vld [vmem:[#allocation15 + $0xd90] sm:$0xff]  ;;  %5821 = vmatpush.msrb.mxu3 %v5323_v43  ;;  %5763 = vmatpush.msrb.mxu0 %v5123_v3  ;;  %v4876_v32 = vld [vmem:[#allocation15 + $0x1d8] sm:$0xff] }
 0x757   : > { %v5319_v15 = vld [vmem:[#allocation15 + $0xfb0] sm:$0xff]  ;;  %5783 = vmatpush.msrb.mxu1 %v5187_v2  ;;  %5803 = vmatpush.msrb.mxu2 %v5251_v13  ;;  %v4940_v43 = vld [vmem:[#allocation15 + $0x3d8] sm:$0xff] }
 0x758   : > { %v5119_v45 = vld [vmem:[#allocation15 + $0x970] sm:$0xff]  ;;  %5822 = vmatpush.msrb.mxu3 %v5319_v15  ;;  %5736 = vmatmul.f32.vlgmr.msra.gmra.mxu2 %v10562_v47  ;;  %v5004_v3 = vld [vmem:[#allocation15 + $0x5d8] sm:$0xff] }
 0x759   : > { %v5183_v42 = vld [vmem:[#allocation15 + $0xb70] sm:$0xff]  ;;  %5764 = vmatpush.msrb.mxu0 %v5119_v45  ;;  %5756 = vmatmul.f32.vlgmr.msra.gmra.mxu3 %v10567_v31  ;;  %v4880_v31 = vld [vmem:[#allocation15 + $0x1f8] sm:$0xff] }
 0x75a   : > { %v5247_v14 = vld [vmem:[#allocation15 + $0xd70] sm:$0xff]  ;;  %5784 = vmatpush.msrb.mxu1 %v5183_v42  ;;  %v5072_v2 = vld [vmem:[#allocation15 + $0x7f8] sm:$0xff] }
 0x75b   : > { %v5315_v41 = vld [vmem:[#allocation15 + $0xf90] sm:$0xff]  ;;  %5804 = vmatpush.msrb.mxu2 %v5247_v14  ;;  %5716 = vmatmul.f32.vlgmr.msra.gmra.mxu1 %v10595_v25  ;;  %v4872_v13 = vld [vmem:[#allocation15 + $0x1b8] sm:$0xff] }
 0x75c   : > { %v5115_v22 = vld [vmem:[#allocation15 + $0x950] sm:$0xff]  ;;  %5823 = vmatpush.msrb.mxu3 %v5315_v41  ;;  %v4936_v15 = vld [vmem:[#allocation15 + $0x3b8] sm:$0xff] }
 0x75d   : > { %v5179_v10 = vld [vmem:[#allocation15 + $0xb50] sm:$0xff]  ;;  %5765 = vmatpush.msrb.mxu0 %v5115_v22  ;;  %v5000_v45 = vld [vmem:[#allocation15 + $0x5b8] sm:$0xff] }
 0x75e   : > { %v5243_v35 = vld [vmem:[#allocation15 + $0xd50] sm:$0xff]  ;;  %5785 = vmatpush.msrb.mxu1 %v5179_v10  ;;  %v5068_v42 = vld [vmem:[#allocation15 + $0x7d8] sm:$0xff] }
 0x75f   : > { %v5311_v39 = vld [vmem:[#allocation15 + $0xf70] sm:$0xff]  ;;  %5805 = vmatpush.msrb.mxu2 %v5243_v35  ;;  %v4932_v14 = vld [vmem:[#allocation15 + $0x398] sm:$0xff] }
 0x760   : > { %v5111_v5 = vld [vmem:[#allocation15 + $0x930] sm:$0xff]  ;;  %5824 = vmatpush.msrb.mxu3 %v5311_v39  ;;  %v4996_v41 = vld [vmem:[#allocation15 + $0x598] sm:$0xff] }
 0x761   : > { %v5175_v44 = vld [vmem:[#allocation15 + $0xb30] sm:$0xff]  ;;  %5766 = vmatpush.msrb.mxu0 %v5111_v5  ;;  %v5064_v22 = vld [vmem:[#allocation15 + $0x7b8] sm:$0xff] }
 0x762   : > { %v5239_v8 = vld [vmem:[#allocation15 + $0xd30] sm:$0xff]  ;;  %5786 = vmatpush.msrb.mxu1 %v5175_v44  ;;  %v4992_v10 = vld [vmem:[#allocation15 + $0x578] sm:$0xff] }
 0x763   : > { %v5307_v17 = vld [vmem:[#allocation15 + $0xf50] sm:$0xff]  ;;  %5806 = vmatpush.msrb.mxu2 %v5239_v8  ;;  %v5060_v35 = vld [vmem:[#allocation15 + $0x798] sm:$0xff] }
 0x764   : > { %v5107_v1 = vld [vmem:[#allocation15 + $0x910] sm:$0xff]  ;;  %5825 = vmatpush.msrb.mxu3 %v5307_v17  ;;  %v4860_v39 = vld [vmem:[#allocation15 + $0x158] sm:$0xff] }
 0x765   : > { %v5171_v23 = vld [vmem:[#allocation15 + $0xb10] sm:$0xff]  ;;  %5767 = vmatpush.msrb.mxu0 %v5107_v1  ;;  %v4924_v5 = vld [vmem:[#allocation15 + $0x358] sm:$0xff] }
 0x766   : > { %v5235_v62 = vld [vmem:[#allocation15 + $0xd10] sm:$0xff]  ;;  %5787 = vmatpush.msrb.mxu1 %v5171_v23  ;;  %v5056_v44 = vld [vmem:[#allocation15 + $0x778] sm:$0xff] }
 0x767   : > { %v5303_v51 = vld [vmem:[#allocation15 + $0xf30] sm:$0xff]  ;;  %5807 = vmatpush.msrb.mxu2 %v5235_v62  ;;  %v4856_v8 = vld [vmem:[#allocation15 + $0x138] sm:$0xff] }
 0x768   : > { %v5103_v20 = vld [vmem:[#allocation15 + $0x8f0] sm:$0xff]  ;;  %5826 = vmatpush.msrb.mxu3 %v5303_v51  ;;  %v4920_v17 = vld [vmem:[#allocation15 + $0x338] sm:$0xff] }
 0x769   : > { %v5167_v0 = vld [vmem:[#allocation15 + $0xaf0] sm:$0xff]  ;;  %5768 = vmatpush.msrb.mxu0 %v5103_v20  ;;  %v4984_v1 = vld [vmem:[#allocation15 + $0x538] sm:$0xff] }
 0x76a   : > { %v5231_v16 = vld [vmem:[#allocation15 + $0xcf0] sm:$0xff]  ;;  %5788 = vmatpush.msrb.mxu1 %v5167_v0  ;;  %v5052_v23 = vld [vmem:[#allocation15 + $0x758] sm:$0xff] }
 0x76b   : > { %v5299_v60 = vld [vmem:[#allocation15 + $0xf10] sm:$0xff]  ;;  %5808 = vmatpush.msrb.mxu2 %v5231_v16  ;;  %v4852_v62 = vld [vmem:[#allocation15 + $0x118] sm:$0xff] }
 0x76c   : > { %v5099_v9 = vld [vmem:[#allocation15 + $0x8d0] sm:$0xff]  ;;  %5827 = vmatpush.msrb.mxu3 %v5299_v60  ;;  %v4916_v51 = vld [vmem:[#allocation15 + $0x318] sm:$0xff] }
 0x76d   : > { %v5163_v28 = vld [vmem:[#allocation15 + $0xad0] sm:$0xff]  ;;  %5769 = vmatpush.msrb.mxu0 %v5099_v9  ;;  %v4980_v20 = vld [vmem:[#allocation15 + $0x518] sm:$0xff] }
 0x76e   : > { %v5227_v4 = vld [vmem:[#allocation15 + $0xcd0] sm:$0xff]  ;;  %5789 = vmatpush.msrb.mxu1 %v5163_v28  ;;  %v5048_v0 = vld [vmem:[#allocation15 + $0x738] sm:$0xff] }
 0x76f   : > { %v5295_v24 = vld [vmem:[#allocation15 + $0xef0] sm:$0xff]  ;;  %5809 = vmatpush.msrb.mxu2 %v5227_v4  ;;  %v4848_v16 = vld [vmem:[#allocation15 + $0xf8] sm:$0xff] }
 0x770   : > { %v5095_v26 = vld [vmem:[#allocation15 + $0x8b0] sm:$0xff]  ;;  %5828 = vmatpush.msrb.mxu3 %v5295_v24  ;;  %v4912_v60 = vld [vmem:[#allocation15 + $0x2f8] sm:$0xff] }
 0x771   : > { %v5159_v56 = vld [vmem:[#allocation15 + $0xab0] sm:$0xff]  ;;  %5770 = vmatpush.msrb.mxu0 %v5095_v26  ;;  %v4976_v9 = vld [vmem:[#allocation15 + $0x4f8] sm:$0xff] }
 0x772   : > { %v5223_v46 = vld [vmem:[#allocation15 + $0xcb0] sm:$0xff]  ;;  %5790 = vmatpush.msrb.mxu1 %v5159_v56  ;;  %v5044_v28 = vld [vmem:[#allocation15 + $0x718] sm:$0xff] }
 0x773   : > { %v5291_v40 = vld [vmem:[#allocation15 + $0xed0] sm:$0xff]  ;;  %5810 = vmatpush.msrb.mxu2 %v5223_v46  ;;  %v4844_v4 = vld [vmem:[#allocation15 + $0xd8] sm:$0xff] }
 0x774   : > { %v5091_v34 = vld [vmem:[#allocation15 + $0x890] sm:$0xff]  ;;  %5829 = vmatpush.msrb.mxu3 %v5291_v40  ;;  %v4908_v24 = vld [vmem:[#allocation15 + $0x2d8] sm:$0xff] }
 0x775   : > { %v5155_v63 = vld [vmem:[#allocation15 + $0xa90] sm:$0xff]  ;;  %5771 = vmatpush.msrb.mxu0 %v5091_v34  ;;  %v4972_v26 = vld [vmem:[#allocation15 + $0x4d8] sm:$0xff] }
 0x776   : > { %v5219_v58 = vld [vmem:[#allocation15 + $0xc90] sm:$0xff]  ;;  %5791 = vmatpush.msrb.mxu1 %v5155_v63  ;;  %v5040_v56 = vld [vmem:[#allocation15 + $0x6f8] sm:$0xff] }
 0x777   : > { %v5287_v6 = vld [vmem:[#allocation15 + $0xeb0] sm:$0xff]  ;;  %5811 = vmatpush.msrb.mxu2 %v5219_v58  ;;  %v4840_v46 = vld [vmem:[#allocation15 + $0xb8] sm:$0xff] }
 0x778   : > { %v5087_v37 = vld [vmem:[#allocation15 + $0x870] sm:$0xff]  ;;  %5830 = vmatpush.msrb.mxu3 %v5287_v6  ;;  %v4904_v40 = vld [vmem:[#allocation15 + $0x2b8] sm:$0xff] }
 0x779   : > { %v5151_v7 = vld [vmem:[#allocation15 + $0xa70] sm:$0xff]  ;;  %5772 = vmatpush.msrb.mxu0 %v5087_v37  ;;  %v4968_v34 = vld [vmem:[#allocation15 + $0x4b8] sm:$0xff] }
 0x77a   : > { %v5215_v29 = vld [vmem:[#allocation15 + $0xc70] sm:$0xff]  ;;  %5792 = vmatpush.msrb.mxu1 %v5151_v7  ;;  %v5036_v63 = vld [vmem:[#allocation15 + $0x6d8] sm:$0xff] }
 0x77b   : > { %v5283_v55 = vld [vmem:[#allocation15 + $0xe90] sm:$0xff]  ;;  %5812 = vmatpush.msrb.mxu2 %v5215_v29  ;;  %v4836_v58 = vld [vmem:[#allocation15 + $0x98] sm:$0xff] }
 0x77c   : > { %v5083_v50 = vld [vmem:[#allocation15 + $0x850] sm:$0xff]  ;;  %5831 = vmatpush.msrb.mxu3 %v5283_v55  ;;  %v4900_v6 = vld [vmem:[#allocation15 + $0x298] sm:$0xff] }
 0x77d   : > { %v5147_v18 = vld [vmem:[#allocation15 + $0xa50] sm:$0xff]  ;;  %5773 = vmatpush.msrb.mxu0 %v5083_v50  ;;  %v4964_v37 = vld [vmem:[#allocation15 + $0x498] sm:$0xff] }
 0x77e   : > { %v5211_v11 = vld [vmem:[#allocation15 + $0xc50] sm:$0xff]  ;;  %5793 = vmatpush.msrb.mxu1 %v5147_v18  ;;  %v5032_v7 = vld [vmem:[#allocation15 + $0x6b8] sm:$0xff] }
 0x77f   : > { %v10591_v12 = vld.sshfl [vmem:[#allocation1] sm:$0xff pattern:$0x73625140]  ;;  %5813 = vmatpush.msrb.mxu2 %v5211_v11 }
 0x780   : > { %5696 = vmatmul.f32.vlgmr.msra.gmra.mxu0 %v10591_v12  ;;  %v5279_v61 = vld [vmem:[#allocation15 + $0xe70] sm:$0xff]  ;;  %v4832_v29 = vld [vmem:[#allocation15 + $0x78] sm:$0xff] }
 0x781   : > { %v5079_v38 = vld [vmem:[#allocation15 + $0x830] sm:$0xff]  ;;  %5832 = vmatpush.msrb.mxu3 %v5279_v61  ;;  %v4896_v55 = vld [vmem:[#allocation15 + $0x278] sm:$0xff] }
 0x782   : > { %v5143_v48 = vld [vmem:[#allocation15 + $0xa30] sm:$0xff]  ;;  %5774 = vmatpush.msrb.mxu0 %v5079_v38  ;;  %v4960_v50 = vld [vmem:[#allocation15 + $0x478] sm:$0xff] }
 0x783   : > { %v5207_v47 = vld [vmem:[#allocation15 + $0xc30] sm:$0xff]  ;;  %5794 = vmatpush.msrb.mxu1 %v5143_v48  ;;  %v5028_v18 = vld [vmem:[#allocation15 + $0x698] sm:$0xff] }
 0x784   : > { %v5275_v57 = vld [vmem:[#allocation15 + $0xe50] sm:$0xff]  ;;  %5814 = vmatpush.msrb.mxu2 %v5207_v47  ;;  %v4828_v11 = vld [vmem:[#allocation15 + $0x58] sm:$0xff] }
 0x785   : > { %v5075_v19 = vld [vmem:[#allocation15 + $0x810] sm:$0xff]  ;;  %5833 = vmatpush.msrb.mxu3 %v5275_v57  ;;  %v4892_v61 = vld [vmem:[#allocation15 + $0x258] sm:$0xff] }
 0x786   : > { %v5139_v36 = vld [vmem:[#allocation15 + $0xa10] sm:$0xff]  ;;  %5775 = vmatpush.msrb.mxu0 %v5075_v19  ;;  %v4956_v38 = vld [vmem:[#allocation15 + $0x458] sm:$0xff] }
 0x787   : > { %v5203_v53 = vld [vmem:[#allocation15 + $0xc10] sm:$0xff]  ;;  %5795 = vmatpush.msrb.mxu1 %v5139_v36  ;;  %v5024_v48 = vld [vmem:[#allocation15 + $0x678] sm:$0xff] }
 0x788   : > { %v5271_v54 = vld [vmem:[#allocation15 + $0xe30] sm:$0xff]  ;;  %5815 = vmatpush.msrb.mxu2 %v5203_v53  ;;  %5840 = vmatpush.msra.mxu0 %v4880_v31  ;;  %v4824_v47 = vld [vmem:[#allocation15 + $0x38] sm:$0xff] }
 0x789   : > { %5834 = vmatpush.msrb.mxu3 %v5271_v54  ;;  %v5267_v30 = vld [vmem:[#allocation15 + $0xe10] sm:$0xff]  ;;  %5816 = vmatmul.f32.vlgmr.msrb.gmra.mxu2 %v10570_v59  ;;  %v4868_v59 = vld [vmem:[#allocation15 + $0x198] sm:$0xff] }
 0x78a   : > { %5860 = vmatpush.msra.mxu1 %v4944_v27  ;;  %5880 = vmatpush.msra.mxu2 %v5008_v21  ;;  %v4888_v57 = vld [vmem:[#allocation15 + $0x238] sm:$0xff] }
 0x78b   : > { %5835 = vmatpush.msrb.mxu3 %v5267_v30  ;;  %5776 = vmatmul.f32.vlgmr.msrb.gmra.mxu0 %v10572_v49  ;;  %v4864_v49 = vld [vmem:[#allocation15 + $0x178] sm:$0xff] }
 0x78c   : > { %5836 = vmatmul.f32.vlgmr.msrb.gmra.mxu3 %v10575_v52  ;;  %5841 = vmatpush.msra.mxu0 %v4876_v32  ;;  %v4928_v52 = vld [vmem:[#allocation15 + $0x378] sm:$0xff] }
 0x78d   : > { %5861 = vmatpush.msra.mxu1 %v4940_v43  ;;  %5881 = vmatpush.msra.mxu2 %v5004_v3  ;;  %v4952_v19 = vld [vmem:[#allocation15 + $0x438] sm:$0xff] }
 0x78e   : > { %5900 = vmatpush.msra.mxu3 %v5072_v2  ;;  %5796 = vmatmul.f32.vlgmr.msrb.gmra.mxu1 %v10578_v33  ;;  %v4988_v33 = vld [vmem:[#allocation15 + $0x558] sm:$0xff] }
 0x78f   : > { %5842 = vmatpush.msra.mxu0 %v4872_v13  ;;  %5862 = vmatpush.msra.mxu1 %v4936_v15  ;;  %v5020_v36 = vld [vmem:[#allocation15 + $0x658] sm:$0xff] }
 0x790   : > { %5882 = vmatpush.msra.mxu2 %v5000_v45  ;;  %5901 = vmatpush.msra.mxu3 %v5068_v42  ;;  %v4820_v53 = vld [vmem:[#allocation15 + $0x18] sm:$0xff] }
 0x791   : > { %5843 = vmatpush.msra.mxu0 %v4868_v59  ;;  %5863 = vmatpush.msra.mxu1 %v4932_v14  ;;  %v4884_v54 = vld [vmem:[#allocation15 + $0x218] sm:$0xff] }
 0x792   : > { %5883 = vmatpush.msra.mxu2 %v4996_v41  ;;  %5902 = vmatpush.msra.mxu3 %v5064_v22  ;;  %v4948_v31 = vld [vmem:[#allocation15 + $0x418] sm:$0xff] }
 0x793   : > { %5844 = vmatpush.msra.mxu0 %v4864_v49  ;;  %5864 = vmatpush.msra.mxu1 %v4928_v52  ;;  %v5016_v27 = vld [vmem:[#allocation15 + $0x638] sm:$0xff] }
 0x794   : > { %5884 = vmatpush.msra.mxu2 %v4992_v10  ;;  %5903 = vmatpush.msra.mxu3 %v5060_v35  ;;  %v5136_v21 = vld [vmem:[#allocation15 + $0x9f8] sm:$0xff] }
 0x795   : > { %5845 = vmatpush.msra.mxu0 %v4860_v39  ;;  %5865 = vmatpush.msra.mxu1 %v4924_v5  ;;  %v5200_v30 = vld [vmem:[#allocation15 + $0xbf8] sm:$0xff] }
 0x796   : > { %5885 = vmatpush.msra.mxu2 %v4988_v33  ;;  %5904 = vmatpush.msra.mxu3 %v5056_v44  ;;  %v5264_v32 = vld [vmem:[#allocation15 + $0xdf8] sm:$0xff] }
 0x797   : > { %5846 = vmatpush.msra.mxu0 %v4856_v8  ;;  %5866 = vmatpush.msra.mxu1 %v4920_v17  ;;  %v5012_v43 = vld [vmem:[#allocation15 + $0x618] sm:$0xff] }
 0x798   : > { %5886 = vmatpush.msra.mxu2 %v4984_v1  ;;  %5905 = vmatpush.msra.mxu3 %v5052_v23  ;;  %v5132_v3 = vld [vmem:[#allocation15 + $0x9d8] sm:$0xff] }
 0x799   : > { %5847 = vmatpush.msra.mxu0 %v4852_v62  ;;  %5867 = vmatpush.msra.mxu1 %v4916_v51  ;;  %v5196_v2 = vld [vmem:[#allocation15 + $0xbd8] sm:$0xff] }
 0x79a   : > { %5887 = vmatpush.msra.mxu2 %v4980_v20  ;;  %5906 = vmatpush.msra.mxu3 %v5048_v0  ;;  %v5260_v13 = vld [vmem:[#allocation15 + $0xdd8] sm:$0xff]  ;;  %v10602_v20 = vpop.f32.mrf.mxu0 }
 0x79b   : > { %5848 = vmatpush.msra.mxu0 %v4848_v16  ;;  %5868 = vmatpush.msra.mxu1 %v4912_v60  ;;  %v5328_v15 = vld [vmem:[#allocation15 + $0xff8] sm:$0xff] }
 0x79c   : > { %5888 = vmatpush.msra.mxu2 %v4976_v9  ;;  %5907 = vmatpush.msra.mxu3 %v5044_v28  ;;  %v5128_v45 = vld [vmem:[#allocation15 + $0x9b8] sm:$0xff] }
 0x79d   : > { %5849 = vmatpush.msra.mxu0 %v4844_v4  ;;  %5869 = vmatpush.msra.mxu1 %v4908_v24  ;;  %v5192_v42 = vld [vmem:[#allocation15 + $0xbb8] sm:$0xff] }
 0x79e   : > { %5889 = vmatpush.msra.mxu2 %v4972_v26  ;;  %5908 = vmatpush.msra.mxu3 %v5040_v56  ;;  %v5256_v59 = vld [vmem:[#allocation15 + $0xdb8] sm:$0xff]  ;;  %v10604_v56 = vpop.f32.mrf.mxu1 }
 0x79f   : > { %5850 = vmatpush.msra.mxu0 %v4840_v46  ;;  %5870 = vmatpush.msra.mxu1 %v4904_v40  ;;  %v5324_v14 = vld [vmem:[#allocation15 + $0xfd8] sm:$0xff] }
 0x7a0   : > { %5890 = vmatpush.msra.mxu2 %v4968_v34  ;;  %5909 = vmatpush.msra.mxu3 %v5036_v63  ;;  %v5124_v41 = vld [vmem:[#allocation15 + $0x998] sm:$0xff] }
 0x7a1   : > { %5851 = vmatpush.msra.mxu0 %v4836_v58  ;;  %5871 = vmatpush.msra.mxu1 %v4900_v6  ;;  %v5188_v22 = vld [vmem:[#allocation15 + $0xb98] sm:$0xff] }
 0x7a2   : > { %5891 = vmatpush.msra.mxu2 %v4964_v37  ;;  %5910 = vmatpush.msra.mxu3 %v5032_v7  ;;  %v5252_v49 = vld [vmem:[#allocation15 + $0xd98] sm:$0xff] }
 0x7a3   : > { %5852 = vmatpush.msra.mxu0 %v4832_v29  ;;  %5872 = vmatpush.msra.mxu1 %v4896_v55  ;;  %v5320_v52 = vld [vmem:[#allocation15 + $0xfb8] sm:$0xff]  ;;  %v10606_v29 = vpop.f32.mrf.mxu2 }
 0x7a4   : > { %5892 = vmatpush.msra.mxu2 %v4960_v50  ;;  %5911 = vmatpush.msra.mxu3 %v5028_v18  ;;  %v5120_v10 = vld [vmem:[#allocation15 + $0x978] sm:$0xff] }
 0x7a5   : > { %5853 = vmatpush.msra.mxu0 %v4828_v11  ;;  %5873 = vmatpush.msra.mxu1 %v4892_v61  ;;  %v5184_v35 = vld [vmem:[#allocation15 + $0xb78] sm:$0xff]  ;;  %v10608_v61 = vpop.f32.mrf.mxu0 }
 0x7a6   : > { %5893 = vmatpush.msra.mxu2 %v4956_v38  ;;  %5912 = vmatpush.msra.mxu3 %v5024_v48  ;;  %v5248_v39 = vld [vmem:[#allocation15 + $0xd78] sm:$0xff] }
 0x7a7   : > { %5854 = vmatpush.msra.mxu0 %v4824_v47  ;;  %5874 = vmatpush.msra.mxu1 %v4888_v57  ;;  %v5316_v5 = vld [vmem:[#allocation15 + $0xf98] sm:$0xff]  ;;  %v10610_v57 = vpop.f32.mrf.mxu3 }
 0x7a8   : > { %5894 = vmatpush.msra.mxu2 %v4952_v19  ;;  %5913 = vmatpush.msra.mxu3 %v5020_v36  ;;  %v5116_v33 = vld [vmem:[#allocation15 + $0x958] sm:$0xff]  ;;  %v7200_v36 = vld.sshfl [vmem:[#allocation1 + $0x10] sm:$0xff pattern:$0x73625140] }
 0x7a9   : > { %5855 = vmatpush.msra.mxu0 %v4820_v53  ;;  %5875 = vmatpush.msra.mxu1 %v4884_v54  ;;  %v5180_v44 = vld [vmem:[#allocation15 + $0xb58] sm:$0xff]  ;;  %v10612_v54 = vld [vmem:[#allocation16] sm:$0xf] }
 0x7aa   : > { %5895 = vmatpush.msra.mxu2 %v4948_v31  ;;  %5914 = vmatpush.msra.mxu3 %v5016_v27  ;;  %v5244_v8 = vld [vmem:[#allocation15 + $0xd58] sm:$0xff]  ;;  %v10614_v31 = vpop.f32.mrf.mxu1 }
 0x7ab   : > { %5920 = vmatpush.msrb.mxu0 %v5136_v21  ;;  %5940 = vmatpush.msrb.mxu1 %v5200_v30  ;;  %v5312_v17 = vld [vmem:[#allocation15 + $0xf78] sm:$0xff] }
 0x7ac   : > { %5960 = vmatpush.msrb.mxu2 %v5264_v32  ;;  %5915 = vmatpush.msra.mxu3 %v5012_v43  ;;  %v5112_v1 = vld [vmem:[#allocation15 + $0x938] sm:$0xff]  ;;  %v7201_v32 = vld.sshfl [vmem:[#allocation1 + $0x18] sm:$0xff pattern:$0x73625140] }
 0x7ad   : > { %5921 = vmatpush.msrb.mxu0 %v5132_v3  ;;  %5941 = vmatpush.msrb.mxu1 %v5196_v2  ;;  %v5176_v23 = vld [vmem:[#allocation15 + $0xb38] sm:$0xff]  ;;  %v5331_v2 = vperm.slane %v10612_v54, 0 }
 0x7ae   : > { %5961 = vmatpush.msrb.mxu2 %v5260_v13  ;;  %5980 = vmatpush.msrb.mxu3 %v5328_v15  ;;  %v5240_v62 = vld [vmem:[#allocation15 + $0xd38] sm:$0xff] }
 0x7af   : > { %5922 = vmatpush.msrb.mxu0 %v5128_v45  ;;  %5942 = vmatpush.msrb.mxu1 %v5192_v42  ;;  %v5308_v51 = vld [vmem:[#allocation15 + $0xf58] sm:$0xff]  ;;  %v5332_v45 = vperm.slane %v10612_v54, 1  ;;  %v10619_v42 = vpop.f32.mrf.mxu2 }
 0x7b0   : > { %5962 = vmatpush.msrb.mxu2 %v5256_v59  ;;  %5981 = vmatpush.msrb.mxu3 %v5324_v14  ;;  %v5108_v0 = vld [vmem:[#allocation15 + $0x918] sm:$0xff]  ;;  %v5537_v14 = vpop.f32.mrf.mxu0 }
 0x7b1   : > { %5923 = vmatpush.msrb.mxu0 %v5124_v41  ;;  %5943 = vmatpush.msrb.mxu1 %v5188_v22  ;;  %v5172_v16 = vld [vmem:[#allocation15 + $0xb18] sm:$0xff] }
 0x7b2   : > { %5963 = vmatpush.msrb.mxu2 %v5252_v49  ;;  %5982 = vmatpush.msrb.mxu3 %v5320_v52  ;;  %v5236_v60 = vld [vmem:[#allocation15 + $0xd18] sm:$0xff]  ;;  %v5378_v52 = vadd.f32 %v10602_v20, %v5331_v2 }
 0x7b3   : > { %5924 = vmatpush.msrb.mxu0 %v5120_v10  ;;  %5944 = vmatpush.msrb.mxu1 %v5184_v35  ;;  %v5304_v9 = vld [vmem:[#allocation15 + $0xf38] sm:$0xff] }
 0x7b4   : > { %5964 = vmatpush.msrb.mxu2 %v5248_v39  ;;  %5983 = vmatpush.msrb.mxu3 %v5316_v5  ;;  %v5104_v28 = vld [vmem:[#allocation15 + $0x8f8] sm:$0xff]  ;;  %v5538_v39 = vadd.f32 %v5537_v14, %v5332_v45  ;;  %v10623_v5 = vpop.f32.mrf.mxu3  ;;  %v6080_v45 = vld [vmem:[#allocation18 + $0x260] sm:$0xff] }
 0x7b5   : > { %5925 = vmatpush.msrb.mxu0 %v5116_v33  ;;  %5945 = vmatpush.msrb.mxu1 %v5180_v44  ;;  %v5168_v4 = vld [vmem:[#allocation15 + $0xaf8] sm:$0xff]  ;;  %v7202_v33 = vld.sshfl [vmem:[#allocation1 + $0x30] sm:$0xff pattern:$0x73625140] }
 0x7b6   : > { %5965 = vmatpush.msrb.mxu2 %v5244_v8  ;;  %5984 = vmatpush.msrb.mxu3 %v5312_v17  ;;  %v5232_v24 = vld [vmem:[#allocation15 + $0xcf8] sm:$0xff]  ;;  %v6032_v44 = vld [vmem:[#allocation18 + $0xe0] sm:$0xff] }
 0x7b7   : > { %5926 = vmatpush.msrb.mxu0 %v5112_v1  ;;  %5946 = vmatpush.msrb.mxu1 %v5176_v23  ;;  %v5300_v26 = vld [vmem:[#allocation15 + $0xf18] sm:$0xff]  ;;  %v6064_v8 = vld [vmem:[#allocation18 + $0x1e0] sm:$0xff]  ;;  %v5398_v1 = vadd.f32 %v10604_v56, %v5378_v52 }
 0x7b8   : > { %5966 = vmatpush.msrb.mxu2 %v5240_v62  ;;  %5985 = vmatpush.msrb.mxu3 %v5308_v51  ;;  %v5100_v46 = vld [vmem:[#allocation15 + $0x8d8] sm:$0xff]  ;;  %v7204_v62 = vld.sshfl [vmem:[#allocation1 + $0x38] sm:$0xff pattern:$0x73625140] }
 0x7b9   : > { %5927 = vmatpush.msrb.mxu0 %v5108_v0  ;;  %5947 = vmatpush.msrb.mxu1 %v5172_v16  ;;  %v5164_v40 = vld [vmem:[#allocation15 + $0xad8] sm:$0xff]  ;;  %v5577_v16 = vpop.f32.mrf.mxu2 }
 0x7ba   : > { %5967 = vmatpush.msrb.mxu2 %v5236_v60  ;;  %5986 = vmatpush.msrb.mxu3 %v5304_v9  ;;  %v5228_v34 = vld [vmem:[#allocation15 + $0xcd8] sm:$0xff]  ;;  %v6096_v60 = vld [vmem:[#allocation18 + $0x2e0] sm:$0xff] }
 0x7bb   : > { %5928 = vmatpush.msrb.mxu0 %v5104_v28  ;;  %5948 = vmatpush.msrb.mxu1 %v5168_v4  ;;  %v5296_v63 = vld [vmem:[#allocation15 + $0xef8] sm:$0xff]  ;;  %v6028_v28 = vld [vmem:[#allocation18 + $0xc0] sm:$0xff] }
 0x7bc   : > { %5968 = vmatpush.msrb.mxu2 %v5232_v24  ;;  %5987 = vmatpush.msrb.mxu3 %v5300_v26  ;;  %v5096_v58 = vld [vmem:[#allocation15 + $0x8b8] sm:$0xff]  ;;  %v6060_v4 = vld [vmem:[#allocation18 + $0x1c0] sm:$0xff]  ;;  %v5418_v26 = vadd.f32 %v10606_v29, %v5398_v1  ;;  %v5617_v29 = vpop.f32.mrf.mxu0 }
 0x7bd   : > { %v5160_v6 = vld [vmem:[#allocation15 + $0xab8] sm:$0xff]  ;;  %5929 = vmatpush.msrb.mxu0 %v5100_v46  ;;  %5949 = vmatpush.msrb.mxu1 %v5164_v40  ;;  %v6004_v1 = vld [vmem:[#allocation18] sm:$0xff] }
 0x7be   : > { %v5224_v37 = vld [vmem:[#allocation15 + $0xcb8] sm:$0xff]  ;;  %5969 = vmatpush.msrb.mxu2 %v5228_v34  ;;  %5988 = vmatpush.msrb.mxu3 %v5296_v63  ;;  %v5597_v34 = vpop.f32.mrf.mxu3  ;;  %v6092_v63 = vld [vmem:[#allocation18 + $0x2c0] sm:$0xff] }
 0x7bf   : > { %v5292_v7 = vld [vmem:[#allocation15 + $0xed8] sm:$0xff]  ;;  %5930 = vmatpush.msrb.mxu0 %v5096_v58  ;;  %5950 = vmatpush.msrb.mxu1 %v5160_v6  ;;  %v6024_v58 = vld [vmem:[#allocation18 + $0xa0] sm:$0xff] }
 0x7c0   : > { %v5092_v55 = vld [vmem:[#allocation15 + $0x898] sm:$0xff]  ;;  %5970 = vmatpush.msrb.mxu2 %v5224_v37  ;;  %5989 = vmatpush.msrb.mxu3 %v5292_v7  ;;  %v6056_v6 = vld [vmem:[#allocation18 + $0x1a0] sm:$0xff]  ;;  %v5438_v7 = vadd.f32 %v10610_v57, %v5418_v26  ;;  %v6029_v26 = vld [vmem:[#allocation18 + $0xc8] sm:$0xff] }
 0x7c1   : > { %v5156_v50 = vld [vmem:[#allocation15 + $0xa98] sm:$0xff]  ;;  %5931 = vmatpush.msrb.mxu0 %v5092_v55  ;;  %5896 = vmatmul.f32.vlgmr.msra.gmra.mxu2 %v7200_v36 }
 0x7c2   : > { %v5220_v18 = vld [vmem:[#allocation15 + $0xc98] sm:$0xff]  ;;  %5951 = vmatpush.msrb.mxu1 %v5156_v50  ;;  %5856 = vmatmul.f32.vlgmr.msra.gmra.mxu0 %v10591_v12 }
 0x7c3   : > { %v5288_v11 = vld [vmem:[#allocation15 + $0xeb8] sm:$0xff]  ;;  %5971 = vmatpush.msrb.mxu2 %v5220_v18  ;;  %5916 = vmatmul.f32.vlgmr.msra.gmra.mxu3 %v7201_v32  ;;  %v6048_v32 = vld [vmem:[#allocation18 + $0x160] sm:$0xff] }
 0x7c4   : > { %v5088_v38 = vld [vmem:[#allocation15 + $0x878] sm:$0xff]  ;;  %5990 = vmatpush.msrb.mxu3 %v5288_v11  ;;  %5876 = vmatmul.f32.vlgmr.msra.gmra.mxu1 %v10595_v25  ;;  %v5557_v25 = vpop.f32.mrf.mxu1  ;;  %v6088_v11 = vld [vmem:[#allocation18 + $0x2a0] sm:$0xff] }
 0x7c5   : > { %v5152_v48 = vld [vmem:[#allocation15 + $0xa78] sm:$0xff]  ;;  %5932 = vmatpush.msrb.mxu0 %v5088_v38  ;;  %v5558_v0 = vadd.f32 %v5557_v25, %v5538_v39  ;;  %v6020_v38 = vld [vmem:[#allocation18 + $0x80] sm:$0xff] }
 0x7c6   : > { %v5216_v47 = vld [vmem:[#allocation15 + $0xc78] sm:$0xff]  ;;  %5952 = vmatpush.msrb.mxu1 %v5152_v48  ;;  %v6052_v48 = vld [vmem:[#allocation18 + $0x180] sm:$0xff] }
 0x7c7   : > { %v5284_v19 = vld [vmem:[#allocation15 + $0xe98] sm:$0xff]  ;;  %5972 = vmatpush.msrb.mxu2 %v5216_v47  ;;  %v5578_v56 = vadd.f32 %v5577_v16, %v5558_v0  ;;  %v6040_v39 = vld [vmem:[#allocation18 + $0x120] sm:$0xff]  ;;  %v6033_v16 = vld [vmem:[#allocation18 + $0xe8] sm:$0xff] }
 0x7c8   : > { %v5084_v53 = vld [vmem:[#allocation15 + $0x858] sm:$0xff]  ;;  %5991 = vmatpush.msrb.mxu3 %v5284_v19  ;;  %v5458_v19 = vadd.f32 %v10608_v61, %v5438_v7  ;;  %v5657_v61 = vpop.f32.mrf.mxu2  ;;  %v6093_v7 = vld [vmem:[#allocation18 + $0x2c8] sm:$0xff] }
 0x7c9   : > { %v5148_v27 = vld [vmem:[#allocation15 + $0xa58] sm:$0xff]  ;;  %5933 = vmatpush.msrb.mxu0 %v5084_v53  ;;  %v5598_v55 = vadd.f32 %v5597_v34, %v5578_v56  ;;  %v6061_v56 = vld [vmem:[#allocation18 + $0x1c8] sm:$0xff] }
 0x7ca   : > { %v5212_v21 = vld [vmem:[#allocation15 + $0xc58] sm:$0xff]  ;;  %5953 = vmatpush.msrb.mxu1 %v5148_v27 }
 0x7cb   : > { %v5280_v30 = vld [vmem:[#allocation15 + $0xe78] sm:$0xff]  ;;  %5973 = vmatpush.msrb.mxu2 %v5212_v21  ;;  %v5618_v36 = vadd.f32 %v5617_v29, %v5598_v55  ;;  %v6084_v21 = vld [vmem:[#allocation18 + $0x280] sm:$0xff]  ;;  %v6021_v29 = vld [vmem:[#allocation18 + $0x88] sm:$0xff] }
 0x7cc   : > { %v5080_v43 = vld [vmem:[#allocation15 + $0x838] sm:$0xff]  ;;  %5992 = vmatpush.msrb.mxu3 %v5280_v30  ;;  %v5637_v57 = vpop.f32.mrf.mxu1  ;;  %v6016_v30 = vld [vmem:[#allocation18 + $0x60] sm:$0xff] }
 0x7cd   : > { %v5144_v3 = vld [vmem:[#allocation15 + $0xa38] sm:$0xff]  ;;  %5934 = vmatpush.msrb.mxu0 %v5080_v43  ;;  %v5638_v2 = vadd.f32 %v5637_v57, %v5618_v36  ;;  %v6017_v57 = vld [vmem:[#allocation18 + $0x68] sm:$0xff] }
 0x7ce   : > { %v5208_v13 = vld [vmem:[#allocation15 + $0xc38] sm:$0xff]  ;;  %5954 = vmatpush.msrb.mxu1 %v5144_v3  ;;  %v5478_v3 = vadd.f32 %v10614_v31, %v5458_v19  ;;  %v5677_v31 = vpop.f32.mrf.mxu3  ;;  %v5333_v19 = vperm.slane %v10612_v54, 2 }
 0x7cf   : > { %v5276_v15 = vld [vmem:[#allocation15 + $0xe58] sm:$0xff]  ;;  %5974 = vmatpush.msrb.mxu2 %v5208_v13 }
 0x7d0   : > { %v5076_v12 = vld [vmem:[#allocation15 + $0x818] sm:$0xff]  ;;  %5993 = vmatpush.msrb.mxu3 %v5276_v15 }
 0x7d1   : > { %v5140_v59 = vld [vmem:[#allocation15 + $0xa18] sm:$0xff]  ;;  %5935 = vmatpush.msrb.mxu0 %v5076_v12  ;;  %v6012_v12 = vld [vmem:[#allocation18 + $0x40] sm:$0xff] }
 0x7d2   : > { %v5204_v41 = vld [vmem:[#allocation15 + $0xc18] sm:$0xff]  ;;  %5955 = vmatpush.msrb.mxu1 %v5140_v59  ;;  %v6044_v59 = vld [vmem:[#allocation18 + $0x140] sm:$0xff] }
 0x7d3   : > { %v5272_v22 = vld [vmem:[#allocation15 + $0xe38] sm:$0xff]  ;;  %5975 = vmatpush.msrb.mxu2 %v5204_v41  ;;  %v5498_v41 = vadd.f32 %v10619_v42, %v5478_v3 }
 0x7d4   : > { %v6034_v49 = vld [vmem:[#allocation18 + $0xf0] sm:$0xff]  ;;  %5994 = vmatpush.msrb.mxu3 %v5272_v22  ;;  %5976 = vmatmul.f32.vlgmr.msrb.gmra.mxu2 %v7202_v33  ;;  %v7205_v9 = vld.sshfl [vmem:[#allocation1 + $0x28] sm:$0xff pattern:$0x73625140]  ;;  %v5658_v22 = vadd.f32 %v5657_v61, %v5638_v2 }
 0x7d5   : > { %v6066_v10 = vld [vmem:[#allocation18 + $0x1f0] sm:$0xff]  ;;  %6138 = vmatpush.msra.mxu0 %v6034_v49  ;;  %5956 = vmatmul.f32.vlgmr.msrb.gmra.mxu1 %v7205_v9  ;;  %v10632_v33 = vadd.f32 %v10623_v5, %v5498_v41  ;;  %v6067_v5 = vld [vmem:[#allocation18 + $0x1f8] sm:$0xff]  ;;  %v6068_v9 = vld [vmem:[#allocation18 + $0x200] sm:$0xff] }
 0x7d6   : > { %v5268_v35 = vld [vmem:[#allocation15 + $0xe18] sm:$0xff]  ;;  %6158 = vmatpush.msra.mxu1 %v6066_v10  ;;  %v6076_v10 = vld [vmem:[#allocation18 + $0x240] sm:$0xff] }
 0x7d7   : > { %5995 = vmatpush.msrb.mxu3 %v5268_v35  ;;  %v6098_v17 = vld [vmem:[#allocation18 + $0x2f0] sm:$0xff]  ;;  %6139 = vmatpush.msra.mxu0 %v6032_v44  ;;  %v6008_v35 = vld [vmem:[#allocation18 + $0x20] sm:$0xff]  ;;  %v10634_v44 = vadd.f32 %v5677_v31, %v5658_v22  ;;  %v6059_v34 = vld [vmem:[#allocation18 + $0x1b8] sm:$0xff] }
 0x7d8   : > { %v7203_v23 = vld.sshfl [vmem:[#allocation1 + $0x20] sm:$0xff pattern:$0x73625140]  ;;  %5996 = vmatmul.f32.vlgmr.msrb.gmra.mxu3 %v7204_v62  ;;  %6159 = vmatpush.msra.mxu1 %v6064_v8  ;;  %v6000_v62 = vmax.f32 %v10632_v33, 0.0  ;;  %v6023_v55 = vld [vmem:[#allocation18 + $0x98] sm:$0xff]  ;;  %v6081_v22 = vld [vmem:[#allocation18 + $0x268] sm:$0xff] }
 0x7d9   : > { %5936 = vmatmul.f32.vlgmr.msrb.gmra.mxu0 %v7203_v23  ;;  %v6030_v51 = vld [vmem:[#allocation18 + $0xd0] sm:$0xff]  ;;  %6178 = vmatpush.msra.mxu2 %v6098_v17  ;;  %v6072_v17 = vld [vmem:[#allocation18 + $0x220] sm:$0xff]  ;;  %v6087_v36 = vld [vmem:[#allocation18 + $0x298] sm:$0xff] }
 0x7da   : > { %v6062_v20 = vld [vmem:[#allocation18 + $0x1d0] sm:$0xff]  ;;  %6140 = vmatpush.msra.mxu0 %v6030_v51  ;;  %v6036_v23 = vld [vmem:[#allocation18 + $0x100] sm:$0xff]  ;;  %v6001_v51 = vmax.f32 %v10634_v44, 0.0  ;;  %v6015_v3 = vld [vmem:[#allocation18 + $0x58] sm:$0xff] }
 0x7db   : > { %6160 = vmatpush.msra.mxu1 %v6062_v20  ;;  %v6094_v24 = vld [vmem:[#allocation18 + $0x2d0] sm:$0xff]  ;;  %6179 = vmatpush.msra.mxu2 %v6096_v60  ;;  %v6035_v20 = vld [vmem:[#allocation18 + $0xf8] sm:$0xff]  ;;  %v6065_v60 = vld [vmem:[#allocation18 + $0x1e8] sm:$0xff]  ;;  %v5737_v41 = vpop.f32.mrf.mxu2 }
 0x7dc   : > { %v6026_v46 = vld [vmem:[#allocation18 + $0xb0] sm:$0xff]  ;;  %6141 = vmatpush.msra.mxu0 %v6028_v28  ;;  %v6031_v28 = vld [vmem:[#allocation18 + $0xd8] sm:$0xff]  ;;  %v6104_v33 = vld [vmem:[#allocation18 + $0x320] sm:$0xff] }
 0x7dd   : > { %v6058_v40 = vld [vmem:[#allocation18 + $0x1b0] sm:$0xff]  ;;  %6161 = vmatpush.msra.mxu1 %v6060_v4  ;;  %6180 = vmatpush.msra.mxu2 %v6094_v24  ;;  %v6063_v4 = vld [vmem:[#allocation18 + $0x1d8] sm:$0xff] }
 0x7de   : > { %6142 = vmatpush.msra.mxu0 %v6026_v46  ;;  %v6090_v37 = vld [vmem:[#allocation18 + $0x2b0] sm:$0xff]  ;;  %v6099_v24 = vld [vmem:[#allocation18 + $0x2f8] sm:$0xff]  ;;  %v6097_v46 = vld [vmem:[#allocation18 + $0x2e8] sm:$0xff] }
 0x7df   : > { %6162 = vmatpush.msra.mxu1 %v6058_v40  ;;  %v6022_v50 = vld [vmem:[#allocation18 + $0x90] sm:$0xff]  ;;  %6181 = vmatpush.msra.mxu2 %v6092_v63  ;;  %v6027_v40 = vld [vmem:[#allocation18 + $0xb8] sm:$0xff] }
 0x7e0   : > { %v6054_v18 = vld [vmem:[#allocation18 + $0x190] sm:$0xff]  ;;  %6143 = vmatpush.msra.mxu0 %v6024_v58  ;;  %v6095_v63 = vld [vmem:[#allocation18 + $0x2d8] sm:$0xff]  ;;  %v6025_v58 = vld [vmem:[#allocation18 + $0xa8] sm:$0xff] }
 0x7e1   : > { %6163 = vmatpush.msra.mxu1 %v6056_v6  ;;  %6182 = vmatpush.msra.mxu2 %v6090_v37  ;;  %v6086_v47 = vld [vmem:[#allocation18 + $0x290] sm:$0xff]  ;;  %v6057_v6 = vld [vmem:[#allocation18 + $0x1a8] sm:$0xff]  ;;  %v6047_v2 = vld [vmem:[#allocation18 + $0x158] sm:$0xff] }
 0x7e2   : > { %6144 = vmatpush.msra.mxu0 %v6022_v50  ;;  %v6018_v53 = vld [vmem:[#allocation18 + $0x70] sm:$0xff]  ;;  %v6055_v50 = vld [vmem:[#allocation18 + $0x198] sm:$0xff] }
 0x7e3   : > { %6164 = vmatpush.msra.mxu1 %v6054_v18  ;;  %v6050_v27 = vld [vmem:[#allocation18 + $0x170] sm:$0xff]  ;;  %6183 = vmatpush.msra.mxu2 %v6088_v11  ;;  %v6091_v18 = vld [vmem:[#allocation18 + $0x2b8] sm:$0xff]  ;;  %v6053_v11 = vld [vmem:[#allocation18 + $0x188] sm:$0xff] }
 0x7e4   : > { %6145 = vmatpush.msra.mxu0 %v6020_v38  ;;  %v6082_v43 = vld [vmem:[#allocation18 + $0x270] sm:$0xff]  ;;  %v6089_v38 = vld [vmem:[#allocation18 + $0x2a8] sm:$0xff]  ;;  %v6043_v31 = vld [vmem:[#allocation18 + $0x138] sm:$0xff] }
 0x7e5   : > { %6165 = vmatpush.msra.mxu1 %v6052_v48  ;;  %6184 = vmatpush.msra.mxu2 %v6086_v47  ;;  %v6014_v13 = vld [vmem:[#allocation18 + $0x50] sm:$0xff]  ;;  %v6019_v48 = vld [vmem:[#allocation18 + $0x78] sm:$0xff] }
 0x7e6   : > { %6146 = vmatpush.msra.mxu0 %v6018_v53  ;;  %v6046_v15 = vld [vmem:[#allocation18 + $0x150] sm:$0xff]  ;;  %v6051_v47 = vld [vmem:[#allocation18 + $0x178] sm:$0xff]  ;;  %v6128_v53 = vld [vmem:[#allocation18 + $0x3e0] sm:$0xff] }
 0x7e7   : > { %6166 = vmatpush.msra.mxu1 %v6050_v27  ;;  %6185 = vmatpush.msra.mxu2 %v6084_v21  ;;  %v6078_v14 = vld [vmem:[#allocation18 + $0x250] sm:$0xff]  ;;  %v6049_v21 = vld [vmem:[#allocation18 + $0x168] sm:$0xff] }
 0x7e8   : > { %6147 = vmatpush.msra.mxu0 %v6016_v30  ;;  %v6010_v49 = vld [vmem:[#allocation18 + $0x30] sm:$0xff] }
 0x7e9   : > { %6167 = vmatpush.msra.mxu1 %v6048_v32  ;;  %6186 = vmatpush.msra.mxu2 %v6082_v43  ;;  %v6042_v52 = vld [vmem:[#allocation18 + $0x130] sm:$0xff]  ;;  %v6085_v32 = vld [vmem:[#allocation18 + $0x288] sm:$0xff]  ;;  %v6124_v43 = vld [vmem:[#allocation18 + $0x3c0] sm:$0xff] }
 0x7ea   : > { %6148 = vmatpush.msra.mxu0 %v6014_v13  ;;  %v6074_v25 = vld [vmem:[#allocation18 + $0x230] sm:$0xff] }
 0x7eb   : > { %6168 = vmatpush.msra.mxu1 %v6046_v15  ;;  %6187 = vmatpush.msra.mxu2 %v6080_v45  ;;  %v6006_v42 = vld [vmem:[#allocation18 + $0x10] sm:$0xff]  ;;  %v6083_v15 = vld [vmem:[#allocation18 + $0x278] sm:$0xff]  ;;  %v6013_v45 = vld [vmem:[#allocation18 + $0x48] sm:$0xff] }
 0x7ec   : > { %6149 = vmatpush.msra.mxu0 %v6012_v12  ;;  %v6038_v8 = vld [vmem:[#allocation18 + $0x110] sm:$0xff]  ;;  %v6045_v12 = vld [vmem:[#allocation18 + $0x148] sm:$0xff] }
 0x7ed   : > { %6169 = vmatpush.msra.mxu1 %v6044_v59  ;;  %6188 = vmatpush.msra.mxu2 %v6078_v14  ;;  %v6070_v0 = vld [vmem:[#allocation18 + $0x210] sm:$0xff]  ;;  %v5717_v59 = vpop.f32.mrf.mxu1 }
 0x7ee   : > { %6150 = vmatpush.msra.mxu0 %v6010_v49  ;;  %v6130_v37 = vld [vmem:[#allocation18 + $0x3f0] sm:$0xff]  ;;  %v6120_v49 = vld [vmem:[#allocation18 + $0x3a0] sm:$0xff] }
 0x7ef   : > { %6170 = vmatpush.msra.mxu1 %v6042_v52  ;;  %6189 = vmatpush.msra.mxu2 %v6076_v10  ;;  %v6126_v27 = vld [vmem:[#allocation18 + $0x3d0] sm:$0xff]  ;;  %v6011_v52 = vld [vmem:[#allocation18 + $0x38] sm:$0xff] }
 0x7f0   : > { %6151 = vmatpush.msra.mxu0 %v6008_v35  ;;  %6198 = vmatpush.msra.mxu3 %v6130_v37  ;;  %v6122_v61 = vld [vmem:[#allocation18 + $0x3b0] sm:$0xff]  ;;  %v6079_v35 = vld [vmem:[#allocation18 + $0x258] sm:$0xff]  ;;  %v6069_v37 = vld [vmem:[#allocation18 + $0x208] sm:$0xff] }
 0x7f1   : > { %6171 = vmatpush.msra.mxu1 %v6040_v39  ;;  %6190 = vmatpush.msra.mxu2 %v6074_v25  ;;  %v6118_v39 = vld [vmem:[#allocation18 + $0x390] sm:$0xff]  ;;  %v6009_v25 = vld [vmem:[#allocation18 + $0x28] sm:$0xff] }
 0x7f2   : > { %6152 = vmatpush.msra.mxu0 %v6006_v42  ;;  %6199 = vmatpush.msra.mxu3 %v6128_v53  ;;  %v6041_v42 = vld [vmem:[#allocation18 + $0x128] sm:$0xff]  ;;  %v6102_v44 = vld [vmem:[#allocation18 + $0x310] sm:$0xff]  ;;  %v6115_v53 = vld [vmem:[#allocation18 + $0x378] sm:$0xff] }
 0x7f3   : > { %6172 = vmatpush.msra.mxu1 %v6038_v8  ;;  %6191 = vmatpush.msra.mxu2 %v6072_v17  ;;  %v5757_v8 = vpop.f32.mrf.mxu3 }
 0x7f4   : > { %6153 = vmatpush.msra.mxu0 %v6004_v1  ;;  %6200 = vmatpush.msra.mxu3 %v6126_v27  ;;  %v6077_v1 = vld [vmem:[#allocation18 + $0x248] sm:$0xff] }
 0x7f5   : > { %6173 = vmatpush.msra.mxu1 %v6036_v23  ;;  %6154 = vmatmul.f32.vlgmr.msra.gmra.mxu0 %v6000_v62  ;;  %v6116_v23 = vld [vmem:[#allocation18 + $0x380] sm:$0xff]  ;;  %v6113_v27 = vld [vmem:[#allocation18 + $0x368] sm:$0xff] }
 0x7f6   : > { %6174 = vmatmul.f32.vlgmr.msra.gmra.mxu1 %v6001_v51  ;;  %6218 = vmatpush.msrb.mxu0 %v6035_v20  ;;  %v6007_v20 = vld [vmem:[#allocation18 + $0x18] sm:$0xff] }
 0x7f7   : > { %6238 = vmatpush.msrb.mxu1 %v6067_v5  ;;  %6192 = vmatpush.msra.mxu2 %v6070_v0  ;;  %v6039_v5 = vld [vmem:[#allocation18 + $0x118] sm:$0xff] }
 0x7f8   : > { %6219 = vmatpush.msrb.mxu0 %v6033_v16  ;;  %6201 = vmatpush.msra.mxu3 %v6124_v43  ;;  %v6075_v16 = vld [vmem:[#allocation18 + $0x238] sm:$0xff] }
 0x7f9   : > { %6239 = vmatpush.msrb.mxu1 %v6065_v60  ;;  %6193 = vmatpush.msra.mxu2 %v6068_v9  ;;  %v6114_v60 = vld [vmem:[#allocation18 + $0x370] sm:$0xff]  ;;  %v6005_v9 = vld [vmem:[#allocation18 + $0x8] sm:$0xff]  ;;  %v6103_v43 = vld [vmem:[#allocation18 + $0x318] sm:$0xff] }
 0x7fa   : > { %6220 = vmatpush.msrb.mxu0 %v6031_v28  ;;  %6202 = vmatpush.msra.mxu3 %v6122_v61  ;;  %v6037_v28 = vld [vmem:[#allocation18 + $0x108] sm:$0xff] }
 0x7fb   : > { %6240 = vmatpush.msrb.mxu1 %v6063_v4  ;;  %6258 = vmatpush.msrb.mxu2 %v6099_v24 }
 0x7fc   : > { %6221 = vmatpush.msrb.mxu0 %v6029_v26  ;;  %6203 = vmatpush.msra.mxu3 %v6120_v49  ;;  %v6073_v26 = vld [vmem:[#allocation18 + $0x228] sm:$0xff] }
 0x7fd   : > { %6241 = vmatpush.msrb.mxu1 %v6061_v56  ;;  %6259 = vmatpush.msrb.mxu2 %v6097_v46  ;;  %v5697_v30 = vpop.f32.mrf.mxu0  ;;  %v6112_v56 = vld [vmem:[#allocation18 + $0x360] sm:$0xff] }
 0x7fe   : > { %6222 = vmatpush.msrb.mxu0 %v6027_v40  ;;  %v5698_v13 = vadd.f32 %v5697_v30, %v5333_v19  ;;  %6204 = vmatpush.msra.mxu3 %v6118_v39  ;;  %v6119_v19 = vld [vmem:[#allocation18 + $0x398] sm:$0xff] }
 0x7ff   : > { %6242 = vmatpush.msrb.mxu1 %v6059_v34  ;;  %6260 = vmatpush.msrb.mxu2 %v6095_v63  ;;  %v6071_v34 = vld [vmem:[#allocation18 + $0x218] sm:$0xff]  ;;  %v6110_v63 = vld [vmem:[#allocation18 + $0x350] sm:$0xff] }
 0x800   : > { %6223 = vmatpush.msrb.mxu0 %v6025_v58  ;;  %v5718_v14 = vadd.f32 %v5717_v59, %v5698_v13  ;;  %6205 = vmatpush.msra.mxu3 %v6116_v23  ;;  %v6107_v30 = vld [vmem:[#allocation18 + $0x338] sm:$0xff] }
 0x801   : > { %6243 = vmatpush.msrb.mxu1 %v6057_v6  ;;  %6261 = vmatpush.msrb.mxu2 %v6093_v7  ;;  %v6108_v7 = vld [vmem:[#allocation18 + $0x340] sm:$0xff]  ;;  %v6330_v23 = vld [vmem:[#allocation21 + $0xf0] sm:$0xff] }
 0x802   : > { %6224 = vmatpush.msrb.mxu0 %v6023_v55  ;;  %v5738_v10 = vadd.f32 %v5737_v41, %v5718_v14  ;;  %6206 = vmatpush.msra.mxu3 %v6114_v60  ;;  %v6327_v60 = vld [vmem:[#allocation21 + $0xd8] sm:$0xff] }
 0x803   : > { %6244 = vmatpush.msrb.mxu1 %v6055_v50  ;;  %6262 = vmatpush.msrb.mxu2 %v6091_v18  ;;  %v6106_v50 = vld [vmem:[#allocation18 + $0x330] sm:$0xff] }
 0x804   : > { %6225 = vmatpush.msrb.mxu0 %v6021_v29  ;;  %v5758_v17 = vadd.f32 %v5757_v8, %v5738_v10  ;;  %6207 = vmatpush.msra.mxu3 %v6112_v56  ;;  %v6129_v29 = vld [vmem:[#allocation18 + $0x3e8] sm:$0xff]  ;;  %v6314_v8 = vld [vmem:[#allocation21 + $0x70] sm:$0xff] }
 0x805   : > { %6245 = vmatpush.msrb.mxu1 %v6053_v11  ;;  %6263 = vmatpush.msrb.mxu2 %v6089_v38  ;;  %v6127_v11 = vld [vmem:[#allocation18 + $0x3d8] sm:$0xff]  ;;  %v6125_v38 = vld [vmem:[#allocation18 + $0x3c8] sm:$0xff] }
 0x806   : > { %6226 = vmatpush.msrb.mxu0 %v6019_v48  ;;  %6208 = vmatpush.msra.mxu3 %v6110_v63  ;;  %v6123_v48 = vld [vmem:[#allocation18 + $0x3b8] sm:$0xff]  ;;  %v6324_v56 = vld [vmem:[#allocation21 + $0xc0] sm:$0xff]  ;;  %v6305_v63 = vld [vmem:[#allocation21 + $0x28] sm:$0xff] }
 0x807   : > { %6246 = vmatpush.msrb.mxu1 %v6051_v47  ;;  %6264 = vmatpush.msrb.mxu2 %v6087_v36  ;;  %v6121_v47 = vld [vmem:[#allocation18 + $0x3a8] sm:$0xff] }
 0x808   : > { %6227 = vmatpush.msrb.mxu0 %v6017_v57  ;;  %v5777_v0 = vpop.f32.mrf.mxu0  ;;  %6209 = vmatpush.msra.mxu3 %v6108_v7  ;;  %v6117_v36 = vld [vmem:[#allocation18 + $0x388] sm:$0xff]  ;;  %v6111_v57 = vld [vmem:[#allocation18 + $0x358] sm:$0xff] }
 0x809   : > { %6247 = vmatpush.msrb.mxu1 %v6049_v21  ;;  %6265 = vmatpush.msrb.mxu2 %v6085_v32  ;;  %v5778_v4 = vadd.f32 %v5777_v0, %v5758_v17  ;;  %v6109_v21 = vld [vmem:[#allocation18 + $0x348] sm:$0xff]  ;;  %v6331_v17 = vld [vmem:[#allocation21 + $0xf8] sm:$0xff]  ;;  %v6322_v7 = vld [vmem:[#allocation21 + $0xb0] sm:$0xff] }
 0x80a   : > { %6228 = vmatpush.msrb.mxu0 %v6015_v3  ;;  %6210 = vmatpush.msra.mxu3 %v6106_v50  ;;  %v6105_v32 = vld [vmem:[#allocation18 + $0x328] sm:$0xff] }
 0x80b   : > { %6248 = vmatpush.msrb.mxu1 %v6047_v2  ;;  %6266 = vmatpush.msrb.mxu2 %v6083_v15  ;;  %v5797_v24 = vpop.f32.mrf.mxu1  ;;  %v6101_v3 = vld [vmem:[#allocation18 + $0x308] sm:$0xff]  ;;  %v5334_v2 = vperm.slane %v10612_v54, 3  ;;  %v6315_v54 = vld [vmem:[#allocation21 + $0x78] sm:$0xff] }
 0x80c   : > { %6229 = vmatpush.msrb.mxu0 %v6013_v45  ;;  %v5798_v46 = vadd.f32 %v5797_v24, %v5778_v4  ;;  %v5817_v40 = vpop.f32.mrf.mxu2  ;;  %6211 = vmatpush.msra.mxu3 %v6104_v33  ;;  %v6328_v0 = vld [vmem:[#allocation21 + $0xe0] sm:$0xff]  ;;  %v6309_v4 = vld [vmem:[#allocation21 + $0x48] sm:$0xff] }
 0x80d   : > { %6249 = vmatpush.msrb.mxu1 %v6045_v12  ;;  %6267 = vmatpush.msrb.mxu2 %v6081_v22  ;;  %v6325_v24 = vld [vmem:[#allocation21 + $0xc8] sm:$0xff]  ;;  %v6320_v33 = vld [vmem:[#allocation21 + $0xa0] sm:$0xff] }
 0x80e   : > { %6230 = vmatpush.msrb.mxu0 %v6011_v52  ;;  %v5818_v58 = vadd.f32 %v5817_v40, %v5798_v46  ;;  %6212 = vmatpush.msra.mxu3 %v6102_v44  ;;  %v6307_v46 = vld [vmem:[#allocation21 + $0x38] sm:$0xff]  ;;  %v6321_v50 = vld [vmem:[#allocation21 + $0xa8] sm:$0xff] }
 0x80f   : > { %6250 = vmatpush.msrb.mxu1 %v6043_v31  ;;  %6268 = vmatpush.msrb.mxu2 %v6079_v35  ;;  %v5837_v6 = vpop.f32.mrf.mxu3  ;;  %v6323_v40 = vld [vmem:[#allocation21 + $0xb8] sm:$0xff] }
 0x810   : > { %6231 = vmatpush.msrb.mxu0 %v6009_v25  ;;  %v5838_v55 = vadd.f32 %v5837_v6, %v5818_v58  ;;  %v6304_v58 = vld [vmem:[#allocation21 + $0x20] sm:$0xff]  ;;  %v6303_v6 = vld [vmem:[#allocation21 + $0x18] sm:$0xff] }
 0x811   : > { %6251 = vmatpush.msrb.mxu1 %v6041_v42  ;;  %6269 = vmatpush.msrb.mxu2 %v6077_v1  ;;  %v6313_v1 = vld [vmem:[#allocation21 + $0x68] sm:$0xff]  ;;  %v6319_v44 = vld [vmem:[#allocation21 + $0x98] sm:$0xff] }
 0x812   : > { %6232 = vmatpush.msrb.mxu0 %v6007_v20  ;;  %v6002_v18 = vmax.f32 %v5838_v55, 0.0  ;;  %v6329_v20 = vld [vmem:[#allocation21 + $0xe8] sm:$0xff] }
 0x813   : > { %6252 = vmatpush.msrb.mxu1 %v6039_v5  ;;  %6270 = vmatpush.msrb.mxu2 %v6075_v16  ;;  %v6312_v5 = vld [vmem:[#allocation21 + $0x60] sm:$0xff]  ;;  %v6311_v16 = vld [vmem:[#allocation21 + $0x58] sm:$0xff]  ;;  %v6301_v55 = vld [vmem:[#allocation21 + $0x8] sm:$0xff] }
 0x814   : > { %6233 = vmatpush.msrb.mxu0 %v6005_v9  ;;  %6194 = vmatmul.f32.vlgmr.msra.gmra.mxu2 %v6002_v18  ;;  %v6310_v9 = vld [vmem:[#allocation21 + $0x50] sm:$0xff] }
 0x815   : > { %6253 = vmatpush.msrb.mxu1 %v6037_v28  ;;  %6234 = vmatmul.f32.vlgmr.msrb.gmra.mxu0 %v6000_v62  ;;  %v6100_v62 = vld [vmem:[#allocation18 + $0x300] sm:$0xff]  ;;  %v6326_v28 = vld [vmem:[#allocation21 + $0xd0] sm:$0xff] }
 0x816   : > { %6254 = vmatmul.f32.vlgmr.msrb.gmra.mxu1 %v6001_v51  ;;  %6271 = vmatpush.msrb.mxu2 %v6073_v26  ;;  %v6131_v51 = vld [vmem:[#allocation18 + $0x3f8] sm:$0xff]  ;;  %v6308_v26 = vld [vmem:[#allocation21 + $0x40] sm:$0xff] }
 0x817   : > { %6213 = vmatpush.msra.mxu3 %v6100_v62  ;;  %6336 = vmatpush.msra.mxu0 %v6315_v54  ;;  %v6318_v62 = vld [vmem:[#allocation21 + $0x90] sm:$0xff] }
 0x818   : > { %6272 = vmatpush.msrb.mxu2 %v6071_v34  ;;  %6356 = vmatpush.msra.mxu1 %v6331_v17  ;;  %v6306_v34 = vld [vmem:[#allocation21 + $0x30] sm:$0xff] }
 0x819   : > { %6278 = vmatpush.msrb.mxu3 %v6131_v51  ;;  %6337 = vmatpush.msra.mxu0 %v6314_v8  ;;  %v6317_v51 = vld [vmem:[#allocation21 + $0x88] sm:$0xff] }
 0x81a   : > { %6273 = vmatpush.msrb.mxu2 %v6069_v37  ;;  %6357 = vmatpush.msra.mxu1 %v6330_v23  ;;  %v6302_v37 = vld [vmem:[#allocation21 + $0x10] sm:$0xff] }
 0x81b   : > { %6279 = vmatpush.msrb.mxu3 %v6129_v29  ;;  %6338 = vmatpush.msra.mxu0 %v6313_v1  ;;  %v6316_v29 = vld [vmem:[#allocation21 + $0x80] sm:$0xff] }
 0x81c   : > { %6274 = vmatmul.f32.vlgmr.msrb.gmra.mxu2 %v6002_v18  ;;  %6358 = vmatpush.msra.mxu1 %v6329_v20  ;;  %v6300_v18 = vld [vmem:[#allocation21] sm:$0xff] }
 0x81d   : > { %6280 = vmatpush.msrb.mxu3 %v6127_v11  ;;  %6339 = vmatpush.msra.mxu0 %v6312_v5  ;;  %v6132_v11 = vld [vmem:[#allocation19] sm:$0x3] }
 0x81e   : > { %6359 = vmatpush.msra.mxu1 %v6328_v0 }
 0x81f   : > { %6281 = vmatpush.msrb.mxu3 %v6125_v38  ;;  %6340 = vmatpush.msra.mxu0 %v6311_v16  ;;  %v6134_v38 = vperm.slane %v6132_v11, 0 }
 0x820   : > { %6360 = vmatpush.msra.mxu1 %v6327_v60 }
 0x821   : > { %6282 = vmatpush.msrb.mxu3 %v6123_v48  ;;  %6341 = vmatpush.msra.mxu0 %v6310_v9 }
 0x822   : > { %6361 = vmatpush.msra.mxu1 %v6326_v28 }
 0x823   : > { %6283 = vmatpush.msrb.mxu3 %v6121_v47  ;;  %6342 = vmatpush.msra.mxu0 %v6309_v4 }
 0x824   : > { %6362 = vmatpush.msra.mxu1 %v6325_v24 }
 0x825   : > { %6284 = vmatpush.msrb.mxu3 %v6119_v19  ;;  %6343 = vmatpush.msra.mxu0 %v6308_v26 }
 0x826   : > { %6363 = vmatpush.msra.mxu1 %v6324_v56 }
 0x827   : > { %6285 = vmatpush.msrb.mxu3 %v6117_v36  ;;  %6344 = vmatpush.msra.mxu0 %v6307_v46 }
 0x828   : > { %6364 = vmatpush.msra.mxu1 %v6323_v40 }
 0x829   : > { %6286 = vmatpush.msrb.mxu3 %v6115_v53  ;;  %6345 = vmatpush.msra.mxu0 %v6306_v34 }
 0x82a   : > { %6365 = vmatpush.msra.mxu1 %v6322_v7 }
 0x82b   : > { %6287 = vmatpush.msrb.mxu3 %v6113_v27  ;;  %6346 = vmatpush.msra.mxu0 %v6305_v63  ;;  %v6135_v27 = vperm.slane %v6132_v11, 1 }
 0x82c   : > { %6366 = vmatpush.msra.mxu1 %v6321_v50 }
 0x82d   : > { %6288 = vmatpush.msrb.mxu3 %v6111_v57  ;;  %6347 = vmatpush.msra.mxu0 %v6304_v58 }
 0x82e   : > { %6367 = vmatpush.msra.mxu1 %v6320_v33 }
 0x82f   : > { %6289 = vmatpush.msrb.mxu3 %v6109_v21  ;;  %6348 = vmatpush.msra.mxu0 %v6303_v6 }
 0x830   : > { %6368 = vmatpush.msra.mxu1 %v6319_v44 }
 0x831   : > { %6290 = vmatpush.msrb.mxu3 %v6107_v30  ;;  %6349 = vmatpush.msra.mxu0 %v6302_v37 }
 0x832   : > { %6369 = vmatpush.msra.mxu1 %v6318_v62 }
 0x833   : > { %6291 = vmatpush.msrb.mxu3 %v6105_v32  ;;  %6350 = vmatpush.msra.mxu0 %v6301_v55 }
 0x834   : > { %6370 = vmatpush.msra.mxu1 %v6317_v51 }
 0x835   : > { %6292 = vmatpush.msrb.mxu3 %v6103_v43  ;;  %6351 = vmatpush.msra.mxu0 %v6300_v18 }
 0x836   : > { %6371 = vmatpush.msra.mxu1 %v6316_v29 }
 0x837   : > { %6293 = vmatpush.msrb.mxu3 %v6101_v3 }
 0x83f   : > { %v5857_v13 = vpop.f32.mrf.mxu0 }
 0x840   : > { %v5858_v15 = vadd.f32 %v5857_v13, %v5334_v2 }
 0x841   : > { %v5877_v61 = vpop.f32.mrf.mxu1 }
 0x842   : > { %v5878_v45 = vadd.f32 %v5877_v61, %v5858_v15 }
 0x844   : > { %v5897_v12 = vpop.f32.mrf.mxu2 }
 0x845   : > { %v5898_v59 = vadd.f32 %v5897_v12, %v5878_v45 }
 0x846   : > { %v5917_v14 = vpop.f32.mrf.mxu3 }
 0x847   : > { %v5918_v41 = vadd.f32 %v5917_v14, %v5898_v59  ;;  %v7193_v14 = vld [vmem:[#allocation22] ss:$0 sm:$0xff] }
 0x852   : > { %v5957_v52 = vpop.f32.mrf.mxu1 }
 0x856   : > { %v5937_v22 = vpop.f32.mrf.mxu0 }
 0x857   : > { %v5938_v49 = vadd.f32 %v5937_v22, %v5918_v41  ;;  %v5977_v10 = vpop.f32.mrf.mxu2 }
 0x859   : > { %v5958_v31 = vadd.f32 %v5957_v52, %v5938_v49 }
 0x85b   : > { %v5978_v35 = vadd.f32 %v5977_v10, %v5958_v31  ;;  %v5997_v39 = vpop.f32.mrf.mxu3 }
 0x85d   : > { %v5998_v25 = vadd.f32 %v5997_v39, %v5978_v35 }
 0x85f   : > { %v6003_v42 = vmax.f32 %v5998_v25, 0.0 }
 0x861   : > { %6214 = vmatmul.f32.vlgmr.msra.gmra.mxu3 %v6003_v42 }
 0x869   : > { %6294 = vmatmul.f32.vlgmr.msrb.gmra.mxu3 %v6003_v42 }
 0x872   : > { %v6155_v48 = vpop.f32.mrf.mxu0 }
 0x873   : > { %v6156_v47 = vadd.f32 %v6155_v48, %v6134_v38  ;;  %v6175_v36 = vpop.f32.mrf.mxu1 }
 0x875   : > { %v6176_v53 = vadd.f32 %v6175_v36, %v6156_v47 }
 0x892   : > { %v6235_v57 = vpop.f32.mrf.mxu0 }
 0x893   : > { %v6236_v32 = vadd.f32 %v6235_v57, %v6135_v27  ;;  %v6255_v2 = vpop.f32.mrf.mxu1 }
 0x895   : > { %v6256_v15 = vadd.f32 %v6255_v2, %v6236_v32 }
 0x897   : > { %v6195_v19 = vpop.f32.mrf.mxu2 }
 0x898   : > { %v6196_v21 = vadd.f32 %v6195_v19, %v6176_v53 }
 0x89f   : > { %v6275_v13 = vpop.f32.mrf.mxu2 }
 0x8a0   : > { %v6276_v61 = vadd.f32 %v6275_v13, %v6256_v15 }
 0x8e4   : > { %v6215_v30 = vpop.f32.mrf.mxu3 }
 0x8e5   : > { %v6216_v43 = vadd.f32 %v6215_v30, %v6196_v21 }
 0x8e7   : > { %v6298_v3 = vmax.f32 %v6216_v43, 0.0 }
 0x8e9   : > { %6352 = vmatmul.f32.vlgmr.msra.gmra.mxu0 %v6298_v3 }
 0x8ec   : > { %v6295_v45 = vpop.f32.mrf.mxu3 }
 0x8ed   : > { %v6296_v12 = vadd.f32 %v6295_v45, %v6276_v61 }
 0x8ef   : > { %v6299_v59 = vmax.f32 %v6296_v12, 0.0 }
 0x8f1   : > { %6372 = vmatmul.f32.vlgmr.msra.gmra.mxu1 %v6299_v59 }
 0x966   : > { %v6353_v41 = vpop.f32.mrf.mxu0 }
 0x967   : > { %v6354_v22 = vadd.f32 %v7193_v14, %v6353_v41 }
 0x96e   : > { %v6373_v49 = vpop.f32.mrf.mxu1 }
 0x96f   : > { %v6374_v52 = vadd.f32 %v6373_v49, %v6354_v22 }
 0x971   : > { %v6377_v31 = vsel %vm6376_vm6, %v6374_v52, -inf }
 0x972   : > { %6378 = vmax.xlane.f32.xlu0 %v6377_v31 }
 0x9e5   : > { %v6379_v10 = vpop.xlane.xlu0 %6378 }
 0x9e6   : > { %v6380_v35 = vsub.f32 %v6374_v52, %v6379_v10 }
 0x9e8   : > { %v6381_v39 = vmul.f32 1.442695, %v6380_v35 }
 0x9ea   : > { %7194 = vpow2.f32 %v6381_v39 }
 0x9f0   : > { %v7195_v25 = vpop.eup %7194 }
 0x9f1   : > { %v6383_v42 = vsel %vm6376_vm6, %v7195_v25, 0.0 }
 0x9f2   : > { %6384 = vadd.xlane.f32.xlu0 %v6383_v42 }
 0xa65   : > { %v6385_v54 = vpop.xlane.xlu0 %6384 }
 0xa66   : > { %7196 = vlog2.f32 %v6385_v54 }
 0xa6c   : > { %v7197_v8 = vpop.eup %7196 }
 0xa6d   : > { %v6387_v17 = vmul.f32 0.6931472, %v7197_v8 }
 0xa6f   : > { %v6388_v1 = vadd.f32 %v6387_v17, %v6379_v10 }
 0xa71   : > { %v6389_v23 = vsub.f32 %v6374_v52, %v6388_v1 }
 0xa73   : > { %6390 = vst [vmem:[#allocation24] sm:$0x3] %v6389_v23 }
 0xa74 PF: > { %s11565_s25 = sadd.s32 4294967295, %s7664_s29   ;;  %s11566_s4 = sld [smem:[#allocation251_spill]] }
 0xa75   : > { %p7126_p1 = scmp.eq.s32.totalorder %s11565_s25, 1  ;;  %s7687_s23 = smov [#allocation24]  }
 0xa76   : > { %s6399_s2 = sshll.u32 %s7687_s23, 4  ;;  %s6400_s2 = int_to_ptr.vmem [resolvable:$true] %s6399_s2 }
 0xa7a   : > { %s6401_s19 = sshll.u32 %s11566_s4, 4  ;;  %s6402_s19 = int_to_ptr.hbm [resolvable:$true] %s6401_s19 }
 0xa7b   : > { %7062 = dma.vmem_to_hbm [thread:$0]  (%p7126_p1), %s6400_s2, 32, %s6402_s19, [#allocation6]  }
 0xa7c   : > { %7643 = dma.done.wait (%p7126_p1), [#allocation6], 32  }
 0xa7d   : > { %7645 = vsyncadd (%p7126_p1), [#allocation6], 4294967264 }
 0xa7e PF: > { %s31_s29 = sadd.s32 1, %s7664_s29   ;;  %s11567_s16 = sld [smem:[#allocation37_spill]] }
 0xa7f   : > { %p28_p2 = scmp.ge.s32.totalorder %s31_s29, 4   ;;  %s11568_s24 = sld [smem:[#allocation35_spill]] }
 0xa80   : > { %s11569_s25 = smov %s7652_s26  ;;  %s11571_s27 = smov %s7660_s28 }
 0xa81   :  { %30 = sbr.rel (!%p28_p2) target bundleno = 16 (0x10), region = 209 }
 0xa84   : > { %s11570_s26 = smov %s11567_s16 }
 0xa85   : > { %s11572_s28 = smov %s11568_s24 }
 0xa86   :  { %6415 = vsyncpa [#allocation5], 1 }
 0xa87   :  { %6417 = vsyncpa [#allocation5 + $0x1], 1 }
 0xa88   :  { %6418 = vsyncpa [#allocation8], 1 }
 0xa89   :  { %6419 = vsyncpa [#allocation11], 1 }
 0xa8a   :  { %6420 = vsyncpa [#allocation14], 1 }
 0xa8b   :  { %6421 = vsyncpa [#allocation17], 1 }
 0xa8c   :  { %6422 = vsyncpa [#allocation20], 1 }
 0xa8d   :  { %6423 = vsyncpa [#allocation23], 1 }
 0xa8e   :  { %6424 = vsyncpa [#allocation6], 1 }
 0xa8f   :  { %6426 = vsyncpa [#allocation6 + $0x1], 1 }

</bundles_post_ra>
